<compile_context>
chip_gen: v7x
topology: tpu7x:2x2x1
jax: 0.10.0
libtpu: 0.0.40
codegen_flags: <defaults>
</compile_context>

<pallas_src>
import functools
import math

import jax
import jax.numpy as jnp
from jax.experimental import pallas as pl
from jax.experimental.pallas import tpu as pltpu


TM = 512     # row-block tile (sublane axis); multiple of 8
TN = 2048    # col-block tile (lane axis); multiple of 128


def _ranknet_mse_kernel(yt_col_ref, yp_col_ref, yt_row_ref, yp_row_ref,
                        rank_out_ref, mse_out_ref, acc_ref, *, n, tm, tn):
    i = pl.program_id(0)
    j = pl.program_id(1)
    nj = pl.num_programs(1)

    row_start = i * tm
    col_start = j * tn

    yt_col = yt_col_ref[...]            # (TM, 1)
    yp_col = yp_col_ref[...]            # (TM, 1)

    # ---- per-row-block init + MSE partial (once per i, at the first j) ------
    @pl.when(j == 0)
    def _():
        acc_ref[...] = jnp.zeros_like(acc_ref)
        row_ids = row_start + jax.lax.broadcasted_iota(jnp.int32, (tm, 1), 0)
        dd = yp_col - yt_col
        sq = jnp.where(row_ids < n, dd * dd, 0.0)
        msum = jnp.sum(sq, keepdims=True)                          # (1, 1)
        mse_out_ref[...] = jnp.broadcast_to(msum.reshape(1, 1, 1), (1, 1, 128))

    # ---- RankNet: only tiles intersecting the strict upper triangle ---------
    col_end = jnp.minimum(col_start + tn, n)        # exclusive, clipped to n
    compute_tile = jnp.logical_and(
        jnp.logical_and(row_start < n, col_start < n),
        col_end - 1 > row_start)

    @pl.when(compute_tile)
    def _():
        yt_row = yt_row_ref[...]        # (1, TN)
        yp_row = yp_row_ref[...]        # (1, TN)

        d = yp_col - yp_row             # (TM, TN) pred_diff
        t = yt_col - yt_row             # (TM, TN) true_diff

        # Unordered-pair loss:  loss(r,c) + loss(c,r)
        #   t > 0  -> 2*softplus(-d)
        #   t < 0  -> 2*softplus(+d)
        #   t == 0 -> |d| + 2*softplus(-|d|)
        tie = t == 0.0
        flip = jnp.logical_or(t > 0.0, jnp.logical_and(tie, d > 0.0))
        z = jnp.where(flip, -d, d)                  # d dead after this point
        az = jnp.abs(z)                             # == |d|
        sp = jnp.maximum(z, 0.0) + jnp.log(1.0 + jnp.exp(-az))   # softplus(z)
        pair = 2.0 * sp + jnp.where(tie, az, 0.0)

        # Masking is only needed on tiles that straddle the diagonal or contain
        # padded rows/cols; interior fully-above-diagonal tiles add directly.
        needs_mask = jnp.logical_or(
            col_start <= row_start + (tm - 1),                       # straddle
            jnp.logical_or(row_start + tm > n, col_start + tn > n))  # padding

        @pl.when(needs_mask)
        def _():
            row_ids = row_start + jax.lax.broadcasted_iota(jnp.int32, (tm, 1), 0)
            col_ids = col_start + jax.lax.broadcasted_iota(jnp.int32, (1, tn), 1)
            valid = jnp.logical_and(
                col_ids > row_ids,
                jnp.logical_and(row_ids < n, col_ids < n))
            acc_ref[...] += jnp.where(valid, pair, 0.0)

        @pl.when(jnp.logical_not(needs_mask))
        def _():
            acc_ref[...] += pair

    # ---- per-row-block finalize: emit partial sum for this i ----------------
    @pl.when(j == nj - 1)
    def _():
        rsum = jnp.sum(acc_ref[...], keepdims=True)                # (1, 1)
        rank_out_ref[...] = jnp.broadcast_to(rsum.reshape(1, 1, 1), (1, 1, 128))


def ranknet_mse_combined_loss(y_pred, y_true, mse_weight=0.8):
    """Pallas TPU implementation of RankNetMSECombinedLoss.forward."""
    y_pred = jnp.reshape(y_pred, (-1,)).astype(jnp.float32)
    y_true = jnp.reshape(y_true, (-1,)).astype(jnp.float32)
    n = y_pred.shape[0]

    step = math.lcm(TM, TN)
    np_ = max(step, ((n + step - 1) // step) * step)
    pad = np_ - n
    yp = jnp.pad(y_pred, (0, pad))
    yt = jnp.pad(y_true, (0, pad))

    yt_col = yt.reshape(np_, 1)
    yp_col = yp.reshape(np_, 1)
    yt_row = yt.reshape(1, np_)
    yp_row = yp.reshape(1, np_)

    ni = np_ // TM
    nj = np_ // TN

    kernel = functools.partial(_ranknet_mse_kernel, n=n, tm=TM, tn=TN)
    rank_parts, mse_parts = pl.pallas_call(
        kernel,
        out_shape=(jax.ShapeDtypeStruct((ni, 1, 128), jnp.float32),   # rank partials
                   jax.ShapeDtypeStruct((ni, 1, 128), jnp.float32)),  # mse partials
        grid_spec=pltpu.PrefetchScalarGridSpec(
            num_scalar_prefetch=0,
            grid=(ni, nj),
            in_specs=[
                pl.BlockSpec((TM, 1), lambda i, j: (i, 0)),   # y_true column view
                pl.BlockSpec((TM, 1), lambda i, j: (i, 0)),   # y_pred column view
                pl.BlockSpec((1, TN), lambda i, j: (0, j)),   # y_true row view
                pl.BlockSpec((1, TN), lambda i, j: (0, j)),   # y_pred row view
            ],
            out_specs=[
                pl.BlockSpec((1, 1, 128), lambda i, j: (i, 0, 0)),
                pl.BlockSpec((1, 1, 128), lambda i, j: (i, 0, 0)),
            ],
            scratch_shapes=[
                pltpu.VMEM((TM, TN), jnp.float32),   # resident per-row-block accumulator
            ],
        ),
        compiler_params=pltpu.CompilerParams(
            dimension_semantics=("parallel", "arbitrary"),
            vmem_limit_bytes=64 * 1024 * 1024),
    )(yt_col, yp_col, yt_row, yp_row)

    # Tiny final reduction in XLA: upper-triangle pair sums + analytic diagonal.
    rank_sum = jnp.sum(rank_parts[:, 0, 0]) + jnp.float32(float(n) * math.log(2.0))
    rank_loss = rank_sum / jnp.float32(n * n)          # numel(y_diff) = N^2
    mse_loss = jnp.sum(mse_parts[:, 0, 0]) / jnp.float32(n)
    return mse_weight * mse_loss + (1.0 - mse_weight) * rank_loss


def _reference(y_pred, y_true, mse_weight=0.8):
    """Pure-JAX reference mirroring the PyTorch module."""
    yp = jnp.reshape(y_pred, (-1,)).astype(jnp.float32)
    yt = jnp.reshape(y_true, (-1,)).astype(jnp.float32)
    n = yp.shape[0]

    mse = jnp.mean((yp - yt) ** 2)

    ypc = yp.reshape(-1, 1)
    ytc = yt.reshape(-1, 1)
    pred_diff = ypc - ypc.T
    true_diff = ytc - ytc.T
    y_diff = (true_diff > 0).astype(jnp.float32)
    p = jax.nn.sigmoid(pred_diff)
    loss = -y_diff * jnp.log(p) - (1.0 - y_diff) * jnp.log(1.0 - p)
    rank = loss.sum() / (n * n)
    return mse * mse_weight + rank * (1.0 - mse_weight)


if __name__ == "__main__":
    key = jax.random.PRNGKey(0)
    k1, k2, k3, k4 = jax.random.split(key, 4)

    # Small example consistent with the module: 2x8 predicted scores and
    # integer-valued relevance labels (includes ties so the tie branch matters).
    y_pred = jax.random.normal(k1, (2, 8), dtype=jnp.float32)
    y_true = jax.random.randint(k2, (2, 8), 0, 5).astype(jnp.float32)

    loss = ranknet_mse_combined_loss(y_pred, y_true, mse_weight=0.8)
    jax.block_until_ready(loss)
    ref = _reference(y_pred, y_true, mse_weight=0.8)
    assert jnp.allclose(loss, ref, atol=1e-5, rtol=1e-4), (loss, ref)

    # Second (still small) shape that exercises a multi-tile grid: unmasked
    # interior tiles, diagonal-straddling masked tiles and skipped
    # below-diagonal tiles, plus the per-row-block partial outputs.
    y_pred2 = jax.random.normal(k3, (64, 64), dtype=jnp.float32)
    y_true2 = jax.random.randint(k4, (64, 64), 0, 5).astype(jnp.float32)
    loss2 = ranknet_mse_combined_loss(y_pred2, y_true2, mse_weight=0.8)
    jax.block_until_ready(loss2)
    ref2 = _reference(y_pred2, y_true2, mse_weight=0.8)
    assert jnp.allclose(loss2, ref2, atol=1e-5, rtol=1e-4), (loss2, ref2)

    print("KERNEL_OK")
</pallas_src>

<mosaic_0001>
module attributes {stable_mosaic.version = 11 : i64} {
  func.func @_ranknet_mse_kernel(%arg0: i32, %arg1: i32, %arg2: memref<512x1xf32, #tpu.memory_space<vmem>>, %arg3: memref<512x1xf32, #tpu.memory_space<vmem>>, %arg4: memref<1x2048xf32, #tpu.memory_space<vmem>>, %arg5: memref<1x2048xf32, #tpu.memory_space<vmem>>, %arg6: memref<1x1x128xf32, #tpu.memory_space<vmem>>, %arg7: memref<1x1x128xf32, #tpu.memory_space<vmem>>, %arg8: memref<512x2048xf32, #tpu.memory_space<vmem>>) attributes {dimension_semantics = [#tpu.dimension_semantics<parallel>, #tpu.dimension_semantics<arbitrary>], iteration_bounds = array<i64: 4, 1>, scalar_prefetch = 0 : i64, scratch_operands = 1 : i64, tpu.core_type = #tpu.core_type<tc>, window_params = [{transform_indices = @transform_0, window_bounds = array<i64: 512, 1>}, {transform_indices = @transform_1, window_bounds = array<i64: 512, 1>}, {transform_indices = @transform_2, window_bounds = array<i64: 1, 2048>}, {transform_indices = @transform_3, window_bounds = array<i64: 1, 2048>}, {transform_indices = @transform_4, window_bounds = array<i64: 1, 1, 128>}, {transform_indices = @transform_5, window_bounds = array<i64: 1, 1, 128>}]} {
    %c512_i32 = arith.constant 512 : i32
    %0 = arith.muli %arg0, %c512_i32 : i32
    %c2048_i32 = arith.constant 2048 : i32
    %1 = arith.muli %arg1, %c2048_i32 : i32
    %c0 = arith.constant 0 : index
    %c0_0 = arith.constant 0 : index
    %2 = vector.load %arg2[%c0, %c0_0] : memref<512x1xf32, #tpu.memory_space<vmem>>, vector<512x1xf32>
    %c0_1 = arith.constant 0 : index
    %c0_2 = arith.constant 0 : index
    %3 = vector.load %arg3[%c0_1, %c0_2] : memref<512x1xf32, #tpu.memory_space<vmem>>, vector<512x1xf32>
    %c0_i32 = arith.constant 0 : i32
    %4 = arith.cmpi eq, %arg1, %c0_i32 : i32
    %5 = arith.extui %4 : i1 to i32
    %c0_i32_3 = arith.constant 0 : i32
    %6 = arith.cmpi ne, %5, %c0_i32_3 : i32
    scf.if %6 {
      %cst = arith.constant 0.000000e+00 : f32
      %20 = vector.broadcast %cst : f32 to vector<512x2048xf32>
      %c0_10 = arith.constant 0 : index
      %c0_11 = arith.constant 0 : index
      %21 = vector.load %arg8[%c0_10, %c0_11] : memref<512x2048xf32, #tpu.memory_space<vmem>>, vector<512x2048xf32>
      tpu.vector_store %arg8[%c0_10, %c0_11], %20 {strides = array<i32>} : memref<512x2048xf32, #tpu.memory_space<vmem>>, vector<512x2048xf32>,
      %22 = tpu.iota {dimensions = array<i32: 0>} : vector<512x1xi32>
      %23 = vector.broadcast %0 : i32 to vector<512x1xi32>
      %24 = arith.addi %23, %22 : vector<512x1xi32>
      %25 = arith.subf %3, %2 : vector<512x1xf32>
      %c16_i32_12 = arith.constant 16 : i32
      %26 = vector.broadcast %c16_i32_12 : i32 to vector<512x1xi32>
      %27 = arith.cmpi slt, %24, %26 : vector<512x1xi32>
      %28 = arith.mulf %25, %25 : vector<512x1xf32>
      %cst_13 = arith.constant 0.000000e+00 : f32
      %29 = vector.broadcast %cst_13 : f32 to vector<512x1xf32>
      %30 = arith.select %27, %28, %29 : vector<512x1xi1>, vector<512x1xf32>
      %31 = vector.shape_cast %30 : vector<512x1xf32> to vector<1x512x1xf32>
      %cst_14 = arith.constant dense<0.000000e+00> : vector<1xf32>
      %32 = vector.multi_reduction <add>, %31, %cst_14 [1, 2] : vector<1x512x1xf32> to vector<1xf32>
      %33 = vector.shape_cast %32 : vector<1xf32> to vector<1x1x1xf32>
      %34 = vector.extract %33[0, 0, 0] : f32 from vector<1x1x1xf32>
      %35 = vector.broadcast %34 : f32 to vector<1x1xf32>
      %36 = vector.shape_cast %35 : vector<1x1xf32> to vector<1x1x1xf32>
      %37 = vector.shape_cast %36 : vector<1x1x1xf32> to vector<1x1x1xf32>
      %38 = vector.broadcast %37 : vector<1x1x1xf32> to vector<1x1x128xf32>
      %c0_15 = arith.constant 0 : index
      %c0_16 = arith.constant 0 : index
      %c0_17 = arith.constant 0 : index
      %39 = vector.load %arg7[%c0_15, %c0_16, %c0_17] : memref<1x1x128xf32, #tpu.memory_space<vmem>>, vector<1x1x128xf32>
      tpu.vector_store %arg7[%c0_15, %c0_16, %c0_17], %38 {strides = array<i32>} : memref<1x1x128xf32, #tpu.memory_space<vmem>>, vector<1x1x128xf32>,
    } else {
    }
    %c2048_i32_4 = arith.constant 2048 : i32
    %7 = arith.addi %1, %c2048_i32_4 : i32
    %c16_i32 = arith.constant 16 : i32
    %8 = arith.minsi %7, %c16_i32 : i32
    %c16_i32_5 = arith.constant 16 : i32
    %9 = arith.cmpi slt, %0, %c16_i32_5 : i32
    %c16_i32_6 = arith.constant 16 : i32
    %10 = arith.cmpi slt, %1, %c16_i32_6 : i32
    %11 = arith.andi %9, %10 : i1
    %c1_i32 = arith.constant 1 : i32
    %12 = arith.subi %8, %c1_i32 : i32
    %13 = arith.cmpi sgt, %12, %0 : i32
    %14 = arith.andi %11, %13 : i1
    %15 = arith.extui %14 : i1 to i32
    %c0_i32_7 = arith.constant 0 : i32
    %16 = arith.cmpi ne, %15, %c0_i32_7 : i32
    scf.if %16 {
      %c0_10 = arith.constant 0 : index
      %c0_11 = arith.constant 0 : index
      %20 = vector.load %arg4[%c0_10, %c0_11] : memref<1x2048xf32, #tpu.memory_space<vmem>>, vector<1x2048xf32>
      %c0_12 = arith.constant 0 : index
      %c0_13 = arith.constant 0 : index
      %21 = vector.load %arg5[%c0_12, %c0_13] : memref<1x2048xf32, #tpu.memory_space<vmem>>, vector<1x2048xf32>
      %22 = vector.broadcast %3 : vector<512x1xf32> to vector<512x2048xf32>
      %23 = vector.broadcast %21 : vector<1x2048xf32> to vector<512x2048xf32>
      %24 = arith.subf %22, %23 : vector<512x2048xf32>
      %25 = vector.broadcast %2 : vector<512x1xf32> to vector<512x2048xf32>
      %26 = vector.broadcast %20 : vector<1x2048xf32> to vector<512x2048xf32>
      %27 = arith.subf %25, %26 : vector<512x2048xf32>
      %cst = arith.constant 0.000000e+00 : f32
      %28 = vector.broadcast %cst : f32 to vector<512x2048xf32>
      %29 = arith.cmpf oeq, %27, %28 : vector<512x2048xf32>
      %cst_14 = arith.constant 0.000000e+00 : f32
      %30 = vector.broadcast %cst_14 : f32 to vector<512x2048xf32>
      %31 = arith.cmpf ogt, %27, %30 : vector<512x2048xf32>
      %cst_15 = arith.constant 0.000000e+00 : f32
      %32 = vector.broadcast %cst_15 : f32 to vector<512x2048xf32>
      %33 = arith.cmpf ogt, %24, %32 : vector<512x2048xf32>
      %34 = arith.andi %29, %33 : vector<512x2048xi1>
      %35 = arith.ori %31, %34 : vector<512x2048xi1>
      %cst_16 = arith.constant 0.000000e+00 : f32
      %36 = vector.broadcast %cst_16 : f32 to vector<512x2048xf32>
      %37 = arith.subf %36, %24 : vector<512x2048xf32>
      %38 = arith.select %35, %37, %24 : vector<512x2048xi1>, vector<512x2048xf32>
      %39 = math.absf %38 : vector<512x2048xf32>
      %cst_17 = arith.constant 0.000000e+00 : f32
      %40 = vector.broadcast %cst_17 : f32 to vector<512x2048xf32>
      %41 = arith.maximumf %38, %40 : vector<512x2048xf32>
      %cst_18 = arith.constant 0.000000e+00 : f32
      %42 = vector.broadcast %cst_18 : f32 to vector<512x2048xf32>
      %43 = arith.subf %42, %39 : vector<512x2048xf32>
      %44 = math.exp %43 : vector<512x2048xf32>
      %cst_19 = arith.constant 1.000000e+00 : f32
      %45 = vector.broadcast %cst_19 : f32 to vector<512x2048xf32>
      %46 = arith.addf %45, %44 : vector<512x2048xf32>
      %47 = math.log %46 : vector<512x2048xf32>
      %48 = arith.addf %41, %47 : vector<512x2048xf32>
      %cst_20 = arith.constant 2.000000e+00 : f32
      %49 = vector.broadcast %cst_20 : f32 to vector<512x2048xf32>
      %50 = arith.mulf %49, %48 : vector<512x2048xf32>
      %cst_21 = arith.constant 0.000000e+00 : f32
      %51 = vector.broadcast %cst_21 : f32 to vector<512x2048xf32>
      %52 = arith.select %29, %39, %51 : vector<512x2048xi1>, vector<512x2048xf32>
      %53 = arith.addf %50, %52 : vector<512x2048xf32>
      %c511_i32 = arith.constant 511 : i32
      %54 = arith.addi %0, %c511_i32 : i32
      %55 = arith.cmpi sle, %1, %54 : i32
      %c512_i32_22 = arith.constant 512 : i32
      %56 = arith.addi %0, %c512_i32_22 : i32
      %c16_i32_23 = arith.constant 16 : i32
      %57 = arith.cmpi sgt, %56, %c16_i32_23 : i32
      %c2048_i32_24 = arith.constant 2048 : i32
      %58 = arith.addi %1, %c2048_i32_24 : i32
      %c16_i32_25 = arith.constant 16 : i32
      %59 = arith.cmpi sgt, %58, %c16_i32_25 : i32
      %60 = arith.ori %57, %59 : i1
      %61 = arith.ori %55, %60 : i1
      %62 = arith.extui %61 : i1 to i32
      %c0_i32_26 = arith.constant 0 : i32
      %63 = arith.cmpi ne, %62, %c0_i32_26 : i32
      scf.if %63 {
        %67 = tpu.iota {dimensions = array<i32: 0>} : vector<512x1xi32>
        %68 = vector.broadcast %0 : i32 to vector<512x1xi32>
        %69 = arith.addi %68, %67 : vector<512x1xi32>
        %70 = tpu.iota {dimensions = array<i32: 1>} : vector<1x2048xi32>
        %71 = vector.broadcast %1 : i32 to vector<1x2048xi32>
        %72 = arith.addi %71, %70 : vector<1x2048xi32>
        %73 = vector.broadcast %72 : vector<1x2048xi32> to vector<512x2048xi32>
        %74 = vector.broadcast %69 : vector<512x1xi32> to vector<512x2048xi32>
        %75 = arith.cmpi sgt, %73, %74 : vector<512x2048xi32>
        %c16_i32_28 = arith.constant 16 : i32
        %76 = vector.broadcast %c16_i32_28 : i32 to vector<512x1xi32>
        %77 = arith.cmpi slt, %69, %76 : vector<512x1xi32>
        %c16_i32_29 = arith.constant 16 : i32
        %78 = vector.broadcast %c16_i32_29 : i32 to vector<1x2048xi32>
        %79 = arith.cmpi slt, %72, %78 : vector<1x2048xi32>
        %80 = vector.broadcast %77 : vector<512x1xi1> to vector<512x2048xi1>
        %81 = vector.broadcast %79 : vector<1x2048xi1> to vector<512x2048xi1>
        %82 = arith.andi %80, %81 : vector<512x2048xi1>
        %83 = arith.andi %75, %82 : vector<512x2048xi1>
        %c0_30 = arith.constant 0 : index
        %c0_31 = arith.constant 0 : index
        %84 = vector.load %arg8[%c0_30, %c0_31] : memref<512x2048xf32, #tpu.memory_space<vmem>>, vector<512x2048xf32>
        %cst_32 = arith.constant 0.000000e+00 : f32
        %85 = vector.broadcast %cst_32 : f32 to vector<512x2048xf32>
        %86 = arith.select %83, %53, %85 : vector<512x2048xi1>, vector<512x2048xf32>
        %87 = arith.addf %84, %86 : vector<512x2048xf32>
        %c0_33 = arith.constant 0 : index
        %c0_34 = arith.constant 0 : index
        %88 = vector.load %arg8[%c0_33, %c0_34] : memref<512x2048xf32, #tpu.memory_space<vmem>>, vector<512x2048xf32>
        tpu.vector_store %arg8[%c0_33, %c0_34], %87 {strides = array<i32>} : memref<512x2048xf32, #tpu.memory_space<vmem>>, vector<512x2048xf32>,
      } else {
      }
      %true = arith.constant true
      %64 = arith.xori %61, %true : i1
      %65 = arith.extui %64 : i1 to i32
      %c0_i32_27 = arith.constant 0 : i32
      %66 = arith.cmpi ne, %65, %c0_i32_27 : i32
      scf.if %66 {
        %c0_28 = arith.constant 0 : index
        %c0_29 = arith.constant 0 : index
        %67 = vector.load %arg8[%c0_28, %c0_29] : memref<512x2048xf32, #tpu.memory_space<vmem>>, vector<512x2048xf32>
        %68 = arith.addf %67, %53 : vector<512x2048xf32>
        %c0_30 = arith.constant 0 : index
        %c0_31 = arith.constant 0 : index
        %69 = vector.load %arg8[%c0_30, %c0_31] : memref<512x2048xf32, #tpu.memory_space<vmem>>, vector<512x2048xf32>
        tpu.vector_store %arg8[%c0_30, %c0_31], %68 {strides = array<i32>} : memref<512x2048xf32, #tpu.memory_space<vmem>>, vector<512x2048xf32>,
      } else {
      }
    } else {
    }
    %c0_i32_8 = arith.constant 0 : i32
    %17 = arith.cmpi eq, %arg1, %c0_i32_8 : i32
    %18 = arith.extui %17 : i1 to i32
    %c0_i32_9 = arith.constant 0 : i32
    %19 = arith.cmpi ne, %18, %c0_i32_9 : i32
    scf.if %19 {
      %c0_10 = arith.constant 0 : index
      %c0_11 = arith.constant 0 : index
      %20 = vector.load %arg8[%c0_10, %c0_11] : memref<512x2048xf32, #tpu.memory_space<vmem>>, vector<512x2048xf32>
      %21 = vector.shape_cast %20 : vector<512x2048xf32> to vector<1x512x2048xf32>
      %cst = arith.constant dense<0.000000e+00> : vector<1xf32>
      %22 = vector.multi_reduction <add>, %21, %cst [1, 2] : vector<1x512x2048xf32> to vector<1xf32>
      %23 = vector.shape_cast %22 : vector<1xf32> to vector<1x1x1xf32>
      %24 = vector.extract %23[0, 0, 0] : f32 from vector<1x1x1xf32>
      %25 = vector.broadcast %24 : f32 to vector<1x1xf32>
      %26 = vector.shape_cast %25 : vector<1x1xf32> to vector<1x1x1xf32>
      %27 = vector.shape_cast %26 : vector<1x1x1xf32> to vector<1x1x1xf32>
      %28 = vector.broadcast %27 : vector<1x1x1xf32> to vector<1x1x128xf32>
      %c0_12 = arith.constant 0 : index
      %c0_13 = arith.constant 0 : index
      %c0_14 = arith.constant 0 : index
      %29 = vector.load %arg6[%c0_12, %c0_13, %c0_14] : memref<1x1x128xf32, #tpu.memory_space<vmem>>, vector<1x1x128xf32>
      tpu.vector_store %arg6[%c0_12, %c0_13, %c0_14], %28 {strides = array<i32>} : memref<1x1x128xf32, #tpu.memory_space<vmem>>, vector<1x1x128xf32>,
    } else {
    }
    return
  }
  func.func @transform_0(%arg0: i32, %arg1: i32) -> (i32, i32) {
    %c0_i32 = arith.constant 0 : i32
    %c0_i32_0 = arith.constant 0 : i32
    return %arg0, %c0_i32 : i32, i32
  }
  func.func @transform_1(%arg0: i32, %arg1: i32) -> (i32, i32) {
    %c0_i32 = arith.constant 0 : i32
    %c0_i32_0 = arith.constant 0 : i32
    return %arg0, %c0_i32 : i32, i32
  }
  func.func @transform_2(%arg0: i32, %arg1: i32) -> (i32, i32) {
    %c0_i32 = arith.constant 0 : i32
    %c0_i32_0 = arith.constant 0 : i32
    return %c0_i32, %arg1 : i32, i32
  }
  func.func @transform_3(%arg0: i32, %arg1: i32) -> (i32, i32) {
    %c0_i32 = arith.constant 0 : i32
    %c0_i32_0 = arith.constant 0 : i32
    return %c0_i32, %arg1 : i32, i32
  }
  func.func @transform_4(%arg0: i32, %arg1: i32) -> (i32, i32, i32) {
    %c0_i32 = arith.constant 0 : i32
    %c0_i32_0 = arith.constant 0 : i32
    %c0_i32_1 = arith.constant 0 : i32
    return %arg0, %c0_i32, %c0_i32_0 : i32, i32, i32
  }
  func.func @transform_5(%arg0: i32, %arg1: i32) -> (i32, i32, i32) {
    %c0_i32 = arith.constant 0 : i32
    %c0_i32_0 = arith.constant 0 : i32
    %c0_i32_1 = arith.constant 0 : i32
    return %arg0, %c0_i32, %c0_i32_0 : i32, i32, i32
  }
}

</mosaic_0001>

<bundles_post_ra>
// kernel: tpu_custom_call.1
= control target key start
LH: loop header
LB: loop body
LE: loop exit
PB: predicated region body
PF: predicated region fallthrough
CT: control target
= control target key end

     0   :  { %s44162_s0 = inlined_call_operand.hbm [shape: f32[2048,1], index: 0, kind: input, shape index: {}]   ;;  %s44163_s1 = inlined_call_operand.hbm [shape: f32[2048,1], index: 1, kind: input, shape index: {}]   ;;  %s44164_s2 = inlined_call_operand.hbm [shape: f32[1,2048], index: 2, kind: input, shape index: {}]   ;;  %s44165_s3 = inlined_call_operand.hbm [shape: f32[1,2048], index: 3, kind: input, shape index: {}]   ;;  %s44166_s4 = inlined_call_operand.hbm [shape: f32[4,1,128], index: 4, kind: output, shape index: {0}]   ;;  %s44167_s5 = inlined_call_operand.hbm [shape: f32[4,1,128], index: 5, kind: output, shape index: {1}]  }
   0x1   :  { %44578 = sst [smem:[#allocation248_spill]] %s44162_s0 }
   0x2   :  { %44579 = sst [smem:[#allocation249_spill]] %s44164_s2 }
   0x3   :  { %44580 = sst [smem:[#allocation250_spill]] %s44165_s3 }
   0x4   :  { %11 = vsyncpa [#allocation4], 0 }
   0x5   :  { %13 = vsyncpa [#allocation4 + $0x1], 0 }
   0x6   :  { %14 = vsyncpa [#allocation7], 0 }
   0x7   :  { %16 = vsyncpa [#allocation7 + $0x1], 0 }
   0x8   :  { %17 = vsyncpa [#allocation10], 0 }
   0x9   :  { %18 = vsyncpa [#allocation5], 0 }
   0xa   :  { %20 = vsyncpa [#allocation5 + $0x1], 0 }
   0xb   :  { %21 = vsyncpa [#allocation13], 0 }
   0xc   :  { %23 = vsyncpa [#allocation13 + $0x1], 0  ;;  %s37925_s18 = smov 0   ;;  %s37927_s19 = smov 0  }
   0xd   :  { %s37929_s20 = smov 0   ;;  %s37931_s21 = smov 0  }
   0xe   :  { %s37933_s22 = smov 0   ;;  %s37935_s23 = smov 0  }
   0xf LB: > { %s37956_s24 = sadd.s32 4294967295, %s37883_s23   ;;  %s37254_s25 = sadd.s32 4294967294, %s37883_s23   ;;  %s37883_s23 = sphi %s37935_s23, %s29_s23   ;;  %s37879_s22 = sphi %s37933_s22, %s45765_s22   ;;  %s37875_s21 = sphi %s37931_s21, %s45764_s21   ;;  %s37871_s20 = sphi %s37929_s20, %s45763_s20   ;;  %s37867_s19 = sphi %s37927_s19, %s45762_s19   ;;  %s37863_s18 = sphi %s37925_s18, %s45761_s18  }
  0x10   : > { %s48_s26 = sadd.s32 1, %s37871_s20  ;;  %p55_p0 = scmp.ne.s32.totalorder %s37871_s20, %s37867_s19 }
  0x11   : > { %p56_p1 = scmp.eq.s32.totalorder %s37883_s23, 0  ;;  %p61_p2 = scmp.ne.s32.totalorder %s37867_s19, %s37863_s18 }
  0x12   : > { %p44168_p3 = scmp.eq.s32.totalorder %s37956_s24, 0  ;;  %p163_p4 = scmp.eq.s32.totalorder %s37956_s24, 3 }
  0x13   : > { %p37967_p5 = por %p56_p1, %p55_p0  ;;  %p169_p6 = scmp.eq.s32.totalorder %s37254_s25, 3 }
  0x14   : > { %p37973_p7 = por %p44168_p3, %p61_p2  ;;  %p37977_p8 = por %p163_p4, %p55_p0 }
  0x15   : > { %p37981_p9 = por %p169_p6, %p61_p2  ;;  %p37255_p10 = scmp.ge.s32.totalorder %s37883_s23, 1 }
  0x16   : > { %s44582_s28 = scalar_select %p37973_p7, 1, 0 }
  0x17   : > { %s44583_s29 = scalar_select %p37977_p8, 1, 0 }
  0x18   : > { %s44584_s30 = scalar_select %p37981_p9, 1, 0 }
  0x19   : > { %p202_p11 = scmp.lt.s32.totalorder %s37883_s23, 5  ;;  %s37885_s7 = smov [#allocation8]  }
  0x1a   : > { %s218_s8 = sshll.u32 %s37885_s7, 4  ;;  %p37324_p13 = scmp.lt.s32.totalorder %s37883_s23, 4  ;;  %s219_s8 = int_to_ptr.vmem [resolvable:$true] %s218_s8 }
  0x1b   : > { %p37987_p12 = pnand %p37255_p10, %p202_p11  ;;  %s37886_s10 = smov [#allocation9]  }
  0x1c   : > { %p37996_p1 = pnand %p37324_p13, %p37967_p5  ;;  %s232_s11 = sshll.u32 %s37886_s10, 4  ;;  %s38006_s11 = int_to_ptr.vmem [resolvable:$true] %s232_s11 }
  0x1d   : > { %s44585_s6 = scalar_select %p37987_p12, 1, 0 }
  0x1e   : > { %p37301_p0 = pneg %p37987_p12  ;;  %s44588_s2 = sld [smem:[#allocation249_spill]] }
  0x1f   : > { %s44586_s9 = scalar_select %p37996_p1, 1, 0 }
  0x20   : > { %p38002_p2 = pnand %p37301_p0, %p44168_p3 }
  0x22   : > { %p37643_p5 = pneg %p38002_p2 }
  0x24   : > { %s37641_s15 = scalar_lea.hbm %s44588_s2, 256 }
  0x25   : > { %p37642_p4 = scmp.ne.s32.totalorder %s44588_s2, %s37641_s15  ;;  %p37648_p11 = scmp.lt.u32.totalorder %s37641_s15, %s44588_s2 }
  0x27   : > { %p37644_p6 = pnand %p37643_p5, %p37642_p4 }
  0x29   : > { %p37645_p10 = pneg %p37644_p6 }
  0x2b   : > { %p37650_p13 = pnand %p37648_p11, %p37645_p10 }
  0x2d   : > { %37653 = shalt.err (!%p37650_p13)
}
  0x2e   : > { %s37654_s7 = scalar_lea.vmem %s219_s8, 256  ;;  %p37662_p8 = scmp.lt.s32.totalorder %s219_s8, %s219_s8 }
  0x2f   : > { %p37655_p0 = scmp.ne.s32.totalorder %s219_s8, %s37654_s7  ;;  %p37663_p7 = scmp.lt.s32.totalorder %s37654_s7, %s37654_s7 }
  0x31   : > { %p37657_p3 = pnand %p37655_p0, %p37643_p5  ;;  %p37664_p12 = por %p37663_p7, %p37662_p8 }
  0x33   : > { %p37658_p9 = pneg %p37657_p3 }
  0x35   : > { %p37665_p1 = pnand %p37664_p12, %p37658_p9 }
  0x37   : > { %37668 = shalt.err (!%p37665_p1)
}
  0x38   : > { %37304 = dma.hbm_to_vmem [thread:$0]  (!%p38002_p2), %s44588_s2, 256, %s219_s8, [#allocation7]  }
  0x39   : > { %s44589_s3 = sld [smem:[#allocation250_spill]] }
  0x3f   : > { %s37669_s16 = scalar_lea.hbm %s44589_s3, 256 }
  0x40   : > { %p37670_p3 = scmp.ne.s32.totalorder %s44589_s3, %s37669_s16  ;;  %p37676_p9 = scmp.lt.u32.totalorder %s37669_s16, %s44589_s3 }
  0x42   : > { %p37672_p7 = pnand %p37670_p3, %p37643_p5 }
  0x44   : > { %p37673_p8 = pneg %p37672_p7 }
  0x46   : > { %p37678_p12 = pnand %p37676_p9, %p37673_p8 }
  0x48   : > { %37681 = shalt.err (!%p37678_p12)
}
  0x49   : > { %s37682_s8 = scalar_lea.vmem %s38006_s11, 256  ;;  %p37690_p10 = scmp.lt.s32.totalorder %s38006_s11, %s38006_s11 }
  0x4a   : > { %p37683_p1 = scmp.ne.s32.totalorder %s38006_s11, %s37682_s8  ;;  %p37691_p11 = scmp.lt.s32.totalorder %s37682_s8, %s37682_s8 }
  0x4c   : > { %p37685_p4 = pnand %p37683_p1, %p37643_p5  ;;  %p37692_p13 = por %p37691_p11, %p37690_p10 }
  0x4e   : > { %p37686_p6 = pneg %p37685_p4 }
  0x50   : > { %p37693_p0 = pnand %p37692_p13, %p37686_p6 }
  0x52   : > { %37696 = shalt.err (!%p37693_p0)
}
  0x53   : > { %37307 = dma.hbm_to_vmem [thread:$0]  (!%p38002_p2), %s44589_s3, 256, %s38006_s11, [#allocation10]  }
  0x54   : > { %s41_s14 = sadd.s32 1, %s37879_s22  ;;  %s243_s15 = sand.u32 1, %s37871_s20  }
  0x55   : > { %p43_p5 = scmp.ge.s32.totalorder %s41_s14, 4  ;;  %s38057_s16 = sshll.u32 %s243_s15, 9 }
  0x56   : > { %s44173_s12 = sshll.u32 %s37879_s22, 13  ;;  %s44591_s0 = sld [smem:[#allocation248_spill]] }
  0x57   : > { %s45767_s14 = smov (%p43_p5, %s41_s14), 0  ;;  %s247_s7 = scalar_lea.vmem [#allocation3], %s38057_s16 }
  0x58   : > { %44590 = sst [smem:[#allocation20_spill]] %s45767_s14  ;;  %s45_s11 = ssub.s32 %s37879_s22, %s45767_s14 }
  0x59   : > { %s254_s8 = sshll.u32 %s247_s7, 4  ;;  %p46_p2 = scmp.eq.s32.totalorder %s45_s11, 0  ;;  %s38072_s8 = int_to_ptr.vmem [resolvable:$true] %s254_s8 }
  0x5a   : > { %s38079_s13 = scalar_lea.sflag [#allocation4], %s243_s15  ;;  %p44592_p7 = scmp.ne.s32.totalorder %s44586_s9, 0 }
  0x5b   : > { %s38077_s10 = scalar_select %p46_p2, %s37871_s20, %s48_s26  }
  0x5c   : > { %s38067_s27 = scalar_lea.hbm %s44591_s0, %s44173_s12  ;;  %p37699_p8 = pneg %p44592_p7 }
  0x5d   : > { %s37697_s2 = scalar_lea.hbm %s38067_s27, 8192  ;;  %s37702_s7 = scalar_lea.hbm %s44591_s0, 32768 }
  0x5e   : > { %p37698_p3 = scmp.ne.s32.totalorder %s38067_s27, %s37697_s2  ;;  %p37703_p1 = scmp.lt.u32.totalorder %s38067_s27, %s44591_s0 }
  0x5f   : > { %p37704_p4 = scmp.lt.u32.totalorder %s37702_s7, %s37697_s2  ;;  %p37706_p10 = scmp.lt.u32.totalorder %s37697_s2, %s38067_s27 }
  0x60   : > { %p37700_p9 = pnand %p37699_p8, %p37698_p3 }
  0x61   : > { %p37705_p6 = por %p37704_p4, %p37703_p1 }
  0x62   : > { %p37701_p12 = pneg %p37700_p9 }
  0x63   : > { %p37707_p11 = por %p37706_p10, %p37705_p6 }
  0x65   : > { %p37708_p13 = pnand %p37707_p11, %p37701_p12 }
  0x67   : > { %37711 = shalt.err (!%p37708_p13)
}
  0x68   : > { %s37712_s26 = scalar_lea.vmem %s38072_s8, 8192  ;;  %s37887_s15 = smov [#allocation3]  }
  0x69   : > { %p37713_p0 = scmp.ne.s32.totalorder %s38072_s8, %s37712_s26  ;;  %s37717_s17 = sshll.u32 %s37887_s15, 4  ;;  %s37718_s17 = int_to_ptr.vmem [resolvable:$false] %s37717_s17 }
  0x6a   : > { %s37719_s12 = scalar_lea.vmem %s37718_s17, 16384  ;;  %p37720_p3 = scmp.lt.s32.totalorder %s38072_s8, %s37718_s17 }
  0x6b   : > { %p37715_p5 = pnand %p37713_p0, %p37699_p8  ;;  %p37721_p9 = scmp.lt.s32.totalorder %s37719_s12, %s37712_s26 }
  0x6d   : > { %p37716_p2 = pneg %p37715_p5  ;;  %p37722_p1 = por %p37721_p9, %p37720_p3 }
  0x6f   : > { %p37723_p4 = pnand %p37722_p1, %p37716_p2 }
  0x71   : > { %37726 = shalt.err (!%p37723_p4)
}
  0x72   : > { %s37888_s2 = smov 128   ;;  %s37889_s25 = smov 8  }
  0x73   : > { %37311 = dma.hbm_to_vmem [thread:$0]  (!%p44592_p7), %s38067_s27, 8192, %s38072_s8, %s38079_s13, %s37888_s2, %s37888_s2, %s37889_s25  }
  0x74   : > { %s44593_s7 = sshll.u32 %s37879_s22, 13  ;;  %s268_s17 = scalar_lea.vmem [#allocation6], %s38057_s16 }
  0x75   : > { %s38115_s15 = scalar_lea.hbm %s44163_s1, %s44593_s7  ;;  %s275_s12 = sshll.u32 %s268_s17, 4  ;;  %s38119_s12 = int_to_ptr.vmem [resolvable:$true] %s275_s12 }
  0x76   : > { %s264_s0 = sand.u32 1, %s37883_s23   ;;  %s37727_s14 = scalar_lea.hbm %s38115_s15, 8192 }
  0x77   : > { %s38121_s3 = scalar_lea.sflag [#allocation7], %s264_s0  ;;  %p37728_p12 = scmp.ne.s32.totalorder %s38115_s15, %s37727_s14 }
  0x78   : > { %s37732_s13 = scalar_lea.hbm %s44163_s1, 32768  ;;  %p37733_p11 = scmp.lt.u32.totalorder %s38115_s15, %s44163_s1 }
  0x79   : > { %p37730_p6 = pnand %p37728_p12, %p37699_p8  ;;  %p37734_p13 = scmp.lt.u32.totalorder %s37732_s13, %s37727_s14 }
  0x7a   : > { %p37736_p5 = scmp.lt.u32.totalorder %s37727_s14, %s38115_s15 }
  0x7b   : > { %p37731_p10 = pneg %p37730_p6  ;;  %p37735_p0 = por %p37734_p13, %p37733_p11 }
  0x7d   : > { %p37737_p2 = por %p37736_p5, %p37735_p0 }
  0x7f   : > { %p37738_p3 = pnand %p37737_p2, %p37731_p10 }
  0x81   : > { %37741 = shalt.err (!%p37738_p3)
}
  0x82   : > { %s37742_s0 = scalar_lea.vmem %s38119_s12, 8192  ;;  %s37890_s16 = smov [#allocation6]  }
  0x83   : > { %p37743_p9 = scmp.ne.s32.totalorder %s38119_s12, %s37742_s0  ;;  %s37747_s26 = sshll.u32 %s37890_s16, 4  ;;  %s37748_s26 = int_to_ptr.vmem [resolvable:$false] %s37747_s26 }
  0x84   : > { %s37749_s17 = scalar_lea.vmem %s37748_s26, 16384  ;;  %p37750_p12 = scmp.lt.s32.totalorder %s38119_s12, %s37748_s26 }
  0x85   : > { %p37745_p1 = pnand %p37743_p9, %p37699_p8  ;;  %p37751_p6 = scmp.lt.s32.totalorder %s37749_s17, %s37742_s0 }
  0x87   : > { %p37746_p4 = pneg %p37745_p1  ;;  %p37752_p11 = por %p37751_p6, %p37750_p12 }
  0x89   : > { %p37753_p13 = pnand %p37752_p11, %p37746_p4 }
  0x8b   : > { %37756 = shalt.err (!%p37753_p13)
}
  0x8c   : > { %37314 = dma.hbm_to_vmem [thread:$0]  (!%p44592_p7), %s38115_s15, 8192, %s38119_s12, %s38121_s3, %s37888_s2, %s37888_s2, %s37889_s25  }
  0x8d   : > { %p44594_p8 = scmp.ne.s32.totalorder %s44585_s6, 0 }
  0x8f   : > { %287 = sbr.rel (%p44594_p8) target bundleno = 4048 (0xfd0), region = 36 }
  0x96   : > { %s38153_s14 = sand.u32 1, %s37867_s19   ;;  %p44595_p10 = scmp.ne.s32.totalorder %s44582_s28, 0 }
  0x97   : > { %s37266_s27 = sshll.u32 %s38153_s14, 9  ;;  %s290_s8 = scalar_lea.sflag [#allocation4], %s38153_s14 }
  0x98   : > { %s38157_s13 = scalar_lea.vmem [#allocation3], %s37266_s27 }
  0x99   : > { %37838 = dma.done.wait (%p44595_p10), %s290_s8, 8192  }
  0x9a   : > { %37840 = vsyncadd (%p44595_p10), %s290_s8, 4294959104  ;;  %s298_s3 = sand.u32 1, %s37956_s24   ;;  %s38164_s9 = scalar_lea.vmem [#allocation6], %s37266_s27 }
  0x9b   : > { %s299_s6 = scalar_lea.sflag [#allocation7], %s298_s3 }
  0x9c   : > { %37842 = dma.done.wait (%p44595_p10), %s299_s6, 8192  }
  0x9d   : > { %37844 = vsyncadd (%p44595_p10), %s299_s6, 4294959104  ;;  %p44596_p7 = scmp.eq.s32.totalorder %s37956_s24, 0 }
  0x9f   : > { %37846 = dma.done.wait (%p44596_p7), [#allocation7], 256   ;;  %p44597_p0 = pmov %p44596_p7 }
  0xa1   : > { %37848 = vsyncadd (%p44597_p0), [#allocation7], 4294967040  ;;  %p44598_p5 = pmov %p44597_p0 }
  0xa2   : > { %p44599_p2 = pmov %p44597_p0 }
  0xa3   : > { %37850 = dma.done.wait (%p44598_p5), [#allocation10], 256  }
  0xa4   : > { %37852 = vsyncadd (%p44599_p2), [#allocation10], 4294967040  ;;  %v37891_v0 = vmov 0.0   ;;  %v44175_v2 = vlaneseq  ;;  %s39205_s24 = sshll.u32 %s37875_s21, 9  ;;  %s344_s25 = scalar_lea.vmem [#allocation12], %s38153_s14 }
  0xa5   : > { %483 = vst [vmem:[#allocation2] sm:$0xff] %v37891_v0  ;;  %484 = vst [vmem:[#allocation2 + $0x8] sm:$0xff] %v37891_v0  ;;  %v39214_v7 = vstv %s39205_s24  ;;  %p2035_p3 = scmp.lt.s32.totalorder %s39205_s24, 16  ;;  %p37272_p9 = scmp.lt.s32.totalorder %s39205_s24, 15 }
  0xa6   : > { %485 = vst [vmem:[#allocation2 + $0x10] sm:$0xff] %v37891_v0  ;;  %486 = vst [vmem:[#allocation2 + $0x18] sm:$0xff] %v37891_v0  ;;  %v39208_v3 = vshrl.u32 %v44175_v2, 7  ;;  %v39399_v2 = vld [vmem:[%s38157_s13 + $0x38] sm:$0xff]  ;;  %s338_s15 = scalar_lea.vmem [#allocation11], %s38153_s14 }
  0xa7   : > { %487 = vst [vmem:[#allocation2 + $0x20] sm:$0xff] %v37891_v0  ;;  %488 = vst [vmem:[#allocation2 + $0x28] sm:$0xff] %v37891_v0  ;;  %p40647_p1 = pnand %p37272_p9, %p2035_p3 }
  0xa8   : > { %489 = vst [vmem:[#allocation2 + $0x30] sm:$0xff] %v37891_v0  ;;  %490 = vst [vmem:[#allocation2 + $0x38] sm:$0xff] %v37891_v0  ;;  %v1541_v4 = vadd.s32 264, %v39208_v3  ;;  %v1542_v5 = vadd.s32 272, %v39208_v3  ;;  %v1543_v6 = vadd.s32 280, %v39208_v3  ;;  %v1544_v8 = vadd.s32 288, %v39208_v3 }
  0xa9   : > { %491 = vst [vmem:[#allocation2 + $0x40] sm:$0xff] %v37891_v0  ;;  %492 = vst [vmem:[#allocation2 + $0x48] sm:$0xff] %v37891_v0  ;;  %v1545_v9 = vadd.s32 296, %v39208_v3  ;;  %v1546_v10 = vadd.s32 304, %v39208_v3  ;;  %v1547_v11 = vadd.s32 312, %v39208_v3  ;;  %v1548_v12 = vadd.s32 320, %v39208_v3 }
  0xaa   : > { %493 = vst [vmem:[#allocation2 + $0x50] sm:$0xff] %v37891_v0  ;;  %494 = vst [vmem:[#allocation2 + $0x58] sm:$0xff] %v37891_v0  ;;  %v1549_v13 = vadd.s32 328, %v39208_v3  ;;  %v1550_v14 = vadd.s32 336, %v39208_v3  ;;  %v1551_v15 = vadd.s32 344, %v39208_v3  ;;  %v1552_v16 = vadd.s32 352, %v39208_v3 }
  0xab   : > { %495 = vst [vmem:[#allocation2 + $0x60] sm:$0xff] %v37891_v0  ;;  %496 = vst [vmem:[#allocation2 + $0x68] sm:$0xff] %v37891_v0  ;;  %v1553_v17 = vadd.s32 360, %v39208_v3  ;;  %v1554_v18 = vadd.s32 368, %v39208_v3  ;;  %v1555_v19 = vadd.s32 376, %v39208_v3  ;;  %v1556_v20 = vadd.s32 384, %v39208_v3 }
  0xac   : > { %497 = vst [vmem:[#allocation2 + $0x70] sm:$0xff] %v37891_v0  ;;  %498 = vst [vmem:[#allocation2 + $0x78] sm:$0xff] %v37891_v0  ;;  %v38690_v1 = vld [vmem:[#allocation2] sm:$0xff]  ;;  %v1557_v21 = vadd.s32 392, %v39208_v3  ;;  %v1558_v22 = vadd.s32 400, %v39208_v3  ;;  %v1559_v23 = vadd.s32 408, %v39208_v3  ;;  %v39245_v36 = vadd.s32 %v39214_v7, %v1541_v4 }
  0xad   : > { %499 = vst [vmem:[#allocation2 + $0x80] sm:$0xff] %v37891_v0  ;;  %500 = vst [vmem:[#allocation2 + $0x88] sm:$0xff] %v37891_v0  ;;  %v1560_v24 = vadd.s32 416, %v39208_v3  ;;  %v1561_v25 = vadd.s32 424, %v39208_v3  ;;  %v1562_v26 = vadd.s32 432, %v39208_v3  ;;  %v1563_v27 = vadd.s32 440, %v39208_v3 }
  0xae   : > { %501 = vst [vmem:[#allocation2 + $0x90] sm:$0xff] %v37891_v0  ;;  %502 = vst [vmem:[#allocation2 + $0x98] sm:$0xff] %v37891_v0  ;;  %v1564_v28 = vadd.s32 448, %v39208_v3  ;;  %v1565_v29 = vadd.s32 456, %v39208_v3  ;;  %v1566_v30 = vadd.s32 464, %v39208_v3  ;;  %v1567_v31 = vadd.s32 472, %v39208_v3 }
  0xaf   : > { %503 = vst [vmem:[#allocation2 + $0xa0] sm:$0xff] %v37891_v0  ;;  %504 = vst [vmem:[#allocation2 + $0xa8] sm:$0xff] %v37891_v0  ;;  %v1568_v32 = vadd.s32 480, %v39208_v3  ;;  %v1569_v33 = vadd.s32 488, %v39208_v3  ;;  %v1570_v34 = vadd.s32 496, %v39208_v3  ;;  %v1571_v35 = vadd.s32 504, %v39208_v3 }
  0xb0   : > { %505 = vst [vmem:[#allocation2 + $0xb0] sm:$0xff] %v37891_v0  ;;  %506 = vst [vmem:[#allocation2 + $0xb8] sm:$0xff] %v37891_v0  ;;  %v39248_v37 = vadd.s32 %v39214_v7, %v1542_v5  ;;  %v39251_v38 = vadd.s32 %v39214_v7, %v1543_v6  ;;  %v39254_v39 = vadd.s32 %v39214_v7, %v1544_v8  ;;  %v1509_v5 = vadd.s32 8, %v39208_v3 }
  0xb1   : > { %507 = vst [vmem:[#allocation2 + $0xc0] sm:$0xff] %v37891_v0  ;;  %508 = vst [vmem:[#allocation2 + $0xc8] sm:$0xff] %v37891_v0  ;;  %v39257_v40 = vadd.s32 %v39214_v7, %v1545_v9  ;;  %v39260_v41 = vadd.s32 %v39214_v7, %v1546_v10  ;;  %v39263_v42 = vadd.s32 %v39214_v7, %v1547_v11  ;;  %v1510_v6 = vadd.s32 16, %v39208_v3 }
  0xb2   : > { %509 = vst [vmem:[#allocation2 + $0xd0] sm:$0xff] %v37891_v0  ;;  %510 = vst [vmem:[#allocation2 + $0xd8] sm:$0xff] %v37891_v0  ;;  %v39266_v43 = vadd.s32 %v39214_v7, %v1548_v12  ;;  %v39269_v44 = vadd.s32 %v39214_v7, %v1549_v13  ;;  %v39272_v45 = vadd.s32 %v39214_v7, %v1550_v14  ;;  %v1511_v8 = vadd.s32 24, %v39208_v3 }
  0xb3   : > { %511 = vst [vmem:[#allocation2 + $0xe0] sm:$0xff] %v37891_v0  ;;  %512 = vst [vmem:[#allocation2 + $0xe8] sm:$0xff] %v37891_v0  ;;  %v39275_v46 = vadd.s32 %v39214_v7, %v1551_v15  ;;  %v39278_v47 = vadd.s32 %v39214_v7, %v1552_v16  ;;  %v39281_v48 = vadd.s32 %v39214_v7, %v1553_v17  ;;  %v1512_v9 = vadd.s32 32, %v39208_v3  ;;  %v39348_v16 = vld [vmem:[%s38157_s13] sm:$0xff] }
  0xb4   : > { %513 = vst [vmem:[#allocation2 + $0xf0] sm:$0xff] %v37891_v0  ;;  %514 = vst [vmem:[#allocation2 + $0xf8] sm:$0xff] %v37891_v0  ;;  %v39284_v49 = vadd.s32 %v39214_v7, %v1554_v18  ;;  %v39287_v50 = vadd.s32 %v39214_v7, %v1555_v19  ;;  %v39290_v51 = vadd.s32 %v39214_v7, %v1556_v20  ;;  %v1513_v10 = vadd.s32 40, %v39208_v3  ;;  %v39351_v17 = vld [vmem:[%s38164_s9] sm:$0xff] }
  0xb5   : > { %515 = vst [vmem:[#allocation2 + $0x100] sm:$0xff] %v37891_v0  ;;  %516 = vst [vmem:[#allocation2 + $0x108] sm:$0xff] %v37891_v0  ;;  %v39293_v52 = vadd.s32 %v39214_v7, %v1557_v21  ;;  %v39296_v53 = vadd.s32 %v39214_v7, %v1558_v22  ;;  %v39299_v54 = vadd.s32 %v39214_v7, %v1559_v23  ;;  %v1514_v11 = vadd.s32 48, %v39208_v3  ;;  %v39358_v22 = vld [vmem:[%s38157_s13 + $0x8] sm:$0xff]  ;;  %v39361_v23 = vld [vmem:[%s38157_s13 + $0x10] sm:$0xff] }
  0xb6   : > { %517 = vst [vmem:[#allocation2 + $0x110] sm:$0xff] %v37891_v0  ;;  %518 = vst [vmem:[#allocation2 + $0x118] sm:$0xff] %v37891_v0  ;;  %v39302_v55 = vadd.s32 %v39214_v7, %v1560_v24  ;;  %v39305_v56 = vadd.s32 %v39214_v7, %v1561_v25  ;;  %v39308_v57 = vadd.s32 %v39214_v7, %v1562_v26  ;;  %v1515_v12 = vadd.s32 56, %v39208_v3  ;;  %v39364_v24 = vld [vmem:[%s38157_s13 + $0x18] sm:$0xff]  ;;  %v39367_v25 = vld [vmem:[%s38157_s13 + $0x20] sm:$0xff] }
  0xb7   : > { %519 = vst [vmem:[#allocation2 + $0x120] sm:$0xff] %v37891_v0  ;;  %520 = vst [vmem:[#allocation2 + $0x128] sm:$0xff] %v37891_v0  ;;  %v39311_v58 = vadd.s32 %v39214_v7, %v1563_v27  ;;  %v39314_v59 = vadd.s32 %v39214_v7, %v1564_v28  ;;  %v39317_v60 = vadd.s32 %v39214_v7, %v1565_v29  ;;  %v1516_v13 = vadd.s32 64, %v39208_v3  ;;  %v39370_v26 = vld [vmem:[%s38164_s9 + $0x8] sm:$0xff]  ;;  %v39373_v27 = vld [vmem:[%s38164_s9 + $0x10] sm:$0xff] }
  0xb8   : > { %521 = vst [vmem:[#allocation2 + $0x130] sm:$0xff] %v37891_v0  ;;  %522 = vst [vmem:[#allocation2 + $0x138] sm:$0xff] %v37891_v0  ;;  %v39320_v61 = vadd.s32 %v39214_v7, %v1566_v30  ;;  %v39323_v62 = vadd.s32 %v39214_v7, %v1567_v31  ;;  %v39326_v63 = vadd.s32 %v39214_v7, %v1568_v32  ;;  %v1517_v14 = vadd.s32 72, %v39208_v3  ;;  %v39376_v28 = vld [vmem:[%s38164_s9 + $0x18] sm:$0xff]  ;;  %v39379_v29 = vld [vmem:[%s38164_s9 + $0x20] sm:$0xff] }
  0xb9   : > { %523 = vst [vmem:[#allocation2 + $0x140] sm:$0xff] %v37891_v0  ;;  %524 = vst [vmem:[#allocation2 + $0x148] sm:$0xff] %v37891_v0  ;;  %v39335_v4 = vadd.s32 %v39214_v7, %v1571_v35  ;;  %v1518_v15 = vadd.s32 80, %v39208_v3  ;;  %v1519_v18 = vadd.s32 88, %v39208_v3  ;;  %v1520_v19 = vadd.s32 96, %v39208_v3  ;;  %v39396_v35 = vld [vmem:[%s38157_s13 + $0x30] sm:$0xff] }
  0xba   : > { %525 = vst [vmem:[#allocation2 + $0x150] sm:$0xff] %v37891_v0  ;;  %526 = vst [vmem:[#allocation2 + $0x158] sm:$0xff] %v37891_v0  ;;  %v1521_v20 = vadd.s32 104, %v39208_v3  ;;  %v1522_v21 = vadd.s32 112, %v39208_v3  ;;  %v1523_v30 = vadd.s32 120, %v39208_v3  ;;  %v39383_v31 = vadd.s32 128, %v39208_v3 }
  0xbb   : > { %527 = vst [vmem:[#allocation2 + $0x160] sm:$0xff] %v37891_v0  ;;  %528 = vst [vmem:[#allocation2 + $0x168] sm:$0xff] %v37891_v0  ;;  %v39386_v32 = vadd.s32 136, %v39208_v3 }
  0xbc   : > { %529 = vst [vmem:[#allocation2 + $0x170] sm:$0xff] %v37891_v0  ;;  %530 = vst [vmem:[#allocation2 + $0x178] sm:$0xff] %v37891_v0 }
  0xbd   : > { %531 = vst [vmem:[#allocation2 + $0x180] sm:$0xff] %v37891_v0  ;;  %532 = vst [vmem:[#allocation2 + $0x188] sm:$0xff] %v37891_v0 }
  0xbe   : > { %533 = vst [vmem:[#allocation2 + $0x190] sm:$0xff] %v37891_v0  ;;  %534 = vst [vmem:[#allocation2 + $0x198] sm:$0xff] %v37891_v0 }
  0xbf   : > { %535 = vst [vmem:[#allocation2 + $0x1a0] sm:$0xff] %v37891_v0  ;;  %536 = vst [vmem:[#allocation2 + $0x1a8] sm:$0xff] %v37891_v0 }
  0xc0   : > { %537 = vst [vmem:[#allocation2 + $0x1b0] sm:$0xff] %v37891_v0  ;;  %538 = vst [vmem:[#allocation2 + $0x1b8] sm:$0xff] %v37891_v0 }
  0xc1   : > { %539 = vst [vmem:[#allocation2 + $0x1c0] sm:$0xff] %v37891_v0  ;;  %540 = vst [vmem:[#allocation2 + $0x1c8] sm:$0xff] %v37891_v0 }
  0xc2   : > { %541 = vst [vmem:[#allocation2 + $0x1d0] sm:$0xff] %v37891_v0  ;;  %542 = vst [vmem:[#allocation2 + $0x1d8] sm:$0xff] %v37891_v0 }
  0xc3   : > { %543 = vst [vmem:[#allocation2 + $0x1e0] sm:$0xff] %v37891_v0  ;;  %544 = vst [vmem:[#allocation2 + $0x1e8] sm:$0xff] %v37891_v0 }
  0xc4   : > { %545 = vst [vmem:[#allocation2 + $0x1f0] sm:$0xff] %v37891_v0  ;;  %546 = vst [vmem:[#allocation2 + $0x1f8] sm:$0xff] %v37891_v0 }
  0xc5   : > { %547 = vst [vmem:[#allocation2 + $0x200] sm:$0xff] %v37891_v0  ;;  %548 = vst [vmem:[#allocation2 + $0x208] sm:$0xff] %v37891_v0 }
  0xc6   : > { %549 = vst [vmem:[#allocation2 + $0x210] sm:$0xff] %v37891_v0  ;;  %550 = vst [vmem:[#allocation2 + $0x218] sm:$0xff] %v37891_v0 }
  0xc7   : > { %551 = vst [vmem:[#allocation2 + $0x220] sm:$0xff] %v37891_v0  ;;  %552 = vst [vmem:[#allocation2 + $0x228] sm:$0xff] %v37891_v0 }
  0xc8   : > { %553 = vst [vmem:[#allocation2 + $0x230] sm:$0xff] %v37891_v0  ;;  %554 = vst [vmem:[#allocation2 + $0x238] sm:$0xff] %v37891_v0 }
  0xc9   : > { %555 = vst [vmem:[#allocation2 + $0x240] sm:$0xff] %v37891_v0  ;;  %556 = vst [vmem:[#allocation2 + $0x248] sm:$0xff] %v37891_v0 }
  0xca   : > { %557 = vst [vmem:[#allocation2 + $0x250] sm:$0xff] %v37891_v0  ;;  %558 = vst [vmem:[#allocation2 + $0x258] sm:$0xff] %v37891_v0 }
  0xcb   : > { %559 = vst [vmem:[#allocation2 + $0x260] sm:$0xff] %v37891_v0  ;;  %560 = vst [vmem:[#allocation2 + $0x268] sm:$0xff] %v37891_v0 }
  0xcc   : > { %561 = vst [vmem:[#allocation2 + $0x270] sm:$0xff] %v37891_v0  ;;  %562 = vst [vmem:[#allocation2 + $0x278] sm:$0xff] %v37891_v0 }
  0xcd   : > { %563 = vst [vmem:[#allocation2 + $0x280] sm:$0xff] %v37891_v0  ;;  %564 = vst [vmem:[#allocation2 + $0x288] sm:$0xff] %v37891_v0 }
  0xce   : > { %565 = vst [vmem:[#allocation2 + $0x290] sm:$0xff] %v37891_v0  ;;  %566 = vst [vmem:[#allocation2 + $0x298] sm:$0xff] %v37891_v0 }
  0xcf   : > { %567 = vst [vmem:[#allocation2 + $0x2a0] sm:$0xff] %v37891_v0  ;;  %568 = vst [vmem:[#allocation2 + $0x2a8] sm:$0xff] %v37891_v0 }
  0xd0   : > { %569 = vst [vmem:[#allocation2 + $0x2b0] sm:$0xff] %v37891_v0  ;;  %570 = vst [vmem:[#allocation2 + $0x2b8] sm:$0xff] %v37891_v0 }
  0xd1   : > { %571 = vst [vmem:[#allocation2 + $0x2c0] sm:$0xff] %v37891_v0  ;;  %572 = vst [vmem:[#allocation2 + $0x2c8] sm:$0xff] %v37891_v0 }
  0xd2   : > { %573 = vst [vmem:[#allocation2 + $0x2d0] sm:$0xff] %v37891_v0  ;;  %574 = vst [vmem:[#allocation2 + $0x2d8] sm:$0xff] %v37891_v0 }
  0xd3   : > { %575 = vst [vmem:[#allocation2 + $0x2e0] sm:$0xff] %v37891_v0  ;;  %576 = vst [vmem:[#allocation2 + $0x2e8] sm:$0xff] %v37891_v0 }
  0xd4   : > { %577 = vst [vmem:[#allocation2 + $0x2f0] sm:$0xff] %v37891_v0  ;;  %578 = vst [vmem:[#allocation2 + $0x2f8] sm:$0xff] %v37891_v0 }
  0xd5   : > { %579 = vst [vmem:[#allocation2 + $0x300] sm:$0xff] %v37891_v0  ;;  %580 = vst [vmem:[#allocation2 + $0x308] sm:$0xff] %v37891_v0 }
  0xd6   : > { %581 = vst [vmem:[#allocation2 + $0x310] sm:$0xff] %v37891_v0  ;;  %582 = vst [vmem:[#allocation2 + $0x318] sm:$0xff] %v37891_v0 }
  0xd7   : > { %583 = vst [vmem:[#allocation2 + $0x320] sm:$0xff] %v37891_v0  ;;  %584 = vst [vmem:[#allocation2 + $0x328] sm:$0xff] %v37891_v0 }
  0xd8   : > { %585 = vst [vmem:[#allocation2 + $0x330] sm:$0xff] %v37891_v0  ;;  %586 = vst [vmem:[#allocation2 + $0x338] sm:$0xff] %v37891_v0 }
  0xd9   : > { %587 = vst [vmem:[#allocation2 + $0x340] sm:$0xff] %v37891_v0  ;;  %588 = vst [vmem:[#allocation2 + $0x348] sm:$0xff] %v37891_v0 }
  0xda   : > { %589 = vst [vmem:[#allocation2 + $0x350] sm:$0xff] %v37891_v0  ;;  %590 = vst [vmem:[#allocation2 + $0x358] sm:$0xff] %v37891_v0 }
  0xdb   : > { %591 = vst [vmem:[#allocation2 + $0x360] sm:$0xff] %v37891_v0  ;;  %592 = vst [vmem:[#allocation2 + $0x368] sm:$0xff] %v37891_v0 }
  0xdc   : > { %593 = vst [vmem:[#allocation2 + $0x370] sm:$0xff] %v37891_v0  ;;  %594 = vst [vmem:[#allocation2 + $0x378] sm:$0xff] %v37891_v0 }
  0xdd   : > { %595 = vst [vmem:[#allocation2 + $0x380] sm:$0xff] %v37891_v0  ;;  %596 = vst [vmem:[#allocation2 + $0x388] sm:$0xff] %v37891_v0 }
  0xde   : > { %597 = vst [vmem:[#allocation2 + $0x390] sm:$0xff] %v37891_v0  ;;  %598 = vst [vmem:[#allocation2 + $0x398] sm:$0xff] %v37891_v0 }
  0xdf   : > { %599 = vst [vmem:[#allocation2 + $0x3a0] sm:$0xff] %v37891_v0  ;;  %600 = vst [vmem:[#allocation2 + $0x3a8] sm:$0xff] %v37891_v0 }
  0xe0   : > { %601 = vst [vmem:[#allocation2 + $0x3b0] sm:$0xff] %v37891_v0  ;;  %602 = vst [vmem:[#allocation2 + $0x3b8] sm:$0xff] %v37891_v0 }
  0xe1   : > { %603 = vst [vmem:[#allocation2 + $0x3c0] sm:$0xff] %v37891_v0  ;;  %604 = vst [vmem:[#allocation2 + $0x3c8] sm:$0xff] %v37891_v0 }
  0xe2   : > { %605 = vst [vmem:[#allocation2 + $0x3d0] sm:$0xff] %v37891_v0  ;;  %606 = vst [vmem:[#allocation2 + $0x3d8] sm:$0xff] %v37891_v0 }
  0xe3   : > { %607 = vst [vmem:[#allocation2 + $0x3e0] sm:$0xff] %v37891_v0  ;;  %608 = vst [vmem:[#allocation2 + $0x3e8] sm:$0xff] %v37891_v0 }
  0xe4   : > { %609 = vst [vmem:[#allocation2 + $0x3f0] sm:$0xff] %v37891_v0  ;;  %610 = vst [vmem:[#allocation2 + $0x3f8] sm:$0xff] %v37891_v0 }
  0xe5   : > { %611 = vst [vmem:[#allocation2 + $0x400] sm:$0xff] %v37891_v0  ;;  %612 = vst [vmem:[#allocation2 + $0x408] sm:$0xff] %v37891_v0 }
  0xe6   : > { %613 = vst [vmem:[#allocation2 + $0x410] sm:$0xff] %v37891_v0  ;;  %614 = vst [vmem:[#allocation2 + $0x418] sm:$0xff] %v37891_v0 }
  0xe7   : > { %615 = vst [vmem:[#allocation2 + $0x420] sm:$0xff] %v37891_v0  ;;  %616 = vst [vmem:[#allocation2 + $0x428] sm:$0xff] %v37891_v0 }
  0xe8   : > { %617 = vst [vmem:[#allocation2 + $0x430] sm:$0xff] %v37891_v0  ;;  %618 = vst [vmem:[#allocation2 + $0x438] sm:$0xff] %v37891_v0 }
  0xe9   : > { %619 = vst [vmem:[#allocation2 + $0x440] sm:$0xff] %v37891_v0  ;;  %620 = vst [vmem:[#allocation2 + $0x448] sm:$0xff] %v37891_v0 }
  0xea   : > { %621 = vst [vmem:[#allocation2 + $0x450] sm:$0xff] %v37891_v0  ;;  %622 = vst [vmem:[#allocation2 + $0x458] sm:$0xff] %v37891_v0 }
  0xeb   : > { %623 = vst [vmem:[#allocation2 + $0x460] sm:$0xff] %v37891_v0  ;;  %624 = vst [vmem:[#allocation2 + $0x468] sm:$0xff] %v37891_v0 }
  0xec   : > { %625 = vst [vmem:[#allocation2 + $0x470] sm:$0xff] %v37891_v0  ;;  %626 = vst [vmem:[#allocation2 + $0x478] sm:$0xff] %v37891_v0 }
  0xed   : > { %627 = vst [vmem:[#allocation2 + $0x480] sm:$0xff] %v37891_v0  ;;  %628 = vst [vmem:[#allocation2 + $0x488] sm:$0xff] %v37891_v0 }
  0xee   : > { %629 = vst [vmem:[#allocation2 + $0x490] sm:$0xff] %v37891_v0  ;;  %630 = vst [vmem:[#allocation2 + $0x498] sm:$0xff] %v37891_v0 }
  0xef   : > { %631 = vst [vmem:[#allocation2 + $0x4a0] sm:$0xff] %v37891_v0  ;;  %632 = vst [vmem:[#allocation2 + $0x4a8] sm:$0xff] %v37891_v0 }
  0xf0   : > { %633 = vst [vmem:[#allocation2 + $0x4b0] sm:$0xff] %v37891_v0  ;;  %634 = vst [vmem:[#allocation2 + $0x4b8] sm:$0xff] %v37891_v0 }
  0xf1   : > { %635 = vst [vmem:[#allocation2 + $0x4c0] sm:$0xff] %v37891_v0  ;;  %636 = vst [vmem:[#allocation2 + $0x4c8] sm:$0xff] %v37891_v0 }
  0xf2   : > { %637 = vst [vmem:[#allocation2 + $0x4d0] sm:$0xff] %v37891_v0  ;;  %638 = vst [vmem:[#allocation2 + $0x4d8] sm:$0xff] %v37891_v0 }
  0xf3   : > { %639 = vst [vmem:[#allocation2 + $0x4e0] sm:$0xff] %v37891_v0  ;;  %640 = vst [vmem:[#allocation2 + $0x4e8] sm:$0xff] %v37891_v0 }
  0xf4   : > { %641 = vst [vmem:[#allocation2 + $0x4f0] sm:$0xff] %v37891_v0  ;;  %642 = vst [vmem:[#allocation2 + $0x4f8] sm:$0xff] %v37891_v0 }
  0xf5   : > { %643 = vst [vmem:[#allocation2 + $0x500] sm:$0xff] %v37891_v0  ;;  %644 = vst [vmem:[#allocation2 + $0x508] sm:$0xff] %v37891_v0 }
  0xf6   : > { %645 = vst [vmem:[#allocation2 + $0x510] sm:$0xff] %v37891_v0  ;;  %646 = vst [vmem:[#allocation2 + $0x518] sm:$0xff] %v37891_v0 }
  0xf7   : > { %647 = vst [vmem:[#allocation2 + $0x520] sm:$0xff] %v37891_v0  ;;  %648 = vst [vmem:[#allocation2 + $0x528] sm:$0xff] %v37891_v0 }
  0xf8   : > { %649 = vst [vmem:[#allocation2 + $0x530] sm:$0xff] %v37891_v0  ;;  %650 = vst [vmem:[#allocation2 + $0x538] sm:$0xff] %v37891_v0 }
  0xf9   : > { %651 = vst [vmem:[#allocation2 + $0x540] sm:$0xff] %v37891_v0  ;;  %652 = vst [vmem:[#allocation2 + $0x548] sm:$0xff] %v37891_v0 }
  0xfa   : > { %653 = vst [vmem:[#allocation2 + $0x550] sm:$0xff] %v37891_v0  ;;  %654 = vst [vmem:[#allocation2 + $0x558] sm:$0xff] %v37891_v0 }
  0xfb   : > { %655 = vst [vmem:[#allocation2 + $0x560] sm:$0xff] %v37891_v0  ;;  %656 = vst [vmem:[#allocation2 + $0x568] sm:$0xff] %v37891_v0 }
  0xfc   : > { %657 = vst [vmem:[#allocation2 + $0x570] sm:$0xff] %v37891_v0  ;;  %658 = vst [vmem:[#allocation2 + $0x578] sm:$0xff] %v37891_v0 }
  0xfd   : > { %659 = vst [vmem:[#allocation2 + $0x580] sm:$0xff] %v37891_v0  ;;  %660 = vst [vmem:[#allocation2 + $0x588] sm:$0xff] %v37891_v0 }
  0xfe   : > { %661 = vst [vmem:[#allocation2 + $0x590] sm:$0xff] %v37891_v0  ;;  %662 = vst [vmem:[#allocation2 + $0x598] sm:$0xff] %v37891_v0 }
  0xff   : > { %663 = vst [vmem:[#allocation2 + $0x5a0] sm:$0xff] %v37891_v0  ;;  %664 = vst [vmem:[#allocation2 + $0x5a8] sm:$0xff] %v37891_v0 }
 0x100   : > { %665 = vst [vmem:[#allocation2 + $0x5b0] sm:$0xff] %v37891_v0  ;;  %666 = vst [vmem:[#allocation2 + $0x5b8] sm:$0xff] %v37891_v0 }
 0x101   : > { %667 = vst [vmem:[#allocation2 + $0x5c0] sm:$0xff] %v37891_v0  ;;  %668 = vst [vmem:[#allocation2 + $0x5c8] sm:$0xff] %v37891_v0 }
 0x102   : > { %669 = vst [vmem:[#allocation2 + $0x5d0] sm:$0xff] %v37891_v0  ;;  %670 = vst [vmem:[#allocation2 + $0x5d8] sm:$0xff] %v37891_v0 }
 0x103   : > { %671 = vst [vmem:[#allocation2 + $0x5e0] sm:$0xff] %v37891_v0  ;;  %672 = vst [vmem:[#allocation2 + $0x5e8] sm:$0xff] %v37891_v0 }
 0x104   : > { %673 = vst [vmem:[#allocation2 + $0x5f0] sm:$0xff] %v37891_v0  ;;  %674 = vst [vmem:[#allocation2 + $0x5f8] sm:$0xff] %v37891_v0 }
 0x105   : > { %675 = vst [vmem:[#allocation2 + $0x600] sm:$0xff] %v37891_v0  ;;  %676 = vst [vmem:[#allocation2 + $0x608] sm:$0xff] %v37891_v0 }
 0x106   : > { %677 = vst [vmem:[#allocation2 + $0x610] sm:$0xff] %v37891_v0  ;;  %678 = vst [vmem:[#allocation2 + $0x618] sm:$0xff] %v37891_v0 }
 0x107   : > { %679 = vst [vmem:[#allocation2 + $0x620] sm:$0xff] %v37891_v0  ;;  %680 = vst [vmem:[#allocation2 + $0x628] sm:$0xff] %v37891_v0 }
 0x108   : > { %681 = vst [vmem:[#allocation2 + $0x630] sm:$0xff] %v37891_v0  ;;  %682 = vst [vmem:[#allocation2 + $0x638] sm:$0xff] %v37891_v0 }
 0x109   : > { %683 = vst [vmem:[#allocation2 + $0x640] sm:$0xff] %v37891_v0  ;;  %684 = vst [vmem:[#allocation2 + $0x648] sm:$0xff] %v37891_v0 }
 0x10a   : > { %685 = vst [vmem:[#allocation2 + $0x650] sm:$0xff] %v37891_v0  ;;  %686 = vst [vmem:[#allocation2 + $0x658] sm:$0xff] %v37891_v0 }
 0x10b   : > { %687 = vst [vmem:[#allocation2 + $0x660] sm:$0xff] %v37891_v0  ;;  %688 = vst [vmem:[#allocation2 + $0x668] sm:$0xff] %v37891_v0 }
 0x10c   : > { %689 = vst [vmem:[#allocation2 + $0x670] sm:$0xff] %v37891_v0  ;;  %690 = vst [vmem:[#allocation2 + $0x678] sm:$0xff] %v37891_v0 }
 0x10d   : > { %691 = vst [vmem:[#allocation2 + $0x680] sm:$0xff] %v37891_v0  ;;  %692 = vst [vmem:[#allocation2 + $0x688] sm:$0xff] %v37891_v0 }
 0x10e   : > { %693 = vst [vmem:[#allocation2 + $0x690] sm:$0xff] %v37891_v0  ;;  %694 = vst [vmem:[#allocation2 + $0x698] sm:$0xff] %v37891_v0 }
 0x10f   : > { %695 = vst [vmem:[#allocation2 + $0x6a0] sm:$0xff] %v37891_v0  ;;  %696 = vst [vmem:[#allocation2 + $0x6a8] sm:$0xff] %v37891_v0 }
 0x110   : > { %697 = vst [vmem:[#allocation2 + $0x6b0] sm:$0xff] %v37891_v0  ;;  %698 = vst [vmem:[#allocation2 + $0x6b8] sm:$0xff] %v37891_v0 }
 0x111   : > { %699 = vst [vmem:[#allocation2 + $0x6c0] sm:$0xff] %v37891_v0  ;;  %700 = vst [vmem:[#allocation2 + $0x6c8] sm:$0xff] %v37891_v0 }
 0x112   : > { %701 = vst [vmem:[#allocation2 + $0x6d0] sm:$0xff] %v37891_v0  ;;  %702 = vst [vmem:[#allocation2 + $0x6d8] sm:$0xff] %v37891_v0 }
 0x113   : > { %703 = vst [vmem:[#allocation2 + $0x6e0] sm:$0xff] %v37891_v0  ;;  %704 = vst [vmem:[#allocation2 + $0x6e8] sm:$0xff] %v37891_v0 }
 0x114   : > { %705 = vst [vmem:[#allocation2 + $0x6f0] sm:$0xff] %v37891_v0  ;;  %706 = vst [vmem:[#allocation2 + $0x6f8] sm:$0xff] %v37891_v0 }
 0x115   : > { %707 = vst [vmem:[#allocation2 + $0x700] sm:$0xff] %v37891_v0  ;;  %708 = vst [vmem:[#allocation2 + $0x708] sm:$0xff] %v37891_v0 }
 0x116   : > { %709 = vst [vmem:[#allocation2 + $0x710] sm:$0xff] %v37891_v0  ;;  %710 = vst [vmem:[#allocation2 + $0x718] sm:$0xff] %v37891_v0 }
 0x117   : > { %711 = vst [vmem:[#allocation2 + $0x720] sm:$0xff] %v37891_v0  ;;  %712 = vst [vmem:[#allocation2 + $0x728] sm:$0xff] %v37891_v0 }
 0x118   : > { %713 = vst [vmem:[#allocation2 + $0x730] sm:$0xff] %v37891_v0  ;;  %714 = vst [vmem:[#allocation2 + $0x738] sm:$0xff] %v37891_v0 }
 0x119   : > { %715 = vst [vmem:[#allocation2 + $0x740] sm:$0xff] %v37891_v0  ;;  %716 = vst [vmem:[#allocation2 + $0x748] sm:$0xff] %v37891_v0 }
 0x11a   : > { %717 = vst [vmem:[#allocation2 + $0x750] sm:$0xff] %v37891_v0  ;;  %718 = vst [vmem:[#allocation2 + $0x758] sm:$0xff] %v37891_v0 }
 0x11b   : > { %719 = vst [vmem:[#allocation2 + $0x760] sm:$0xff] %v37891_v0  ;;  %720 = vst [vmem:[#allocation2 + $0x768] sm:$0xff] %v37891_v0 }
 0x11c   : > { %721 = vst [vmem:[#allocation2 + $0x770] sm:$0xff] %v37891_v0  ;;  %722 = vst [vmem:[#allocation2 + $0x778] sm:$0xff] %v37891_v0 }
 0x11d   : > { %723 = vst [vmem:[#allocation2 + $0x780] sm:$0xff] %v37891_v0  ;;  %724 = vst [vmem:[#allocation2 + $0x788] sm:$0xff] %v37891_v0 }
 0x11e   : > { %725 = vst [vmem:[#allocation2 + $0x790] sm:$0xff] %v37891_v0  ;;  %726 = vst [vmem:[#allocation2 + $0x798] sm:$0xff] %v37891_v0 }
 0x11f   : > { %727 = vst [vmem:[#allocation2 + $0x7a0] sm:$0xff] %v37891_v0  ;;  %728 = vst [vmem:[#allocation2 + $0x7a8] sm:$0xff] %v37891_v0 }
 0x120   : > { %729 = vst [vmem:[#allocation2 + $0x7b0] sm:$0xff] %v37891_v0  ;;  %730 = vst [vmem:[#allocation2 + $0x7b8] sm:$0xff] %v37891_v0 }
 0x121   : > { %731 = vst [vmem:[#allocation2 + $0x7c0] sm:$0xff] %v37891_v0  ;;  %732 = vst [vmem:[#allocation2 + $0x7c8] sm:$0xff] %v37891_v0 }
 0x122   : > { %733 = vst [vmem:[#allocation2 + $0x7d0] sm:$0xff] %v37891_v0  ;;  %734 = vst [vmem:[#allocation2 + $0x7d8] sm:$0xff] %v37891_v0 }
 0x123   : > { %735 = vst [vmem:[#allocation2 + $0x7e0] sm:$0xff] %v37891_v0  ;;  %736 = vst [vmem:[#allocation2 + $0x7e8] sm:$0xff] %v37891_v0 }
 0x124   : > { %737 = vst [vmem:[#allocation2 + $0x7f0] sm:$0xff] %v37891_v0  ;;  %738 = vst [vmem:[#allocation2 + $0x7f8] sm:$0xff] %v37891_v0 }
 0x125   : > { %739 = vst [vmem:[#allocation2 + $0x800] sm:$0xff] %v37891_v0  ;;  %740 = vst [vmem:[#allocation2 + $0x808] sm:$0xff] %v37891_v0 }
 0x126   : > { %741 = vst [vmem:[#allocation2 + $0x810] sm:$0xff] %v37891_v0  ;;  %742 = vst [vmem:[#allocation2 + $0x818] sm:$0xff] %v37891_v0 }
 0x127   : > { %743 = vst [vmem:[#allocation2 + $0x820] sm:$0xff] %v37891_v0  ;;  %744 = vst [vmem:[#allocation2 + $0x828] sm:$0xff] %v37891_v0 }
 0x128   : > { %745 = vst [vmem:[#allocation2 + $0x830] sm:$0xff] %v37891_v0  ;;  %746 = vst [vmem:[#allocation2 + $0x838] sm:$0xff] %v37891_v0 }
 0x129   : > { %747 = vst [vmem:[#allocation2 + $0x840] sm:$0xff] %v37891_v0  ;;  %748 = vst [vmem:[#allocation2 + $0x848] sm:$0xff] %v37891_v0 }
 0x12a   : > { %749 = vst [vmem:[#allocation2 + $0x850] sm:$0xff] %v37891_v0  ;;  %750 = vst [vmem:[#allocation2 + $0x858] sm:$0xff] %v37891_v0 }
 0x12b   : > { %751 = vst [vmem:[#allocation2 + $0x860] sm:$0xff] %v37891_v0  ;;  %752 = vst [vmem:[#allocation2 + $0x868] sm:$0xff] %v37891_v0 }
 0x12c   : > { %753 = vst [vmem:[#allocation2 + $0x870] sm:$0xff] %v37891_v0  ;;  %754 = vst [vmem:[#allocation2 + $0x878] sm:$0xff] %v37891_v0 }
 0x12d   : > { %755 = vst [vmem:[#allocation2 + $0x880] sm:$0xff] %v37891_v0  ;;  %756 = vst [vmem:[#allocation2 + $0x888] sm:$0xff] %v37891_v0 }
 0x12e   : > { %757 = vst [vmem:[#allocation2 + $0x890] sm:$0xff] %v37891_v0  ;;  %758 = vst [vmem:[#allocation2 + $0x898] sm:$0xff] %v37891_v0 }
 0x12f   : > { %759 = vst [vmem:[#allocation2 + $0x8a0] sm:$0xff] %v37891_v0  ;;  %760 = vst [vmem:[#allocation2 + $0x8a8] sm:$0xff] %v37891_v0 }
 0x130   : > { %761 = vst [vmem:[#allocation2 + $0x8b0] sm:$0xff] %v37891_v0  ;;  %762 = vst [vmem:[#allocation2 + $0x8b8] sm:$0xff] %v37891_v0 }
 0x131   : > { %763 = vst [vmem:[#allocation2 + $0x8c0] sm:$0xff] %v37891_v0  ;;  %764 = vst [vmem:[#allocation2 + $0x8c8] sm:$0xff] %v37891_v0 }
 0x132   : > { %765 = vst [vmem:[#allocation2 + $0x8d0] sm:$0xff] %v37891_v0  ;;  %766 = vst [vmem:[#allocation2 + $0x8d8] sm:$0xff] %v37891_v0 }
 0x133   : > { %767 = vst [vmem:[#allocation2 + $0x8e0] sm:$0xff] %v37891_v0  ;;  %768 = vst [vmem:[#allocation2 + $0x8e8] sm:$0xff] %v37891_v0 }
 0x134   : > { %769 = vst [vmem:[#allocation2 + $0x8f0] sm:$0xff] %v37891_v0  ;;  %770 = vst [vmem:[#allocation2 + $0x8f8] sm:$0xff] %v37891_v0 }
 0x135   : > { %771 = vst [vmem:[#allocation2 + $0x900] sm:$0xff] %v37891_v0  ;;  %772 = vst [vmem:[#allocation2 + $0x908] sm:$0xff] %v37891_v0 }
 0x136   : > { %773 = vst [vmem:[#allocation2 + $0x910] sm:$0xff] %v37891_v0  ;;  %774 = vst [vmem:[#allocation2 + $0x918] sm:$0xff] %v37891_v0 }
 0x137   : > { %775 = vst [vmem:[#allocation2 + $0x920] sm:$0xff] %v37891_v0  ;;  %776 = vst [vmem:[#allocation2 + $0x928] sm:$0xff] %v37891_v0 }
 0x138   : > { %777 = vst [vmem:[#allocation2 + $0x930] sm:$0xff] %v37891_v0  ;;  %778 = vst [vmem:[#allocation2 + $0x938] sm:$0xff] %v37891_v0 }
 0x139   : > { %779 = vst [vmem:[#allocation2 + $0x940] sm:$0xff] %v37891_v0  ;;  %780 = vst [vmem:[#allocation2 + $0x948] sm:$0xff] %v37891_v0 }
 0x13a   : > { %781 = vst [vmem:[#allocation2 + $0x950] sm:$0xff] %v37891_v0  ;;  %782 = vst [vmem:[#allocation2 + $0x958] sm:$0xff] %v37891_v0 }
 0x13b   : > { %783 = vst [vmem:[#allocation2 + $0x960] sm:$0xff] %v37891_v0  ;;  %784 = vst [vmem:[#allocation2 + $0x968] sm:$0xff] %v37891_v0 }
 0x13c   : > { %785 = vst [vmem:[#allocation2 + $0x970] sm:$0xff] %v37891_v0  ;;  %786 = vst [vmem:[#allocation2 + $0x978] sm:$0xff] %v37891_v0 }
 0x13d   : > { %787 = vst [vmem:[#allocation2 + $0x980] sm:$0xff] %v37891_v0  ;;  %788 = vst [vmem:[#allocation2 + $0x988] sm:$0xff] %v37891_v0 }
 0x13e   : > { %789 = vst [vmem:[#allocation2 + $0x990] sm:$0xff] %v37891_v0  ;;  %790 = vst [vmem:[#allocation2 + $0x998] sm:$0xff] %v37891_v0 }
 0x13f   : > { %791 = vst [vmem:[#allocation2 + $0x9a0] sm:$0xff] %v37891_v0  ;;  %792 = vst [vmem:[#allocation2 + $0x9a8] sm:$0xff] %v37891_v0 }
 0x140   : > { %793 = vst [vmem:[#allocation2 + $0x9b0] sm:$0xff] %v37891_v0  ;;  %794 = vst [vmem:[#allocation2 + $0x9b8] sm:$0xff] %v37891_v0 }
 0x141   : > { %795 = vst [vmem:[#allocation2 + $0x9c0] sm:$0xff] %v37891_v0  ;;  %796 = vst [vmem:[#allocation2 + $0x9c8] sm:$0xff] %v37891_v0 }
 0x142   : > { %797 = vst [vmem:[#allocation2 + $0x9d0] sm:$0xff] %v37891_v0  ;;  %798 = vst [vmem:[#allocation2 + $0x9d8] sm:$0xff] %v37891_v0 }
 0x143   : > { %799 = vst [vmem:[#allocation2 + $0x9e0] sm:$0xff] %v37891_v0  ;;  %800 = vst [vmem:[#allocation2 + $0x9e8] sm:$0xff] %v37891_v0 }
 0x144   : > { %801 = vst [vmem:[#allocation2 + $0x9f0] sm:$0xff] %v37891_v0  ;;  %802 = vst [vmem:[#allocation2 + $0x9f8] sm:$0xff] %v37891_v0 }
 0x145   : > { %803 = vst [vmem:[#allocation2 + $0xa00] sm:$0xff] %v37891_v0  ;;  %804 = vst [vmem:[#allocation2 + $0xa08] sm:$0xff] %v37891_v0 }
 0x146   : > { %805 = vst [vmem:[#allocation2 + $0xa10] sm:$0xff] %v37891_v0  ;;  %806 = vst [vmem:[#allocation2 + $0xa18] sm:$0xff] %v37891_v0 }
 0x147   : > { %807 = vst [vmem:[#allocation2 + $0xa20] sm:$0xff] %v37891_v0  ;;  %808 = vst [vmem:[#allocation2 + $0xa28] sm:$0xff] %v37891_v0 }
 0x148   : > { %809 = vst [vmem:[#allocation2 + $0xa30] sm:$0xff] %v37891_v0  ;;  %810 = vst [vmem:[#allocation2 + $0xa38] sm:$0xff] %v37891_v0 }
 0x149   : > { %811 = vst [vmem:[#allocation2 + $0xa40] sm:$0xff] %v37891_v0  ;;  %812 = vst [vmem:[#allocation2 + $0xa48] sm:$0xff] %v37891_v0 }
 0x14a   : > { %813 = vst [vmem:[#allocation2 + $0xa50] sm:$0xff] %v37891_v0  ;;  %814 = vst [vmem:[#allocation2 + $0xa58] sm:$0xff] %v37891_v0 }
 0x14b   : > { %815 = vst [vmem:[#allocation2 + $0xa60] sm:$0xff] %v37891_v0  ;;  %816 = vst [vmem:[#allocation2 + $0xa68] sm:$0xff] %v37891_v0 }
 0x14c   : > { %817 = vst [vmem:[#allocation2 + $0xa70] sm:$0xff] %v37891_v0  ;;  %818 = vst [vmem:[#allocation2 + $0xa78] sm:$0xff] %v37891_v0 }
 0x14d   : > { %819 = vst [vmem:[#allocation2 + $0xa80] sm:$0xff] %v37891_v0  ;;  %820 = vst [vmem:[#allocation2 + $0xa88] sm:$0xff] %v37891_v0 }
 0x14e   : > { %821 = vst [vmem:[#allocation2 + $0xa90] sm:$0xff] %v37891_v0  ;;  %822 = vst [vmem:[#allocation2 + $0xa98] sm:$0xff] %v37891_v0 }
 0x14f   : > { %823 = vst [vmem:[#allocation2 + $0xaa0] sm:$0xff] %v37891_v0  ;;  %824 = vst [vmem:[#allocation2 + $0xaa8] sm:$0xff] %v37891_v0 }
 0x150   : > { %825 = vst [vmem:[#allocation2 + $0xab0] sm:$0xff] %v37891_v0  ;;  %826 = vst [vmem:[#allocation2 + $0xab8] sm:$0xff] %v37891_v0 }
 0x151   : > { %827 = vst [vmem:[#allocation2 + $0xac0] sm:$0xff] %v37891_v0  ;;  %828 = vst [vmem:[#allocation2 + $0xac8] sm:$0xff] %v37891_v0 }
 0x152   : > { %829 = vst [vmem:[#allocation2 + $0xad0] sm:$0xff] %v37891_v0  ;;  %830 = vst [vmem:[#allocation2 + $0xad8] sm:$0xff] %v37891_v0 }
 0x153   : > { %831 = vst [vmem:[#allocation2 + $0xae0] sm:$0xff] %v37891_v0  ;;  %832 = vst [vmem:[#allocation2 + $0xae8] sm:$0xff] %v37891_v0 }
 0x154   : > { %833 = vst [vmem:[#allocation2 + $0xaf0] sm:$0xff] %v37891_v0  ;;  %834 = vst [vmem:[#allocation2 + $0xaf8] sm:$0xff] %v37891_v0 }
 0x155   : > { %835 = vst [vmem:[#allocation2 + $0xb00] sm:$0xff] %v37891_v0  ;;  %836 = vst [vmem:[#allocation2 + $0xb08] sm:$0xff] %v37891_v0 }
 0x156   : > { %837 = vst [vmem:[#allocation2 + $0xb10] sm:$0xff] %v37891_v0  ;;  %838 = vst [vmem:[#allocation2 + $0xb18] sm:$0xff] %v37891_v0 }
 0x157   : > { %839 = vst [vmem:[#allocation2 + $0xb20] sm:$0xff] %v37891_v0  ;;  %840 = vst [vmem:[#allocation2 + $0xb28] sm:$0xff] %v37891_v0 }
 0x158   : > { %841 = vst [vmem:[#allocation2 + $0xb30] sm:$0xff] %v37891_v0  ;;  %842 = vst [vmem:[#allocation2 + $0xb38] sm:$0xff] %v37891_v0 }
 0x159   : > { %843 = vst [vmem:[#allocation2 + $0xb40] sm:$0xff] %v37891_v0  ;;  %844 = vst [vmem:[#allocation2 + $0xb48] sm:$0xff] %v37891_v0 }
 0x15a   : > { %845 = vst [vmem:[#allocation2 + $0xb50] sm:$0xff] %v37891_v0  ;;  %846 = vst [vmem:[#allocation2 + $0xb58] sm:$0xff] %v37891_v0 }
 0x15b   : > { %847 = vst [vmem:[#allocation2 + $0xb60] sm:$0xff] %v37891_v0  ;;  %848 = vst [vmem:[#allocation2 + $0xb68] sm:$0xff] %v37891_v0 }
 0x15c   : > { %849 = vst [vmem:[#allocation2 + $0xb70] sm:$0xff] %v37891_v0  ;;  %850 = vst [vmem:[#allocation2 + $0xb78] sm:$0xff] %v37891_v0 }
 0x15d   : > { %851 = vst [vmem:[#allocation2 + $0xb80] sm:$0xff] %v37891_v0  ;;  %852 = vst [vmem:[#allocation2 + $0xb88] sm:$0xff] %v37891_v0 }
 0x15e   : > { %853 = vst [vmem:[#allocation2 + $0xb90] sm:$0xff] %v37891_v0  ;;  %854 = vst [vmem:[#allocation2 + $0xb98] sm:$0xff] %v37891_v0 }
 0x15f   : > { %855 = vst [vmem:[#allocation2 + $0xba0] sm:$0xff] %v37891_v0  ;;  %856 = vst [vmem:[#allocation2 + $0xba8] sm:$0xff] %v37891_v0 }
 0x160   : > { %857 = vst [vmem:[#allocation2 + $0xbb0] sm:$0xff] %v37891_v0  ;;  %858 = vst [vmem:[#allocation2 + $0xbb8] sm:$0xff] %v37891_v0 }
 0x161   : > { %859 = vst [vmem:[#allocation2 + $0xbc0] sm:$0xff] %v37891_v0  ;;  %860 = vst [vmem:[#allocation2 + $0xbc8] sm:$0xff] %v37891_v0 }
 0x162   : > { %861 = vst [vmem:[#allocation2 + $0xbd0] sm:$0xff] %v37891_v0  ;;  %862 = vst [vmem:[#allocation2 + $0xbd8] sm:$0xff] %v37891_v0 }
 0x163   : > { %863 = vst [vmem:[#allocation2 + $0xbe0] sm:$0xff] %v37891_v0  ;;  %864 = vst [vmem:[#allocation2 + $0xbe8] sm:$0xff] %v37891_v0 }
 0x164   : > { %865 = vst [vmem:[#allocation2 + $0xbf0] sm:$0xff] %v37891_v0  ;;  %866 = vst [vmem:[#allocation2 + $0xbf8] sm:$0xff] %v37891_v0 }
 0x165   : > { %867 = vst [vmem:[#allocation2 + $0xc00] sm:$0xff] %v37891_v0  ;;  %868 = vst [vmem:[#allocation2 + $0xc08] sm:$0xff] %v37891_v0 }
 0x166   : > { %869 = vst [vmem:[#allocation2 + $0xc10] sm:$0xff] %v37891_v0  ;;  %870 = vst [vmem:[#allocation2 + $0xc18] sm:$0xff] %v37891_v0 }
 0x167   : > { %871 = vst [vmem:[#allocation2 + $0xc20] sm:$0xff] %v37891_v0  ;;  %872 = vst [vmem:[#allocation2 + $0xc28] sm:$0xff] %v37891_v0 }
 0x168   : > { %873 = vst [vmem:[#allocation2 + $0xc30] sm:$0xff] %v37891_v0  ;;  %874 = vst [vmem:[#allocation2 + $0xc38] sm:$0xff] %v37891_v0 }
 0x169   : > { %875 = vst [vmem:[#allocation2 + $0xc40] sm:$0xff] %v37891_v0  ;;  %876 = vst [vmem:[#allocation2 + $0xc48] sm:$0xff] %v37891_v0 }
 0x16a   : > { %877 = vst [vmem:[#allocation2 + $0xc50] sm:$0xff] %v37891_v0  ;;  %878 = vst [vmem:[#allocation2 + $0xc58] sm:$0xff] %v37891_v0 }
 0x16b   : > { %879 = vst [vmem:[#allocation2 + $0xc60] sm:$0xff] %v37891_v0  ;;  %880 = vst [vmem:[#allocation2 + $0xc68] sm:$0xff] %v37891_v0 }
 0x16c   : > { %881 = vst [vmem:[#allocation2 + $0xc70] sm:$0xff] %v37891_v0  ;;  %882 = vst [vmem:[#allocation2 + $0xc78] sm:$0xff] %v37891_v0 }
 0x16d   : > { %883 = vst [vmem:[#allocation2 + $0xc80] sm:$0xff] %v37891_v0  ;;  %884 = vst [vmem:[#allocation2 + $0xc88] sm:$0xff] %v37891_v0 }
 0x16e   : > { %885 = vst [vmem:[#allocation2 + $0xc90] sm:$0xff] %v37891_v0  ;;  %886 = vst [vmem:[#allocation2 + $0xc98] sm:$0xff] %v37891_v0 }
 0x16f   : > { %887 = vst [vmem:[#allocation2 + $0xca0] sm:$0xff] %v37891_v0  ;;  %888 = vst [vmem:[#allocation2 + $0xca8] sm:$0xff] %v37891_v0 }
 0x170   : > { %889 = vst [vmem:[#allocation2 + $0xcb0] sm:$0xff] %v37891_v0  ;;  %890 = vst [vmem:[#allocation2 + $0xcb8] sm:$0xff] %v37891_v0 }
 0x171   : > { %891 = vst [vmem:[#allocation2 + $0xcc0] sm:$0xff] %v37891_v0  ;;  %892 = vst [vmem:[#allocation2 + $0xcc8] sm:$0xff] %v37891_v0 }
 0x172   : > { %893 = vst [vmem:[#allocation2 + $0xcd0] sm:$0xff] %v37891_v0  ;;  %894 = vst [vmem:[#allocation2 + $0xcd8] sm:$0xff] %v37891_v0 }
 0x173   : > { %895 = vst [vmem:[#allocation2 + $0xce0] sm:$0xff] %v37891_v0  ;;  %896 = vst [vmem:[#allocation2 + $0xce8] sm:$0xff] %v37891_v0 }
 0x174   : > { %897 = vst [vmem:[#allocation2 + $0xcf0] sm:$0xff] %v37891_v0  ;;  %898 = vst [vmem:[#allocation2 + $0xcf8] sm:$0xff] %v37891_v0 }
 0x175   : > { %899 = vst [vmem:[#allocation2 + $0xd00] sm:$0xff] %v37891_v0  ;;  %900 = vst [vmem:[#allocation2 + $0xd08] sm:$0xff] %v37891_v0 }
 0x176   : > { %901 = vst [vmem:[#allocation2 + $0xd10] sm:$0xff] %v37891_v0  ;;  %902 = vst [vmem:[#allocation2 + $0xd18] sm:$0xff] %v37891_v0 }
 0x177   : > { %903 = vst [vmem:[#allocation2 + $0xd20] sm:$0xff] %v37891_v0  ;;  %904 = vst [vmem:[#allocation2 + $0xd28] sm:$0xff] %v37891_v0 }
 0x178   : > { %905 = vst [vmem:[#allocation2 + $0xd30] sm:$0xff] %v37891_v0  ;;  %906 = vst [vmem:[#allocation2 + $0xd38] sm:$0xff] %v37891_v0 }
 0x179   : > { %907 = vst [vmem:[#allocation2 + $0xd40] sm:$0xff] %v37891_v0  ;;  %908 = vst [vmem:[#allocation2 + $0xd48] sm:$0xff] %v37891_v0 }
 0x17a   : > { %909 = vst [vmem:[#allocation2 + $0xd50] sm:$0xff] %v37891_v0  ;;  %910 = vst [vmem:[#allocation2 + $0xd58] sm:$0xff] %v37891_v0 }
 0x17b   : > { %911 = vst [vmem:[#allocation2 + $0xd60] sm:$0xff] %v37891_v0  ;;  %912 = vst [vmem:[#allocation2 + $0xd68] sm:$0xff] %v37891_v0 }
 0x17c   : > { %913 = vst [vmem:[#allocation2 + $0xd70] sm:$0xff] %v37891_v0  ;;  %914 = vst [vmem:[#allocation2 + $0xd78] sm:$0xff] %v37891_v0 }
 0x17d   : > { %915 = vst [vmem:[#allocation2 + $0xd80] sm:$0xff] %v37891_v0  ;;  %916 = vst [vmem:[#allocation2 + $0xd88] sm:$0xff] %v37891_v0 }
 0x17e   : > { %917 = vst [vmem:[#allocation2 + $0xd90] sm:$0xff] %v37891_v0  ;;  %918 = vst [vmem:[#allocation2 + $0xd98] sm:$0xff] %v37891_v0 }
 0x17f   : > { %919 = vst [vmem:[#allocation2 + $0xda0] sm:$0xff] %v37891_v0  ;;  %920 = vst [vmem:[#allocation2 + $0xda8] sm:$0xff] %v37891_v0 }
 0x180   : > { %921 = vst [vmem:[#allocation2 + $0xdb0] sm:$0xff] %v37891_v0  ;;  %922 = vst [vmem:[#allocation2 + $0xdb8] sm:$0xff] %v37891_v0 }
 0x181   : > { %923 = vst [vmem:[#allocation2 + $0xdc0] sm:$0xff] %v37891_v0  ;;  %924 = vst [vmem:[#allocation2 + $0xdc8] sm:$0xff] %v37891_v0 }
 0x182   : > { %925 = vst [vmem:[#allocation2 + $0xdd0] sm:$0xff] %v37891_v0  ;;  %926 = vst [vmem:[#allocation2 + $0xdd8] sm:$0xff] %v37891_v0 }
 0x183   : > { %927 = vst [vmem:[#allocation2 + $0xde0] sm:$0xff] %v37891_v0  ;;  %928 = vst [vmem:[#allocation2 + $0xde8] sm:$0xff] %v37891_v0 }
 0x184   : > { %929 = vst [vmem:[#allocation2 + $0xdf0] sm:$0xff] %v37891_v0  ;;  %930 = vst [vmem:[#allocation2 + $0xdf8] sm:$0xff] %v37891_v0 }
 0x185   : > { %931 = vst [vmem:[#allocation2 + $0xe00] sm:$0xff] %v37891_v0  ;;  %932 = vst [vmem:[#allocation2 + $0xe08] sm:$0xff] %v37891_v0 }
 0x186   : > { %933 = vst [vmem:[#allocation2 + $0xe10] sm:$0xff] %v37891_v0  ;;  %934 = vst [vmem:[#allocation2 + $0xe18] sm:$0xff] %v37891_v0 }
 0x187   : > { %935 = vst [vmem:[#allocation2 + $0xe20] sm:$0xff] %v37891_v0  ;;  %936 = vst [vmem:[#allocation2 + $0xe28] sm:$0xff] %v37891_v0 }
 0x188   : > { %937 = vst [vmem:[#allocation2 + $0xe30] sm:$0xff] %v37891_v0  ;;  %938 = vst [vmem:[#allocation2 + $0xe38] sm:$0xff] %v37891_v0 }
 0x189   : > { %939 = vst [vmem:[#allocation2 + $0xe40] sm:$0xff] %v37891_v0  ;;  %940 = vst [vmem:[#allocation2 + $0xe48] sm:$0xff] %v37891_v0 }
 0x18a   : > { %941 = vst [vmem:[#allocation2 + $0xe50] sm:$0xff] %v37891_v0  ;;  %942 = vst [vmem:[#allocation2 + $0xe58] sm:$0xff] %v37891_v0 }
 0x18b   : > { %943 = vst [vmem:[#allocation2 + $0xe60] sm:$0xff] %v37891_v0  ;;  %944 = vst [vmem:[#allocation2 + $0xe68] sm:$0xff] %v37891_v0 }
 0x18c   : > { %945 = vst [vmem:[#allocation2 + $0xe70] sm:$0xff] %v37891_v0  ;;  %946 = vst [vmem:[#allocation2 + $0xe78] sm:$0xff] %v37891_v0 }
 0x18d   : > { %947 = vst [vmem:[#allocation2 + $0xe80] sm:$0xff] %v37891_v0  ;;  %948 = vst [vmem:[#allocation2 + $0xe88] sm:$0xff] %v37891_v0 }
 0x18e   : > { %949 = vst [vmem:[#allocation2 + $0xe90] sm:$0xff] %v37891_v0  ;;  %950 = vst [vmem:[#allocation2 + $0xe98] sm:$0xff] %v37891_v0 }
 0x18f   : > { %951 = vst [vmem:[#allocation2 + $0xea0] sm:$0xff] %v37891_v0  ;;  %952 = vst [vmem:[#allocation2 + $0xea8] sm:$0xff] %v37891_v0 }
 0x190   : > { %953 = vst [vmem:[#allocation2 + $0xeb0] sm:$0xff] %v37891_v0  ;;  %954 = vst [vmem:[#allocation2 + $0xeb8] sm:$0xff] %v37891_v0 }
 0x191   : > { %955 = vst [vmem:[#allocation2 + $0xec0] sm:$0xff] %v37891_v0  ;;  %956 = vst [vmem:[#allocation2 + $0xec8] sm:$0xff] %v37891_v0 }
 0x192   : > { %957 = vst [vmem:[#allocation2 + $0xed0] sm:$0xff] %v37891_v0  ;;  %958 = vst [vmem:[#allocation2 + $0xed8] sm:$0xff] %v37891_v0 }
 0x193   : > { %959 = vst [vmem:[#allocation2 + $0xee0] sm:$0xff] %v37891_v0  ;;  %960 = vst [vmem:[#allocation2 + $0xee8] sm:$0xff] %v37891_v0 }
 0x194   : > { %961 = vst [vmem:[#allocation2 + $0xef0] sm:$0xff] %v37891_v0  ;;  %962 = vst [vmem:[#allocation2 + $0xef8] sm:$0xff] %v37891_v0 }
 0x195   : > { %963 = vst [vmem:[#allocation2 + $0xf00] sm:$0xff] %v37891_v0  ;;  %964 = vst [vmem:[#allocation2 + $0xf08] sm:$0xff] %v37891_v0 }
 0x196   : > { %965 = vst [vmem:[#allocation2 + $0xf10] sm:$0xff] %v37891_v0  ;;  %966 = vst [vmem:[#allocation2 + $0xf18] sm:$0xff] %v37891_v0 }
 0x197   : > { %967 = vst [vmem:[#allocation2 + $0xf20] sm:$0xff] %v37891_v0  ;;  %968 = vst [vmem:[#allocation2 + $0xf28] sm:$0xff] %v37891_v0 }
 0x198   : > { %969 = vst [vmem:[#allocation2 + $0xf30] sm:$0xff] %v37891_v0  ;;  %970 = vst [vmem:[#allocation2 + $0xf38] sm:$0xff] %v37891_v0 }
 0x199   : > { %971 = vst [vmem:[#allocation2 + $0xf40] sm:$0xff] %v37891_v0  ;;  %972 = vst [vmem:[#allocation2 + $0xf48] sm:$0xff] %v37891_v0 }
 0x19a   : > { %973 = vst [vmem:[#allocation2 + $0xf50] sm:$0xff] %v37891_v0  ;;  %974 = vst [vmem:[#allocation2 + $0xf58] sm:$0xff] %v37891_v0 }
 0x19b   : > { %975 = vst [vmem:[#allocation2 + $0xf60] sm:$0xff] %v37891_v0  ;;  %976 = vst [vmem:[#allocation2 + $0xf68] sm:$0xff] %v37891_v0 }
 0x19c   : > { %977 = vst [vmem:[#allocation2 + $0xf70] sm:$0xff] %v37891_v0  ;;  %978 = vst [vmem:[#allocation2 + $0xf78] sm:$0xff] %v37891_v0 }
 0x19d   : > { %979 = vst [vmem:[#allocation2 + $0xf80] sm:$0xff] %v37891_v0  ;;  %980 = vst [vmem:[#allocation2 + $0xf88] sm:$0xff] %v37891_v0 }
 0x19e   : > { %981 = vst [vmem:[#allocation2 + $0xf90] sm:$0xff] %v37891_v0  ;;  %982 = vst [vmem:[#allocation2 + $0xf98] sm:$0xff] %v37891_v0 }
 0x19f   : > { %983 = vst [vmem:[#allocation2 + $0xfa0] sm:$0xff] %v37891_v0  ;;  %984 = vst [vmem:[#allocation2 + $0xfa8] sm:$0xff] %v37891_v0 }
 0x1a0   : > { %985 = vst [vmem:[#allocation2 + $0xfb0] sm:$0xff] %v37891_v0  ;;  %986 = vst [vmem:[#allocation2 + $0xfb8] sm:$0xff] %v37891_v0 }
 0x1a1   : > { %987 = vst [vmem:[#allocation2 + $0xfc0] sm:$0xff] %v37891_v0  ;;  %988 = vst [vmem:[#allocation2 + $0xfc8] sm:$0xff] %v37891_v0 }
 0x1a2   : > { %989 = vst [vmem:[#allocation2 + $0xfd0] sm:$0xff] %v37891_v0  ;;  %990 = vst [vmem:[#allocation2 + $0xfd8] sm:$0xff] %v37891_v0 }
 0x1a3   : > { %991 = vst [vmem:[#allocation2 + $0xfe0] sm:$0xff] %v37891_v0  ;;  %992 = vst [vmem:[#allocation2 + $0xfe8] sm:$0xff] %v37891_v0 }
 0x1a4   : > { %993 = vst [vmem:[#allocation2 + $0xff0] sm:$0xff] %v37891_v0  ;;  %994 = vst [vmem:[#allocation2 + $0xff8] sm:$0xff] %v37891_v0  ;;  %v39329_v0 = vadd.s32 %v39214_v7, %v1569_v33  ;;  %v39390_v33 = vadd.s32 %v39214_v7, %v39208_v3 }
 0x1a5   : > { %995 = vst [vmem:[#allocation2 + $0x1000] sm:$0xff] %v38690_v1  ;;  %996 = vst [vmem:[#allocation2 + $0x1008] sm:$0xff] %v38690_v1 }
 0x1a6   : > { %997 = vst [vmem:[#allocation2 + $0x1010] sm:$0xff] %v38690_v1  ;;  %998 = vst [vmem:[#allocation2 + $0x1018] sm:$0xff] %v38690_v1  ;;  %vm44361_vm0 = vcmp.lt.s32.totalorder %v39390_v33, 16 }
 0x1a7   : > { %999 = vst [vmem:[#allocation2 + $0x1020] sm:$0xff] %v38690_v1  ;;  %1000 = vst [vmem:[#allocation2 + $0x1028] sm:$0xff] %v38690_v1 }
 0x1a8   : > { %1001 = vst [vmem:[#allocation2 + $0x1030] sm:$0xff] %v38690_v1  ;;  %1002 = vst [vmem:[#allocation2 + $0x1038] sm:$0xff] %v38690_v1 }
 0x1a9   : > { %1003 = vst [vmem:[#allocation2 + $0x1040] sm:$0xff] %v38690_v1  ;;  %1004 = vst [vmem:[#allocation2 + $0x1048] sm:$0xff] %v38690_v1 }
 0x1aa   : > { %1005 = vst [vmem:[#allocation2 + $0x1050] sm:$0xff] %v38690_v1  ;;  %1006 = vst [vmem:[#allocation2 + $0x1058] sm:$0xff] %v38690_v1 }
 0x1ab   : > { %1007 = vst [vmem:[#allocation2 + $0x1060] sm:$0xff] %v38690_v1  ;;  %1008 = vst [vmem:[#allocation2 + $0x1068] sm:$0xff] %v38690_v1 }
 0x1ac   : > { %1009 = vst [vmem:[#allocation2 + $0x1070] sm:$0xff] %v38690_v1  ;;  %1010 = vst [vmem:[#allocation2 + $0x1078] sm:$0xff] %v38690_v1 }
 0x1ad   : > { %1011 = vst [vmem:[#allocation2 + $0x1080] sm:$0xff] %v38690_v1  ;;  %1012 = vst [vmem:[#allocation2 + $0x1088] sm:$0xff] %v38690_v1 }
 0x1ae   : > { %1013 = vst [vmem:[#allocation2 + $0x1090] sm:$0xff] %v38690_v1  ;;  %1014 = vst [vmem:[#allocation2 + $0x1098] sm:$0xff] %v38690_v1 }
 0x1af   : > { %1015 = vst [vmem:[#allocation2 + $0x10a0] sm:$0xff] %v38690_v1  ;;  %1016 = vst [vmem:[#allocation2 + $0x10a8] sm:$0xff] %v38690_v1 }
 0x1b0   : > { %1017 = vst [vmem:[#allocation2 + $0x10b0] sm:$0xff] %v38690_v1  ;;  %1018 = vst [vmem:[#allocation2 + $0x10b8] sm:$0xff] %v38690_v1 }
 0x1b1   : > { %1019 = vst [vmem:[#allocation2 + $0x10c0] sm:$0xff] %v38690_v1  ;;  %1020 = vst [vmem:[#allocation2 + $0x10c8] sm:$0xff] %v38690_v1 }
 0x1b2   : > { %1021 = vst [vmem:[#allocation2 + $0x10d0] sm:$0xff] %v38690_v1  ;;  %1022 = vst [vmem:[#allocation2 + $0x10d8] sm:$0xff] %v38690_v1 }
 0x1b3   : > { %1023 = vst [vmem:[#allocation2 + $0x10e0] sm:$0xff] %v38690_v1  ;;  %1024 = vst [vmem:[#allocation2 + $0x10e8] sm:$0xff] %v38690_v1 }
 0x1b4   : > { %1025 = vst [vmem:[#allocation2 + $0x10f0] sm:$0xff] %v38690_v1  ;;  %1026 = vst [vmem:[#allocation2 + $0x10f8] sm:$0xff] %v38690_v1 }
 0x1b5   : > { %1027 = vst [vmem:[#allocation2 + $0x1100] sm:$0xff] %v38690_v1  ;;  %1028 = vst [vmem:[#allocation2 + $0x1108] sm:$0xff] %v38690_v1 }
 0x1b6   : > { %1029 = vst [vmem:[#allocation2 + $0x1110] sm:$0xff] %v38690_v1  ;;  %1030 = vst [vmem:[#allocation2 + $0x1118] sm:$0xff] %v38690_v1 }
 0x1b7   : > { %1031 = vst [vmem:[#allocation2 + $0x1120] sm:$0xff] %v38690_v1  ;;  %1032 = vst [vmem:[#allocation2 + $0x1128] sm:$0xff] %v38690_v1 }
 0x1b8   : > { %1033 = vst [vmem:[#allocation2 + $0x1130] sm:$0xff] %v38690_v1  ;;  %1034 = vst [vmem:[#allocation2 + $0x1138] sm:$0xff] %v38690_v1 }
 0x1b9   : > { %1035 = vst [vmem:[#allocation2 + $0x1140] sm:$0xff] %v38690_v1  ;;  %1036 = vst [vmem:[#allocation2 + $0x1148] sm:$0xff] %v38690_v1 }
 0x1ba   : > { %1037 = vst [vmem:[#allocation2 + $0x1150] sm:$0xff] %v38690_v1  ;;  %1038 = vst [vmem:[#allocation2 + $0x1158] sm:$0xff] %v38690_v1 }
 0x1bb   : > { %1039 = vst [vmem:[#allocation2 + $0x1160] sm:$0xff] %v38690_v1  ;;  %1040 = vst [vmem:[#allocation2 + $0x1168] sm:$0xff] %v38690_v1 }
 0x1bc   : > { %1041 = vst [vmem:[#allocation2 + $0x1170] sm:$0xff] %v38690_v1  ;;  %1042 = vst [vmem:[#allocation2 + $0x1178] sm:$0xff] %v38690_v1 }
 0x1bd   : > { %1043 = vst [vmem:[#allocation2 + $0x1180] sm:$0xff] %v38690_v1  ;;  %1044 = vst [vmem:[#allocation2 + $0x1188] sm:$0xff] %v38690_v1 }
 0x1be   : > { %1045 = vst [vmem:[#allocation2 + $0x1190] sm:$0xff] %v38690_v1  ;;  %1046 = vst [vmem:[#allocation2 + $0x1198] sm:$0xff] %v38690_v1 }
 0x1bf   : > { %1047 = vst [vmem:[#allocation2 + $0x11a0] sm:$0xff] %v38690_v1  ;;  %1048 = vst [vmem:[#allocation2 + $0x11a8] sm:$0xff] %v38690_v1 }
 0x1c0   : > { %1049 = vst [vmem:[#allocation2 + $0x11b0] sm:$0xff] %v38690_v1  ;;  %1050 = vst [vmem:[#allocation2 + $0x11b8] sm:$0xff] %v38690_v1 }
 0x1c1   : > { %1051 = vst [vmem:[#allocation2 + $0x11c0] sm:$0xff] %v38690_v1  ;;  %1052 = vst [vmem:[#allocation2 + $0x11c8] sm:$0xff] %v38690_v1 }
 0x1c2   : > { %1053 = vst [vmem:[#allocation2 + $0x11d0] sm:$0xff] %v38690_v1  ;;  %1054 = vst [vmem:[#allocation2 + $0x11d8] sm:$0xff] %v38690_v1 }
 0x1c3   : > { %1055 = vst [vmem:[#allocation2 + $0x11e0] sm:$0xff] %v38690_v1  ;;  %1056 = vst [vmem:[#allocation2 + $0x11e8] sm:$0xff] %v38690_v1 }
 0x1c4   : > { %1057 = vst [vmem:[#allocation2 + $0x11f0] sm:$0xff] %v38690_v1  ;;  %1058 = vst [vmem:[#allocation2 + $0x11f8] sm:$0xff] %v38690_v1 }
 0x1c5   : > { %1059 = vst [vmem:[#allocation2 + $0x1200] sm:$0xff] %v38690_v1  ;;  %1060 = vst [vmem:[#allocation2 + $0x1208] sm:$0xff] %v38690_v1 }
 0x1c6   : > { %1061 = vst [vmem:[#allocation2 + $0x1210] sm:$0xff] %v38690_v1  ;;  %1062 = vst [vmem:[#allocation2 + $0x1218] sm:$0xff] %v38690_v1 }
 0x1c7   : > { %1063 = vst [vmem:[#allocation2 + $0x1220] sm:$0xff] %v38690_v1  ;;  %1064 = vst [vmem:[#allocation2 + $0x1228] sm:$0xff] %v38690_v1 }
 0x1c8   : > { %1065 = vst [vmem:[#allocation2 + $0x1230] sm:$0xff] %v38690_v1  ;;  %1066 = vst [vmem:[#allocation2 + $0x1238] sm:$0xff] %v38690_v1 }
 0x1c9   : > { %1067 = vst [vmem:[#allocation2 + $0x1240] sm:$0xff] %v38690_v1  ;;  %1068 = vst [vmem:[#allocation2 + $0x1248] sm:$0xff] %v38690_v1 }
 0x1ca   : > { %1069 = vst [vmem:[#allocation2 + $0x1250] sm:$0xff] %v38690_v1  ;;  %1070 = vst [vmem:[#allocation2 + $0x1258] sm:$0xff] %v38690_v1 }
 0x1cb   : > { %1071 = vst [vmem:[#allocation2 + $0x1260] sm:$0xff] %v38690_v1  ;;  %1072 = vst [vmem:[#allocation2 + $0x1268] sm:$0xff] %v38690_v1 }
 0x1cc   : > { %1073 = vst [vmem:[#allocation2 + $0x1270] sm:$0xff] %v38690_v1  ;;  %1074 = vst [vmem:[#allocation2 + $0x1278] sm:$0xff] %v38690_v1 }
 0x1cd   : > { %1075 = vst [vmem:[#allocation2 + $0x1280] sm:$0xff] %v38690_v1  ;;  %1076 = vst [vmem:[#allocation2 + $0x1288] sm:$0xff] %v38690_v1 }
 0x1ce   : > { %1077 = vst [vmem:[#allocation2 + $0x1290] sm:$0xff] %v38690_v1  ;;  %1078 = vst [vmem:[#allocation2 + $0x1298] sm:$0xff] %v38690_v1 }
 0x1cf   : > { %1079 = vst [vmem:[#allocation2 + $0x12a0] sm:$0xff] %v38690_v1  ;;  %1080 = vst [vmem:[#allocation2 + $0x12a8] sm:$0xff] %v38690_v1 }
 0x1d0   : > { %1081 = vst [vmem:[#allocation2 + $0x12b0] sm:$0xff] %v38690_v1  ;;  %1082 = vst [vmem:[#allocation2 + $0x12b8] sm:$0xff] %v38690_v1 }
 0x1d1   : > { %1083 = vst [vmem:[#allocation2 + $0x12c0] sm:$0xff] %v38690_v1  ;;  %1084 = vst [vmem:[#allocation2 + $0x12c8] sm:$0xff] %v38690_v1 }
 0x1d2   : > { %1085 = vst [vmem:[#allocation2 + $0x12d0] sm:$0xff] %v38690_v1  ;;  %1086 = vst [vmem:[#allocation2 + $0x12d8] sm:$0xff] %v38690_v1 }
 0x1d3   : > { %1087 = vst [vmem:[#allocation2 + $0x12e0] sm:$0xff] %v38690_v1  ;;  %1088 = vst [vmem:[#allocation2 + $0x12e8] sm:$0xff] %v38690_v1 }
 0x1d4   : > { %1089 = vst [vmem:[#allocation2 + $0x12f0] sm:$0xff] %v38690_v1  ;;  %1090 = vst [vmem:[#allocation2 + $0x12f8] sm:$0xff] %v38690_v1 }
 0x1d5   : > { %1091 = vst [vmem:[#allocation2 + $0x1300] sm:$0xff] %v38690_v1  ;;  %1092 = vst [vmem:[#allocation2 + $0x1308] sm:$0xff] %v38690_v1 }
 0x1d6   : > { %1093 = vst [vmem:[#allocation2 + $0x1310] sm:$0xff] %v38690_v1  ;;  %1094 = vst [vmem:[#allocation2 + $0x1318] sm:$0xff] %v38690_v1 }
 0x1d7   : > { %1095 = vst [vmem:[#allocation2 + $0x1320] sm:$0xff] %v38690_v1  ;;  %1096 = vst [vmem:[#allocation2 + $0x1328] sm:$0xff] %v38690_v1 }
 0x1d8   : > { %1097 = vst [vmem:[#allocation2 + $0x1330] sm:$0xff] %v38690_v1  ;;  %1098 = vst [vmem:[#allocation2 + $0x1338] sm:$0xff] %v38690_v1 }
 0x1d9   : > { %1099 = vst [vmem:[#allocation2 + $0x1340] sm:$0xff] %v38690_v1  ;;  %1100 = vst [vmem:[#allocation2 + $0x1348] sm:$0xff] %v38690_v1 }
 0x1da   : > { %1101 = vst [vmem:[#allocation2 + $0x1350] sm:$0xff] %v38690_v1  ;;  %1102 = vst [vmem:[#allocation2 + $0x1358] sm:$0xff] %v38690_v1 }
 0x1db   : > { %1103 = vst [vmem:[#allocation2 + $0x1360] sm:$0xff] %v38690_v1  ;;  %1104 = vst [vmem:[#allocation2 + $0x1368] sm:$0xff] %v38690_v1 }
 0x1dc   : > { %1105 = vst [vmem:[#allocation2 + $0x1370] sm:$0xff] %v38690_v1  ;;  %1106 = vst [vmem:[#allocation2 + $0x1378] sm:$0xff] %v38690_v1 }
 0x1dd   : > { %1107 = vst [vmem:[#allocation2 + $0x1380] sm:$0xff] %v38690_v1  ;;  %1108 = vst [vmem:[#allocation2 + $0x1388] sm:$0xff] %v38690_v1 }
 0x1de   : > { %1109 = vst [vmem:[#allocation2 + $0x1390] sm:$0xff] %v38690_v1  ;;  %1110 = vst [vmem:[#allocation2 + $0x1398] sm:$0xff] %v38690_v1 }
 0x1df   : > { %1111 = vst [vmem:[#allocation2 + $0x13a0] sm:$0xff] %v38690_v1  ;;  %1112 = vst [vmem:[#allocation2 + $0x13a8] sm:$0xff] %v38690_v1 }
 0x1e0   : > { %1113 = vst [vmem:[#allocation2 + $0x13b0] sm:$0xff] %v38690_v1  ;;  %1114 = vst [vmem:[#allocation2 + $0x13b8] sm:$0xff] %v38690_v1 }
 0x1e1   : > { %1115 = vst [vmem:[#allocation2 + $0x13c0] sm:$0xff] %v38690_v1  ;;  %1116 = vst [vmem:[#allocation2 + $0x13c8] sm:$0xff] %v38690_v1 }
 0x1e2   : > { %1117 = vst [vmem:[#allocation2 + $0x13d0] sm:$0xff] %v38690_v1  ;;  %1118 = vst [vmem:[#allocation2 + $0x13d8] sm:$0xff] %v38690_v1 }
 0x1e3   : > { %1119 = vst [vmem:[#allocation2 + $0x13e0] sm:$0xff] %v38690_v1  ;;  %1120 = vst [vmem:[#allocation2 + $0x13e8] sm:$0xff] %v38690_v1 }
 0x1e4   : > { %1121 = vst [vmem:[#allocation2 + $0x13f0] sm:$0xff] %v38690_v1  ;;  %1122 = vst [vmem:[#allocation2 + $0x13f8] sm:$0xff] %v38690_v1 }
 0x1e5   : > { %1123 = vst [vmem:[#allocation2 + $0x1400] sm:$0xff] %v38690_v1  ;;  %1124 = vst [vmem:[#allocation2 + $0x1408] sm:$0xff] %v38690_v1 }
 0x1e6   : > { %1125 = vst [vmem:[#allocation2 + $0x1410] sm:$0xff] %v38690_v1  ;;  %1126 = vst [vmem:[#allocation2 + $0x1418] sm:$0xff] %v38690_v1 }
 0x1e7   : > { %1127 = vst [vmem:[#allocation2 + $0x1420] sm:$0xff] %v38690_v1  ;;  %1128 = vst [vmem:[#allocation2 + $0x1428] sm:$0xff] %v38690_v1 }
 0x1e8   : > { %1129 = vst [vmem:[#allocation2 + $0x1430] sm:$0xff] %v38690_v1  ;;  %1130 = vst [vmem:[#allocation2 + $0x1438] sm:$0xff] %v38690_v1 }
 0x1e9   : > { %1131 = vst [vmem:[#allocation2 + $0x1440] sm:$0xff] %v38690_v1  ;;  %1132 = vst [vmem:[#allocation2 + $0x1448] sm:$0xff] %v38690_v1 }
 0x1ea   : > { %1133 = vst [vmem:[#allocation2 + $0x1450] sm:$0xff] %v38690_v1  ;;  %1134 = vst [vmem:[#allocation2 + $0x1458] sm:$0xff] %v38690_v1 }
 0x1eb   : > { %1135 = vst [vmem:[#allocation2 + $0x1460] sm:$0xff] %v38690_v1  ;;  %1136 = vst [vmem:[#allocation2 + $0x1468] sm:$0xff] %v38690_v1 }
 0x1ec   : > { %1137 = vst [vmem:[#allocation2 + $0x1470] sm:$0xff] %v38690_v1  ;;  %1138 = vst [vmem:[#allocation2 + $0x1478] sm:$0xff] %v38690_v1 }
 0x1ed   : > { %1139 = vst [vmem:[#allocation2 + $0x1480] sm:$0xff] %v38690_v1  ;;  %1140 = vst [vmem:[#allocation2 + $0x1488] sm:$0xff] %v38690_v1 }
 0x1ee   : > { %1141 = vst [vmem:[#allocation2 + $0x1490] sm:$0xff] %v38690_v1  ;;  %1142 = vst [vmem:[#allocation2 + $0x1498] sm:$0xff] %v38690_v1 }
 0x1ef   : > { %1143 = vst [vmem:[#allocation2 + $0x14a0] sm:$0xff] %v38690_v1  ;;  %1144 = vst [vmem:[#allocation2 + $0x14a8] sm:$0xff] %v38690_v1 }
 0x1f0   : > { %1145 = vst [vmem:[#allocation2 + $0x14b0] sm:$0xff] %v38690_v1  ;;  %1146 = vst [vmem:[#allocation2 + $0x14b8] sm:$0xff] %v38690_v1 }
 0x1f1   : > { %1147 = vst [vmem:[#allocation2 + $0x14c0] sm:$0xff] %v38690_v1  ;;  %1148 = vst [vmem:[#allocation2 + $0x14c8] sm:$0xff] %v38690_v1 }
 0x1f2   : > { %1149 = vst [vmem:[#allocation2 + $0x14d0] sm:$0xff] %v38690_v1  ;;  %1150 = vst [vmem:[#allocation2 + $0x14d8] sm:$0xff] %v38690_v1 }
 0x1f3   : > { %1151 = vst [vmem:[#allocation2 + $0x14e0] sm:$0xff] %v38690_v1  ;;  %1152 = vst [vmem:[#allocation2 + $0x14e8] sm:$0xff] %v38690_v1 }
 0x1f4   : > { %1153 = vst [vmem:[#allocation2 + $0x14f0] sm:$0xff] %v38690_v1  ;;  %1154 = vst [vmem:[#allocation2 + $0x14f8] sm:$0xff] %v38690_v1 }
 0x1f5   : > { %1155 = vst [vmem:[#allocation2 + $0x1500] sm:$0xff] %v38690_v1  ;;  %1156 = vst [vmem:[#allocation2 + $0x1508] sm:$0xff] %v38690_v1 }
 0x1f6   : > { %1157 = vst [vmem:[#allocation2 + $0x1510] sm:$0xff] %v38690_v1  ;;  %1158 = vst [vmem:[#allocation2 + $0x1518] sm:$0xff] %v38690_v1 }
 0x1f7   : > { %1159 = vst [vmem:[#allocation2 + $0x1520] sm:$0xff] %v38690_v1  ;;  %1160 = vst [vmem:[#allocation2 + $0x1528] sm:$0xff] %v38690_v1 }
 0x1f8   : > { %1161 = vst [vmem:[#allocation2 + $0x1530] sm:$0xff] %v38690_v1  ;;  %1162 = vst [vmem:[#allocation2 + $0x1538] sm:$0xff] %v38690_v1 }
 0x1f9   : > { %1163 = vst [vmem:[#allocation2 + $0x1540] sm:$0xff] %v38690_v1  ;;  %1164 = vst [vmem:[#allocation2 + $0x1548] sm:$0xff] %v38690_v1 }
 0x1fa   : > { %1165 = vst [vmem:[#allocation2 + $0x1550] sm:$0xff] %v38690_v1  ;;  %1166 = vst [vmem:[#allocation2 + $0x1558] sm:$0xff] %v38690_v1 }
 0x1fb   : > { %1167 = vst [vmem:[#allocation2 + $0x1560] sm:$0xff] %v38690_v1  ;;  %1168 = vst [vmem:[#allocation2 + $0x1568] sm:$0xff] %v38690_v1 }
 0x1fc   : > { %1169 = vst [vmem:[#allocation2 + $0x1570] sm:$0xff] %v38690_v1  ;;  %1170 = vst [vmem:[#allocation2 + $0x1578] sm:$0xff] %v38690_v1 }
 0x1fd   : > { %1171 = vst [vmem:[#allocation2 + $0x1580] sm:$0xff] %v38690_v1  ;;  %1172 = vst [vmem:[#allocation2 + $0x1588] sm:$0xff] %v38690_v1 }
 0x1fe   : > { %1173 = vst [vmem:[#allocation2 + $0x1590] sm:$0xff] %v38690_v1  ;;  %1174 = vst [vmem:[#allocation2 + $0x1598] sm:$0xff] %v38690_v1 }
 0x1ff   : > { %1175 = vst [vmem:[#allocation2 + $0x15a0] sm:$0xff] %v38690_v1  ;;  %1176 = vst [vmem:[#allocation2 + $0x15a8] sm:$0xff] %v38690_v1 }
 0x200   : > { %1177 = vst [vmem:[#allocation2 + $0x15b0] sm:$0xff] %v38690_v1  ;;  %1178 = vst [vmem:[#allocation2 + $0x15b8] sm:$0xff] %v38690_v1 }
 0x201   : > { %1179 = vst [vmem:[#allocation2 + $0x15c0] sm:$0xff] %v38690_v1  ;;  %1180 = vst [vmem:[#allocation2 + $0x15c8] sm:$0xff] %v38690_v1 }
 0x202   : > { %1181 = vst [vmem:[#allocation2 + $0x15d0] sm:$0xff] %v38690_v1  ;;  %1182 = vst [vmem:[#allocation2 + $0x15d8] sm:$0xff] %v38690_v1 }
 0x203   : > { %1183 = vst [vmem:[#allocation2 + $0x15e0] sm:$0xff] %v38690_v1  ;;  %1184 = vst [vmem:[#allocation2 + $0x15e8] sm:$0xff] %v38690_v1 }
 0x204   : > { %1185 = vst [vmem:[#allocation2 + $0x15f0] sm:$0xff] %v38690_v1  ;;  %1186 = vst [vmem:[#allocation2 + $0x15f8] sm:$0xff] %v38690_v1 }
 0x205   : > { %1187 = vst [vmem:[#allocation2 + $0x1600] sm:$0xff] %v38690_v1  ;;  %1188 = vst [vmem:[#allocation2 + $0x1608] sm:$0xff] %v38690_v1 }
 0x206   : > { %1189 = vst [vmem:[#allocation2 + $0x1610] sm:$0xff] %v38690_v1  ;;  %1190 = vst [vmem:[#allocation2 + $0x1618] sm:$0xff] %v38690_v1 }
 0x207   : > { %1191 = vst [vmem:[#allocation2 + $0x1620] sm:$0xff] %v38690_v1  ;;  %1192 = vst [vmem:[#allocation2 + $0x1628] sm:$0xff] %v38690_v1 }
 0x208   : > { %1193 = vst [vmem:[#allocation2 + $0x1630] sm:$0xff] %v38690_v1  ;;  %1194 = vst [vmem:[#allocation2 + $0x1638] sm:$0xff] %v38690_v1 }
 0x209   : > { %1195 = vst [vmem:[#allocation2 + $0x1640] sm:$0xff] %v38690_v1  ;;  %1196 = vst [vmem:[#allocation2 + $0x1648] sm:$0xff] %v38690_v1 }
 0x20a   : > { %1197 = vst [vmem:[#allocation2 + $0x1650] sm:$0xff] %v38690_v1  ;;  %1198 = vst [vmem:[#allocation2 + $0x1658] sm:$0xff] %v38690_v1 }
 0x20b   : > { %1199 = vst [vmem:[#allocation2 + $0x1660] sm:$0xff] %v38690_v1  ;;  %1200 = vst [vmem:[#allocation2 + $0x1668] sm:$0xff] %v38690_v1 }
 0x20c   : > { %1201 = vst [vmem:[#allocation2 + $0x1670] sm:$0xff] %v38690_v1  ;;  %1202 = vst [vmem:[#allocation2 + $0x1678] sm:$0xff] %v38690_v1 }
 0x20d   : > { %1203 = vst [vmem:[#allocation2 + $0x1680] sm:$0xff] %v38690_v1  ;;  %1204 = vst [vmem:[#allocation2 + $0x1688] sm:$0xff] %v38690_v1 }
 0x20e   : > { %1205 = vst [vmem:[#allocation2 + $0x1690] sm:$0xff] %v38690_v1  ;;  %1206 = vst [vmem:[#allocation2 + $0x1698] sm:$0xff] %v38690_v1 }
 0x20f   : > { %1207 = vst [vmem:[#allocation2 + $0x16a0] sm:$0xff] %v38690_v1  ;;  %1208 = vst [vmem:[#allocation2 + $0x16a8] sm:$0xff] %v38690_v1 }
 0x210   : > { %1209 = vst [vmem:[#allocation2 + $0x16b0] sm:$0xff] %v38690_v1  ;;  %1210 = vst [vmem:[#allocation2 + $0x16b8] sm:$0xff] %v38690_v1 }
 0x211   : > { %1211 = vst [vmem:[#allocation2 + $0x16c0] sm:$0xff] %v38690_v1  ;;  %1212 = vst [vmem:[#allocation2 + $0x16c8] sm:$0xff] %v38690_v1 }
 0x212   : > { %1213 = vst [vmem:[#allocation2 + $0x16d0] sm:$0xff] %v38690_v1  ;;  %1214 = vst [vmem:[#allocation2 + $0x16d8] sm:$0xff] %v38690_v1 }
 0x213   : > { %1215 = vst [vmem:[#allocation2 + $0x16e0] sm:$0xff] %v38690_v1  ;;  %1216 = vst [vmem:[#allocation2 + $0x16e8] sm:$0xff] %v38690_v1 }
 0x214   : > { %1217 = vst [vmem:[#allocation2 + $0x16f0] sm:$0xff] %v38690_v1  ;;  %1218 = vst [vmem:[#allocation2 + $0x16f8] sm:$0xff] %v38690_v1 }
 0x215   : > { %1219 = vst [vmem:[#allocation2 + $0x1700] sm:$0xff] %v38690_v1  ;;  %1220 = vst [vmem:[#allocation2 + $0x1708] sm:$0xff] %v38690_v1 }
 0x216   : > { %1221 = vst [vmem:[#allocation2 + $0x1710] sm:$0xff] %v38690_v1  ;;  %1222 = vst [vmem:[#allocation2 + $0x1718] sm:$0xff] %v38690_v1 }
 0x217   : > { %1223 = vst [vmem:[#allocation2 + $0x1720] sm:$0xff] %v38690_v1  ;;  %1224 = vst [vmem:[#allocation2 + $0x1728] sm:$0xff] %v38690_v1 }
 0x218   : > { %1225 = vst [vmem:[#allocation2 + $0x1730] sm:$0xff] %v38690_v1  ;;  %1226 = vst [vmem:[#allocation2 + $0x1738] sm:$0xff] %v38690_v1 }
 0x219   : > { %1227 = vst [vmem:[#allocation2 + $0x1740] sm:$0xff] %v38690_v1  ;;  %1228 = vst [vmem:[#allocation2 + $0x1748] sm:$0xff] %v38690_v1 }
 0x21a   : > { %1229 = vst [vmem:[#allocation2 + $0x1750] sm:$0xff] %v38690_v1  ;;  %1230 = vst [vmem:[#allocation2 + $0x1758] sm:$0xff] %v38690_v1 }
 0x21b   : > { %1231 = vst [vmem:[#allocation2 + $0x1760] sm:$0xff] %v38690_v1  ;;  %1232 = vst [vmem:[#allocation2 + $0x1768] sm:$0xff] %v38690_v1 }
 0x21c   : > { %1233 = vst [vmem:[#allocation2 + $0x1770] sm:$0xff] %v38690_v1  ;;  %1234 = vst [vmem:[#allocation2 + $0x1778] sm:$0xff] %v38690_v1 }
 0x21d   : > { %1235 = vst [vmem:[#allocation2 + $0x1780] sm:$0xff] %v38690_v1  ;;  %1236 = vst [vmem:[#allocation2 + $0x1788] sm:$0xff] %v38690_v1 }
 0x21e   : > { %1237 = vst [vmem:[#allocation2 + $0x1790] sm:$0xff] %v38690_v1  ;;  %1238 = vst [vmem:[#allocation2 + $0x1798] sm:$0xff] %v38690_v1 }
 0x21f   : > { %1239 = vst [vmem:[#allocation2 + $0x17a0] sm:$0xff] %v38690_v1  ;;  %1240 = vst [vmem:[#allocation2 + $0x17a8] sm:$0xff] %v38690_v1 }
 0x220   : > { %1241 = vst [vmem:[#allocation2 + $0x17b0] sm:$0xff] %v38690_v1  ;;  %1242 = vst [vmem:[#allocation2 + $0x17b8] sm:$0xff] %v38690_v1 }
 0x221   : > { %1243 = vst [vmem:[#allocation2 + $0x17c0] sm:$0xff] %v38690_v1  ;;  %1244 = vst [vmem:[#allocation2 + $0x17c8] sm:$0xff] %v38690_v1 }
 0x222   : > { %1245 = vst [vmem:[#allocation2 + $0x17d0] sm:$0xff] %v38690_v1  ;;  %1246 = vst [vmem:[#allocation2 + $0x17d8] sm:$0xff] %v38690_v1 }
 0x223   : > { %1247 = vst [vmem:[#allocation2 + $0x17e0] sm:$0xff] %v38690_v1  ;;  %1248 = vst [vmem:[#allocation2 + $0x17e8] sm:$0xff] %v38690_v1 }
 0x224   : > { %1249 = vst [vmem:[#allocation2 + $0x17f0] sm:$0xff] %v38690_v1  ;;  %1250 = vst [vmem:[#allocation2 + $0x17f8] sm:$0xff] %v38690_v1 }
 0x225   : > { %1251 = vst [vmem:[#allocation2 + $0x1800] sm:$0xff] %v38690_v1  ;;  %1252 = vst [vmem:[#allocation2 + $0x1808] sm:$0xff] %v38690_v1 }
 0x226   : > { %1253 = vst [vmem:[#allocation2 + $0x1810] sm:$0xff] %v38690_v1  ;;  %1254 = vst [vmem:[#allocation2 + $0x1818] sm:$0xff] %v38690_v1 }
 0x227   : > { %1255 = vst [vmem:[#allocation2 + $0x1820] sm:$0xff] %v38690_v1  ;;  %1256 = vst [vmem:[#allocation2 + $0x1828] sm:$0xff] %v38690_v1 }
 0x228   : > { %1257 = vst [vmem:[#allocation2 + $0x1830] sm:$0xff] %v38690_v1  ;;  %1258 = vst [vmem:[#allocation2 + $0x1838] sm:$0xff] %v38690_v1 }
 0x229   : > { %1259 = vst [vmem:[#allocation2 + $0x1840] sm:$0xff] %v38690_v1  ;;  %1260 = vst [vmem:[#allocation2 + $0x1848] sm:$0xff] %v38690_v1 }
 0x22a   : > { %1261 = vst [vmem:[#allocation2 + $0x1850] sm:$0xff] %v38690_v1  ;;  %1262 = vst [vmem:[#allocation2 + $0x1858] sm:$0xff] %v38690_v1 }
 0x22b   : > { %1263 = vst [vmem:[#allocation2 + $0x1860] sm:$0xff] %v38690_v1  ;;  %1264 = vst [vmem:[#allocation2 + $0x1868] sm:$0xff] %v38690_v1 }
 0x22c   : > { %1265 = vst [vmem:[#allocation2 + $0x1870] sm:$0xff] %v38690_v1  ;;  %1266 = vst [vmem:[#allocation2 + $0x1878] sm:$0xff] %v38690_v1 }
 0x22d   : > { %1267 = vst [vmem:[#allocation2 + $0x1880] sm:$0xff] %v38690_v1  ;;  %1268 = vst [vmem:[#allocation2 + $0x1888] sm:$0xff] %v38690_v1 }
 0x22e   : > { %1269 = vst [vmem:[#allocation2 + $0x1890] sm:$0xff] %v38690_v1  ;;  %1270 = vst [vmem:[#allocation2 + $0x1898] sm:$0xff] %v38690_v1 }
 0x22f   : > { %1271 = vst [vmem:[#allocation2 + $0x18a0] sm:$0xff] %v38690_v1  ;;  %1272 = vst [vmem:[#allocation2 + $0x18a8] sm:$0xff] %v38690_v1 }
 0x230   : > { %1273 = vst [vmem:[#allocation2 + $0x18b0] sm:$0xff] %v38690_v1  ;;  %1274 = vst [vmem:[#allocation2 + $0x18b8] sm:$0xff] %v38690_v1 }
 0x231   : > { %1275 = vst [vmem:[#allocation2 + $0x18c0] sm:$0xff] %v38690_v1  ;;  %1276 = vst [vmem:[#allocation2 + $0x18c8] sm:$0xff] %v38690_v1 }
 0x232   : > { %1277 = vst [vmem:[#allocation2 + $0x18d0] sm:$0xff] %v38690_v1  ;;  %1278 = vst [vmem:[#allocation2 + $0x18d8] sm:$0xff] %v38690_v1 }
 0x233   : > { %1279 = vst [vmem:[#allocation2 + $0x18e0] sm:$0xff] %v38690_v1  ;;  %1280 = vst [vmem:[#allocation2 + $0x18e8] sm:$0xff] %v38690_v1 }
 0x234   : > { %1281 = vst [vmem:[#allocation2 + $0x18f0] sm:$0xff] %v38690_v1  ;;  %1282 = vst [vmem:[#allocation2 + $0x18f8] sm:$0xff] %v38690_v1 }
 0x235   : > { %1283 = vst [vmem:[#allocation2 + $0x1900] sm:$0xff] %v38690_v1  ;;  %1284 = vst [vmem:[#allocation2 + $0x1908] sm:$0xff] %v38690_v1 }
 0x236   : > { %1285 = vst [vmem:[#allocation2 + $0x1910] sm:$0xff] %v38690_v1  ;;  %1286 = vst [vmem:[#allocation2 + $0x1918] sm:$0xff] %v38690_v1 }
 0x237   : > { %1287 = vst [vmem:[#allocation2 + $0x1920] sm:$0xff] %v38690_v1  ;;  %1288 = vst [vmem:[#allocation2 + $0x1928] sm:$0xff] %v38690_v1 }
 0x238   : > { %1289 = vst [vmem:[#allocation2 + $0x1930] sm:$0xff] %v38690_v1  ;;  %1290 = vst [vmem:[#allocation2 + $0x1938] sm:$0xff] %v38690_v1 }
 0x239   : > { %1291 = vst [vmem:[#allocation2 + $0x1940] sm:$0xff] %v38690_v1  ;;  %1292 = vst [vmem:[#allocation2 + $0x1948] sm:$0xff] %v38690_v1 }
 0x23a   : > { %1293 = vst [vmem:[#allocation2 + $0x1950] sm:$0xff] %v38690_v1  ;;  %1294 = vst [vmem:[#allocation2 + $0x1958] sm:$0xff] %v38690_v1 }
 0x23b   : > { %1295 = vst [vmem:[#allocation2 + $0x1960] sm:$0xff] %v38690_v1  ;;  %1296 = vst [vmem:[#allocation2 + $0x1968] sm:$0xff] %v38690_v1 }
 0x23c   : > { %1297 = vst [vmem:[#allocation2 + $0x1970] sm:$0xff] %v38690_v1  ;;  %1298 = vst [vmem:[#allocation2 + $0x1978] sm:$0xff] %v38690_v1 }
 0x23d   : > { %1299 = vst [vmem:[#allocation2 + $0x1980] sm:$0xff] %v38690_v1  ;;  %1300 = vst [vmem:[#allocation2 + $0x1988] sm:$0xff] %v38690_v1 }
 0x23e   : > { %1301 = vst [vmem:[#allocation2 + $0x1990] sm:$0xff] %v38690_v1  ;;  %1302 = vst [vmem:[#allocation2 + $0x1998] sm:$0xff] %v38690_v1 }
 0x23f   : > { %1303 = vst [vmem:[#allocation2 + $0x19a0] sm:$0xff] %v38690_v1  ;;  %1304 = vst [vmem:[#allocation2 + $0x19a8] sm:$0xff] %v38690_v1 }
 0x240   : > { %1305 = vst [vmem:[#allocation2 + $0x19b0] sm:$0xff] %v38690_v1  ;;  %1306 = vst [vmem:[#allocation2 + $0x19b8] sm:$0xff] %v38690_v1 }
 0x241   : > { %1307 = vst [vmem:[#allocation2 + $0x19c0] sm:$0xff] %v38690_v1  ;;  %1308 = vst [vmem:[#allocation2 + $0x19c8] sm:$0xff] %v38690_v1 }
 0x242   : > { %1309 = vst [vmem:[#allocation2 + $0x19d0] sm:$0xff] %v38690_v1  ;;  %1310 = vst [vmem:[#allocation2 + $0x19d8] sm:$0xff] %v38690_v1 }
 0x243   : > { %1311 = vst [vmem:[#allocation2 + $0x19e0] sm:$0xff] %v38690_v1  ;;  %1312 = vst [vmem:[#allocation2 + $0x19e8] sm:$0xff] %v38690_v1 }
 0x244   : > { %1313 = vst [vmem:[#allocation2 + $0x19f0] sm:$0xff] %v38690_v1  ;;  %1314 = vst [vmem:[#allocation2 + $0x19f8] sm:$0xff] %v38690_v1 }
 0x245   : > { %1315 = vst [vmem:[#allocation2 + $0x1a00] sm:$0xff] %v38690_v1  ;;  %1316 = vst [vmem:[#allocation2 + $0x1a08] sm:$0xff] %v38690_v1 }
 0x246   : > { %1317 = vst [vmem:[#allocation2 + $0x1a10] sm:$0xff] %v38690_v1  ;;  %1318 = vst [vmem:[#allocation2 + $0x1a18] sm:$0xff] %v38690_v1 }
 0x247   : > { %1319 = vst [vmem:[#allocation2 + $0x1a20] sm:$0xff] %v38690_v1  ;;  %1320 = vst [vmem:[#allocation2 + $0x1a28] sm:$0xff] %v38690_v1 }
 0x248   : > { %1321 = vst [vmem:[#allocation2 + $0x1a30] sm:$0xff] %v38690_v1  ;;  %1322 = vst [vmem:[#allocation2 + $0x1a38] sm:$0xff] %v38690_v1 }
 0x249   : > { %1323 = vst [vmem:[#allocation2 + $0x1a40] sm:$0xff] %v38690_v1  ;;  %1324 = vst [vmem:[#allocation2 + $0x1a48] sm:$0xff] %v38690_v1 }
 0x24a   : > { %1325 = vst [vmem:[#allocation2 + $0x1a50] sm:$0xff] %v38690_v1  ;;  %1326 = vst [vmem:[#allocation2 + $0x1a58] sm:$0xff] %v38690_v1 }
 0x24b   : > { %1327 = vst [vmem:[#allocation2 + $0x1a60] sm:$0xff] %v38690_v1  ;;  %1328 = vst [vmem:[#allocation2 + $0x1a68] sm:$0xff] %v38690_v1 }
 0x24c   : > { %1329 = vst [vmem:[#allocation2 + $0x1a70] sm:$0xff] %v38690_v1  ;;  %1330 = vst [vmem:[#allocation2 + $0x1a78] sm:$0xff] %v38690_v1 }
 0x24d   : > { %1331 = vst [vmem:[#allocation2 + $0x1a80] sm:$0xff] %v38690_v1  ;;  %1332 = vst [vmem:[#allocation2 + $0x1a88] sm:$0xff] %v38690_v1 }
 0x24e   : > { %1333 = vst [vmem:[#allocation2 + $0x1a90] sm:$0xff] %v38690_v1  ;;  %1334 = vst [vmem:[#allocation2 + $0x1a98] sm:$0xff] %v38690_v1 }
 0x24f   : > { %1335 = vst [vmem:[#allocation2 + $0x1aa0] sm:$0xff] %v38690_v1  ;;  %1336 = vst [vmem:[#allocation2 + $0x1aa8] sm:$0xff] %v38690_v1 }
 0x250   : > { %1337 = vst [vmem:[#allocation2 + $0x1ab0] sm:$0xff] %v38690_v1  ;;  %1338 = vst [vmem:[#allocation2 + $0x1ab8] sm:$0xff] %v38690_v1 }
 0x251   : > { %1339 = vst [vmem:[#allocation2 + $0x1ac0] sm:$0xff] %v38690_v1  ;;  %1340 = vst [vmem:[#allocation2 + $0x1ac8] sm:$0xff] %v38690_v1 }
 0x252   : > { %1341 = vst [vmem:[#allocation2 + $0x1ad0] sm:$0xff] %v38690_v1  ;;  %1342 = vst [vmem:[#allocation2 + $0x1ad8] sm:$0xff] %v38690_v1 }
 0x253   : > { %1343 = vst [vmem:[#allocation2 + $0x1ae0] sm:$0xff] %v38690_v1  ;;  %1344 = vst [vmem:[#allocation2 + $0x1ae8] sm:$0xff] %v38690_v1 }
 0x254   : > { %1345 = vst [vmem:[#allocation2 + $0x1af0] sm:$0xff] %v38690_v1  ;;  %1346 = vst [vmem:[#allocation2 + $0x1af8] sm:$0xff] %v38690_v1 }
 0x255   : > { %1347 = vst [vmem:[#allocation2 + $0x1b00] sm:$0xff] %v38690_v1  ;;  %1348 = vst [vmem:[#allocation2 + $0x1b08] sm:$0xff] %v38690_v1 }
 0x256   : > { %1349 = vst [vmem:[#allocation2 + $0x1b10] sm:$0xff] %v38690_v1  ;;  %1350 = vst [vmem:[#allocation2 + $0x1b18] sm:$0xff] %v38690_v1 }
 0x257   : > { %1351 = vst [vmem:[#allocation2 + $0x1b20] sm:$0xff] %v38690_v1  ;;  %1352 = vst [vmem:[#allocation2 + $0x1b28] sm:$0xff] %v38690_v1 }
 0x258   : > { %1353 = vst [vmem:[#allocation2 + $0x1b30] sm:$0xff] %v38690_v1  ;;  %1354 = vst [vmem:[#allocation2 + $0x1b38] sm:$0xff] %v38690_v1 }
 0x259   : > { %1355 = vst [vmem:[#allocation2 + $0x1b40] sm:$0xff] %v38690_v1  ;;  %1356 = vst [vmem:[#allocation2 + $0x1b48] sm:$0xff] %v38690_v1 }
 0x25a   : > { %1357 = vst [vmem:[#allocation2 + $0x1b50] sm:$0xff] %v38690_v1  ;;  %1358 = vst [vmem:[#allocation2 + $0x1b58] sm:$0xff] %v38690_v1 }
 0x25b   : > { %1359 = vst [vmem:[#allocation2 + $0x1b60] sm:$0xff] %v38690_v1  ;;  %1360 = vst [vmem:[#allocation2 + $0x1b68] sm:$0xff] %v38690_v1 }
 0x25c   : > { %1361 = vst [vmem:[#allocation2 + $0x1b70] sm:$0xff] %v38690_v1  ;;  %1362 = vst [vmem:[#allocation2 + $0x1b78] sm:$0xff] %v38690_v1 }
 0x25d   : > { %1363 = vst [vmem:[#allocation2 + $0x1b80] sm:$0xff] %v38690_v1  ;;  %1364 = vst [vmem:[#allocation2 + $0x1b88] sm:$0xff] %v38690_v1 }
 0x25e   : > { %1365 = vst [vmem:[#allocation2 + $0x1b90] sm:$0xff] %v38690_v1  ;;  %1366 = vst [vmem:[#allocation2 + $0x1b98] sm:$0xff] %v38690_v1 }
 0x25f   : > { %1367 = vst [vmem:[#allocation2 + $0x1ba0] sm:$0xff] %v38690_v1  ;;  %1368 = vst [vmem:[#allocation2 + $0x1ba8] sm:$0xff] %v38690_v1 }
 0x260   : > { %1369 = vst [vmem:[#allocation2 + $0x1bb0] sm:$0xff] %v38690_v1  ;;  %1370 = vst [vmem:[#allocation2 + $0x1bb8] sm:$0xff] %v38690_v1 }
 0x261   : > { %1371 = vst [vmem:[#allocation2 + $0x1bc0] sm:$0xff] %v38690_v1  ;;  %1372 = vst [vmem:[#allocation2 + $0x1bc8] sm:$0xff] %v38690_v1 }
 0x262   : > { %1373 = vst [vmem:[#allocation2 + $0x1bd0] sm:$0xff] %v38690_v1  ;;  %1374 = vst [vmem:[#allocation2 + $0x1bd8] sm:$0xff] %v38690_v1 }
 0x263   : > { %1375 = vst [vmem:[#allocation2 + $0x1be0] sm:$0xff] %v38690_v1  ;;  %1376 = vst [vmem:[#allocation2 + $0x1be8] sm:$0xff] %v38690_v1 }
 0x264   : > { %1377 = vst [vmem:[#allocation2 + $0x1bf0] sm:$0xff] %v38690_v1  ;;  %1378 = vst [vmem:[#allocation2 + $0x1bf8] sm:$0xff] %v38690_v1 }
 0x265   : > { %1379 = vst [vmem:[#allocation2 + $0x1c00] sm:$0xff] %v38690_v1  ;;  %1380 = vst [vmem:[#allocation2 + $0x1c08] sm:$0xff] %v38690_v1 }
 0x266   : > { %1381 = vst [vmem:[#allocation2 + $0x1c10] sm:$0xff] %v38690_v1  ;;  %1382 = vst [vmem:[#allocation2 + $0x1c18] sm:$0xff] %v38690_v1 }
 0x267   : > { %1383 = vst [vmem:[#allocation2 + $0x1c20] sm:$0xff] %v38690_v1  ;;  %1384 = vst [vmem:[#allocation2 + $0x1c28] sm:$0xff] %v38690_v1 }
 0x268   : > { %1385 = vst [vmem:[#allocation2 + $0x1c30] sm:$0xff] %v38690_v1  ;;  %1386 = vst [vmem:[#allocation2 + $0x1c38] sm:$0xff] %v38690_v1 }
 0x269   : > { %1387 = vst [vmem:[#allocation2 + $0x1c40] sm:$0xff] %v38690_v1  ;;  %1388 = vst [vmem:[#allocation2 + $0x1c48] sm:$0xff] %v38690_v1 }
 0x26a   : > { %1389 = vst [vmem:[#allocation2 + $0x1c50] sm:$0xff] %v38690_v1  ;;  %1390 = vst [vmem:[#allocation2 + $0x1c58] sm:$0xff] %v38690_v1 }
 0x26b   : > { %1391 = vst [vmem:[#allocation2 + $0x1c60] sm:$0xff] %v38690_v1  ;;  %1392 = vst [vmem:[#allocation2 + $0x1c68] sm:$0xff] %v38690_v1 }
 0x26c   : > { %1393 = vst [vmem:[#allocation2 + $0x1c70] sm:$0xff] %v38690_v1  ;;  %1394 = vst [vmem:[#allocation2 + $0x1c78] sm:$0xff] %v38690_v1 }
 0x26d   : > { %1395 = vst [vmem:[#allocation2 + $0x1c80] sm:$0xff] %v38690_v1  ;;  %1396 = vst [vmem:[#allocation2 + $0x1c88] sm:$0xff] %v38690_v1 }
 0x26e   : > { %1397 = vst [vmem:[#allocation2 + $0x1c90] sm:$0xff] %v38690_v1  ;;  %1398 = vst [vmem:[#allocation2 + $0x1c98] sm:$0xff] %v38690_v1 }
 0x26f   : > { %1399 = vst [vmem:[#allocation2 + $0x1ca0] sm:$0xff] %v38690_v1  ;;  %1400 = vst [vmem:[#allocation2 + $0x1ca8] sm:$0xff] %v38690_v1 }
 0x270   : > { %1401 = vst [vmem:[#allocation2 + $0x1cb0] sm:$0xff] %v38690_v1  ;;  %1402 = vst [vmem:[#allocation2 + $0x1cb8] sm:$0xff] %v38690_v1 }
 0x271   : > { %1403 = vst [vmem:[#allocation2 + $0x1cc0] sm:$0xff] %v38690_v1  ;;  %1404 = vst [vmem:[#allocation2 + $0x1cc8] sm:$0xff] %v38690_v1 }
 0x272   : > { %1405 = vst [vmem:[#allocation2 + $0x1cd0] sm:$0xff] %v38690_v1  ;;  %1406 = vst [vmem:[#allocation2 + $0x1cd8] sm:$0xff] %v38690_v1 }
 0x273   : > { %1407 = vst [vmem:[#allocation2 + $0x1ce0] sm:$0xff] %v38690_v1  ;;  %1408 = vst [vmem:[#allocation2 + $0x1ce8] sm:$0xff] %v38690_v1 }
 0x274   : > { %1409 = vst [vmem:[#allocation2 + $0x1cf0] sm:$0xff] %v38690_v1  ;;  %1410 = vst [vmem:[#allocation2 + $0x1cf8] sm:$0xff] %v38690_v1 }
 0x275   : > { %1411 = vst [vmem:[#allocation2 + $0x1d00] sm:$0xff] %v38690_v1  ;;  %1412 = vst [vmem:[#allocation2 + $0x1d08] sm:$0xff] %v38690_v1 }
 0x276   : > { %1413 = vst [vmem:[#allocation2 + $0x1d10] sm:$0xff] %v38690_v1  ;;  %1414 = vst [vmem:[#allocation2 + $0x1d18] sm:$0xff] %v38690_v1 }
 0x277   : > { %1415 = vst [vmem:[#allocation2 + $0x1d20] sm:$0xff] %v38690_v1  ;;  %1416 = vst [vmem:[#allocation2 + $0x1d28] sm:$0xff] %v38690_v1 }
 0x278   : > { %1417 = vst [vmem:[#allocation2 + $0x1d30] sm:$0xff] %v38690_v1  ;;  %1418 = vst [vmem:[#allocation2 + $0x1d38] sm:$0xff] %v38690_v1 }
 0x279   : > { %1419 = vst [vmem:[#allocation2 + $0x1d40] sm:$0xff] %v38690_v1  ;;  %1420 = vst [vmem:[#allocation2 + $0x1d48] sm:$0xff] %v38690_v1 }
 0x27a   : > { %1421 = vst [vmem:[#allocation2 + $0x1d50] sm:$0xff] %v38690_v1  ;;  %1422 = vst [vmem:[#allocation2 + $0x1d58] sm:$0xff] %v38690_v1 }
 0x27b   : > { %1423 = vst [vmem:[#allocation2 + $0x1d60] sm:$0xff] %v38690_v1  ;;  %1424 = vst [vmem:[#allocation2 + $0x1d68] sm:$0xff] %v38690_v1 }
 0x27c   : > { %1425 = vst [vmem:[#allocation2 + $0x1d70] sm:$0xff] %v38690_v1  ;;  %1426 = vst [vmem:[#allocation2 + $0x1d78] sm:$0xff] %v38690_v1 }
 0x27d   : > { %1427 = vst [vmem:[#allocation2 + $0x1d80] sm:$0xff] %v38690_v1  ;;  %1428 = vst [vmem:[#allocation2 + $0x1d88] sm:$0xff] %v38690_v1 }
 0x27e   : > { %1429 = vst [vmem:[#allocation2 + $0x1d90] sm:$0xff] %v38690_v1  ;;  %1430 = vst [vmem:[#allocation2 + $0x1d98] sm:$0xff] %v38690_v1 }
 0x27f   : > { %1431 = vst [vmem:[#allocation2 + $0x1da0] sm:$0xff] %v38690_v1  ;;  %1432 = vst [vmem:[#allocation2 + $0x1da8] sm:$0xff] %v38690_v1 }
 0x280   : > { %1433 = vst [vmem:[#allocation2 + $0x1db0] sm:$0xff] %v38690_v1  ;;  %1434 = vst [vmem:[#allocation2 + $0x1db8] sm:$0xff] %v38690_v1 }
 0x281   : > { %1435 = vst [vmem:[#allocation2 + $0x1dc0] sm:$0xff] %v38690_v1  ;;  %1436 = vst [vmem:[#allocation2 + $0x1dc8] sm:$0xff] %v38690_v1 }
 0x282   : > { %1437 = vst [vmem:[#allocation2 + $0x1dd0] sm:$0xff] %v38690_v1  ;;  %1438 = vst [vmem:[#allocation2 + $0x1dd8] sm:$0xff] %v38690_v1 }
 0x283   : > { %1439 = vst [vmem:[#allocation2 + $0x1de0] sm:$0xff] %v38690_v1  ;;  %1440 = vst [vmem:[#allocation2 + $0x1de8] sm:$0xff] %v38690_v1 }
 0x284   : > { %1441 = vst [vmem:[#allocation2 + $0x1df0] sm:$0xff] %v38690_v1  ;;  %1442 = vst [vmem:[#allocation2 + $0x1df8] sm:$0xff] %v38690_v1 }
 0x285   : > { %1443 = vst [vmem:[#allocation2 + $0x1e00] sm:$0xff] %v38690_v1  ;;  %1444 = vst [vmem:[#allocation2 + $0x1e08] sm:$0xff] %v38690_v1 }
 0x286   : > { %1445 = vst [vmem:[#allocation2 + $0x1e10] sm:$0xff] %v38690_v1  ;;  %1446 = vst [vmem:[#allocation2 + $0x1e18] sm:$0xff] %v38690_v1 }
 0x287   : > { %1447 = vst [vmem:[#allocation2 + $0x1e20] sm:$0xff] %v38690_v1  ;;  %1448 = vst [vmem:[#allocation2 + $0x1e28] sm:$0xff] %v38690_v1 }
 0x288   : > { %1449 = vst [vmem:[#allocation2 + $0x1e30] sm:$0xff] %v38690_v1  ;;  %1450 = vst [vmem:[#allocation2 + $0x1e38] sm:$0xff] %v38690_v1 }
 0x289   : > { %1451 = vst [vmem:[#allocation2 + $0x1e40] sm:$0xff] %v38690_v1  ;;  %1452 = vst [vmem:[#allocation2 + $0x1e48] sm:$0xff] %v38690_v1 }
 0x28a   : > { %1453 = vst [vmem:[#allocation2 + $0x1e50] sm:$0xff] %v38690_v1  ;;  %1454 = vst [vmem:[#allocation2 + $0x1e58] sm:$0xff] %v38690_v1 }
 0x28b   : > { %1455 = vst [vmem:[#allocation2 + $0x1e60] sm:$0xff] %v38690_v1  ;;  %1456 = vst [vmem:[#allocation2 + $0x1e68] sm:$0xff] %v38690_v1 }
 0x28c   : > { %1457 = vst [vmem:[#allocation2 + $0x1e70] sm:$0xff] %v38690_v1  ;;  %1458 = vst [vmem:[#allocation2 + $0x1e78] sm:$0xff] %v38690_v1 }
 0x28d   : > { %1459 = vst [vmem:[#allocation2 + $0x1e80] sm:$0xff] %v38690_v1  ;;  %1460 = vst [vmem:[#allocation2 + $0x1e88] sm:$0xff] %v38690_v1 }
 0x28e   : > { %1461 = vst [vmem:[#allocation2 + $0x1e90] sm:$0xff] %v38690_v1  ;;  %1462 = vst [vmem:[#allocation2 + $0x1e98] sm:$0xff] %v38690_v1 }
 0x28f   : > { %1463 = vst [vmem:[#allocation2 + $0x1ea0] sm:$0xff] %v38690_v1  ;;  %1464 = vst [vmem:[#allocation2 + $0x1ea8] sm:$0xff] %v38690_v1 }
 0x290   : > { %1465 = vst [vmem:[#allocation2 + $0x1eb0] sm:$0xff] %v38690_v1  ;;  %1466 = vst [vmem:[#allocation2 + $0x1eb8] sm:$0xff] %v38690_v1 }
 0x291   : > { %1467 = vst [vmem:[#allocation2 + $0x1ec0] sm:$0xff] %v38690_v1  ;;  %1468 = vst [vmem:[#allocation2 + $0x1ec8] sm:$0xff] %v38690_v1 }
 0x292   : > { %1469 = vst [vmem:[#allocation2 + $0x1ed0] sm:$0xff] %v38690_v1  ;;  %1470 = vst [vmem:[#allocation2 + $0x1ed8] sm:$0xff] %v38690_v1 }
 0x293   : > { %1471 = vst [vmem:[#allocation2 + $0x1ee0] sm:$0xff] %v38690_v1  ;;  %1472 = vst [vmem:[#allocation2 + $0x1ee8] sm:$0xff] %v38690_v1 }
 0x294   : > { %1473 = vst [vmem:[#allocation2 + $0x1ef0] sm:$0xff] %v38690_v1  ;;  %1474 = vst [vmem:[#allocation2 + $0x1ef8] sm:$0xff] %v38690_v1 }
 0x295   : > { %1475 = vst [vmem:[#allocation2 + $0x1f00] sm:$0xff] %v38690_v1  ;;  %1476 = vst [vmem:[#allocation2 + $0x1f08] sm:$0xff] %v38690_v1 }
 0x296   : > { %1477 = vst [vmem:[#allocation2 + $0x1f10] sm:$0xff] %v38690_v1  ;;  %1478 = vst [vmem:[#allocation2 + $0x1f18] sm:$0xff] %v38690_v1 }
 0x297   : > { %1479 = vst [vmem:[#allocation2 + $0x1f20] sm:$0xff] %v38690_v1  ;;  %1480 = vst [vmem:[#allocation2 + $0x1f28] sm:$0xff] %v38690_v1 }
 0x298   : > { %1481 = vst [vmem:[#allocation2 + $0x1f30] sm:$0xff] %v38690_v1  ;;  %1482 = vst [vmem:[#allocation2 + $0x1f38] sm:$0xff] %v38690_v1 }
 0x299   : > { %1483 = vst [vmem:[#allocation2 + $0x1f40] sm:$0xff] %v38690_v1  ;;  %1484 = vst [vmem:[#allocation2 + $0x1f48] sm:$0xff] %v38690_v1 }
 0x29a   : > { %1485 = vst [vmem:[#allocation2 + $0x1f50] sm:$0xff] %v38690_v1  ;;  %1486 = vst [vmem:[#allocation2 + $0x1f58] sm:$0xff] %v38690_v1 }
 0x29b   : > { %1487 = vst [vmem:[#allocation2 + $0x1f60] sm:$0xff] %v38690_v1  ;;  %1488 = vst [vmem:[#allocation2 + $0x1f68] sm:$0xff] %v38690_v1 }
 0x29c   : > { %1489 = vst [vmem:[#allocation2 + $0x1f70] sm:$0xff] %v38690_v1  ;;  %1490 = vst [vmem:[#allocation2 + $0x1f78] sm:$0xff] %v38690_v1 }
 0x29d   : > { %1491 = vst [vmem:[#allocation2 + $0x1f80] sm:$0xff] %v38690_v1  ;;  %1492 = vst [vmem:[#allocation2 + $0x1f88] sm:$0xff] %v38690_v1 }
 0x29e   : > { %1493 = vst [vmem:[#allocation2 + $0x1f90] sm:$0xff] %v38690_v1  ;;  %1494 = vst [vmem:[#allocation2 + $0x1f98] sm:$0xff] %v38690_v1 }
 0x29f   : > { %1495 = vst [vmem:[#allocation2 + $0x1fa0] sm:$0xff] %v38690_v1  ;;  %1496 = vst [vmem:[#allocation2 + $0x1fa8] sm:$0xff] %v38690_v1 }
 0x2a0   : > { %1497 = vst [vmem:[#allocation2 + $0x1fb0] sm:$0xff] %v38690_v1  ;;  %1498 = vst [vmem:[#allocation2 + $0x1fb8] sm:$0xff] %v38690_v1 }
 0x2a1   : > { %1499 = vst [vmem:[#allocation2 + $0x1fc0] sm:$0xff] %v38690_v1  ;;  %1500 = vst [vmem:[#allocation2 + $0x1fc8] sm:$0xff] %v38690_v1 }
 0x2a2   : > { %1501 = vst [vmem:[#allocation2 + $0x1fd0] sm:$0xff] %v38690_v1  ;;  %1502 = vst [vmem:[#allocation2 + $0x1fd8] sm:$0xff] %v38690_v1 }
 0x2a3   : > { %1503 = vst [vmem:[#allocation2 + $0x1fe0] sm:$0xff] %v38690_v1  ;;  %1504 = vst [vmem:[#allocation2 + $0x1fe8] sm:$0xff] %v38690_v1 }
 0x2a4   : > { %1505 = vst [vmem:[#allocation2 + $0x1ff0] sm:$0xff] %v38690_v1  ;;  %1506 = vst [vmem:[#allocation2 + $0x1ff8] sm:$0xff] %v38690_v1  ;;  %v39332_v1 = vadd.s32 %v39214_v7, %v1570_v34  ;;  %v39393_v34 = vld [vmem:[%s38157_s13 + $0x28] sm:$0xff] }
 0x2a5   : > { %44600 = vst [vmem:[#allocation21_spill] sm:$0xff] %v39208_v3  ;;  %44601 = vst [vmem:[#allocation22_spill] sm:$0xff] %v39214_v7  ;;  %v39414_v3 = vld [vmem:[%s38164_s9 + $0x40] sm:$0xff] }
 0x2a6   : > { %44602 = vst [vmem:[#allocation23_spill] sm:$0xff] %v39245_v36  ;;  %44603 = vst [vmem:[#allocation24_spill] sm:$0xff] %v39248_v37  ;;  %v39535_v37 = vsub.f32 %v39351_v17, %v39348_v16  ;;  %v39538_v36 = vld [vmem:[%s38157_s13 + $0x128] sm:$0xff] }
 0x2a7   : > { %44604 = vst [vmem:[#allocation25_spill] sm:$0xff] %v39251_v38  ;;  %44605 = vst [vmem:[#allocation26_spill] sm:$0xff] %v39254_v39  ;;  %v39528_v39 = vadd.s32 %v39214_v7, %v1522_v21  ;;  %v39531_v38 = vadd.s32 %v39214_v7, %v1523_v30  ;;  %v39547_v21 = vld [vmem:[%s38157_s13 + $0x140] sm:$0xff]  ;;  %v39553_v30 = vld [vmem:[%s38164_s9 + $0x130] sm:$0xff] }
 0x2a8   : > { %44606 = vst [vmem:[#allocation27_spill] sm:$0xff] %v39257_v40  ;;  %44607 = vst [vmem:[#allocation28_spill] sm:$0xff] %v39260_v41  ;;  %v39519_v41 = vld [vmem:[%s38164_s9 + $0x118] sm:$0xff]  ;;  %v39525_v40 = vadd.s32 %v39214_v7, %v1521_v20 }
 0x2a9   : > { %44608 = vst [vmem:[#allocation29_spill] sm:$0xff] %v39263_v42  ;;  %44609 = vst [vmem:[#allocation30_spill] sm:$0xff] %v39266_v43  ;;  %v39504_v43 = vld [vmem:[%s38157_s13 + $0x110] sm:$0xff]  ;;  %v39513_v42 = vld [vmem:[%s38164_s9 + $0x108] sm:$0xff] }
 0x2aa   : > { %44610 = vst [vmem:[#allocation31_spill] sm:$0xff] %v39269_v44  ;;  %44611 = vst [vmem:[#allocation32_spill] sm:$0xff] %v39272_v45  ;;  %v39498_v45 = vadd.s32 %v39214_v7, %v1520_v19  ;;  %v39501_v44 = vld [vmem:[%s38157_s13 + $0x108] sm:$0xff]  ;;  %v39522_v19 = vld [vmem:[%s38164_s9 + $0x120] sm:$0xff] }
 0x2ab   : > { %44612 = vst [vmem:[#allocation33_spill] sm:$0xff] %v39275_v46  ;;  %44613 = vst [vmem:[#allocation34_spill] sm:$0xff] %v39278_v47  ;;  %v39492_v47 = vadd.s32 %v39214_v7, %v1518_v15  ;;  %v39495_v46 = vadd.s32 %v39214_v7, %v1519_v18  ;;  %v39510_v15 = vld [vmem:[%s38157_s13 + $0x120] sm:$0xff]  ;;  %v39516_v18 = vld [vmem:[%s38164_s9 + $0x110] sm:$0xff] }
 0x2ac   : > { %44614 = vst [vmem:[#allocation35_spill] sm:$0xff] %v39281_v48  ;;  %44615 = vst [vmem:[#allocation36_spill] sm:$0xff] %v39284_v49  ;;  %v39483_v49 = vld [vmem:[%s38164_s9 + $0x78] sm:$0xff]  ;;  %v39489_v48 = vadd.s32 %v39214_v7, %v1517_v14 }
 0x2ad   : > { %44616 = vst [vmem:[#allocation37_spill] sm:$0xff] %v39287_v50  ;;  %44617 = vst [vmem:[#allocation38_spill] sm:$0xff] %v39290_v51  ;;  %v39468_v51 = vld [vmem:[%s38157_s13 + $0x70] sm:$0xff]  ;;  %v39477_v50 = vld [vmem:[%s38164_s9 + $0x68] sm:$0xff] }
 0x2ae   : > { %44618 = vst [vmem:[#allocation39_spill] sm:$0xff] %v39293_v52  ;;  %44619 = vst [vmem:[#allocation40_spill] sm:$0xff] %v39296_v53  ;;  %v39462_v53 = vadd.s32 %v39214_v7, %v1516_v13  ;;  %v39465_v52 = vld [vmem:[%s38157_s13 + $0x68] sm:$0xff]  ;;  %v39486_v13 = vld [vmem:[%s38164_s9 + $0x80] sm:$0xff] }
 0x2af   : > { %44620 = vst [vmem:[#allocation41_spill] sm:$0xff] %v39299_v54  ;;  %44621 = vst [vmem:[#allocation42_spill] sm:$0xff] %v39302_v55  ;;  %v39456_v55 = vadd.s32 %v39214_v7, %v1514_v11  ;;  %v39459_v54 = vadd.s32 %v39214_v7, %v1515_v12  ;;  %v39474_v11 = vld [vmem:[%s38157_s13 + $0x80] sm:$0xff]  ;;  %v39480_v12 = vld [vmem:[%s38164_s9 + $0x70] sm:$0xff] }
 0x2b0   : > { %44622 = vst [vmem:[#allocation43_spill] sm:$0xff] %v39305_v56  ;;  %44623 = vst [vmem:[#allocation44_spill] sm:$0xff] %v39308_v57  ;;  %v39447_v57 = vld [vmem:[%s38164_s9 + $0x58] sm:$0xff]  ;;  %v39453_v56 = vadd.s32 %v39214_v7, %v1513_v10 }
 0x2b1   : > { %44624 = vst [vmem:[#allocation45_spill] sm:$0xff] %v39311_v58  ;;  %44625 = vst [vmem:[#allocation46_spill] sm:$0xff] %v39314_v59  ;;  %v39432_v59 = vld [vmem:[%s38157_s13 + $0x50] sm:$0xff]  ;;  %v39441_v58 = vld [vmem:[%s38164_s9 + $0x48] sm:$0xff]  ;;  %vm44364_vm6 = vcmp.lt.s32.totalorder %v39456_v55, 16 }
 0x2b2   : > { %44626 = vst [vmem:[#allocation47_spill] sm:$0xff] %v39317_v60  ;;  %44627 = vst [vmem:[#allocation48_spill] sm:$0xff] %v39320_v61  ;;  %v39426_v61 = vadd.s32 %v39214_v7, %v1512_v9  ;;  %v39429_v60 = vld [vmem:[%s38157_s13 + $0x48] sm:$0xff]  ;;  %v39450_v9 = vld [vmem:[%s38164_s9 + $0x60] sm:$0xff]  ;;  %vm44499_vm5 = vcmp.lt.s32.totalorder %v39453_v56, 16 }
 0x2b3   : > { %44628 = vst [vmem:[#allocation49_spill] sm:$0xff] %v39323_v62  ;;  %44629 = vst [vmem:[#allocation50_spill] sm:$0xff] %v39326_v63  ;;  %v39420_v63 = vadd.s32 %v39214_v7, %v1510_v6  ;;  %v39423_v62 = vadd.s32 %v39214_v7, %v1511_v8  ;;  %v39438_v6 = vld [vmem:[%s38157_s13 + $0x60] sm:$0xff]  ;;  %v39444_v8 = vld [vmem:[%s38164_s9 + $0x50] sm:$0xff] }
 0x2b4   : > { %44630 = vst [vmem:[#allocation51_spill] sm:$0xff] %v39329_v0  ;;  %44631 = vst [vmem:[#allocation52_spill] sm:$0xff] %v39332_v1  ;;  %v39411_v1 = vld [vmem:[%s38164_s9 + $0x38] sm:$0xff]  ;;  %v39417_v0 = vadd.s32 %v39214_v7, %v1509_v5  ;;  %v39568_v7 = vsub.f32 %v39376_v28, %v39364_v24  ;;  %vm44370_vm4 = vcmp.lt.s32.totalorder %v39426_v61, 16 }
 0x2b5   : > { %44632 = vst [vmem:[#allocation53_spill] sm:$0xff] %v39335_v4  ;;  %44633 = vst [vmem:[#allocation54_spill] sm:$0xff] %v39348_v16  ;;  %v39405_v4 = vld [vmem:[%s38164_s9 + $0x28] sm:$0xff]  ;;  %v39435_v5 = vld [vmem:[%s38157_s13 + $0x58] sm:$0xff]  ;;  %v39560_v16 = vsub.f32 %v39370_v26, %v39358_v22  ;;  %vm44358_vm2 = vcmp.lt.s32.totalorder %v39420_v63, 16  ;;  %vm44502_vm3 = vcmp.lt.s32.totalorder %v39423_v62, 16 }
 0x2b6   : > { %44634 = vst [vmem:[#allocation55_spill] sm:$0xff] %v39351_v17  ;;  %44635 = vst [vmem:[#allocation56_spill] sm:$0xff] %v39358_v22  ;;  %v39471_v10 = vld [vmem:[%s38157_s13 + $0x78] sm:$0xff]  ;;  %v39564_v17 = vsub.f32 %v39373_v27, %v39361_v23  ;;  %v39578_v22 = vld [vmem:[%s38157_s13 + $0x150] sm:$0xff]  ;;  %vm44513_vm1 = vcmp.lt.s32.totalorder %v39417_v0, 16 }
 0x2b7   : > { %44636 = vst [vmem:[#allocation57_spill] sm:$0xff] %v39361_v23  ;;  %44637 = vst [vmem:[#allocation58_spill] sm:$0xff] %v39364_v24  ;;  %v39507_v14 = vld [vmem:[%s38157_s13 + $0x118] sm:$0xff]  ;;  %v39584_v23 = vld [vmem:[%s38157_s13 + $0x160] sm:$0xff] }
 0x2b8   : > { %44638 = vst [vmem:[#allocation59_spill] sm:$0xff] %v39367_v25  ;;  %44639 = vst [vmem:[#allocation60_spill] sm:$0xff] %v39370_v26  ;;  %v39544_v20 = vld [vmem:[%s38157_s13 + $0x138] sm:$0xff]  ;;  %v39590_v24 = vld [vmem:[%s38164_s9 + $0x148] sm:$0xff] }
 0x2b9   : > { %44640 = vst [vmem:[#allocation61_spill] sm:$0xff] %v39373_v27  ;;  %44641 = vst [vmem:[#allocation62_spill] sm:$0xff] %v39376_v28  ;;  %v39581_v26 = vld [vmem:[%s38157_s13 + $0x158] sm:$0xff]  ;;  %v39587_v27 = vld [vmem:[%s38164_s9 + $0x140] sm:$0xff] }
 0x2ba   : > { %44642 = vst [vmem:[#allocation63_spill] sm:$0xff] %v39379_v29  ;;  %44643 = vst [vmem:[#allocation64_spill] sm:$0xff] %v39383_v31  ;;  %v39402_v31 = vld [vmem:[%s38157_s13 + $0x40] sm:$0xff]  ;;  %v39593_v28 = vld [vmem:[%s38164_s9 + $0x150] sm:$0xff] }
 0x2bb   : > { %44644 = vst [vmem:[#allocation65_spill] sm:$0xff] %v39386_v32  ;;  %44645 = vst [vmem:[#allocation66_spill] sm:$0xff] %v39390_v33  ;;  %v39408_v32 = vld [vmem:[%s38164_s9 + $0x30] sm:$0xff] }
 0x2bc   : > { %44646 = vst [vmem:[#allocation67_spill] sm:$0xff] %v39393_v34  ;;  %44647 = vst [vmem:[#allocation68_spill] sm:$0xff] %v39396_v35  ;;  %v44822_v33 = vld [vmem:[#allocation53_spill] sm:$0xff] }
 0x2bd   : > { %44648 = vst [vmem:[#allocation69_spill] sm:$0xff] %v39399_v2  ;;  %44649 = vst [vmem:[#allocation70_spill] sm:$0xff] %v39402_v31 }
 0x2be   : > { %44650 = vst [vmem:[#allocation71_spill] sm:$0xff] %v39405_v4  ;;  %44651 = vst [vmem:[#allocation72_spill] sm:$0xff] %v39408_v32 }
 0x2bf   : > { %44652 = vst [vmem:[#allocation73_spill] sm:$0xff] %v39411_v1  ;;  %44653 = vst [vmem:[#allocation74_spill] sm:$0xff] %v39414_v3 }
 0x2c0   : > { %44654 = vst [vmem:[#allocation75_spill] sm:$0xff] %v39417_v0  ;;  %44655 = vst [vmem:[#allocation76_spill] sm:$0xff] %v39420_v63  ;;  %v44821_v63 = vld [vmem:[#allocation52_spill] sm:$0xff] }
 0x2c1   : > { %44656 = vst [vmem:[#allocation77_spill] sm:$0xff] %v39423_v62  ;;  %44657 = vst [vmem:[#allocation78_spill] sm:$0xff] %v39426_v61  ;;  %v40397_v62 = vld [vmem:[%s38164_s9 + $0xa8] sm:$0xff] }
 0x2c2   : > { %44658 = vst [vmem:[#allocation79_spill] sm:$0xff] %v39429_v60  ;;  %44659 = vst [vmem:[#allocation80_spill] sm:$0xff] %v39432_v59 }
 0x2c3   : > { %44660 = vst [vmem:[#allocation81_spill] sm:$0xff] %v39435_v5  ;;  %44661 = vst [vmem:[#allocation82_spill] sm:$0xff] %v39438_v6 }
 0x2c4   : > { %44662 = vst [vmem:[#allocation83_spill] sm:$0xff] %v39441_v58  ;;  %44663 = vst [vmem:[#allocation84_spill] sm:$0xff] %v39444_v8 }
 0x2c5   : > { %44664 = vst [vmem:[#allocation85_spill] sm:$0xff] %v39447_v57  ;;  %44665 = vst [vmem:[#allocation86_spill] sm:$0xff] %v39450_v9 }
 0x2c6   : > { %44666 = vst [vmem:[#allocation87_spill] sm:$0xff] %v39453_v56  ;;  %44667 = vst [vmem:[#allocation88_spill] sm:$0xff] %v39456_v55 }
 0x2c7   : > { %44668 = vst [vmem:[#allocation89_spill] sm:$0xff] %v39459_v54  ;;  %44669 = vst [vmem:[#allocation90_spill] sm:$0xff] %v39462_v53  ;;  %v39612_v53 = vld [vmem:[%s38157_s13 + $0x168] sm:$0xff]  ;;  %v39642_v54 = vsub.f32 %v39447_v57, %v39435_v5  ;;  %v39664_v5 = vld [vmem:[%s38164_s9 + $0x178] sm:$0xff] }
 0x2c8   : > { %44670 = vst [vmem:[#allocation91_spill] sm:$0xff] %v39465_v52  ;;  %44671 = vst [vmem:[#allocation92_spill] sm:$0xff] %v39468_v51  ;;  %v39667_v57 = vld [vmem:[%s38164_s9 + $0x180] sm:$0xff] }
 0x2c9   : > { %44672 = vst [vmem:[#allocation93_spill] sm:$0xff] %v39471_v10  ;;  %44673 = vst [vmem:[#allocation94_spill] sm:$0xff] %v39474_v11 }
 0x2ca   : > { %44674 = vst [vmem:[#allocation95_spill] sm:$0xff] %v39477_v50  ;;  %44675 = vst [vmem:[#allocation96_spill] sm:$0xff] %v39480_v12 }
 0x2cb   : > { %44676 = vst [vmem:[#allocation97_spill] sm:$0xff] %v39483_v49  ;;  %44677 = vst [vmem:[#allocation98_spill] sm:$0xff] %v39486_v13 }
 0x2cc   : > { %44678 = vst [vmem:[#allocation99_spill] sm:$0xff] %v39489_v48  ;;  %44679 = vst [vmem:[#allocation100_spill] sm:$0xff] %v39492_v47  ;;  %v39605_v47 = vsub.f32 %v39411_v1, %v39399_v2  ;;  %v39609_v48 = vsub.f32 %v39414_v3, %v39402_v31  ;;  %v39627_v2 = vld [vmem:[%s38164_s9 + $0x160] sm:$0xff]  ;;  %v39630_v1 = vld [vmem:[%s38164_s9 + $0x168] sm:$0xff]  ;;  %v39634_v31 = vsub.f32 %v39441_v58, %v39429_v60 }
 0x2cd   : > { %44680 = vst [vmem:[#allocation101_spill] sm:$0xff] %v39495_v46  ;;  %44681 = vst [vmem:[#allocation102_spill] sm:$0xff] %v39498_v45  ;;  %v39541_v45 = vld [vmem:[%s38157_s13 + $0x130] sm:$0xff]  ;;  %v39575_v46 = vld [vmem:[%s38157_s13 + $0x148] sm:$0xff]  ;;  %v39638_v3 = vsub.f32 %v39444_v8, %v39432_v59 }
 0x2ce   : > { %44682 = vst [vmem:[#allocation103_spill] sm:$0xff] %v39501_v44  ;;  %44683 = vst [vmem:[#allocation104_spill] sm:$0xff] %v39504_v43  ;;  %v39652_v60 = vld [vmem:[%s38157_s13 + $0x190] sm:$0xff]  ;;  %v39655_v58 = vld [vmem:[%s38157_s13 + $0x198] sm:$0xff] }
 0x2cf   : > { %44684 = vst [vmem:[#allocation105_spill] sm:$0xff] %v39507_v14  ;;  %44685 = vst [vmem:[#allocation106_spill] sm:$0xff] %v39510_v15  ;;  %v39658_v59 = vld [vmem:[%s38157_s13 + $0x1a0] sm:$0xff]  ;;  %v39661_v8 = vld [vmem:[%s38164_s9 + $0x170] sm:$0xff] }
 0x2d0   : > { %44686 = vst [vmem:[#allocation107_spill] sm:$0xff] %v39513_v42  ;;  %44687 = vst [vmem:[#allocation108_spill] sm:$0xff] %v39516_v18 }
 0x2d1   : > { %44688 = vst [vmem:[#allocation109_spill] sm:$0xff] %v39519_v41  ;;  %44689 = vst [vmem:[#allocation110_spill] sm:$0xff] %v39522_v19 }
 0x2d2   : > { %44690 = vst [vmem:[#allocation111_spill] sm:$0xff] %v39525_v40  ;;  %44691 = vst [vmem:[#allocation112_spill] sm:$0xff] %v39528_v39  ;;  %v39550_v39 = vld [vmem:[%s38164_s9 + $0x128] sm:$0xff]  ;;  %v39572_v40 = vsub.f32 %v39379_v29, %v39367_v25  ;;  %v39597_v25 = vsub.f32 %v39405_v4, %v39393_v34  ;;  %v39601_v29 = vsub.f32 %v39408_v32, %v39396_v35  ;;  %v39615_v34 = vld [vmem:[%s38157_s13 + $0x170] sm:$0xff] }
 0x2d3   : > { %44692 = vst [vmem:[#allocation113_spill] sm:$0xff] %v39531_v38  ;;  %44693 = vst [vmem:[#allocation114_spill] sm:$0xff] %v39538_v36  ;;  %v39556_v38 = vld [vmem:[%s38164_s9 + $0x138] sm:$0xff]  ;;  %v39621_v35 = vld [vmem:[%s38157_s13 + $0x180] sm:$0xff] }
 0x2d4   : > { %44694 = vst [vmem:[#allocation115_spill] sm:$0xff] %v39541_v45  ;;  %44695 = vst [vmem:[#allocation116_spill] sm:$0xff] %v39544_v20  ;;  %v39618_v4 = vld [vmem:[%s38157_s13 + $0x178] sm:$0xff] }
 0x2d5   : > { %44696 = vst [vmem:[#allocation117_spill] sm:$0xff] %v39547_v21  ;;  %44697 = vst [vmem:[#allocation118_spill] sm:$0xff] %v39550_v39  ;;  %v39624_v32 = vld [vmem:[%s38164_s9 + $0x158] sm:$0xff] }
 0x2d6   : > { %44698 = vst [vmem:[#allocation119_spill] sm:$0xff] %v39553_v30  ;;  %44699 = vst [vmem:[#allocation120_spill] sm:$0xff] %v39556_v38 }
 0x2d7   : > { %44700 = vst [vmem:[#allocation121_spill] sm:$0xff] %v39575_v46  ;;  %44701 = vst [vmem:[#allocation122_spill] sm:$0xff] %v39578_v22 }
 0x2d8   : > { %44702 = vst [vmem:[#allocation123_spill] sm:$0xff] %v39581_v26  ;;  %44703 = vst [vmem:[#allocation124_spill] sm:$0xff] %v39584_v23 }
 0x2d9   : > { %44704 = vst [vmem:[#allocation125_spill] sm:$0xff] %v39587_v27  ;;  %44705 = vst [vmem:[#allocation126_spill] sm:$0xff] %v39590_v24 }
 0x2da   : > { %44706 = vst [vmem:[#allocation127_spill] sm:$0xff] %v39593_v28  ;;  %44707 = vst [vmem:[#allocation128_spill] sm:$0xff] %v39605_v47  ;;  %v39649_v47 = vld [vmem:[%s38157_s13 + $0x188] sm:$0xff] }
 0x2db   : > { %44708 = vst [vmem:[#allocation129_spill] sm:$0xff] %v39609_v48  ;;  %44709 = vst [vmem:[#allocation130_spill] sm:$0xff] %v39612_v53  ;;  %v39646_v48 = vsub.f32 %v39450_v9, %v39438_v6  ;;  %v39671_v6 = vsub.f32 %v39477_v50, %v39465_v52  ;;  %v39675_v9 = vsub.f32 %v39480_v12, %v39468_v51  ;;  %v39689_v52 = vld [vmem:[%s38157_s13 + $0x1b0] sm:$0xff]  ;;  %v39692_v50 = vld [vmem:[%s38157_s13 + $0x1b8] sm:$0xff] }
 0x2dc   : > { %44710 = vst [vmem:[#allocation131_spill] sm:$0xff] %v39615_v34  ;;  %44711 = vst [vmem:[#allocation132_spill] sm:$0xff] %v39618_v4  ;;  %v39695_v51 = vld [vmem:[%s38157_s13 + $0x1c0] sm:$0xff]  ;;  %v39698_v12 = vld [vmem:[%s38164_s9 + $0x188] sm:$0xff] }
 0x2dd   : > { %44712 = vst [vmem:[#allocation133_spill] sm:$0xff] %v39621_v35  ;;  %44713 = vst [vmem:[#allocation134_spill] sm:$0xff] %v39624_v32 }
 0x2de   : > { %44714 = vst [vmem:[#allocation135_spill] sm:$0xff] %v39627_v2  ;;  %44715 = vst [vmem:[#allocation136_spill] sm:$0xff] %v39630_v1 }
 0x2df   : > { %44716 = vst [vmem:[#allocation137_spill] sm:$0xff] %v39638_v3  ;;  %44717 = vst [vmem:[#allocation138_spill] sm:$0xff] %v39642_v54  ;;  %v39683_v54 = vsub.f32 %v39486_v13, %v39474_v11  ;;  %v39686_v3 = vld [vmem:[%s38157_s13 + $0x1a8] sm:$0xff]  ;;  %v39708_v11 = vsub.f32 %v39513_v42, %v39501_v44  ;;  %v39712_v13 = vsub.f32 %v39516_v18, %v39504_v43  ;;  %v39726_v44 = vld [vmem:[%s38157_s13 + $0x1d0] sm:$0xff] }
 0x2e0   : > { %44718 = vst [vmem:[#allocation139_spill] sm:$0xff] %v39646_v48  ;;  %44719 = vst [vmem:[#allocation140_spill] sm:$0xff] %v39649_v47  ;;  %v39679_v48 = vsub.f32 %v39483_v49, %v39471_v10  ;;  %v39701_v10 = vld [vmem:[%s38164_s9 + $0x190] sm:$0xff]  ;;  %v39704_v49 = vld [vmem:[%s38164_s9 + $0x198] sm:$0xff] }
 0x2e1   : > { %44720 = vst [vmem:[#allocation141_spill] sm:$0xff] %v39652_v60  ;;  %44721 = vst [vmem:[#allocation142_spill] sm:$0xff] %v39655_v58  ;;  %v39729_v42 = vld [vmem:[%s38157_s13 + $0x1d8] sm:$0xff]  ;;  %v39732_v43 = vld [vmem:[%s38157_s13 + $0x1e0] sm:$0xff] }
 0x2e2   : > { %44722 = vst [vmem:[#allocation143_spill] sm:$0xff] %v39658_v59  ;;  %44723 = vst [vmem:[#allocation144_spill] sm:$0xff] %v39661_v8  ;;  %v39735_v18 = vld [vmem:[%s38164_s9 + $0x1a0] sm:$0xff] }
 0x2e3   : > { %44724 = vst [vmem:[#allocation145_spill] sm:$0xff] %v39664_v5  ;;  %44725 = vst [vmem:[#allocation146_spill] sm:$0xff] %v39667_v57 }
 0x2e4   : > { %44726 = vst [vmem:[#allocation147_spill] sm:$0xff] %v39675_v9  ;;  %44727 = vst [vmem:[#allocation148_spill] sm:$0xff] %v39679_v48  ;;  %v39720_v48 = vsub.f32 %v39522_v19, %v39510_v15  ;;  %v39723_v9 = vld [vmem:[%s38157_s13 + $0x1c8] sm:$0xff]  ;;  %v39745_v15 = vsub.f32 %v39550_v39, %v39538_v36  ;;  %v39749_v19 = vsub.f32 %v39553_v30, %v39541_v45  ;;  %v39766_v36 = vld [vmem:[%s38157_s13 + $0x1f8] sm:$0xff] }
 0x2e5   : > { %44728 = vst [vmem:[#allocation149_spill] sm:$0xff] %v39683_v54  ;;  %44729 = vst [vmem:[#allocation150_spill] sm:$0xff] %v39686_v3  ;;  %v39716_v54 = vsub.f32 %v39519_v41, %v39507_v14  ;;  %v39741_v14 = vld [vmem:[%s38164_s9 + $0x1b0] sm:$0xff]  ;;  %v39753_v41 = vsub.f32 %v39556_v38, %v39544_v20  ;;  %v39769_v39 = vld [vmem:[%s38164_s9 + $0x1b8] sm:$0xff]  ;;  %v39779_v20 = vsub.f32 %v39590_v24, %v39575_v46 }
 0x2e6   : > { %44730 = vst [vmem:[#allocation151_spill] sm:$0xff] %v39689_v52  ;;  %44731 = vst [vmem:[#allocation152_spill] sm:$0xff] %v39692_v50  ;;  %v39772_v45 = vld [vmem:[%s38164_s9 + $0x1c0] sm:$0xff]  ;;  %v39775_v30 = vld [vmem:[%s38164_s9 + $0x1c8] sm:$0xff]  ;;  %v39791_v38 = vsub.f32 %v39627_v2, %v39584_v23  ;;  %v39804_v46 = vsub.f32 %v39630_v1, %v39612_v53  ;;  %v39816_v23 = vsub.f32 %v39667_v57, %v39621_v35 }
 0x2e7   : > { %44732 = vst [vmem:[#allocation153_spill] sm:$0xff] %v39695_v51  ;;  %44733 = vst [vmem:[#allocation154_spill] sm:$0xff] %v39698_v12  ;;  %v39819_v2 = vld [vmem:[%s38164_s9 + $0x1e8] sm:$0xff]  ;;  %v39829_v53 = vsub.f32 %v39698_v12, %v39649_v47  ;;  %v39841_v35 = vsub.f32 %v39735_v18, %v39658_v59  ;;  %v39849_v47 = vsub.f32 %v39741_v14, %v39689_v52 }
 0x2e8   : > { %44734 = vst [vmem:[#allocation155_spill] sm:$0xff] %v39701_v10  ;;  %44735 = vst [vmem:[#allocation156_spill] sm:$0xff] %v39704_v49  ;;  %v39861_v59 = vsub.f32 %v39775_v30, %v39723_v9  ;;  %v44804_v1 = vld [vmem:[#allocation38_spill] sm:$0xff] }
 0x2e9   : > { %44736 = vst [vmem:[#allocation157_spill] sm:$0xff] %v39708_v11  ;;  %44737 = vst [vmem:[#allocation158_spill] sm:$0xff] %v39712_v13  ;;  %v39738_v13 = vld [vmem:[%s38164_s9 + $0x1a8] sm:$0xff]  ;;  %v39763_v11 = vld [vmem:[%s38157_s13 + $0x1f0] sm:$0xff] }
 0x2ea   : > { %44738 = vst [vmem:[#allocation159_spill] sm:$0xff] %v39716_v54  ;;  %44739 = vst [vmem:[#allocation160_spill] sm:$0xff] %v39720_v48  ;;  %v39757_v48 = vsub.f32 %v39587_v27, %v39547_v21  ;;  %v39760_v54 = vld [vmem:[%s38157_s13 + $0x1e8] sm:$0xff]  ;;  %v39783_v21 = vsub.f32 %v39593_v28, %v39578_v22  ;;  %v39787_v27 = vsub.f32 %v39624_v32, %v39581_v26  ;;  %v39822_v28 = vld [vmem:[%s38164_s9 + $0x1f0] sm:$0xff] }
 0x2eb   : > { %44740 = vst [vmem:[#allocation161_spill] sm:$0xff] %v39723_v9  ;;  %44741 = vst [vmem:[#allocation162_spill] sm:$0xff] %v39726_v44  ;;  %v39808_v22 = vsub.f32 %v39661_v8, %v39615_v34  ;;  %v39812_v26 = vsub.f32 %v39664_v5, %v39618_v4  ;;  %v39825_v32 = vld [vmem:[%s38164_s9 + $0x1f8] sm:$0xff]  ;;  %v39833_v34 = vsub.f32 %v39701_v10, %v39652_v60  ;;  %v44789_v5 = vld [vmem:[#allocation29_spill] sm:$0xff] }
 0x2ec   : > { %44742 = vst [vmem:[#allocation163_spill] sm:$0xff] %v39729_v42  ;;  %44743 = vst [vmem:[#allocation164_spill] sm:$0xff] %v39732_v43  ;;  %v39837_v4 = vsub.f32 %v39704_v49, %v39655_v58  ;;  %v39845_v57 = vsub.f32 %v39738_v13, %v39686_v3  ;;  %v39853_v60 = vsub.f32 %v39769_v39, %v39692_v50 }
 0x2ed   : > { %44744 = vst [vmem:[#allocation165_spill] sm:$0xff] %v39735_v18  ;;  %44745 = vst [vmem:[#allocation166_spill] sm:$0xff] %v39738_v13  ;;  %v39857_v58 = vsub.f32 %v39772_v45, %v39695_v51  ;;  %v39877_v51 = vsub.f32 %v39819_v2, %v39760_v54  ;;  %v39881_v9 = vsub.f32 %v39822_v28, %v39763_v11  ;;  %v44773_v18 = vld [vmem:[#allocation23_spill] sm:$0xff] }
 0x2ee   : > { %44746 = vst [vmem:[#allocation167_spill] sm:$0xff] %v39741_v14  ;;  %44747 = vst [vmem:[#allocation168_spill] sm:$0xff] %v39749_v19  ;;  %v39800_v19 = vld [vmem:[%s38164_s9 + $0x1e0] sm:$0xff]  ;;  %v44776_v13 = vld [vmem:[#allocation147_spill] sm:$0xff] }
 0x2ef   : > { %44748 = vst [vmem:[#allocation169_spill] sm:$0xff] %v39753_v41  ;;  %44749 = vst [vmem:[#allocation170_spill] sm:$0xff] %v39757_v48  ;;  %v39794_v48 = vld [vmem:[%s38164_s9 + $0x1d0] sm:$0xff]  ;;  %v39797_v41 = vld [vmem:[%s38164_s9 + $0x1d8] sm:$0xff]  ;;  %v39873_v50 = vsub.f32 %v39800_v19, %v39732_v43  ;;  %v39896_v43 = vmul.f32 %v39560_v16, %v39560_v16  ;;  %v39916_v16 = vmul.f32 %v39597_v25, %v39597_v25 }
 0x2f0   : > { %44750 = vst [vmem:[#allocation171_spill] sm:$0xff] %v39760_v54  ;;  %44751 = vst [vmem:[#allocation172_spill] sm:$0xff] %v39763_v11  ;;  %v39865_v3 = vsub.f32 %v39794_v48, %v39726_v44  ;;  %v39869_v52 = vsub.f32 %v39797_v41, %v39729_v42  ;;  %v39885_v44 = vsub.f32 %v39825_v32, %v39766_v36  ;;  %v44763_v54 = vld [vmem:[#allocation129_spill] sm:$0xff]  ;;  %v44767_v25 = vld [vmem:[#allocation100_spill] sm:$0xff] }
 0x2f1   : > { %44752 = vst [vmem:[#allocation173_spill] sm:$0xff] %v39766_v36  ;;  %44753 = vst [vmem:[#allocation174_spill] sm:$0xff] %v39769_v39  ;;  %v39889_v42 = vmul.f32 %v39535_v37, %v39535_v37  ;;  %v39900_v11 = vmul.f32 %v39564_v17, %v39564_v17  ;;  %v39904_v36 = vmul.f32 %v39568_v7, %v39568_v7  ;;  %v44762_v17 = vld [vmem:[#allocation128_spill] sm:$0xff]  ;;  %vm44367_vm10 = vcmp.lt.s32.totalorder %v44767_v25, 16  ;;  %v44771_v14 = vld [vmem:[#allocation101_spill] sm:$0xff] }
 0x2f2   : > { %44754 = vst [vmem:[#allocation175_spill] sm:$0xff] %v39772_v45  ;;  %44755 = vst [vmem:[#allocation176_spill] sm:$0xff] %v39775_v30  ;;  %v39908_v37 = vmul.f32 %v39572_v40, %v39572_v40  ;;  %v39920_v7 = vmul.f32 %v39601_v29, %v39601_v29  ;;  %v39924_v40 = vmul.f32 %v44762_v17, %v44762_v17  ;;  %v44770_v45 = vld [vmem:[#allocation139_spill] sm:$0xff]  ;;  %vm44368_vm11 = vcmp.lt.s32.totalorder %v44771_v14, 16  ;;  %v44772_v39 = vld [vmem:[#allocation102_spill] sm:$0xff] }
 0x2f3   : > { %44756 = vst [vmem:[#allocation177_spill] sm:$0xff] %v39794_v48  ;;  %44757 = vst [vmem:[#allocation178_spill] sm:$0xff] %v39797_v41  ;;  %v39936_v29 = vmul.f32 %v39634_v31, %v39634_v31  ;;  %v44768_v48 = vld [vmem:[#allocation137_spill] sm:$0xff]  ;;  %v44769_v41 = vld [vmem:[#allocation138_spill] sm:$0xff]  ;;  %v39948_v30 = vmul.f32 %v44770_v45, %v44770_v45 }
 0x2f4   : > { %44758 = vst [vmem:[#allocation179_spill] sm:$0xff] %v39800_v19  ;;  %44759 = vst [vmem:[#allocation180_spill] sm:$0xff] %v39819_v2  ;;  %v44765_v19 = vld [vmem:[#allocation90_spill] sm:$0xff]  ;;  %v44766_v2 = vld [vmem:[#allocation99_spill] sm:$0xff]  ;;  %v39940_v17 = vmul.f32 %v44768_v48, %v44768_v48  ;;  %v39956_v48 = vmul.f32 %v39671_v6, %v39671_v6  ;;  %v1824_v6 = vmul.f32 %v39869_v52, %v39869_v52  ;;  %v1829_v52 = vsel %vm44361_vm0, %v39889_v42, 0.0 }
 0x2f5   : > { %44760 = vst [vmem:[#allocation181_spill] sm:$0xff] %v39822_v28  ;;  %44761 = vst [vmem:[#allocation182_spill] sm:$0xff] %v39825_v32  ;;  %v39928_v28 = vmul.f32 %v44763_v54, %v44763_v54  ;;  %v44764_v32 = vld [vmem:[#allocation89_spill] sm:$0xff]  ;;  %vm44365_vm8 = vcmp.lt.s32.totalorder %v44765_v19, 16  ;;  %vm44366_vm9 = vcmp.lt.s32.totalorder %v44766_v2, 16  ;;  %v39944_v54 = vmul.f32 %v44769_v41, %v44769_v41  ;;  %v44774_v31 = vld [vmem:[#allocation24_spill] sm:$0xff] }
 0x2f6   : > { %vm44369_vm7 = vcmp.lt.s32.totalorder %v44764_v32, 16  ;;  %44775 = vst [vmem:[#allocation128_spill] sm:$0xff] %v39956_v48  ;;  %v39960_v41 = vmul.f32 %v44776_v13, %v44776_v13  ;;  %v44778_v10 = vld [vmem:[#allocation157_spill] sm:$0xff]  ;;  %v44779_v49 = vld [vmem:[#allocation158_spill] sm:$0xff]  ;;  %v44784_v24 = vld [vmem:[#allocation159_spill] sm:$0xff]  ;;  %v1833_v42 = vsel %vm44370_vm4, %v39908_v37, 0.0 }
 0x2f7   : > { %v39964_v45 = vmul.f32 %v44778_v10, %v44778_v10  ;;  %v39968_v12 = vmul.f32 %v44779_v49, %v44779_v49  ;;  %v39976_v13 = vmul.f32 %v44784_v24, %v44784_v24  ;;  %v39984_v49 = vmul.f32 %v39745_v15, %v39745_v15  ;;  %v44788_v48 = vld [vmem:[#allocation168_spill] sm:$0xff]  ;;  %v44792_v24 = vld [vmem:[#allocation169_spill] sm:$0xff] }
 0x2f8   : > { %44777 = vst [vmem:[#allocation129_spill] sm:$0xff] %v39960_v41  ;;  %v44786_v41 = vld [vmem:[#allocation160_spill] sm:$0xff]  ;;  %v39988_v8 = vmul.f32 %v44788_v48, %v44788_v48  ;;  %v40003_v15 = vmul.f32 %v39779_v20, %v39779_v20  ;;  %v40007_v48 = vmul.f32 %v39783_v21, %v39783_v21  ;;  %v40021_v20 = vmul.f32 %v39804_v46, %v39804_v46 }
 0x2f9   : > { %44785 = vst [vmem:[#allocation137_spill] sm:$0xff] %v39976_v13  ;;  %v39980_v10 = vmul.f32 %v44786_v41, %v44786_v41  ;;  %v39995_v13 = vmul.f32 %v44792_v24, %v44792_v24  ;;  %v44793_v41 = vld [vmem:[#allocation170_spill] sm:$0xff]  ;;  %v40013_v24 = vmul.f32 %v39787_v27, %v39787_v27  ;;  %v40025_v21 = vmul.f32 %v39808_v22, %v39808_v22 }
 0x2fa   : > { %44794 = vst [vmem:[#allocation139_spill] sm:$0xff] %v40007_v48  ;;  %v44798_v48 = vld [vmem:[#allocation34_spill] sm:$0xff]  ;;  %v40032_v27 = vmul.f32 %v39812_v26, %v39812_v26  ;;  %v40040_v46 = vmul.f32 %v39829_v53, %v39829_v53  ;;  %v40044_v22 = vmul.f32 %v39833_v34, %v39833_v34  ;;  %v40051_v26 = vmul.f32 %v39837_v4, %v39837_v4 }
 0x2fb   : > { %44787 = vst [vmem:[#allocation138_spill] sm:$0xff] %v39980_v10  ;;  %v39999_v10 = vmul.f32 %v44793_v41, %v44793_v41  ;;  %v40017_v41 = vmul.f32 %v39791_v38, %v39791_v38  ;;  %44797 = vst [vmem:[#allocation147_spill] sm:$0xff] %v40025_v21  ;;  %v40036_v38 = vmul.f32 %v39816_v23, %v39816_v23  ;;  %v44803_v21 = vld [vmem:[#allocation37_spill] sm:$0xff]  ;;  %vm44374_vm0 = vcmp.lt.s32.totalorder %v44822_v33, 16 }
 0x2fc   : > { %44801 = vst [vmem:[#allocation157_spill] sm:$0xff] %v40040_v46  ;;  %44802 = vst [vmem:[#allocation158_spill] sm:$0xff] %v40044_v22  ;;  %v40055_v23 = vmul.f32 %v39841_v35, %v39841_v35  ;;  %v40059_v53 = vmul.f32 %v39845_v57, %v39845_v57  ;;  %v40063_v34 = vmul.f32 %v39849_v47, %v39849_v47  ;;  %v44809_v22 = vld [vmem:[#allocation40_spill] sm:$0xff]  ;;  %v44815_v46 = vld [vmem:[#allocation46_spill] sm:$0xff]  ;;  %v1837_v37 = vsel %vm44365_vm8, %v39928_v28, 0.0 }
 0x2fd   : > { %v1820_v4 = vmul.f32 %v39853_v60, %v39853_v60  ;;  %v1821_v35 = vmul.f32 %v39857_v58, %v39857_v58  ;;  %v1822_v57 = vmul.f32 %v39861_v59, %v39861_v59  ;;  %v1825_v60 = vmul.f32 %v39873_v50, %v39873_v50  ;;  %v44820_v47 = vld [vmem:[#allocation51_spill] sm:$0xff] }
 0x2fe   : > { %44806 = vst [vmem:[#allocation159_spill] sm:$0xff] %v40055_v23  ;;  %44807 = vst [vmem:[#allocation160_spill] sm:$0xff] %v40059_v53  ;;  %v1823_v53 = vmul.f32 %v39865_v3, %v39865_v3  ;;  %v44814_v23 = vld [vmem:[#allocation45_spill] sm:$0xff]  ;;  %v1826_v58 = vmul.f32 %v39877_v51, %v39877_v51  ;;  %v1827_v59 = vmul.f32 %v39881_v9, %v39881_v9  ;;  %v1830_v50 = vsel %vm44513_vm1, %v39896_v43, 0.0  ;;  %v44819_v3 = vld [vmem:[#allocation50_spill] sm:$0xff] }
 0x2ff   : > { %44808 = vst [vmem:[#allocation168_spill] sm:$0xff] %v40063_v34  ;;  %v44813_v34 = vld [vmem:[#allocation44_spill] sm:$0xff]  ;;  %vm44410_vm12 = vcmp.lt.s32.totalorder %v44814_v23, 16  ;;  %v1828_v23 = vmul.f32 %v39885_v44, %v39885_v44  ;;  %v1831_v51 = vsel %vm44358_vm2, %v39900_v11, 0.0  ;;  %v44818_v9 = vld [vmem:[#allocation49_spill] sm:$0xff]  ;;  %vm44395_vm15 = vcmp.lt.s32.totalorder %v44819_v3, 16 }
 0x300   : > { %vm44405_vm14 = vcmp.lt.s32.totalorder %v44818_v9, 16  ;;  %vm44400_vm13 = vcmp.lt.s32.totalorder %v44820_v47, 16  ;;  %v1832_v44 = vsel %vm44502_vm3, %v39904_v36, 0.0  ;;  %v1834_v43 = vsel %vm44499_vm5, %v39916_v16, 0.0  ;;  %v44826_v19 = vld [vmem:[#allocation137_spill] sm:$0xff] }
 0x301   : > { %v1835_v11 = vsel %vm44364_vm6, %v39920_v7, 0.0  ;;  %vm44373_vm2 = vcmp.lt.s32.totalorder %v44821_v63, 16  ;;  %v1836_v36 = vsel %vm44369_vm7, %v39924_v40, 0.0  ;;  %v1838_v16 = vsel %vm44366_vm9, %v39936_v29, 0.0  ;;  %v44827_v40 = vld [vmem:[#allocation25_spill] sm:$0xff]  ;;  %v44830_v29 = vld [vmem:[#allocation26_spill] sm:$0xff] }
 0x302   : > { %v1839_v7 = vsel %vm44367_vm10, %v39940_v17, 0.0  ;;  %v40133_v55 = vsel %vm44368_vm11, %v39944_v54, 0.0  ;;  %vm44823_vm6 = vcmp.lt.s32.totalorder %v44772_v39, 16  ;;  %vm44824_vm8 = vcmp.lt.s32.totalorder %v44773_v18, 16  ;;  %v44829_v14 = vld [vmem:[#allocation138_spill] sm:$0xff]  ;;  %v44832_v39 = vld [vmem:[#allocation27_spill] sm:$0xff] }
 0x303   : > { %v40138_v32 = vsel %vm44823_vm6, %v39948_v30, 0.0  ;;  %v1862_v28 = vsel %vm44824_vm8, %v39964_v45, 0.0  ;;  %vm44825_vm9 = vcmp.lt.s32.totalorder %v44774_v31, 16  ;;  %vm44828_vm10 = vcmp.lt.s32.totalorder %v44827_v40, 16  ;;  %v44834_v54 = vld [vmem:[#allocation28_spill] sm:$0xff]  ;;  %v44837_v31 = vld [vmem:[#allocation30_spill] sm:$0xff] }
 0x304   : > { %v1863_v2 = vsel %vm44825_vm9, %v39968_v12, 0.0  ;;  %v1864_v25 = vsel %vm44828_vm10, %v44826_v19, 0.0  ;;  %vm44831_vm11 = vcmp.lt.s32.totalorder %v44830_v29, 16  ;;  %vm44833_vm6 = vcmp.lt.s32.totalorder %v44832_v39, 16  ;;  %v44839_v19 = vld [vmem:[#allocation31_spill] sm:$0xff] }
 0x305   : > { %v1865_v17 = vsel %vm44831_vm11, %v44829_v14, 0.0  ;;  %v1866_v30 = vsel %vm44833_vm6, %v39984_v49, 0.0  ;;  %vm44835_vm7 = vcmp.lt.s32.totalorder %v44834_v54, 16  ;;  %vm44836_vm8 = vcmp.lt.s32.totalorder %v44789_v5, 16  ;;  %v44842_v29 = vld [vmem:[#allocation139_spill] sm:$0xff]  ;;  %v44843_v49 = vld [vmem:[#allocation32_spill] sm:$0xff] }
 0x306   : > { %v1867_v18 = vsel %vm44835_vm7, %v39988_v8, 0.0  ;;  %v1868_v12 = vsel %vm44836_vm8, %v39995_v13, 0.0  ;;  %vm44838_vm9 = vcmp.lt.s32.totalorder %v44837_v31, 16  ;;  %vm44840_vm10 = vcmp.lt.s32.totalorder %v44839_v19, 16  ;;  %v44845_v8 = vld [vmem:[#allocation33_spill] sm:$0xff]  ;;  %v44852_v31 = vld [vmem:[#allocation147_spill] sm:$0xff] }
 0x307   : > { %v1869_v45 = vsel %vm44838_vm9, %v39999_v10, 0.0  ;;  %v1870_v40 = vsel %vm44840_vm10, %v40003_v15, 0.0  ;;  %vm44841_vm11 = vcmask 7168   ;;  %vm44844_vm6 = vcmp.lt.s32.totalorder %v44843_v49, 16  ;;  %v44850_v15 = vld [vmem:[#allocation35_spill] sm:$0xff]  ;;  %v44853_v19 = vld [vmem:[#allocation36_spill] sm:$0xff] }
 0x308   : > { %v1894_v14 = vsel %vm44841_vm11, %v1829_v52, 0.0  ;;  %v1871_v39 = vsel %vm44844_vm6, %v44842_v29, 0.0  ;;  %vm44846_vm7 = vcmp.lt.s32.totalorder %v44845_v8, 16  ;;  %vm44847_vm4 = vmmov %vm44841_vm11  ;;  %vm44849_vm9 = vcmp.lt.s32.totalorder %v44798_v48, 16  ;;  %v44858_v48 = vld [vmem:[#allocation39_spill] sm:$0xff] }
 0x309   : > { %v1872_v54 = vsel %vm44846_vm7, %v40013_v24, 0.0  ;;  %v1895_v5 = vsel %vm44847_vm4, %v1830_v50, 0.0  ;;  %vm44848_vm8 = vmmov %vm44847_vm4  ;;  %v1873_v10 = vsel %vm44849_vm9, %v40017_v41, 0.0  ;;  %vm44851_vm10 = vcmp.lt.s32.totalorder %v44850_v15, 16 }
 0x30a   : > { %v1897_v13 = vsel %vm44848_vm8, %v1831_v51, 0.0  ;;  %v1874_v52 = vsel %vm44851_vm10, %v40021_v20, 0.0  ;;  %vm44854_vm11 = vcmp.lt.s32.totalorder %v44853_v19, 16  ;;  %v1896_v49 = vadd.f32 %v1895_v5, %v1894_v14  ;;  %v44857_v51 = vld [vmem:[#allocation157_spill] sm:$0xff]  ;;  %v44860_v20 = vld [vmem:[#allocation158_spill] sm:$0xff]  ;;  %v44868_v19 = vld [vmem:[#allocation43_spill] sm:$0xff] }
 0x30b   : > { %v1875_v29 = vsel %vm44854_vm11, %v44852_v31, 0.0  ;;  %vm44855_vm6 = vcmp.lt.s32.totalorder %v44803_v21, 16  ;;  %vm44856_vm4 = vcmp.lt.s32.totalorder %v44804_v1, 16  ;;  %vm44859_vm7 = vcmp.lt.s32.totalorder %v44858_v48, 16  ;;  %v44862_v14 = vld [vmem:[#allocation41_spill] sm:$0xff]  ;;  %v44864_v21 = vld [vmem:[#allocation159_spill] sm:$0xff] }
 0x30c   : > { %v1876_v24 = vsel %vm44855_vm6, %v40032_v27, 0.0  ;;  %v1877_v50 = vsel %vm44856_vm4, %v40036_v38, 0.0  ;;  %v1878_v41 = vsel %vm44859_vm7, %v44857_v51, 0.0  ;;  %v1899_v8 = vsel %vm44848_vm8, %v1832_v44, 0.0  ;;  %v44865_v27 = vld [vmem:[#allocation42_spill] sm:$0xff]  ;;  %v44867_v38 = vld [vmem:[#allocation160_spill] sm:$0xff]  ;;  %vm44873_vm7 = vmmov %vm44848_vm8 }
 0x30d   : > { %vm44861_vm9 = vcmp.lt.s32.totalorder %v44809_v22, 16  ;;  %vm44863_vm10 = vcmp.lt.s32.totalorder %v44862_v14, 16  ;;  %vm44866_vm11 = vcmp.lt.s32.totalorder %v44865_v27, 16  ;;  %v1898_v1 = vadd.f32 %v1897_v13, %v1896_v49  ;;  %v44870_v51 = vld [vmem:[#allocation168_spill] sm:$0xff]  ;;  %v44875_v14 = vld [vmem:[#allocation47_spill] sm:$0xff] }
 0x30e   : > { %v1879_v15 = vsel %vm44861_vm9, %v44860_v20, 0.0  ;;  %v1880_v5 = vsel %vm44863_vm10, %v40051_v26, 0.0  ;;  %v1881_v31 = vsel %vm44866_vm11, %v44864_v21, 0.0  ;;  %vm44869_vm6 = vcmp.lt.s32.totalorder %v44868_v19, 16  ;;  %v44877_v13 = vld [vmem:[#allocation48_spill] sm:$0xff]  ;;  %vm44879_vm11 = vmmov %vm44873_vm7 }
 0x30f   : > { %v1882_v48 = vsel %vm44869_vm6, %v44867_v38, 0.0  ;;  %vm44871_vm4 = vcmp.lt.s32.totalorder %v44813_v34, 16  ;;  %v1884_v22 = vsel %vm44410_vm12, %v1820_v4, 0.0  ;;  %v1901_v20 = vsel %vm44873_vm7, %v1833_v42, 0.0  ;;  %vm44880_vm6 = vmmov %vm44873_vm7  ;;  %v44881_v42 = vld [vmem:[#allocation111_spill] sm:$0xff] }
 0x310   : > { %v1883_v44 = vsel %vm44871_vm4, %v44870_v51, 0.0  ;;  %vm44874_vm8 = vcmp.lt.s32.totalorder %v44815_v46, 16  ;;  %vm44876_vm9 = vcmp.lt.s32.totalorder %v44875_v14, 16  ;;  %vm44878_vm10 = vcmp.lt.s32.totalorder %v44877_v13, 16  ;;  %vm44882_vm7 = vmmov %vm44880_vm6  ;;  %v44918_v13 = vld [vmem:[#allocation22_spill] sm:$0xff] }
 0x311   : > { %v1885_v26 = vsel %vm44874_vm8, %v1821_v35, 0.0  ;;  %v1886_v21 = vsel %vm44876_vm9, %v1822_v57, 0.0  ;;  %v1887_v49 = vsel %vm44878_vm10, %v1823_v53, 0.0  ;;  %v1900_v27 = vadd.f32 %v1899_v8, %v1898_v1  ;;  %vm44883_vm8 = vmmov %vm44880_vm6  ;;  %v40312_v8 = vld [vmem:[%s38164_s9 + $0x88] sm:$0xff] }
 0x312   : > { %v1888_v38 = vsel %vm44405_vm14, %v1824_v6, 0.0  ;;  %v1889_v34 = vsel %vm44395_vm15, %v1825_v60, 0.0  ;;  %v1890_v61 = vsel %vm44400_vm13, %v1826_v58, 0.0  ;;  %v1903_v4 = vsel %vm44879_vm11, %v1834_v43, 0.0  ;;  %vm44884_vm9 = vmmov %vm44880_vm6 }
 0x313   : > { %v1891_v46 = vsel %vm44373_vm2, %v1827_v59, 0.0  ;;  %v1892_v35 = vsel %vm44374_vm0, %v1828_v23, 0.0  ;;  %v1902_v57 = vadd.f32 %v1901_v20, %v1900_v27  ;;  %v1905_v53 = vsel %vm44880_vm6, %v1835_v11, 0.0  ;;  %vm44885_vm10 = vmmov %vm44880_vm6  ;;  %v40339_v20 = vld [vmem:[%s38164_s9 + $0x90] sm:$0xff]  ;;  %v44920_v27 = vld [vmem:[#allocation112_spill] sm:$0xff] }
 0x314   : > { %vm44482_vm4 = vcmp.lt.s32.totalorder %v44881_v42, 16  ;;  %v1907_v6 = vsel %vm44882_vm7, %v1836_v36, 0.0  ;;  %v1909_v60 = vsel %vm44883_vm8, %v1837_v37, 0.0  ;;  %v1911_v47 = vsel %vm44884_vm9, %v1838_v16, 0.0  ;;  %vm44886_vm11 = vmmov %vm44880_vm6 }
 0x315   : > { %v1913_v58 = vsel %vm44885_vm10, %v1839_v7, 0.0  ;;  %v1904_v3 = vadd.f32 %v1903_v4, %v1902_v57  ;;  %v40237_v63 = vsel %vm44886_vm11, %v1862_v28, 0.0  ;;  %vm44887_vm2 = vmmov %vm44880_vm6  ;;  %vm44951_vm15 = vcmask 7168  }
 0x316   : > { %v40240_v33 = vsel %vm44887_vm2, %v1863_v2, 0.0  ;;  %vm44888_vm0 = vmmov %vm44887_vm2  ;;  %vm44955_vm13 = vcmask 7168   ;;  %vm44959_vm14 = vcmask 7168   ;;  %vm44963_vm12 = vcmask 7168  }
 0x317   : > { %v40243_v23 = vsel %vm44888_vm0, %v1864_v25, 0.0  ;;  %vm44889_vm6 = vmmov %vm44888_vm0  ;;  %v1906_v36 = vadd.f32 %v1905_v53, %v1904_v3  ;;  %v40264_v7 = vsel %vm44888_vm0, %v1871_v39, 0.0  ;;  %v40357_v53 = vld [vmem:[%s38157_s13 + $0x98] sm:$0xff]  ;;  %v44927_v3 = vld [vmem:[#allocation113_spill] sm:$0xff] }
 0x318   : > { %v40246_v59 = vsel %vm44889_vm6, %v1865_v17, 0.0  ;;  %vm44890_vm7 = vmmov %vm44888_vm0  ;;  %44924 = vst [vmem:[#allocation138_spill] sm:$0xff] %v40357_v53 }
 0x319   : > { %v40249_v9 = vsel %vm44890_vm7, %v1866_v30, 0.0  ;;  %vm44891_vm8 = vmmov %vm44888_vm0  ;;  %v1908_v30 = vadd.f32 %v1907_v6, %v1906_v36  ;;  %v40360_v6 = vld [vmem:[%s38164_s9 + $0x98] sm:$0xff] }
 0x31a   : > { %v40252_v43 = vsel %vm44891_vm8, %v1867_v18, 0.0  ;;  %vm44892_vm9 = vmmov %vm44888_vm0 }
 0x31b   : > { %v40255_v11 = vsel %vm44892_vm9, %v1868_v12, 0.0  ;;  %vm44893_vm10 = vmmov %vm44888_vm0 }
 0x31c   : > { %v40258_v37 = vsel %vm44893_vm10, %v1869_v45, 0.0  ;;  %vm44894_vm2 = vmmov %vm44888_vm0 }
 0x31d   : > { %v40261_v16 = vsel %vm44894_vm2, %v1870_v40, 0.0  ;;  %vm44895_vm11 = vmmov %vm44888_vm0  ;;  %v40288_v40 = vsel %vm44888_vm0, %v1879_v15, 0.0 }
 0x31e   : > { %v40267_v28 = vsel %vm44895_vm11, %v1872_v54, 0.0  ;;  %vm44896_vm6 = vmmov %vm44888_vm0 }
 0x31f   : > { %v40270_v2 = vsel %vm44896_vm6, %v1873_v10, 0.0  ;;  %vm44897_vm7 = vmmov %vm44888_vm0 }
 0x320   : > { %v40273_v25 = vsel %vm44897_vm7, %v1874_v52, 0.0  ;;  %vm44898_vm8 = vmmov %vm44888_vm0  ;;  %v1910_v52 = vadd.f32 %v1909_v60, %v1908_v30 }
 0x321   : > { %v40276_v17 = vsel %vm44898_vm8, %v1875_v29, 0.0  ;;  %vm44899_vm9 = vmmov %vm44888_vm0 }
 0x322   : > { %v40279_v18 = vsel %vm44899_vm9, %v1876_v24, 0.0  ;;  %vm44900_vm10 = vmmov %vm44888_vm0  ;;  %v1912_v19 = vadd.f32 %v1911_v47, %v1910_v52  ;;  %v44925_v47 = vld [vmem:[#allocation65_spill] sm:$0xff] }
 0x323   : > { %v40282_v12 = vsel %vm44900_vm10, %v1877_v50, 0.0  ;;  %vm44901_vm2 = vmmov %vm44888_vm0  ;;  %v44930_v52 = vld [vmem:[#allocation129_spill] sm:$0xff] }
 0x324   : > { %v40285_v45 = vsel %vm44901_vm2, %v1878_v41, 0.0  ;;  %vm44902_vm11 = vmmov %vm44888_vm0  ;;  %v40309_v41 = vld [vmem:[%s38157_s13 + $0x88] sm:$0xff]  ;;  %v1914_v57 = vadd.f32 %v1913_v58, %v1912_v19 }
 0x325   : > { %v40291_v39 = vsel %vm44902_vm11, %v1880_v5, 0.0  ;;  %vm44903_vm6 = vmmov %vm44888_vm0  ;;  %44908 = vst [vmem:[#allocation169_spill] sm:$0xff] %v40309_v41  ;;  %v40318_v5 = vsel %vm44888_vm0, %v1887_v49, 0.0  ;;  %v44929_v58 = vld [vmem:[#allocation149_spill] sm:$0xff] }
 0x326   : > { %v40294_v54 = vsel %vm44903_vm6, %v1881_v31, 0.0  ;;  %vm44904_vm7 = vmmov %vm44888_vm0  ;;  %v1781_v30 = vmul.f32 %v44929_v58, %v44929_v58 }
 0x327   : > { %v40297_v10 = vsel %vm44904_vm7, %v1882_v48, 0.0  ;;  %vm44905_vm8 = vmmov %vm44888_vm0 }
 0x328   : > { %v40300_v29 = vsel %vm44905_vm8, %v1883_v44, 0.0  ;;  %vm44906_vm9 = vmmov %vm44888_vm0 }
 0x329   : > { %v40303_v24 = vsel %vm44906_vm9, %v1884_v22, 0.0  ;;  %vm44907_vm10 = vmmov %vm44888_vm0  ;;  %v40336_v22 = vld [vmem:[%s38157_s13 + $0x90] sm:$0xff] }
 0x32a   : > { %v40306_v50 = vsel %vm44907_vm10, %v1885_v26, 0.0  ;;  %vm44909_vm2 = vmmov %vm44888_vm0  ;;  %44915 = vst [vmem:[#allocation170_spill] sm:$0xff] %v40336_v22  ;;  %v44916_v26 = vld [vmem:[#allocation21_spill] sm:$0xff]  ;;  %vm44470_vm10 = vcmp.lt.s32.totalorder %v44920_v27, 16  ;;  %v1655_v42 = vsub.f32 %v40339_v20, %v40336_v22  ;;  %v1656_v27 = vsub.f32 %v40360_v6, %v40357_v53  ;;  %v40413_v22 = vld [vmem:[%s38164_s9 + $0xb0] sm:$0xff] }
 0x32b   : > { %v40315_v15 = vsel %vm44909_vm2, %v1886_v21, 0.0  ;;  %vm44910_vm11 = vmmov %vm44888_vm0  ;;  %v1526_v14 = vadd.s32 144, %v44916_v26  ;;  %v44917_v21 = vld [vmem:[#allocation64_spill] sm:$0xff]  ;;  %v1527_v60 = vadd.s32 152, %v44916_v26  ;;  %v1843_v19 = vsel %vm44470_vm10, %v44930_v52, 0.0  ;;  %v40394_v52 = vld [vmem:[%s38157_s13 + $0xa8] sm:$0xff] }
 0x32c   : > { %v40321_v31 = vsel %vm44910_vm11, %v1888_v38, 0.0  ;;  %vm44911_vm6 = vmmov %vm44888_vm0  ;;  %v40344_v49 = vadd.s32 %v44918_v13, %v44917_v21  ;;  %44935 = vst [vmem:[#allocation159_spill] sm:$0xff] %v40394_v52 }
 0x32d   : > { %v40324_v1 = vsel %vm44911_vm6, %v1889_v34, 0.0  ;;  %vm44912_vm7 = vmmov %vm44888_vm0  ;;  %v1654_v34 = vsub.f32 %v40312_v8, %v40309_v41  ;;  %v40401_v0 = vadd.s32 %v44918_v13, %v1527_v60  ;;  %44939 = vst [vmem:[#allocation64_spill] sm:$0xff] %v40413_v22  ;;  %v1530_v60 = vadd.s32 176, %v44916_v26 }
 0x32e   : > { %v40327_v48 = vsel %vm44912_vm7, %v1890_v61, 0.0  ;;  %vm44913_vm8 = vmmov %vm44888_vm0  ;;  %44919 = vst [vmem:[#allocation137_spill] sm:$0xff] %v40344_v49  ;;  %v44922_v61 = vld [vmem:[#allocation148_spill] sm:$0xff]  ;;  %vm44466_vm6 = vcmp.lt.s32.totalorder %v40344_v49, 16 }
 0x32f   : > { %v40330_v51 = vsel %vm44913_vm8, %v1891_v46, 0.0  ;;  %vm44914_vm9 = vmmov %vm44888_vm0  ;;  %v1780_v4 = vmul.f32 %v44922_v61, %v44922_v61  ;;  %v44923_v46 = vld [vmem:[#allocation128_spill] sm:$0xff]  ;;  %v1782_v58 = vmul.f32 %v1654_v34, %v1654_v34  ;;  %44936 = vst [vmem:[#allocation160_spill] sm:$0xff] %v40401_v0 }
 0x330   : > { %v40333_v44 = vsel %vm44914_vm9, %v1892_v35, 0.0  ;;  %vm44921_vm2 = vmmov %vm44888_vm0  ;;  %v1842_v35 = vsel %vm44482_vm4, %v44923_v46, 0.0  ;;  %vm44481_vm0 = vcmp.lt.s32.totalorder %v44927_v3, 16  ;;  %v40378_v61 = vld [vmem:[%s38157_s13 + $0xa0] sm:$0xff]  ;;  %v1845_v3 = vsel %vm44466_vm6, %v1781_v30, 0.0  ;;  %v40426_v49 = vld [vmem:[%s38157_s13 + $0xb8] sm:$0xff] }
 0x331   : > { %v1915_v38 = vsel %vm44921_vm2, %v40133_v55, 0.0  ;;  %v40365_v55 = vadd.s32 %v44918_v13, %v44925_v47  ;;  %vm44928_vm11 = vmmov %vm44921_vm2  ;;  %44931 = vst [vmem:[#allocation147_spill] sm:$0xff] %v40378_v61  ;;  %v40381_v46 = vld [vmem:[%s38164_s9 + $0xa0] sm:$0xff]  ;;  %v1528_v47 = vadd.s32 160, %v44916_v26  ;;  %v1784_v30 = vmul.f32 %v1656_v27, %v1656_v27 }
 0x332   : > { %v1917_v36 = vsel %vm44928_vm11, %v40138_v32, 0.0  ;;  %v1916_v21 = vadd.f32 %v1915_v38, %v1914_v57  ;;  %44932 = vst [vmem:[#allocation157_spill] sm:$0xff] %v40381_v46  ;;  %v40385_v32 = vadd.s32 %v44918_v13, %v1526_v14  ;;  %vm44934_vm7 = vmmov %vm44921_vm2  ;;  %v1844_v38 = vsel %vm44481_vm0, %v1780_v4, 0.0 }
 0x333   : > { %44926 = vst [vmem:[#allocation139_spill] sm:$0xff] %v40365_v55  ;;  %v1919_v56 = vsel %vm44934_vm7, %v1842_v35, 0.0  ;;  %v1529_v14 = vadd.s32 168, %v44916_v26  ;;  %vm44467_vm8 = vcmp.lt.s32.totalorder %v40365_v55, 16  ;;  %vm44937_vm9 = vmmov %vm44921_vm2  ;;  %v1657_v34 = vsub.f32 %v40381_v46, %v40378_v61  ;;  %v40429_v61 = vld [vmem:[%s38164_s9 + $0xb8] sm:$0xff]  ;;  %v40442_v55 = vld [vmem:[%s38157_s13 + $0xc0] sm:$0xff] }
 0x334   : > { %44933 = vst [vmem:[#allocation158_spill] sm:$0xff] %v40385_v32  ;;  %v1918_v57 = vadd.f32 %v1917_v36, %v1916_v21  ;;  %v1921_v35 = vsel %vm44937_vm9, %v1843_v19, 0.0  ;;  %v1783_v4 = vmul.f32 %v1655_v42, %v1655_v42  ;;  %v40410_v21 = vld [vmem:[%s38157_s13 + $0xb0] sm:$0xff]  ;;  %v40417_v53 = vadd.s32 %v44918_v13, %v1528_v47  ;;  %vm44941_vm11 = vmmov %vm44934_vm7 }
 0x335   : > { %44938 = vst [vmem:[#allocation168_spill] sm:$0xff] %v40410_v21  ;;  %vm44440_vm2 = vcmp.lt.s32.totalorder %v40385_v32, 16  ;;  %v1923_v19 = vsel %vm44941_vm11, %v1844_v38, 0.0  ;;  %v1658_v42 = vsub.f32 %v40397_v62, %v40394_v52  ;;  %44942 = vst [vmem:[#allocation148_spill] sm:$0xff] %v40426_v49  ;;  %v1531_v47 = vadd.s32 184, %v44916_v26  ;;  %v40445_v52 = vld [vmem:[%s38164_s9 + $0xc0] sm:$0xff] }
 0x336   : > { %v1920_v36 = vadd.f32 %v1919_v56, %v1918_v57  ;;  %44940 = vst [vmem:[#allocation22_spill] sm:$0xff] %v40417_v53  ;;  %v1846_v56 = vsel %vm44467_vm8, %v1782_v58, 0.0  ;;  %44943 = vst [vmem:[#allocation128_spill] sm:$0xff] %v40429_v61  ;;  %v40433_v41 = vadd.s32 %v44918_v13, %v1529_v14  ;;  %vm44465_vm7 = vcmp.lt.s32.totalorder %v40401_v0, 16  ;;  %v40458_v32 = vld [vmem:[%s38157_s13 + $0xc8] sm:$0xff]  ;;  %v40474_v0 = vld [vmem:[%s38157_s13 + $0xd0] sm:$0xff] }
 0x337   : > { %v1925_v38 = vsel %vm44937_vm9, %v1845_v3, 0.0  ;;  %v1659_v27 = vsub.f32 %v40413_v22, %v40410_v21  ;;  %v1785_v58 = vmul.f32 %v1657_v34, %v1657_v34  ;;  %44945 = vst [vmem:[#allocation149_spill] sm:$0xff] %v40442_v55  ;;  %44946 = vst [vmem:[#allocation129_spill] sm:$0xff] %v40445_v52  ;;  %v1532_v14 = vadd.s32 192, %v44916_v26  ;;  %v40461_v21 = vld [vmem:[%s38164_s9 + $0xc8] sm:$0xff] }
 0x338   : > { %v1922_v57 = vadd.f32 %v1921_v35, %v1920_v36  ;;  %44944 = vst [vmem:[#allocation65_spill] sm:$0xff] %v40433_v41  ;;  %v1847_v35 = vsel %vm44440_vm2, %v1783_v4, 0.0  ;;  %v40449_v46 = vadd.s32 %v44918_v13, %v1530_v60  ;;  %vm44433_vm11 = vcmp.lt.s32.totalorder %v40417_v53, 16  ;;  %44948 = vst [vmem:[#allocation184_spill] sm:$0xff] %v40458_v32  ;;  %v40490_v53 = vld [vmem:[%s38157_s13 + $0xd8] sm:$0xff] }
 0x339   : > { %v1927_v3 = vsel %vm44937_vm9, %v1846_v56, 0.0  ;;  %v1660_v34 = vsub.f32 %v40429_v61, %v40426_v49  ;;  %v1786_v4 = vmul.f32 %v1658_v42, %v1658_v42  ;;  %44949 = vst [vmem:[#allocation185_spill] sm:$0xff] %v40461_v21  ;;  %v1533_v60 = vadd.s32 200, %v44916_v26  ;;  %44952 = vst [vmem:[#allocation187_spill] sm:$0xff] %v40474_v0  ;;  %v40477_v49 = vld [vmem:[%s38164_s9 + $0xd0] sm:$0xff] }
 0x33a   : > { %v1924_v36 = vadd.f32 %v1923_v19, %v1922_v57  ;;  %44947 = vst [vmem:[#allocation183_spill] sm:$0xff] %v40449_v46  ;;  %v1848_v19 = vsel %vm44465_vm7, %v1784_v30, 0.0  ;;  %v40465_v22 = vadd.s32 %v44918_v13, %v1531_v47  ;;  %vm44438_vm9 = vcmp.lt.s32.totalorder %v40433_v41, 16  ;;  %44953 = vst [vmem:[#allocation188_spill] sm:$0xff] %v40477_v49  ;;  %v40506_v41 = vld [vmem:[%s38157_s13 + $0xe0] sm:$0xff] }
 0x33b   : > { %v1929_v56 = vsel %vm44951_vm15, %v1847_v35, 0.0  ;;  %v1661_v42 = vsub.f32 %v40445_v52, %v40442_v55  ;;  %v1787_v30 = vmul.f32 %v1659_v27, %v1659_v27  ;;  %v1534_v47 = vadd.s32 208, %v44916_v26  ;;  %44956 = vst [vmem:[#allocation190_spill] sm:$0xff] %v40490_v53  ;;  %v40493_v55 = vld [vmem:[%s38164_s9 + $0xd8] sm:$0xff]  ;;  %44960 = vst [vmem:[#allocation193_spill] sm:$0xff] %v40506_v41 }
 0x33c   : > { %v1926_v57 = vadd.f32 %v1925_v38, %v1924_v36  ;;  %44950 = vst [vmem:[#allocation186_spill] sm:$0xff] %v40465_v22  ;;  %v1849_v38 = vsel %vm44433_vm11, %v1785_v58, 0.0  ;;  %v40481_v61 = vadd.s32 %v44918_v13, %v1532_v14  ;;  %vm44415_vm15 = vcmp.lt.s32.totalorder %v40449_v46, 16  ;;  %44957 = vst [vmem:[#allocation191_spill] sm:$0xff] %v40493_v55  ;;  %v40522_v46 = vld [vmem:[%s38157_s13 + $0xe8] sm:$0xff] }
 0x33d   : > { %v1931_v35 = vsel %vm44955_vm13, %v1848_v19, 0.0  ;;  %v1662_v27 = vsub.f32 %v40461_v21, %v40458_v32  ;;  %v1788_v58 = vmul.f32 %v1660_v34, %v1660_v34  ;;  %v1535_v14 = vadd.s32 216, %v44916_v26  ;;  %v40509_v32 = vld [vmem:[%s38164_s9 + $0xe0] sm:$0xff]  ;;  %44964 = vst [vmem:[#allocation196_spill] sm:$0xff] %v40522_v46 }
 0x33e   : > { %v1928_v36 = vadd.f32 %v1927_v3, %v1926_v57  ;;  %44954 = vst [vmem:[#allocation189_spill] sm:$0xff] %v40481_v61  ;;  %v1850_v3 = vsel %vm44438_vm9, %v1786_v4, 0.0  ;;  %v40497_v52 = vadd.s32 %v44918_v13, %v1533_v60  ;;  %vm44420_vm13 = vcmp.lt.s32.totalorder %v40465_v22, 16  ;;  %44961 = vst [vmem:[#allocation194_spill] sm:$0xff] %v40509_v32  ;;  %v40538_v22 = vld [vmem:[%s38157_s13 + $0xf0] sm:$0xff] }
 0x33f   : > { %v1933_v19 = vsel %vm44959_vm14, %v1849_v38, 0.0  ;;  %v1663_v34 = vsub.f32 %v40477_v49, %v40474_v0  ;;  %v1789_v4 = vmul.f32 %v1661_v42, %v1661_v42  ;;  %v1536_v60 = vadd.s32 224, %v44916_v26  ;;  %v40525_v0 = vld [vmem:[%s38164_s9 + $0xe8] sm:$0xff]  ;;  %44968 = vst [vmem:[#allocation199_spill] sm:$0xff] %v40538_v22 }
 0x340   : > { %v1930_v57 = vadd.f32 %v1929_v56, %v1928_v36  ;;  %44958 = vst [vmem:[#allocation192_spill] sm:$0xff] %v40497_v52  ;;  %v1851_v56 = vsel %vm44415_vm15, %v1787_v30, 0.0  ;;  %v40513_v21 = vadd.s32 %v44918_v13, %v1534_v47  ;;  %vm44425_vm14 = vcmp.lt.s32.totalorder %v40481_v61, 16  ;;  %44965 = vst [vmem:[#allocation197_spill] sm:$0xff] %v40525_v0  ;;  %v40554_v61 = vld [vmem:[%s38157_s13 + $0xf8] sm:$0xff] }
 0x341   : > { %v1935_v38 = vsel %vm44963_vm12, %v1850_v3, 0.0  ;;  %v1664_v42 = vsub.f32 %v40493_v55, %v40490_v53  ;;  %v1790_v30 = vmul.f32 %v1662_v27, %v1662_v27  ;;  %v1537_v47 = vadd.s32 232, %v44916_v26  ;;  %v40541_v53 = vld [vmem:[%s38164_s9 + $0xf0] sm:$0xff]  ;;  %44971 = vst [vmem:[#allocation201_spill] sm:$0xff] %v40554_v61 }
 0x342   : > { %v1932_v36 = vadd.f32 %v1931_v35, %v1930_v57  ;;  %44962 = vst [vmem:[#allocation195_spill] sm:$0xff] %v40513_v21  ;;  %v1852_v35 = vsel %vm44420_vm13, %v1788_v58, 0.0  ;;  %v40529_v49 = vadd.s32 %v44918_v13, %v1535_v14  ;;  %vm44430_vm12 = vcmp.lt.s32.totalorder %v40497_v52, 16  ;;  %v40573_v52 = vld [vmem:[%s38164_s9 + $0x100] sm:$0xff] }
 0x343   : > { %vm44967_vm15 = vcmask 7168   ;;  %v1665_v27 = vsub.f32 %v40509_v32, %v40506_v41  ;;  %v1791_v58 = vmul.f32 %v1663_v34, %v1663_v34  ;;  %v1538_v14 = vadd.s32 240, %v44916_v26  ;;  %v40557_v41 = vld [vmem:[%s38164_s9 + $0xf8] sm:$0xff] }
 0x344   : > { %v1934_v57 = vadd.f32 %v1933_v19, %v1932_v36  ;;  %44966 = vst [vmem:[#allocation198_spill] sm:$0xff] %v40529_v49  ;;  %v1937_v3 = vsel %vm44967_vm15, %v1851_v56, 0.0  ;;  %v1853_v19 = vsel %vm44425_vm14, %v1789_v4, 0.0  ;;  %v40545_v55 = vadd.s32 %v44918_v13, %v1536_v60 }
 0x345   : > { %vm44432_vm15 = vcmp.lt.s32.totalorder %v40513_v21, 16  ;;  %vm44970_vm13 = vcmask 7168   ;;  %v1666_v34 = vsub.f32 %v40525_v0, %v40522_v46  ;;  %v1792_v4 = vmul.f32 %v1664_v42, %v1664_v42 }
 0x346   : > { %v1936_v36 = vadd.f32 %v1935_v38, %v1934_v57  ;;  %44969 = vst [vmem:[#allocation200_spill] sm:$0xff] %v40545_v55  ;;  %v1939_v56 = vsel %vm44970_vm13, %v1852_v35, 0.0  ;;  %v1854_v38 = vsel %vm44430_vm12, %v1790_v30, 0.0  ;;  %v1539_v60 = vadd.s32 248, %v44916_v26 }
 0x347   : > { %v40561_v32 = vadd.s32 %v44918_v13, %v1537_v47  ;;  %vm44437_vm13 = vcmp.lt.s32.totalorder %v40529_v49, 16  ;;  %vm44973_vm14 = vcmask 7168   ;;  %v1667_v42 = vsub.f32 %v40541_v53, %v40538_v22 }
 0x348   : > { %v1938_v57 = vadd.f32 %v1937_v3, %v1936_v36  ;;  %v1941_v35 = vsel %vm44973_vm14, %v1853_v19, 0.0  ;;  %v1793_v46 = vmul.f32 %v1665_v27, %v1665_v27  ;;  %v1855_v30 = vsel %vm44432_vm15, %v1791_v58, 0.0  ;;  %v40570_v36 = vld [vmem:[%s38157_s13 + $0x100] sm:$0xff]  ;;  %vm44976_vm11 = vmmov %vm44973_vm14 }
 0x349   : > { %44972 = vst [vmem:[#allocation202_spill] sm:$0xff] %v40561_v32  ;;  %v1540_v0 = vadd.s32 256, %v44916_v26  ;;  %v40577_v47 = vadd.s32 %v44918_v13, %v1538_v14  ;;  %vm44439_vm12 = vcmp.lt.s32.totalorder %v40545_v55, 16  ;;  %v1943_v19 = vsel %vm44973_vm14, %v1854_v38, 0.0 }
 0x34a   : > { %v1940_v3 = vadd.f32 %v1939_v56, %v1938_v57  ;;  %v1668_v27 = vsub.f32 %v40557_v41, %v40554_v61  ;;  %v1794_v22 = vmul.f32 %v1666_v34, %v1666_v34  ;;  %v1856_v58 = vsel %vm44437_vm13, %v1792_v4, 0.0  ;;  %vm44978_vm13 = vmmov %vm44976_vm11 }
 0x34b   : > { %44974 = vst [vmem:[#allocation203_spill] sm:$0xff] %v40577_v47  ;;  %v40586_v57 = vadd.s32 %v44918_v13, %v1539_v60  ;;  %vm44441_vm15 = vcmp.lt.s32.totalorder %v40561_v32, 16  ;;  %v1945_v26 = vsel %vm44976_vm11, %v1855_v30, 0.0  ;;  %v1669_v14 = vsub.f32 %v40573_v52, %v40570_v36  ;;  %vm44979_vm9 = vmmov %vm44978_vm13 }
 0x34c   : > { %v1942_v56 = vadd.f32 %v1941_v35, %v1940_v3  ;;  %v1795_v21 = vmul.f32 %v1667_v42, %v1667_v42  ;;  %v1857_v38 = vsel %vm44439_vm12, %v1793_v46, 0.0  ;;  %v40595_v34 = vadd.s32 %v44918_v13, %v1540_v0  ;;  %vm44980_vm2 = vmmov %vm44979_vm9 }
 0x34d   : > { %44975 = vst [vmem:[#allocation204_spill] sm:$0xff] %v40586_v57  ;;  %vm44463_vm14 = vcmp.lt.s32.totalorder %v40577_v47, 16  ;;  %v1947_v4 = vsel %vm44978_vm13, %v1856_v58, 0.0  ;;  %v1796_v60 = vmul.f32 %v1668_v27, %v1668_v27  ;;  %v1858_v35 = vsel %vm44441_vm15, %v1794_v22, 0.0  ;;  %vm44981_vm13 = vmmov %vm44980_vm2 }
 0x34e   : > { %v1944_v61 = vadd.f32 %v1943_v19, %v1942_v56  ;;  %44977 = vst [vmem:[#allocation205_spill] sm:$0xff] %v40595_v34  ;;  %vm44464_vm11 = vcmp.lt.s32.totalorder %v40586_v57, 16  ;;  %v1949_v42 = vsel %vm44979_vm9, %v1857_v38, 0.0  ;;  %v1797_v3 = vmul.f32 %v1669_v14, %v1669_v14  ;;  %vm44982_vm9 = vmmov %vm44980_vm2 }
 0x34f   : > { %v1859_v46 = vsel %vm44463_vm14, %v1795_v21, 0.0  ;;  %vm44462_vm12 = vcmp.lt.s32.totalorder %v40595_v34, 16  ;;  %v1951_v0 = vsel %vm44980_vm2, %v1858_v35, 0.0  ;;  %v1860_v13 = vsel %vm44464_vm11, %v1796_v60, 0.0  ;;  %vm44983_vm15 = vmmov %vm44980_vm2 }
 0x350   : > { %v1946_v30 = vadd.f32 %v1945_v26, %v1944_v61  ;;  %v1953_v22 = vsel %vm44981_vm13, %v1859_v46, 0.0  ;;  %v1861_v61 = vsel %vm44462_vm12, %v1797_v3, 0.0  ;;  %v1955_v56 = vsel %vm44982_vm9, %v1860_v13, 0.0 }
 0x351   : > { %v1957_v21 = vsel %vm44983_vm15, %v1861_v61, 0.0 }
 0x352   : > { %v1948_v19 = vadd.f32 %v1947_v4, %v1946_v30 }
 0x354   : > { %v1950_v27 = vadd.f32 %v1949_v42, %v1948_v19 }
 0x356   : > { %v1952_v58 = vadd.f32 %v1951_v0, %v1950_v27 }
 0x358   : > { %v1954_v26 = vadd.f32 %v1953_v22, %v1952_v58 }
 0x35a   : > { %v1956_v14 = vadd.f32 %v1955_v56, %v1954_v26 }
 0x35c   : > { %v1958_v38 = vadd.f32 %v1957_v21, %v1956_v14 }
 0x35e   : > { %v1960_v4 = vadd.f32 %v40237_v63, %v1958_v38 }
 0x360   : > { %v1962_v35 = vadd.f32 %v40240_v33, %v1960_v4 }
 0x362   : > { %v1964_v60 = vadd.f32 %v40243_v23, %v1962_v35 }
 0x364   : > { %v1966_v30 = vadd.f32 %v40246_v59, %v1964_v60 }
 0x366   : > { %v1968_v42 = vadd.f32 %v40249_v9, %v1966_v30 }
 0x368   : > { %v1970_v3 = vadd.f32 %v40252_v43, %v1968_v42 }
 0x36a   : > { %v1972_v46 = vadd.f32 %v40255_v11, %v1970_v3 }
 0x36c   : > { %v1974_v19 = vadd.f32 %v40258_v37, %v1972_v46 }
 0x36e   : > { %v1976_v0 = vadd.f32 %v40261_v16, %v1974_v19 }
 0x370   : > { %v1978_v13 = vadd.f32 %v40264_v7, %v1976_v0 }
 0x372   : > { %v1980_v63 = vadd.f32 %v40267_v28, %v1978_v13 }
 0x374   : > { %v1982_v33 = vadd.f32 %v40270_v2, %v1980_v63 }
 0x376   : > { %v1984_v23 = vadd.f32 %v40273_v25, %v1982_v33 }
 0x378   : > { %v1986_v59 = vadd.f32 %v40276_v17, %v1984_v23 }
 0x37a   : > { %v1988_v9 = vadd.f32 %v40279_v18, %v1986_v59 }
 0x37c   : > { %v1990_v43 = vadd.f32 %v40282_v12, %v1988_v9 }
 0x37e   : > { %v1992_v11 = vadd.f32 %v40285_v45, %v1990_v43 }
 0x380   : > { %v1994_v37 = vadd.f32 %v40288_v40, %v1992_v11 }
 0x382   : > { %v1996_v16 = vadd.f32 %v40291_v39, %v1994_v37 }
 0x384   : > { %v1998_v7 = vadd.f32 %v40294_v54, %v1996_v16 }
 0x386   : > { %v2000_v28 = vadd.f32 %v40297_v10, %v1998_v7 }
 0x388   : > { %v2002_v2 = vadd.f32 %v40300_v29, %v2000_v28 }
 0x38a   : > { %v2004_v25 = vadd.f32 %v40303_v24, %v2002_v2 }
 0x38c   : > { %v2006_v17 = vadd.f32 %v40306_v50, %v2004_v25 }
 0x38e   : > { %v2008_v18 = vadd.f32 %v40315_v15, %v2006_v17 }
 0x390   : > { %v2010_v12 = vadd.f32 %v40318_v5, %v2008_v18 }
 0x392   : > { %v2012_v45 = vadd.f32 %v40321_v31, %v2010_v12 }
 0x394   : > { %v2014_v40 = vadd.f32 %v40324_v1, %v2012_v45 }
 0x396   : > { %v2016_v39 = vadd.f32 %v40327_v48, %v2014_v40 }
 0x398   : > { %v2018_v54 = vadd.f32 %v40330_v51, %v2016_v39 }
 0x39a   : > { %v2020_v10 = vadd.f32 %v40333_v44, %v2018_v54 }
 0x39c   : > { %2021 = vadd.xlane.f32.xlu0 %v2020_v10 }
 0x429   : > { %v2022_v29 = vpop.xlane.xlu0 %2021 }
 0x42a   : > { %v2023_v24 = vrot.slane %v2022_v29, 4 }
 0x42c   : > { %v2024_v50 = vadd.f32 %v2023_v24, %v2022_v29 }
 0x42e   : > { %v2025_v15 = vrot.slane %v2024_v50, 2 }
 0x430   : > { %v2026_v5 = vadd.f32 %v2025_v15, %v2024_v50 }
 0x432   : > { %v2027_v31 = vrot.slane %v2026_v5, 1 }
 0x434   : > { %v2028_v1 = vadd.f32 %v2027_v31, %v2026_v5 }
 0x436   : > { %37281 = vpush %v2028_v1 }
 0x463   : > { %2044 = sbr.rel (%p40647_p1) target bundleno = 1782 (0x6f6), region = 60 }
 0x467   : > { %s37282_s2 = spop %37281 }
 0x468   : > { %v2030_v48 = vstv %s37282_s2 }
 0x469   : > { %2031 = vst [vmem:[%s344_s25] sm:$0x1] %v2030_v48 }
 0x46a   : > { %v37892_v51 = vmov 0   ;;  %v44985_v44 = vld [vmem:[#allocation61_spill] sm:$0xff]  ;;  %v44986_v27 = vld [vmem:[#allocation55_spill] sm:$0xff]  ;;  %v44987_v22 = vld [vmem:[#allocation62_spill] sm:$0xff]  ;;  %v45101_v49 = vlaneseq }
 0x46b   : > { %37384 = vset.pattern.permute.xlu1 %v37892_v51  ;;  %37383 = vset.pattern.permute.xlu0 %v37892_v51  ;;  %v44988_v61 = vld [vmem:[#allocation60_spill] sm:$0xff]  ;;  %v44989_v58 = vld [vmem:[#allocation71_spill] sm:$0xff]  ;;  %v44991_v26 = vld [vmem:[#allocation73_spill] sm:$0xff] }
 0x46c   : > { %2061 = vperm.xlu1 %37384, %v44985_v44   ;;  %2051 = vperm.xlu0 %37383, %v44986_v27   ;;  %v44990_v56 = vld [vmem:[#allocation63_spill] sm:$0xff]  ;;  %v44992_v21 = vld [vmem:[#allocation72_spill] sm:$0xff]  ;;  %v44994_v38 = vld [vmem:[#allocation74_spill] sm:$0xff] }
 0x46d   : > { %v44993_v14 = vld [vmem:[#allocation83_spill] sm:$0xff]  ;;  %v44995_v4 = vld [vmem:[#allocation85_spill] sm:$0xff]  ;;  %v44996_v35 = vld [vmem:[#allocation84_spill] sm:$0xff] }
 0x46e   : > { %v44997_v60 = vld [vmem:[#allocation95_spill] sm:$0xff]  ;;  %v44998_v30 = vld [vmem:[#allocation86_spill] sm:$0xff]  ;;  %v44999_v42 = vld [vmem:[#allocation97_spill] sm:$0xff] }
 0x46f   : > { %v45000_v3 = vld [vmem:[#allocation96_spill] sm:$0xff]  ;;  %v45001_v46 = vld [vmem:[#allocation98_spill] sm:$0xff]  ;;  %v45002_v19 = vld [vmem:[#allocation157_spill] sm:$0xff] }
 0x470   : > { %2066 = vperm.xlu1 %37384, %v44987_v22   ;;  %2056 = vperm.xlu0 %37383, %v44988_v61   ;;  %v45003_v0 = vld [vmem:[#allocation128_spill] sm:$0xff]  ;;  %v45005_v63 = vld [vmem:[#allocation185_spill] sm:$0xff]  ;;  %v45007_v23 = vld [vmem:[#allocation191_spill] sm:$0xff] }
 0x471   : > { %v45004_v13 = vld [vmem:[#allocation64_spill] sm:$0xff]  ;;  %v45006_v33 = vld [vmem:[#allocation129_spill] sm:$0xff]  ;;  %v45014_v43 = vld [vmem:[#allocation118_spill] sm:$0xff] }
 0x472   : > { %v45009_v59 = vld [vmem:[#allocation197_spill] sm:$0xff]  ;;  %v45013_v9 = vld [vmem:[#allocation108_spill] sm:$0xff]  ;;  %v45015_v11 = vld [vmem:[#allocation110_spill] sm:$0xff] }
 0x473   : > { %v45016_v37 = vld [vmem:[#allocation120_spill] sm:$0xff]  ;;  %v45017_v16 = vld [vmem:[#allocation119_spill] sm:$0xff]  ;;  %v45018_v7 = vld [vmem:[#allocation126_spill] sm:$0xff] }
 0x474   : > { %2076 = vperm.xlu1 %37384, %v44989_v58   ;;  %2071 = vperm.xlu0 %37383, %v44990_v56   ;;  %v45021_v28 = vld [vmem:[#allocation127_spill] sm:$0xff]  ;;  %v45024_v25 = vld [vmem:[#allocation145_spill] sm:$0xff]  ;;  %v45025_v17 = vld [vmem:[#allocation144_spill] sm:$0xff] }
 0x475   : > { %v45023_v2 = vld [vmem:[#allocation135_spill] sm:$0xff]  ;;  %v45026_v18 = vld [vmem:[#allocation154_spill] sm:$0xff]  ;;  %v45028_v45 = vld [vmem:[#allocation156_spill] sm:$0xff] }
 0x476   : > { %v45027_v12 = vld [vmem:[#allocation146_spill] sm:$0xff]  ;;  %v45029_v40 = vld [vmem:[#allocation155_spill] sm:$0xff]  ;;  %v45031_v54 = vld [vmem:[#allocation165_spill] sm:$0xff] }
 0x477   : > { %v45030_v39 = vld [vmem:[#allocation166_spill] sm:$0xff]  ;;  %v45033_v29 = vld [vmem:[#allocation167_spill] sm:$0xff]  ;;  %v45034_v24 = vld [vmem:[#allocation176_spill] sm:$0xff] }
 0x478   : > { %2086 = vperm.xlu1 %37384, %v44991_v26   ;;  %2081 = vperm.xlu0 %37383, %v44992_v21   ;;  %v45032_v10 = vld [vmem:[#allocation174_spill] sm:$0xff]  ;;  %v45035_v50 = vld [vmem:[#allocation175_spill] sm:$0xff]  ;;  %v45037_v5 = vld [vmem:[#allocation177_spill] sm:$0xff] }
 0x479   : > { %v45036_v15 = vld [vmem:[#allocation178_spill] sm:$0xff]  ;;  %v45038_v31 = vld [vmem:[#allocation180_spill] sm:$0xff]  ;;  %v45039_v1 = vld [vmem:[#allocation179_spill] sm:$0xff] }
 0x47a   : > { %v45040_v48 = vld [vmem:[#allocation182_spill] sm:$0xff]  ;;  %v45041_v51 = vld [vmem:[#allocation181_spill] sm:$0xff]  ;;  %v45042_v22 = vld [vmem:[#allocation56_spill] sm:$0xff] }
 0x47b   : > { %v45043_v61 = vld [vmem:[#allocation54_spill] sm:$0xff]  ;;  %v45045_v21 = vld [vmem:[#allocation57_spill] sm:$0xff] }
 0x47c   : > { %2096 = vperm.xlu1 %37384, %v44993_v14   ;;  %2091 = vperm.xlu0 %37383, %v44994_v38   ;;  %v45044_v26 = vld [vmem:[#allocation58_spill] sm:$0xff]  ;;  %v2045_v32 = vld [vmem:[#allocation8] sm:$0xff] }
 0x480   : > { %2106 = vperm.xlu1 %37384, %v44995_v4   ;;  %2101 = vperm.xlu0 %37383, %v44996_v35   ;;  %v45046_v4 = vld [vmem:[#allocation67_spill] sm:$0xff] }
 0x481   : > { %v45047_v35 = vld [vmem:[#allocation59_spill] sm:$0xff] }
 0x484   : > { %2116 = vperm.xlu1 %37384, %v44997_v60   ;;  %2111 = vperm.xlu0 %37383, %v44998_v30  }
 0x488   : > { %2126 = vperm.xlu1 %37384, %v44999_v42   ;;  %2121 = vperm.xlu0 %37383, %v45000_v3   ;;  %v45048_v42 = vld [vmem:[#allocation69_spill] sm:$0xff]  ;;  %v45049_v3 = vld [vmem:[#allocation68_spill] sm:$0xff] }
 0x48c   : > { %2136 = vperm.xlu1 %37384, %v40312_v8   ;;  %2131 = vperm.xlu0 %37383, %v45001_v46   ;;  %v45008_v8 = vld [vmem:[#allocation188_spill] sm:$0xff] }
 0x490   : > { %2146 = vperm.xlu1 %37384, %v40360_v6   ;;  %2141 = vperm.xlu0 %37383, %v40339_v20   ;;  %v45010_v6 = vld [vmem:[#allocation194_spill] sm:$0xff]  ;;  %v45012_v20 = vld [vmem:[#allocation109_spill] sm:$0xff] }
 0x494   : > { %2156 = vperm.xlu1 %37384, %v40397_v62   ;;  %2151 = vperm.xlu0 %37383, %v45002_v19   ;;  %v45011_v62 = vld [vmem:[#allocation107_spill] sm:$0xff] }
 0x498   : > { %2166 = vperm.xlu1 %37384, %v45003_v0   ;;  %2161 = vperm.xlu0 %37383, %v45004_v13   ;;  %v45050_v0 = vld [vmem:[#allocation79_spill] sm:$0xff]  ;;  %v45051_v13 = vld [vmem:[#allocation70_spill] sm:$0xff] }
 0x49c   : > { %2176 = vperm.xlu1 %37384, %v45005_v63   ;;  %2171 = vperm.xlu0 %37383, %v45006_v33  }
 0x4a0   : > { %2186 = vperm.xlu1 %37384, %v45007_v23   ;;  %2181 = vperm.xlu0 %37383, %v45008_v8   ;;  %v45052_v23 = vld [vmem:[#allocation81_spill] sm:$0xff]  ;;  %v45053_v8 = vld [vmem:[#allocation80_spill] sm:$0xff] }
 0x4a4   : > { %2196 = vperm.xlu1 %37384, %v45009_v59   ;;  %2191 = vperm.xlu0 %37383, %v45010_v6  }
 0x4a8   : > { %2206 = vperm.xlu1 %37384, %v40557_v41   ;;  %2201 = vperm.xlu0 %37383, %v40541_v53   ;;  %v45019_v41 = vld [vmem:[#allocation125_spill] sm:$0xff]  ;;  %v45020_v53 = vld [vmem:[#allocation134_spill] sm:$0xff] }
 0x4ac   : > { %2216 = vperm.xlu1 %37384, %v45011_v62   ;;  %2211 = vperm.xlu0 %37383, %v40573_v52   ;;  %v45022_v52 = vld [vmem:[#allocation136_spill] sm:$0xff]  ;;  %v45054_v62 = vld [vmem:[#allocation91_spill] sm:$0xff] }
 0x4b0   : > { %2226 = vperm.xlu1 %37384, %v45012_v20   ;;  %2221 = vperm.xlu0 %37383, %v45013_v9   ;;  %v45055_v20 = vld [vmem:[#allocation82_spill] sm:$0xff] }
 0x4b4   : > { %2236 = vperm.xlu1 %37384, %v45014_v43   ;;  %2231 = vperm.xlu0 %37383, %v45015_v11   ;;  %v45056_v11 = vld [vmem:[#allocation93_spill] sm:$0xff] }
 0x4b8   : > { %2246 = vperm.xlu1 %37384, %v45016_v37   ;;  %2241 = vperm.xlu0 %37383, %v45017_v16   ;;  %v45057_v37 = vld [vmem:[#allocation92_spill] sm:$0xff] }
 0x4bc   : > { %2256 = vperm.xlu1 %37384, %v45018_v7   ;;  %2251 = vperm.xlu0 %37383, %v45019_v41   ;;  %v45058_v41 = vld [vmem:[#allocation169_spill] sm:$0xff] }
 0x4c0   : > { %2266 = vperm.xlu1 %37384, %v45020_v53   ;;  %2261 = vperm.xlu0 %37383, %v45021_v28   ;;  %v45059_v53 = vld [vmem:[#allocation94_spill] sm:$0xff] }
 0x4c4   : > { %2276 = vperm.xlu1 %37384, %v45022_v52   ;;  %2271 = vperm.xlu0 %37383, %v45023_v2   ;;  %v45060_v2 = vld [vmem:[#allocation138_spill] sm:$0xff] }
 0x4c8   : > { %2286 = vperm.xlu1 %37384, %v45024_v25   ;;  %2281 = vperm.xlu0 %37383, %v45025_v17   ;;  %v45061_v25 = vld [vmem:[#allocation170_spill] sm:$0xff] }
 0x4cc   : > { %2296 = vperm.xlu1 %37384, %v45026_v18   ;;  %2291 = vperm.xlu0 %37383, %v45027_v12   ;;  %v45062_v12 = vld [vmem:[#allocation159_spill] sm:$0xff] }
 0x4d0   : > { %2306 = vperm.xlu1 %37384, %v45028_v45   ;;  %2301 = vperm.xlu0 %37383, %v45029_v40   ;;  %v45063_v45 = vld [vmem:[#allocation147_spill] sm:$0xff] }
 0x4d4   : > { %2316 = vperm.xlu1 %37384, %v45030_v39   ;;  %2311 = vperm.xlu0 %37383, %v45031_v54   ;;  %v45064_v54 = vld [vmem:[#allocation148_spill] sm:$0xff] }
 0x4d8   : > { %2326 = vperm.xlu1 %37384, %v45032_v10   ;;  %2321 = vperm.xlu0 %37383, %v45033_v29   ;;  %v45065_v10 = vld [vmem:[#allocation168_spill] sm:$0xff] }
 0x4dc   : > { %2336 = vperm.xlu1 %37384, %v45034_v24   ;;  %2331 = vperm.xlu0 %37383, %v45035_v50   ;;  %v45066_v50 = vld [vmem:[#allocation184_spill] sm:$0xff] }
 0x4e0   : > { %2346 = vperm.xlu1 %37384, %v45036_v15   ;;  %2341 = vperm.xlu0 %37383, %v45037_v5   ;;  %v45067_v15 = vld [vmem:[#allocation149_spill] sm:$0xff] }
 0x4e4   : > { %2356 = vperm.xlu1 %37384, %v45038_v31   ;;  %2351 = vperm.xlu0 %37383, %v45039_v1   ;;  %v45068_v1 = vld [vmem:[#allocation190_spill] sm:$0xff] }
 0x4e8   : > { %2366 = vperm.xlu1 %37384, %v45040_v48   ;;  %2361 = vperm.xlu0 %37383, %v45041_v51   ;;  %v45069_v48 = vld [vmem:[#allocation187_spill] sm:$0xff] }
 0x4eb   : > { %v40721_v44 = vpop.permute.xlu1 %2061  ;;  %v40723_v27 = vpop.permute.xlu0 %2051 }
 0x4ec   : > { %3482 = vperm.xlu1 %37384, %v45042_v22   ;;  %3477 = vperm.xlu0 %37383, %v45043_v61   ;;  %v45070_v61 = vld [vmem:[#allocation196_spill] sm:$0xff] }
 0x4ef   : > { %v40727_v58 = vpop.permute.xlu1 %2066  ;;  %v40729_v56 = vpop.permute.xlu0 %2056 }
 0x4f0   : > { %3492 = vperm.xlu1 %37384, %v45044_v26   ;;  %3487 = vperm.xlu0 %37383, %v45045_v21   ;;  %v45071_v26 = vld [vmem:[#allocation193_spill] sm:$0xff] }
 0x4f3   : > { %v40733_v14 = vpop.permute.xlu1 %2076  ;;  %v40735_v38 = vpop.permute.xlu0 %2071 }
 0x4f4   : > { %3502 = vperm.xlu1 %37384, %v45046_v4   ;;  %3497 = vperm.xlu0 %37383, %v45047_v35   ;;  %v45072_v35 = vld [vmem:[#allocation201_spill] sm:$0xff] }
 0x4f7   : > { %v40739_v60 = vpop.permute.xlu1 %2086  ;;  %v40741_v30 = vpop.permute.xlu0 %2081 }
 0x4f8   : > { %3512 = vperm.xlu1 %37384, %v45048_v42   ;;  %3507 = vperm.xlu0 %37383, %v45049_v3   ;;  %v45073_v42 = vld [vmem:[#allocation199_spill] sm:$0xff] }
 0x4fb   : > { %v40745_v46 = vpop.permute.xlu1 %2096  ;;  %v40747_v19 = vpop.permute.xlu0 %2091 }
 0x4fc   : > { %3522 = vperm.xlu1 %37384, %v45050_v0   ;;  %3517 = vperm.xlu0 %37383, %v45051_v13   ;;  %v45074_v13 = vld [vmem:[#allocation103_spill] sm:$0xff] }
 0x4ff   : > { %v40751_v63 = vpop.permute.xlu1 %2106  ;;  %v40753_v33 = vpop.permute.xlu0 %2101 }
 0x500   : > { %3532 = vperm.xlu1 %37384, %v45052_v23   ;;  %3527 = vperm.xlu0 %37383, %v45053_v8  }
 0x503   : > { %v40757_v59 = vpop.permute.xlu1 %2116  ;;  %v40759_v6 = vpop.permute.xlu0 %2111 }
 0x504   : > { %3542 = vperm.xlu1 %37384, %v45054_v62   ;;  %3537 = vperm.xlu0 %37383, %v45055_v20   ;;  %v45075_v62 = vld [vmem:[#allocation105_spill] sm:$0xff]  ;;  %v45076_v20 = vld [vmem:[#allocation104_spill] sm:$0xff] }
 0x507   : > { %v40763_v9 = vpop.permute.xlu1 %2126  ;;  %v40765_v43 = vpop.permute.xlu0 %2121 }
 0x508   : > { %3552 = vperm.xlu1 %37384, %v45056_v11   ;;  %3547 = vperm.xlu0 %37383, %v45057_v37  }
 0x50b   : > { %v40769_v16 = vpop.permute.xlu1 %2136  ;;  %v40771_v7 = vpop.permute.xlu0 %2131 }
 0x50c   : > { %3562 = vperm.xlu1 %37384, %v45058_v41   ;;  %3557 = vperm.xlu0 %37383, %v45059_v53   ;;  %v45077_v41 = vld [vmem:[#allocation114_spill] sm:$0xff] }
 0x50d   : > { %v45078_v53 = vld [vmem:[#allocation106_spill] sm:$0xff] }
 0x50f   : > { %v40775_v28 = vpop.permute.xlu1 %2146  ;;  %v40777_v52 = vpop.permute.xlu0 %2141 }
 0x510   : > { %3572 = vperm.xlu1 %37384, %v45060_v2   ;;  %3567 = vperm.xlu0 %37383, %v45061_v25  }
 0x513   : > { %v40781_v17 = vpop.permute.xlu1 %2156  ;;  %v40783_v18 = vpop.permute.xlu0 %2151 }
 0x514   : > { %3582 = vperm.xlu1 %37384, %v45062_v12   ;;  %3577 = vperm.xlu0 %37383, %v45063_v45   ;;  %v45080_v12 = vld [vmem:[#allocation115_spill] sm:$0xff] }
 0x517   : > { %v40787_v40 = vpop.permute.xlu1 %2166  ;;  %v40789_v39 = vpop.permute.xlu0 %2161 }
 0x518   : > { %3592 = vperm.xlu1 %37384, %v45064_v54   ;;  %3587 = vperm.xlu0 %37383, %v45065_v10   ;;  %v45081_v10 = vld [vmem:[#allocation121_spill] sm:$0xff] }
 0x51b   : > { %v40793_v29 = vpop.permute.xlu1 %2176  ;;  %v40795_v24 = vpop.permute.xlu0 %2171 }
 0x51c   : > { %3602 = vperm.xlu1 %37384, %v45066_v50   ;;  %3597 = vperm.xlu0 %37383, %v45067_v15   ;;  %v45082_v50 = vld [vmem:[#allocation117_spill] sm:$0xff] }
 0x51f   : > { %v40799_v5 = vpop.permute.xlu1 %2186  ;;  %v40801_v31 = vpop.permute.xlu0 %2181 }
 0x520   : > { %3612 = vperm.xlu1 %37384, %v45068_v1   ;;  %3607 = vperm.xlu0 %37383, %v45069_v48   ;;  %v45083_v48 = vld [vmem:[#allocation123_spill] sm:$0xff] }
 0x523   : > { %v40805_v51 = vpop.permute.xlu1 %2196  ;;  %v40807_v22 = vpop.permute.xlu0 %2191 }
 0x524   : > { %3622 = vperm.xlu1 %37384, %v45070_v61   ;;  %3617 = vperm.xlu0 %37383, %v45071_v26   ;;  %v45084_v61 = vld [vmem:[#allocation122_spill] sm:$0xff] }
 0x527   : > { %v40811_v21 = vpop.permute.xlu1 %2206  ;;  %v40813_v4 = vpop.permute.xlu0 %2201 }
 0x528   : > { %3632 = vperm.xlu1 %37384, %v45072_v35   ;;  %3627 = vperm.xlu0 %37383, %v45073_v42   ;;  %v45085_v42 = vld [vmem:[#allocation130_spill] sm:$0xff] }
 0x52b   : > { %v40817_v3 = vpop.permute.xlu1 %2216  ;;  %v40819_v0 = vpop.permute.xlu0 %2211 }
 0x52c   : > { %3642 = vperm.xlu1 %37384, %v45074_v13   ;;  %3637 = vperm.xlu0 %37383, %v40570_v36   ;;  %v45079_v36 = vld [vmem:[#allocation116_spill] sm:$0xff] }
 0x52d   : > { %v45086_v13 = vld [vmem:[#allocation124_spill] sm:$0xff] }
 0x52f   : > { %v40823_v23 = vpop.permute.xlu1 %2226  ;;  %v40825_v8 = vpop.permute.xlu0 %2221 }
 0x530   : > { %3652 = vperm.xlu1 %37384, %v45075_v62   ;;  %3647 = vperm.xlu0 %37383, %v45076_v20  }
 0x533   : > { %v40829_v11 = vpop.permute.xlu1 %2236  ;;  %v40831_v37 = vpop.permute.xlu0 %2231 }
 0x534   : > { %3662 = vperm.xlu1 %37384, %v45077_v41   ;;  %3657 = vperm.xlu0 %37383, %v45078_v53   ;;  %v45087_v41 = vld [vmem:[#allocation132_spill] sm:$0xff]  ;;  %v45088_v53 = vld [vmem:[#allocation131_spill] sm:$0xff] }
 0x537   : > { %v40835_v2 = vpop.permute.xlu1 %2246  ;;  %v40837_v25 = vpop.permute.xlu0 %2241 }
 0x538   : > { %3672 = vperm.xlu1 %37384, %v45079_v36   ;;  %3667 = vperm.xlu0 %37383, %v45080_v12  }
 0x53b   : > { %v40841_v45 = vpop.permute.xlu1 %2256  ;;  %v40843_v54 = vpop.permute.xlu0 %2251 }
 0x53c   : > { %3682 = vperm.xlu1 %37384, %v45081_v10   ;;  %3677 = vperm.xlu0 %37383, %v45082_v50   ;;  %v45089_v10 = vld [vmem:[#allocation21_spill] sm:$0xff] }
 0x53d   : > { %v2373_v50 = vsub.s32 0, %v45089_v10 }
 0x53f   : > { %v40847_v15 = vpop.permute.xlu1 %2266  ;;  %v40849_v1 = vpop.permute.xlu0 %2261 }
 0x540   : > { %3692 = vperm.xlu1 %37384, %v45083_v48   ;;  %3687 = vperm.xlu0 %37383, %v45084_v61   ;;  %v45090_v48 = vld [vmem:[#allocation140_spill] sm:$0xff]  ;;  %v45091_v61 = vld [vmem:[#allocation133_spill] sm:$0xff] }
 0x543   : > { %v40853_v26 = vpop.permute.xlu1 %2276  ;;  %v40855_v35 = vpop.permute.xlu0 %2271 }
 0x544   : > { %3702 = vperm.xlu1 %37384, %v45085_v42   ;;  %3697 = vperm.xlu0 %37383, %v45086_v13   ;;  %v2047_v42 = vld [vmem:[#allocation9] sm:$0xff] }
 0x545   : > { %v40876_v47 = vrot.slane %v2047_v42, %v2373_v50  ;;  %v45098_v42 = vld [vmem:[#allocation143_spill] sm:$0xff] }
 0x547   : > { %v40859_v62 = vpop.permute.xlu1 %2286  ;;  %v40861_v20 = vpop.permute.xlu0 %2281  ;;  %v40886_v10 = vsub.f32 %v40721_v44, %v40876_v47  ;;  %v40904_v44 = vsub.f32 %v40733_v14, %v40876_v47  ;;  %v40924_v14 = vsub.f32 %v40747_v19, %v40876_v47  ;;  %v40941_v19 = vrot.slane %v2045_v32, %v2373_v50 }
 0x548   : > { %3712 = vperm.xlu1 %37384, %v45087_v41   ;;  %3707 = vperm.xlu0 %37383, %v45088_v53   ;;  %v45093_v41 = vld [vmem:[#allocation142_spill] sm:$0xff]  ;;  %v45094_v53 = vld [vmem:[#allocation141_spill] sm:$0xff]  ;;  %v40955_v32 = vsub.f32 %v40757_v59, %v40876_v47  ;;  %v40974_v59 = vsub.f32 %v40765_v43, %v40876_v47  ;;  %v40978_v50 = vsub.f32 %v40769_v16, %v40876_v47 }
 0x549   : > { %v40993_v43 = vsub.f32 %v40777_v52, %v40876_v47  ;;  %v40997_v16 = vsub.f32 %v40781_v17, %v40876_v47  ;;  %v41016_v17 = vsub.f32 %v40793_v29, %v40876_v47  ;;  %v45114_v29 = vld [vmem:[#allocation163_spill] sm:$0xff]  ;;  %vm6981_vm9 = vcmp.gt.f32.partialorder %v40886_v10, 0.0 }
 0x54a   : > { %vm7029_vm8 = vcmp.gt.f32.partialorder %v40904_v44, 0.0  ;;  %vm7077_vm3 = vcmp.gt.f32.partialorder %v40924_v14, 0.0 }
 0x54b   : > { %v40865_v36 = vpop.permute.xlu1 %2296  ;;  %v40867_v12 = vpop.permute.xlu0 %2291  ;;  %45110 = vst [vmem:[#allocation215_spill] sm:$0xff] %v41016_v17 }
 0x54c   : > { %3722 = vperm.xlu1 %37384, %v45090_v48   ;;  %3717 = vperm.xlu0 %37383, %v45091_v61   ;;  %v40890_v48 = vsub.f32 %v40723_v27, %v40876_v47  ;;  %v45097_v61 = vld [vmem:[#allocation150_spill] sm:$0xff]  ;;  %v40908_v27 = vsub.f32 %v40735_v38, %v40876_v47 }
 0x54e   : > { %vm6949_vm15 = vcmp.gt.f32.partialorder %v40890_v48, 0.0 }
 0x54f   : > { %v40872_v13 = vpop.permute.xlu1 %2306  ;;  %v40874_v34 = vpop.permute.xlu0 %2301 }
 0x550   : > { %45092 = vst [vmem:[#allocation206_spill] sm:$0xff] %v40874_v34  ;;  %3732 = vperm.xlu1 %37384, %v45093_v41   ;;  %3727 = vperm.xlu0 %37383, %v45094_v53   ;;  %v40896_v41 = vsub.f32 %v40727_v58, %v40876_v47  ;;  %v40900_v53 = vsub.f32 %v40729_v56, %v40876_v47  ;;  %v45103_v34 = vld [vmem:[#allocation151_spill] sm:$0xff] }
 0x551   : > { %v40916_v58 = vsub.f32 %v40741_v30, %v40876_v47  ;;  %v40920_v56 = vsub.f32 %v40745_v46, %v40876_v47  ;;  %v45102_v46 = vld [vmem:[#allocation152_spill] sm:$0xff] }
 0x552   : > { %vm6965_vm2 = vcmp.gt.f32.partialorder %v40900_v53, 0.0  ;;  %vm6997_vm13 = vcmp.gt.f32.partialorder %v40896_v41, 0.0 }
 0x553   : > { %v40880_v57 = vpop.permute.xlu1 %2316  ;;  %v40882_v55 = vpop.permute.xlu0 %2311 }
 0x554   : > { %45095 = vst [vmem:[#allocation207_spill] sm:$0xff] %v40880_v57  ;;  %45096 = vst [vmem:[#allocation208_spill] sm:$0xff] %v40882_v55  ;;  %3742 = vperm.xlu1 %37384, %v45097_v61   ;;  %3737 = vperm.xlu0 %37383, %v45098_v42   ;;  %v40912_v61 = vsub.f32 %v40739_v60, %v40876_v47  ;;  %v40931_v55 = vand.u32 127, %v45101_v49  ;;  %v40937_v57 = vsub.f32 %v40751_v63, %v40876_v47 }
 0x555   : > { %v40948_v60 = vsub.f32 %v40753_v33, %v40876_v47  ;;  %v40961_v49 = vsub.f32 %v40759_v6, %v40876_v47  ;;  %v40965_v33 = vsub.f32 %v40763_v9, %v40876_v47  ;;  %v40982_v6 = vsub.f32 %v40771_v7, %v40876_v47  ;;  %v45106_v9 = vld [vmem:[#allocation161_spill] sm:$0xff] }
 0x557   : > { %v40926_v42 = vpop.permute.xlu1 %2326  ;;  %v40928_v38 = vpop.permute.xlu0 %2321  ;;  %45104 = vst [vmem:[#allocation211_spill] sm:$0xff] %v40961_v49  ;;  %45105 = vst [vmem:[#allocation212_spill] sm:$0xff] %v40965_v33  ;;  %v45115_v33 = vld [vmem:[#allocation162_spill] sm:$0xff]  ;;  %v41070_v49 = vsub.f32 %v40817_v3, %v40876_v47  ;;  %v41089_v3 = vsub.f32 %v40829_v11, %v40876_v47  ;;  %v41124_v11 = vsub.f32 %v40847_v15, %v40876_v47 }
 0x558   : > { %45099 = vst [vmem:[#allocation209_spill] sm:$0xff] %v40926_v42  ;;  %45100 = vst [vmem:[#allocation210_spill] sm:$0xff] %v40928_v38  ;;  %3752 = vperm.xlu1 %37384, %v45102_v46   ;;  %3747 = vperm.xlu0 %37383, %v45103_v34   ;;  %v45107_v34 = vld [vmem:[#allocation153_spill] sm:$0xff]  ;;  %v40989_v46 = vsub.f32 %v40775_v28, %v40876_v47  ;;  %v41010_v28 = vsub.f32 %v40789_v39, %v40876_v47 }
 0x559   : > { %v41031_v42 = vsub.f32 %v40799_v5, %v40876_v47  ;;  %v41040_v38 = vsub.f32 %v40801_v31, %v40876_v47  ;;  %v41057_v31 = vsub.f32 %v40811_v21, %v40876_v47  ;;  %45123 = vst [vmem:[#allocation226_spill] sm:$0xff] %v41070_v49  ;;  %v45125_v21 = vld [vmem:[#allocation171_spill] sm:$0xff]  ;;  %v41081_v5 = vsub.f32 %v40823_v23, %v40876_v47 }
 0x55a   : > { %45109 = vst [vmem:[#allocation214_spill] sm:$0xff] %v41010_v28  ;;  %45129 = vst [vmem:[#allocation230_spill] sm:$0xff] %v41089_v3  ;;  %v41102_v23 = vsub.f32 %v40837_v25, %v40876_v47 }
 0x55b   : > { %v40967_v30 = vpop.permute.xlu1 %2336  ;;  %v40969_v63 = vpop.permute.xlu0 %2331  ;;  %45113 = vst [vmem:[#allocation218_spill] sm:$0xff] %v41031_v42  ;;  %45116 = vst [vmem:[#allocation219_spill] sm:$0xff] %v41040_v38  ;;  %v45199_v42 = vld [vmem:[#allocation76_spill] sm:$0xff] }
 0x55c   : > { %3762 = vperm.xlu1 %37384, %v45106_v9   ;;  %3757 = vperm.xlu0 %37383, %v45107_v34   ;;  %v41002_v9 = vsub.f32 %v40783_v18, %v40876_v47  ;;  %v41006_v34 = vsub.f32 %v40787_v40, %v40876_v47  ;;  %v41020_v18 = vsub.f32 %v40795_v24, %v40876_v47 }
 0x55d   : > { %45119 = vst [vmem:[#allocation222_spill] sm:$0xff] %v41057_v31  ;;  %45127 = vst [vmem:[#allocation228_spill] sm:$0xff] %v41081_v5  ;;  %v45139_v31 = vld [vmem:[#allocation172_spill] sm:$0xff] }
 0x55e   : > { %45108 = vst [vmem:[#allocation213_spill] sm:$0xff] %v41006_v34  ;;  %45111 = vst [vmem:[#allocation216_spill] sm:$0xff] %v41020_v18 }
 0x55f   : > { %v41022_v7 = vpop.permute.xlu1 %2346  ;;  %v41024_v40 = vpop.permute.xlu0 %2341  ;;  %45132 = vst [vmem:[#allocation233_spill] sm:$0xff] %v41102_v23  ;;  %45137 = vst [vmem:[#allocation238_spill] sm:$0xff] %v41124_v11 }
 0x560   : > { %45112 = vst [vmem:[#allocation217_spill] sm:$0xff] %v41024_v40  ;;  %3772 = vperm.xlu1 %37384, %v45114_v29   ;;  %3767 = vperm.xlu0 %37383, %v45115_v33   ;;  %v41047_v29 = vsub.f32 %v40805_v51, %v40876_v47  ;;  %v41053_v40 = vsub.f32 %v40807_v22, %v40876_v47  ;;  %v45126_v33 = vld [vmem:[#allocation164_spill] sm:$0xff] }
 0x561   : > { %v41066_v51 = vsub.f32 %v40813_v4, %v40876_v47  ;;  %v41074_v22 = vsub.f32 %v40819_v0, %v40876_v47  ;;  %v41085_v4 = vsub.f32 %v40825_v8, %v40876_v47  ;;  %v41109_v0 = vsub.f32 %v40841_v45, %v40876_v47  ;;  %v45138_v45 = vld [vmem:[#allocation173_spill] sm:$0xff] }
 0x562   : > { %45117 = vst [vmem:[#allocation220_spill] sm:$0xff] %v41047_v29  ;;  %45118 = vst [vmem:[#allocation221_spill] sm:$0xff] %v41053_v40  ;;  %v41134_v29 = vsub.f32 %v40849_v1, %v40876_v47  ;;  %v41148_v1 = vsub.f32 %v40855_v35, %v40876_v47  ;;  %v41152_v8 = vsub.f32 %v40859_v62, %v40876_v47  ;;  %v45148_v35 = vld [vmem:[#allocation206_spill] sm:$0xff] }
 0x563   : > { %v41059_v52 = vpop.permute.xlu1 %2356  ;;  %v41061_v39 = vpop.permute.xlu0 %2351  ;;  %45122 = vst [vmem:[#allocation225_spill] sm:$0xff] %v41066_v51  ;;  %45124 = vst [vmem:[#allocation227_spill] sm:$0xff] %v41074_v22  ;;  %v41169_v62 = vsub.f32 %v40865_v36, %v40876_v47 }
 0x564   : > { %45120 = vst [vmem:[#allocation223_spill] sm:$0xff] %v41059_v52  ;;  %45121 = vst [vmem:[#allocation224_spill] sm:$0xff] %v41061_v39  ;;  %3782 = vperm.xlu1 %37384, %v45125_v21   ;;  %3777 = vperm.xlu0 %37383, %v45126_v33   ;;  %v41094_v21 = vsub.f32 %v40831_v37, %v40876_v47  ;;  %v41098_v33 = vsub.f32 %v40835_v2, %v40876_v47  ;;  %v27859_v52 = vld [vmem:[#allocation2 + $0x80] sm:$0xff] }
 0x565   : > { %45128 = vst [vmem:[#allocation229_spill] sm:$0xff] %v41085_v4  ;;  %45133 = vst [vmem:[#allocation234_spill] sm:$0xff] %v41109_v0  ;;  %v41113_v37 = vsub.f32 %v40843_v54, %v40876_v47  ;;  %v41173_v54 = vsub.f32 %v40867_v12, %v40876_v47  ;;  %v41187_v12 = vsub.f32 %v45148_v35, %v40876_v47 }
 0x566   : > { %45130 = vst [vmem:[#allocation231_spill] sm:$0xff] %v41094_v21  ;;  %45131 = vst [vmem:[#allocation232_spill] sm:$0xff] %v41098_v33 }
 0x567   : > { %45134 = vst [vmem:[#allocation235_spill] sm:$0xff] %v41113_v37  ;;  %v41115_v2 = vpop.permute.xlu1 %2366  ;;  %v41117_v24 = vpop.permute.xlu0 %2361  ;;  %45140 = vst [vmem:[#allocation239_spill] sm:$0xff] %v41134_v29 }
 0x568   : > { %45135 = vst [vmem:[#allocation236_spill] sm:$0xff] %v41115_v2  ;;  %45136 = vst [vmem:[#allocation237_spill] sm:$0xff] %v41117_v24  ;;  %3792 = vperm.xlu1 %37384, %v45138_v45   ;;  %3787 = vperm.xlu0 %37383, %v45139_v31   ;;  %v41141_v31 = vsub.f32 %v40853_v26, %v40876_v47  ;;  %v41157_v26 = vsub.f32 %v40861_v20, %v40876_v47 }
 0x569   : > { %45142 = vst [vmem:[#allocation241_spill] sm:$0xff] %v41148_v1  ;;  %45143 = vst [vmem:[#allocation242_spill] sm:$0xff] %v41152_v8  ;;  %v41177_v20 = vsub.f32 %v40872_v13, %v40876_v47 }
 0x56a   : > { %45141 = vst [vmem:[#allocation240_spill] sm:$0xff] %v41141_v31  ;;  %45144 = vst [vmem:[#allocation243_spill] sm:$0xff] %v41157_v26  ;;  %v45152_v31 = vsub.f32 0.0, %v40900_v53 }
 0x56b   : > { %v3483_v15 = vpop.permute.xlu1 %3482  ;;  %v3478_v45 = vpop.permute.xlu0 %3477  ;;  %45145 = vst [vmem:[#allocation244_spill] sm:$0xff] %v41169_v62  ;;  %45146 = vst [vmem:[#allocation245_spill] sm:$0xff] %v41173_v54  ;;  %v45161_v62 = vsub.f32 0.0, %v40896_v41 }
 0x56c   : > { %v41160_v24 = vsub.f32 %v3483_v15, %v40941_v19  ;;  %v41163_v25 = vsub.f32 %v3478_v45, %v40941_v19  ;;  %45147 = vst [vmem:[#allocation246_spill] sm:$0xff] %v41177_v20  ;;  %45149 = vst [vmem:[#allocation206_spill] sm:$0xff] %v41187_v12  ;;  %v45150_v45 = vld [vmem:[#allocation207_spill] sm:$0xff]  ;;  %v45159_v20 = vld [vmem:[#allocation210_spill] sm:$0xff] }
 0x56d   : > { %v41198_v36 = vsub.f32 %v45150_v45, %v40876_v47  ;;  %v41251_v54 = vsub.f32 %v45159_v20, %v40876_v47 }
 0x56e   : > { %vm4917_vm12 = vcmp.eq.f32.partialorder %v41160_v24, 0.0  ;;  %vm5941_vm14 = vcmp.gt.f32.partialorder %v41160_v24, 0.0  ;;  %vm4901_vm11 = vcmp.eq.f32.partialorder %v41163_v25, 0.0  ;;  %vm5925_vm6 = vcmp.gt.f32.partialorder %v41163_v25, 0.0 }
 0x56f   : > { %vm7989_vm7 = vmand %vm4917_vm12, %vm6965_vm2  ;;  %v3493_v13 = vpop.permute.xlu1 %3492  ;;  %v3488_v15 = vpop.permute.xlu0 %3487  ;;  %45151 = vst [vmem:[#allocation207_spill] sm:$0xff] %v41198_v36 }
 0x570   : > { %vm9013_vm10 = vmor %vm5941_vm14, %vm7989_vm7  ;;  %v41201_v35 = vsub.f32 %v3493_v13, %v40941_v19  ;;  %v41204_v8 = vsub.f32 %v3488_v15, %v40941_v19  ;;  %vm7013_vm14 = vcmp.gt.f32.partialorder %v40908_v27, 0.0  ;;  %v45153_v15 = vld [vmem:[#allocation208_spill] sm:$0xff]  ;;  %45160 = vst [vmem:[#allocation210_spill] sm:$0xff] %v41251_v54 }
 0x571   : > { %v41212_v26 = vsel %vm9013_vm10, %v45152_v31, %v40900_v53  ;;  %vm7973_vm7 = vmand %vm4901_vm11, %vm6949_vm15  ;;  %v41221_v45 = vsub.f32 %v45153_v15, %v40876_v47  ;;  %v45155_v31 = vsub.f32 0.0, %v40890_v48  ;;  %v45156_v53 = vld [vmem:[#allocation209_spill] sm:$0xff] }
 0x572   : > { %vm8997_vm2 = vmor %vm5925_vm6, %vm7973_vm7  ;;  %vm4949_vm0 = vcmp.eq.f32.partialorder %v41201_v35, 0.0  ;;  %vm5973_vm10 = vcmp.gt.f32.partialorder %v41201_v35, 0.0  ;;  %vm4933_vm4 = vcmp.eq.f32.partialorder %v41204_v8, 0.0  ;;  %vm5957_vm6 = vcmp.gt.f32.partialorder %v41204_v8, 0.0 }
 0x573   : > { %45154 = vst [vmem:[#allocation208_spill] sm:$0xff] %v41221_v45  ;;  %v41232_v11 = vsel %vm8997_vm2, %v45155_v31, %v40890_v48  ;;  %vm8021_vm15 = vmand %vm4949_vm0, %vm6997_vm13  ;;  %v3503_v15 = vpop.permute.xlu1 %3502  ;;  %v3498_v29 = vpop.permute.xlu0 %3497  ;;  %v41243_v13 = vsub.f32 %v45156_v53, %v40876_v47  ;;  %v45158_v48 = vand.u32 2147483647, %v41212_v26  ;;  %vm7061_vm13 = vcmp.gt.f32.partialorder %v40912_v61, 0.0 }
 0x574   : > { %vm9045_vm7 = vmor %vm5973_vm10, %vm8021_vm15  ;;  %v41263_v53 = vsub.f32 %v3503_v15, %v40941_v19  ;;  %v45162_v36 = vand.u32 2147483647, %v41232_v11  ;;  %v45164_v15 = vsub.f32 0.0, %v40886_v10  ;;  %v45178_v35 = vsub.f32 0.0, %v40924_v14 }
 0x575   : > { %45157 = vst [vmem:[#allocation209_spill] sm:$0xff] %v41243_v13  ;;  %v14133_v31 = vsub.f32 0.0, %v45158_v48  ;;  %v41256_v1 = vsel %vm9045_vm7, %v45161_v62, %v40896_v41  ;;  %vm8005_vm2 = vmand %vm4933_vm4, %vm6981_vm9  ;;  %v41266_v48 = vsub.f32 %v3498_v29, %v40941_v19  ;;  %v41276_v62 = vsub.f32 %v40967_v30, %v40876_v47 }
 0x576   : > { %v14117_v37 = vsub.f32 0.0, %v45162_v36  ;;  %vm9029_vm10 = vmor %vm5957_vm6, %vm8005_vm2  ;;  %vm44514_vm9 = vcmp.eq.f32.partialorder %v41263_v53, 0.0  ;;  %vm6005_vm15 = vcmp.gt.f32.partialorder %v41263_v53, 0.0  ;;  %v45165_v45 = vand.u32 2147483647, %v41256_v1 }
 0x577   : > { %v15173_v20 = vmul.f32 1.442695, %v14133_v31  ;;  %45163 = vst [vmem:[#allocation247_spill] sm:$0xff] %v41276_v62  ;;  %v41281_v29 = vsel %vm9029_vm10, %v45164_v15, %v40886_v10  ;;  %v3513_v31 = vpop.permute.xlu1 %3512  ;;  %v3508_v36 = vpop.permute.xlu0 %3507  ;;  %vm8053_vm6 = vmand %vm44514_vm9, %vm7029_vm8  ;;  %vm7045_vm7 = vcmp.gt.f32.partialorder %v40916_v58, 0.0  ;;  %vm44512_vm10 = vcmp.eq.f32.partialorder %v41266_v48, 0.0 }
 0x578   : > { %v15141_v41 = vmul.f32 1.442695, %v14117_v37  ;;  %v14165_v0 = vsub.f32 0.0, %v45165_v45  ;;  %v44503_v30 = vand.u32 2147483647, %v41281_v29  ;;  %vm9077_vm2 = vmor %vm6005_vm15, %vm8053_vm6  ;;  %vm5989_vm5 = vcmp.gt.f32.partialorder %v41266_v48, 0.0 }
 0x579   : > { %37385 = vpow2.f32 %v15173_v20  ;;  %v45166_v45 = vsub.f32 0.0, %v40904_v44  ;;  %vm8037_vm8 = vmand %vm44512_vm10, %vm7013_vm14  ;;  %v41307_v15 = vsub.f32 %v3513_v31, %v40941_v19  ;;  %vm7093_vm15 = vcmp.gt.f32.partialorder %v40920_v56, 0.0 }
 0x57a   : > { %37387 = vpow2.f32 %v15141_v41  ;;  %v15237_v37 = vmul.f32 1.442695, %v14165_v0  ;;  %v41313_v0 = vsub.f32 %v40969_v63, %v40876_v47  ;;  %vm9061_vm6 = vmor %vm5989_vm5, %vm8037_vm8  ;;  %v45167_v31 = vsub.f32 0.0, %v40908_v27 }
 0x57b   : > { %v41300_v20 = vsel %vm9077_vm2, %v45166_v45, %v40904_v44  ;;  %v14149_v44 = vsub.f32 0.0, %v44503_v30  ;;  %v3523_v45 = vpop.permute.xlu1 %3522  ;;  %v3518_v12 = vpop.permute.xlu0 %3517  ;;  %vm44511_vm14 = vcmp.eq.f32.partialorder %v41307_v15, 0.0  ;;  %vm6037_vm2 = vcmp.gt.f32.partialorder %v41307_v15, 0.0 }
 0x57c   : > { %v44504_v41 = vand.u32 2147483647, %v41300_v20  ;;  %37389 = vpow2.f32 %v15237_v37  ;;  %v41321_v54 = vsel %vm9061_vm6, %v45167_v31, %v40908_v27  ;;  %v41328_v63 = vsub.f32 %v41022_v7, %v40876_v47  ;;  %vm8085_vm5 = vmand %vm44511_vm14, %vm7061_vm13 }
 0x57d   : > { %v15205_v10 = vmul.f32 1.442695, %v14149_v44  ;;  %vm9109_vm8 = vmor %vm6037_vm2, %vm8085_vm5  ;;  %v41339_v31 = vsub.f32 %v3508_v36, %v40941_v19  ;;  %v41342_v7 = vsub.f32 %v3523_v45, %v40941_v19  ;;  %v41345_v44 = vsub.f32 %v3518_v12, %v40941_v19 }
 0x57e   : > { %v14197_v30 = vsub.f32 0.0, %v44504_v41  ;;  %vm7125_vm6 = vcmp.gt.f32.partialorder %v40937_v57, 0.0  ;;  %v45168_v41 = vand.u32 2147483647, %v41212_v26  ;;  %v45169_v62 = vand.u32 2147483647, %v41321_v54 }
 0x57f   : > { %37391 = vpow2.f32 %v15205_v10  ;;  %v3533_v13 = vpop.permute.xlu1 %3532  ;;  %v45170_v45 = vsub.f32 0.0, %v40912_v61  ;;  %vm44515_vm13 = vcmp.eq.f32.partialorder %v41339_v31, 0.0  ;;  %vm6021_vm2 = vcmp.gt.f32.partialorder %v41339_v31, 0.0 }
 0x580   : > { %v41352_v37 = vsel %vm4917_vm12, %v45168_v41, 0.0  ;;  %v15301_v27 = vmul.f32 1.442695, %v14197_v30  ;;  %v14181_v36 = vsub.f32 0.0, %v45169_v62  ;;  %vm5045_vm5 = vcmp.eq.f32.partialorder %v41342_v7, 0.0 }
 0x581   : > { %v41359_v23 = vsel %vm9109_vm8, %v45170_v45, %v40912_v61  ;;  %vm7109_vm12 = vcmp.gt.f32.partialorder %v40948_v60, 0.0  ;;  %vm8069_vm8 = vmand %vm44515_vm13, %vm7045_vm7  ;;  %v3528_v61 = vpop.permute.xlu0 %3527  ;;  %v45171_v30 = vand.u32 2147483647, %v41232_v11  ;;  %vm6069_vm1 = vcmp.gt.f32.partialorder %v41342_v7, 0.0 }
 0x582   : > { %37393 = vpow2.f32 %v15301_v27  ;;  %v15269_v12 = vmul.f32 1.442695, %v14181_v36  ;;  %v44516_v62 = vand.u32 2147483647, %v41359_v23  ;;  %vm9093_vm10 = vmor %vm6021_vm2, %vm8069_vm8  ;;  %vm44547_vm9 = vcmp.eq.f32.partialorder %v41345_v44, 0.0 }
 0x583   : > { %v37386_v10 = vpop.eup %37385  ;;  %v41376_v41 = vsel %vm4901_vm11, %v45171_v30, 0.0  ;;  %v41381_v27 = vsub.f32 %v3533_v13, %v40941_v19  ;;  %vm8117_vm7 = vmand %vm5045_vm5, %vm7093_vm15  ;;  %vm6053_vm11 = vcmp.gt.f32.partialorder %v41345_v44, 0.0  ;;  %v45172_v30 = vsub.f32 0.0, %v40916_v58 }
 0x584   : > { %v17205_v36 = vadd.f32 1.0, %v37386_v10  ;;  %37395 = vpow2.f32 %v15269_v12  ;;  %v14229_v45 = vsub.f32 0.0, %v44516_v62  ;;  %v37388_v25 = vpop.eup %37387  ;;  %vm9141_vm2 = vmor %vm6069_vm1, %vm8117_vm7  ;;  %v41398_v13 = vsub.f32 %v3528_v61, %v40941_v19  ;;  %v45173_v12 = vld [vmem:[#allocation75_spill] sm:$0xff] }
 0x585   : > { %v41393_v24 = vsel %vm9093_vm10, %v45172_v30, %v40916_v58  ;;  %vm44543_vm8 = vcmp.eq.f32.partialorder %v41381_v27, 0.0  ;;  %vm6101_vm13 = vcmp.gt.f32.partialorder %v41381_v27, 0.0  ;;  %vm24547_vm14 = vcmp.gt.s32.totalorder %v40931_v55, %v45173_v12  ;;  %vm8101_vm1 = vmand %vm44547_vm9, %vm7077_vm3  ;;  %v45174_v30 = vld [vmem:[#allocation66_spill] sm:$0xff]  ;;  %v3538_v51 = vpop.permute.xlu0 %3537 }
 0x586   : > { %37397 = vlog2.f32 %v17205_v36  ;;  %v17189_v10 = vadd.f32 1.0, %v37388_v25  ;;  %v15365_v62 = vmul.f32 1.442695, %v14229_v45  ;;  %v37390_v58 = vpop.eup %37389  ;;  %vm24531_vm10 = vcmp.gt.s32.totalorder %v40931_v55, %v45174_v30  ;;  %vm9125_vm3 = vmor %vm6053_vm11, %vm8101_vm1 }
 0x587   : > { %v45175_v21 = vand.u32 2147483647, %v41256_v1  ;;  %v45176_v45 = vsub.f32 0.0, %v40920_v56  ;;  %vm44542_vm15 = vcmp.eq.f32.partialorder %v41398_v13, 0.0  ;;  %v17237_v33 = vadd.f32 1.0, %v37390_v58 }
 0x588   : > { %37399 = vlog2.f32 %v17189_v10  ;;  %v45177_v61 = vand.u32 2147483647, %v41393_v24  ;;  %vm6085_vm7 = vcmp.gt.f32.partialorder %v41398_v13, 0.0  ;;  %v41436_v10 = vsel %vm9125_vm3, %v45178_v35, %v40924_v14 }
 0x589   : > { %v41414_v36 = vsel %vm4949_vm0, %v45175_v21, 0.0  ;;  %v41419_v25 = vsel %vm9141_vm2, %v45176_v45, %v40920_v56  ;;  %vm8149_vm0 = vmand %vm44543_vm8, %vm7125_vm6  ;;  %37401 = vpow2.f32 %v15365_v62  ;;  %v37392_v58 = vpop.eup %37391  ;;  %vm7157_vm2 = vcmp.gt.f32.partialorder %v40955_v32, 0.0  ;;  %v3543_v62 = vpop.permute.xlu1 %3542 }
 0x58a   : > { %v14213_v3 = vsub.f32 0.0, %v45177_v61  ;;  %v44525_v21 = vand.u32 2147483647, %v41419_v25  ;;  %vm9173_vm11 = vmor %vm6101_vm13, %vm8149_vm0  ;;  %37403 = vlog2.f32 %v17237_v33  ;;  %v45179_v61 = vand.u32 2147483647, %v41281_v29  ;;  %v3548_v39 = vpop.permute.xlu0 %3547 }
 0x58b   : > { %vm8133_vm6 = vmand %vm44542_vm15, %vm7109_vm12  ;;  %v17221_v14 = vadd.f32 1.0, %v37392_v58  ;;  %v45180_v8 = vsub.f32 0.0, %v40937_v57  ;;  %v45183_v58 = vand.u32 2147483647, %v41300_v20  ;;  %vm45184_vm13 = vcmp.eq.f32.partialorder %v41263_v53, 0.0 }
 0x58c   : > { %v41444_v45 = vsel %vm4933_vm4, %v45179_v61, 0.0  ;;  %v15333_v56 = vmul.f32 1.442695, %v14213_v3  ;;  %v14261_v33 = vsub.f32 0.0, %v44525_v21  ;;  %vm41462_vm4 = vmor %vm6085_vm7, %vm8133_vm6  ;;  %v37394_v4 = vpop.eup %37393  ;;  %v45185_v21 = vand.u32 2147483647, %v41436_v10 }
 0x58d   : > { %v41458_v61 = vsel %vm9173_vm11, %v45180_v8, %v40937_v57  ;;  %v41470_v35 = vsel %vm45184_vm13, %v45183_v58, 0.0  ;;  %v45186_v8 = vld [vmem:[#allocation211_spill] sm:$0xff]  ;;  %v17269_v5 = vadd.f32 1.0, %v37394_v4  ;;  %vm45187_vm1 = vcmp.lt.s32.totalorder %v40931_v55, 16 }
 0x58e   : > { %37405 = vpow2.f32 %v15333_v56  ;;  %v14245_v2 = vsub.f32 0.0, %v45185_v21  ;;  %v44538_v57 = vand.u32 2147483647, %v41458_v61  ;;  %vm7141_vm12 = vcmp.gt.f32.partialorder %v45186_v8, 0.0  ;;  %v37396_v40 = vpop.eup %37395  ;;  %v45191_v56 = vld [vmem:[#allocation77_spill] sm:$0xff]  ;;  %vm45195_vm6 = vmmov %vm45187_vm1 }
 0x58f   : > { %37407 = vlog2.f32 %v17221_v14  ;;  %v15429_v49 = vmul.f32 1.442695, %v14261_v33  ;;  %vm45188_vm3 = vcmp.lt.s32.totalorder %v45173_v12, 16  ;;  %vm24579_vm7 = vcmp.gt.s32.totalorder %v40931_v55, %v45191_v56 }
 0x590   : > { %vm41481_vm0 = vmand %vm45188_vm3, %vm45187_vm1  ;;  %v45192_v21 = vand.u32 2147483647, %v41321_v54  ;;  %vm45193_vm11 = vcmp.eq.f32.partialorder %v41266_v48, 0.0  ;;  %v15397_v14 = vmul.f32 1.442695, %v14245_v2  ;;  %v14293_v33 = vsub.f32 0.0, %v44538_v57  ;;  %v37398_v57 = vpop.eup %37397 }
 0x591   : > { %v45194_v58 = vsub.f32 0.0, %v40948_v60  ;;  %vm45196_vm13 = vcmp.lt.s32.totalorder %v45174_v30, 16  ;;  %37409 = vlog2.f32 %v17269_v5  ;;  %v17253_v2 = vadd.f32 1.0, %v37396_v40 }
 0x592   : > { %v41491_v4 = vsel %vm45193_vm11, %v45192_v21, 0.0  ;;  %vm41506_vm1 = vmand %vm45196_vm13, %vm45195_vm6  ;;  %vm24563_vm3 = vcmp.gt.s32.totalorder %v40931_v55, %v45199_v42  ;;  %37411 = vpow2.f32 %v15429_v49  ;;  %v41515_v3 = vsub.f32 %v3543_v62, %v40941_v19  ;;  %v37400_v53 = vpop.eup %37399 }
 0x593   : > { %v41500_v22 = vsel %vm41462_vm4, %v45194_v58, %v40948_v60  ;;  %v15493_v60 = vmul.f32 1.442695, %v14293_v33  ;;  %v41518_v58 = vsub.f32 %v3538_v51, %v40941_v19  ;;  %vm41525_vm4 = vmand %vm24547_vm14, %vm41481_vm0  ;;  %v18246_v5 = vmul.f32 0.6931472, %v37398_v57  ;;  %v3553_v33 = vpop.permute.xlu1 %3552  ;;  %v45207_v57 = vld [vmem:[#allocation87_spill] sm:$0xff] }
 0x594   : > { %v44541_v21 = vand.u32 2147483647, %v41500_v22  ;;  %45200 = vst [vmem:[#allocation211_spill] sm:$0xff] %v41515_v3  ;;  %37413 = vlog2.f32 %v17253_v2  ;;  %v45203_v49 = vand.u32 2147483647, %v41359_v23  ;;  %vm45204_vm11 = vcmp.eq.f32.partialorder %v41307_v15, 0.0  ;;  %vm41542_vm14 = vmand %vm24531_vm10, %vm41506_vm1  ;;  %v37402_v15 = vpop.eup %37401 }
 0x595   : > { %vm24611_vm0 = vcmp.gt.s32.totalorder %v40931_v55, %v45207_v57  ;;  %37415 = vpow2.f32 %v15397_v14  ;;  %vm44546_vm6 = vcmp.eq.f32.partialorder %v41515_v3, 0.0  ;;  %vm6133_vm13 = vcmp.gt.f32.partialorder %v41515_v3, 0.0  ;;  %v45209_v14 = vld [vmem:[#allocation78_spill] sm:$0xff] }
 0x596   : > { %v41533_v62 = vsel %vm45204_vm11, %v45203_v49, 0.0  ;;  %v14277_v51 = vsub.f32 0.0, %v44541_v21  ;;  %vm44555_vm11 = vcmp.eq.f32.partialorder %v41518_v58, 0.0  ;;  %v45208_v38 = vmax.f32 %v41212_v26, 0.0  ;;  %vm8181_vm10 = vmand %vm44546_vm6, %vm7157_vm2  ;;  %v37404_v21 = vpop.eup %37403 }
 0x597   : > { %v18214_v49 = vmul.f32 0.6931472, %v37400_v53  ;;  %37417 = vpow2.f32 %v15493_v60  ;;  %vm24595_vm1 = vcmp.gt.s32.totalorder %v40931_v55, %v45209_v14  ;;  %v17301_v48 = vadd.f32 1.0, %v37402_v15  ;;  %vm9205_vm15 = vmor %vm6133_vm13, %vm8181_vm10 }
 0x598   : > { %v20277_v2 = vadd.f32 %v18246_v5, %v45208_v38  ;;  %v15461_v30 = vmul.f32 1.442695, %v14277_v51  ;;  %vm6117_vm8 = vcmp.gt.f32.partialorder %v41518_v58, 0.0  ;;  %v41562_v26 = vsub.f32 %v3553_v33, %v40941_v19  ;;  %vm41570_vm2 = vmand %vm44555_vm11, %vm7141_vm12  ;;  %v45213_v38 = vld [vmem:[#allocation212_spill] sm:$0xff]  ;;  %v37406_v18 = vpop.eup %37405 }
 0x599   : > { %v45210_v5 = vmax.f32 %v41232_v11, 0.0  ;;  %v18310_v53 = vmul.f32 0.6931472, %v37404_v21  ;;  %vm7189_vm13 = vcmp.gt.f32.partialorder %v45213_v38, 0.0  ;;  %vm45214_vm10 = vcmp.lt.s32.totalorder %v40931_v55, 16 }
 0x59a   : > { %v21301_v60 = vmul.f32 2.0, %v20277_v2  ;;  %37419 = vpow2.f32 %v15461_v30  ;;  %vm45215_vm6 = vcmp.lt.s32.totalorder %v45191_v56, 16  ;;  %v45218_v21 = vand.u32 2147483647, %v41393_v24 }
 0x59b   : > { %v20261_v51 = vadd.f32 %v18214_v49, %v45210_v5  ;;  %vm41579_vm9 = vmand %vm45215_vm6, %vm45214_vm10  ;;  %37421 = vlog2.f32 %v17301_v48  ;;  %vm45219_vm12 = vcmp.eq.f32.partialorder %v41339_v31, 0.0  ;;  %v13237_v2 = vmax.f32 %v41419_v25, 0.0  ;;  %v37408_v5 = vpop.eup %37407 }
 0x59c   : > { %v41587_v33 = vsel %vm45219_vm12, %v45218_v21, 0.0  ;;  %v45220_v49 = vsub.f32 0.0, %v40955_v32  ;;  %v23349_v17 = vadd.f32 %v41352_v37, %v21301_v60  ;;  %v45221_v48 = vmax.f32 %v41256_v1, 0.0  ;;  %vm41602_vm6 = vmor %vm6117_vm8, %vm41570_vm2  ;;  %v37410_v60 = vpop.eup %37409 }
 0x59d   : > { %v21285_v28 = vmul.f32 2.0, %v20261_v51  ;;  %v17285_v3 = vadd.f32 1.0, %v37406_v18  ;;  %v18278_v37 = vmul.f32 0.6931472, %v37408_v5  ;;  %vm5141_vm11 = vcmp.eq.f32.partialorder %v41562_v26, 0.0  ;;  %vm41627_vm8 = vmand %vm24579_vm7, %vm41579_vm9  ;;  %v45230_v5 = vld [vmem:[#allocation89_spill] sm:$0xff] }
 0x59e   : > { %v41593_v30 = vsel %vm9205_vm15, %v45220_v49, %v40955_v32  ;;  %v20309_v34 = vadd.f32 %v18310_v53, %v45221_v48  ;;  %vm45224_vm15 = vmmov %vm45214_vm10  ;;  %vm45225_vm10 = vcmp.lt.s32.totalorder %v45199_v42, 16  ;;  %v41617_v18 = vsub.f32 %v3548_v39, %v40941_v19  ;;  %v27843_v53 = vld [vmem:[#allocation2] sm:$0xff]  ;;  %v37412_v39 = vpop.eup %37411 }
 0x59f   : > { %vm41610_vm12 = vmand %vm45225_vm10, %vm45224_vm15  ;;  %v12277_v1 = vand.u32 2147483647, %v41593_v30  ;;  %v28883_v51 = vsel %vm41525_vm4, %v23349_v17, 0.0  ;;  %v23333_v15 = vadd.f32 %v41376_v41, %v21285_v28  ;;  %vm24643_vm2 = vcmp.gt.s32.totalorder %v40931_v55, %v45230_v5 }
 0x5a0   : > { %v21333_v49 = vmul.f32 2.0, %v20309_v34  ;;  %37423 = vlog2.f32 %v17285_v3  ;;  %v29907_v40 = vadd.f32 %v28883_v51, %v27859_v52  ;;  %v45231_v17 = vmax.f32 %v41281_v29, 0.0  ;;  %vm45232_vm4 = vmmov %vm45224_vm15  ;;  %v37414_v52 = vpop.eup %37413  ;;  %v27891_v3 = vld [vmem:[#allocation2 + $0x180] sm:$0xff] }
 0x5a1   : > { %vm45233_vm15 = vcmp.lt.s32.totalorder %v45207_v57, 16  ;;  %v18374_v41 = vmul.f32 0.6931472, %v37410_v60  ;;  %v45236_v34 = vsub.f32 0.0, %v45186_v8  ;;  %v28867_v29 = vsel %vm41542_vm14, %v23333_v15, 0.0  ;;  %vm41658_vm9 = vmand %vm24563_vm3, %vm41610_vm12  ;;  %v45239_v60 = vld [vmem:[#allocation88_spill] sm:$0xff]  ;;  %v37416_v31 = vpop.eup %37415 }
 0x5a2   : > { %v20293_v48 = vadd.f32 %v18278_v37, %v45231_v17  ;;  %vm41639_vm10 = vmand %vm45233_vm15, %vm45232_vm4  ;;  %v23381_v11 = vadd.f32 %v41414_v36, %v21333_v49  ;;  %vm24627_vm7 = vcmp.gt.s32.totalorder %v40931_v55, %v45239_v60  ;;  %v14325_v12 = vsub.f32 0.0, %v12277_v1  ;;  %30931 = vst [vmem:[#allocation2 + $0x80] sm:$0xff] %v29907_v40 }
 0x5a3   : > { %v41648_v56 = vsel %vm41602_vm6, %v45236_v34, %v45186_v8  ;;  %v17333_v8 = vadd.f32 1.0, %v37412_v39  ;;  %v29891_v51 = vadd.f32 %v28867_v29, %v27843_v53  ;;  %v45240_v32 = vmax.f32 %v41300_v20, 0.0  ;;  %vm45241_vm14 = vmmov %vm45232_vm4  ;;  %v37418_v39 = vpop.eup %37417 }
 0x5a4   : > { %v21317_v36 = vmul.f32 2.0, %v20293_v48  ;;  %vm45242_vm3 = vcmp.lt.s32.totalorder %v45209_v14, 16  ;;  %v18342_v49 = vmul.f32 0.6931472, %v37414_v52  ;;  %vm7173_vm12 = vcmp.gt.f32.partialorder %v40974_v59, 0.0  ;;  %vm41684_vm4 = vmand %vm24611_vm0, %vm41639_vm10  ;;  %v27875_v48 = vld [vmem:[#allocation2 + $0x100] sm:$0xff]  ;;  %v37420_v52 = vpop.eup %37419 }
 0x5a5   : > { %v20341_v15 = vadd.f32 %v18374_v41, %v45240_v32  ;;  %vm41672_vm6 = vmand %vm45242_vm3, %vm45241_vm14  ;;  %v28915_v40 = vsel %vm41627_vm8, %v23381_v11, 0.0  ;;  %37425 = vlog2.f32 %v17333_v8  ;;  %v17317_v53 = vadd.f32 1.0, %v37416_v31  ;;  %30915 = vst [vmem:[#allocation2] sm:$0xff] %v29891_v51  ;;  %v37422_v11 = vpop.eup %37421  ;;  %v27923_v31 = vld [vmem:[#allocation2 + $0x280] sm:$0xff] }
 0x5a6   : > { %vm6165_vm15 = vcmp.gt.f32.partialorder %v41562_v26, 0.0  ;;  %v29939_v17 = vadd.f32 %v28915_v40, %v27891_v3  ;;  %v23365_v41 = vadd.f32 %v41444_v45, %v21317_v36  ;;  %v45247_v34 = vmax.f32 %v41321_v54, 0.0  ;;  %vm41696_vm0 = vmand %vm5141_vm11, %vm7189_vm13 }
 0x5a7   : > { %v21365_v21 = vmul.f32 2.0, %v20341_v15  ;;  %vm41705_vm8 = vmand %vm24595_vm1, %vm41672_vm6  ;;  %37427 = vlog2.f32 %v17317_v53  ;;  %v17365_v54 = vadd.f32 1.0, %v37418_v39  ;;  %v15557_v29 = vmul.f32 1.442695, %v14325_v12  ;;  %v45256_v12 = vld [vmem:[#allocation99_spill] sm:$0xff]  ;;  %v27907_v39 = vld [vmem:[#allocation2 + $0x200] sm:$0xff] }
 0x5a8   : > { %v20325_v28 = vadd.f32 %v18342_v49, %v45247_v34  ;;  %v12261_v3 = vand.u32 2147483647, %v41648_v56  ;;  %30963 = vst [vmem:[#allocation2 + $0x180] sm:$0xff] %v29939_v17  ;;  %v28899_v8 = vsel %vm41658_vm9, %v23365_v41, 0.0  ;;  %vm45252_vm13 = vmmov %vm45241_vm14  ;;  %vm45253_vm1 = vcmp.lt.s32.totalorder %v45230_v5, 16  ;;  %v45259_v53 = vld [vmem:[#allocation90_spill] sm:$0xff] }
 0x5a9   : > { %v23413_v51 = vadd.f32 %v41470_v35, %v21365_v21  ;;  %vm41717_vm10 = vmand %vm45253_vm1, %vm45252_vm13  ;;  %vm24675_vm14 = vcmp.gt.s32.totalorder %v40931_v55, %v45256_v12  ;;  %v17349_v32 = vadd.f32 1.0, %v37420_v52  ;;  %vm7221_vm3 = vcmp.gt.f32.partialorder %v40978_v50, 0.0 }
 0x5aa   : > { %v21349_v36 = vmul.f32 2.0, %v20325_v28  ;;  %v29923_v37 = vadd.f32 %v28899_v8, %v27875_v48  ;;  %v18438_v15 = vmul.f32 0.6931472, %v37422_v11  ;;  %37429 = vlog2.f32 %v17365_v54  ;;  %vm41730_vm9 = vmor %vm6165_vm15, %vm41696_vm0  ;;  %v37424_v48 = vpop.eup %37423  ;;  %v3563_v28 = vpop.permute.xlu1 %3562 }
 0x5ab   : > { %v14309_v35 = vsub.f32 0.0, %v12261_v3  ;;  %v28947_v49 = vsel %vm41684_vm4, %v23413_v51, 0.0  ;;  %vm24659_vm6 = vcmp.gt.s32.totalorder %v40931_v55, %v45259_v53  ;;  %v13221_v17 = vmax.f32 %v41436_v10, 0.0  ;;  %vm45261_vm15 = vmmov %vm45252_vm13 }
 0x5ac   : > { %v23397_v40 = vadd.f32 %v41491_v4, %v21349_v36  ;;  %37431 = vlog2.f32 %v17349_v32  ;;  %30947 = vst [vmem:[#allocation2 + $0x100] sm:$0xff] %v29923_v37  ;;  %v29971_v41 = vadd.f32 %v28947_v49, %v27923_v31  ;;  %v45260_v21 = vmax.f32 %v41359_v23, 0.0  ;;  %vm41757_vm13 = vmand %vm24643_vm2, %vm41717_vm10  ;;  %v45274_v32 = vld [vmem:[#allocation101_spill] sm:$0xff]  ;;  %v45277_v49 = vld [vmem:[#allocation100_spill] sm:$0xff] }
 0x5ad   : > { %vm45262_vm0 = vcmp.lt.s32.totalorder %v45239_v60, 16  ;;  %37433 = vpow2.f32 %v15557_v29  ;;  %v15525_v4 = vmul.f32 1.442695, %v14309_v35  ;;  %v18406_v52 = vmul.f32 0.6931472, %v37424_v48 }
 0x5ae   : > { %v20373_v34 = vadd.f32 %v18438_v15, %v45260_v21  ;;  %vm41746_vm4 = vmand %vm45262_vm0, %vm45261_vm15  ;;  %v28931_v57 = vsel %vm41705_vm8, %v23397_v40, 0.0  ;;  %v45267_v54 = vsub.f32 0.0, %v45213_v38  ;;  %vm5125_vm1 = vcmp.eq.f32.partialorder %v41617_v18, 0.0  ;;  %30995 = vst [vmem:[#allocation2 + $0x280] sm:$0xff] %v29971_v41  ;;  %v27955_v15 = vld [vmem:[#allocation2 + $0x380] sm:$0xff]  ;;  %v3558_v21 = vpop.permute.xlu0 %3557 }
 0x5af   : > { %v29955_v45 = vadd.f32 %v28931_v57, %v27907_v39  ;;  %37435 = vpow2.f32 %v15525_v4  ;;  %vm41774_vm2 = vmand %vm5125_vm1, %vm7173_vm12  ;;  %v45272_v31 = vmax.f32 %v41393_v24, 0.0  ;;  %v45273_v36 = vand.u32 2147483647, %v41419_v25  ;;  %v37426_v60 = vpop.eup %37425 }
 0x5b0   : > { %v41766_v29 = vsel %vm41730_vm9, %v45267_v54, %v45213_v38  ;;  %v21397_v11 = vmul.f32 2.0, %v20373_v34  ;;  %vm41783_vm8 = vmand %vm24627_vm7, %vm41746_vm4  ;;  %vm24707_vm12 = vcmp.gt.s32.totalorder %v40931_v55, %v45274_v32  ;;  %vm6149_vm10 = vcmp.gt.f32.partialorder %v41617_v18, 0.0  ;;  %v27939_v54 = vld [vmem:[#allocation2 + $0x300] sm:$0xff] }
 0x5b1   : > { %v12309_v5 = vand.u32 2147483647, %v41766_v29  ;;  %v20357_v51 = vadd.f32 %v18406_v52, %v45272_v31  ;;  %v22453_v14 = vsel %vm5045_vm5, %v45273_v36, 0.0  ;;  %v41797_v37 = vsub.f32 %v3563_v28, %v40941_v19  ;;  %30979 = vst [vmem:[#allocation2 + $0x200] sm:$0xff] %v29955_v45  ;;  %vm9221_vm9 = vmor %vm6149_vm10, %vm41774_vm2  ;;  %v37428_v34 = vpop.eup %37427 }
 0x5b2   : > { %v23445_v35 = vadd.f32 %v41533_v62, %v21397_v11  ;;  %v45275_v24 = vand.u32 2147483647, %v41436_v10  ;;  %vm45276_vm7 = vcmp.eq.f32.partialorder %v41345_v44, 0.0  ;;  %v13269_v7 = vmax.f32 %v41458_v61, 0.0 }
 0x5b3   : > { %vm24691_vm5 = vcmp.gt.s32.totalorder %v40931_v55, %v45277_v49  ;;  %v14357_v39 = vsub.f32 0.0, %v12309_v5  ;;  %v21381_v40 = vmul.f32 2.0, %v20357_v51  ;;  %vm45278_vm0 = vcmp.lt.s32.totalorder %v45256_v12, 16 }
 0x5b4   : > { %v22437_v42 = vsel %vm45276_vm7, %v45275_v24, 0.0  ;;  %vm41815_vm4 = vmand %vm45278_vm0, %vm45261_vm15  ;;  %v18502_v44 = vmul.f32 0.6931472, %v37426_v60  ;;  %v45281_v48 = vsub.f32 0.0, %v40974_v59  ;;  %vm44557_vm7 = vcmp.eq.f32.partialorder %v41797_v37, 0.0  ;;  %v37430_v31 = vpop.eup %37429 }
 0x5b5   : > { %v28979_v20 = vsel %vm41757_vm13, %v23445_v35, 0.0  ;;  %v13253_v4 = vmax.f32 %v41500_v22, 0.0  ;;  %v15621_v28 = vmul.f32 1.442695, %v14357_v39  ;;  %vm41833_vm2 = vmand %vm44557_vm7, %vm7221_vm3  ;;  %v23429_v45 = vadd.f32 %v41587_v33, %v21381_v40  ;;  %v3573_v35 = vpop.permute.xlu1 %3572  ;;  %v45309_v40 = vld [vmem:[#allocation111_spill] sm:$0xff] }
 0x5b6   : > { %v41822_v41 = vsel %vm9221_vm9, %v45281_v48, %v40974_v59  ;;  %v30003_v59 = vadd.f32 %v28979_v20, %v27955_v15  ;;  %v20405_v23 = vadd.f32 %v18502_v44, %v13237_v2  ;;  %vm45284_vm13 = vmmov %vm45261_vm15  ;;  %vm45285_vm10 = vcmp.lt.s32.totalorder %v45259_v53, 16  ;;  %v37432_v51 = vpop.eup %37431  ;;  %v27987_v44 = vld [vmem:[#allocation2 + $0x480] sm:$0xff] }
 0x5b7   : > { %v12293_v57 = vand.u32 2147483647, %v41822_v41  ;;  %vm41844_vm9 = vmand %vm45285_vm10, %vm45284_vm13  ;;  %v18470_v8 = vmul.f32 0.6931472, %v37428_v34  ;;  %vm7205_vm3 = vcmp.gt.f32.partialorder %v40982_v6, 0.0  ;;  %37437 = vpow2.f32 %v15621_v28  ;;  %v37434_v24 = vpop.eup %37433 }
 0x5b8   : > { %vm41854_vm15 = vmand %vm24675_vm14, %vm41815_vm4  ;;  %vm6197_vm0 = vcmp.gt.f32.partialorder %v41797_v37, 0.0  ;;  %v41862_v2 = vsub.f32 %v3558_v21, %v40941_v19  ;;  %31027 = vst [vmem:[#allocation2 + $0x380] sm:$0xff] %v30003_v59  ;;  %v28963_v36 = vsel %vm41783_vm8, %v23429_v45, 0.0  ;;  %v21429_v60 = vmul.f32 2.0, %v20405_v23  ;;  %v27971_v45 = vld [vmem:[#allocation2 + $0x400] sm:$0xff] }
 0x5b9   : > { %v14341_v33 = vsub.f32 0.0, %v12293_v57  ;;  %v20389_v12 = vadd.f32 %v18470_v8, %v13221_v17  ;;  %v18566_v15 = vmul.f32 0.6931472, %v37430_v31  ;;  %vm9269_vm14 = vmor %vm6197_vm0, %vm41833_vm2  ;;  %v29987_v39 = vadd.f32 %v28963_v36, %v27939_v54  ;;  %v37436_v28 = vpop.eup %37435 }
 0x5ba   : > { %vm41875_vm4 = vmand %vm24659_vm6, %vm41844_vm9  ;;  %v18534_v38 = vmul.f32 0.6931472, %v37432_v51  ;;  %v45292_v10 = vsub.f32 0.0, %v40978_v50  ;;  %v23477_v48 = vadd.f32 %v22453_v14, %v21429_v60  ;;  %vm45294_vm2 = vcmp.lt.s32.totalorder %v45274_v32, 16 }
 0x5bb   : > { %v15589_v62 = vmul.f32 1.442695, %v14341_v33  ;;  %v21413_v21 = vmul.f32 2.0, %v20389_v12  ;;  %vm45293_vm8 = vmmov %vm45284_vm13  ;;  %v20437_v34 = vadd.f32 %v18566_v15, %v13269_v7  ;;  %v17397_v20 = vadd.f32 1.0, %v37434_v24  ;;  %31011 = vst [vmem:[#allocation2 + $0x300] sm:$0xff] %v29987_v39  ;;  %v28019_v33 = vld [vmem:[#allocation2 + $0x580] sm:$0xff]  ;;  %v3583_v12 = vpop.permute.xlu1 %3582 }
 0x5bc   : > { %v41882_v17 = vsel %vm9269_vm14, %v45292_v10, %v40978_v50  ;;  %vm41888_vm13 = vmand %vm45294_vm2, %vm45293_vm8  ;;  %vm7253_vm6 = vcmp.gt.f32.partialorder %v40989_v46, 0.0  ;;  %v45297_v50 = vand.u32 2147483647, %v41458_v61  ;;  %vm45298_vm10 = vcmp.eq.f32.partialorder %v41381_v27, 0.0  ;;  %v3568_v27 = vpop.permute.xlu0 %3567  ;;  %v28003_v24 = vld [vmem:[#allocation2 + $0x500] sm:$0xff] }
 0x5bd   : > { %vm45299_vm9 = vmmov %vm45293_vm8  ;;  %vm45300_vm0 = vcmp.lt.s32.totalorder %v45277_v49, 16  ;;  %v20421_v59 = vadd.f32 %v18534_v38, %v13253_v4  ;;  %37439 = vpow2.f32 %v15589_v62  ;;  %v12341_v7 = vand.u32 2147483647, %v41882_v17 }
 0x5be   : > { %v22485_v14 = vsel %vm45298_vm10, %v45297_v50, 0.0  ;;  %vm41901_vm14 = vmand %vm45300_vm0, %vm45299_vm9  ;;  %v29011_v54 = vsel %vm41854_vm15, %v23477_v48, 0.0  ;;  %v23461_v61 = vadd.f32 %v22437_v42, %v21413_v21  ;;  %v21461_v23 = vmul.f32 2.0, %v20437_v34 }
 0x5bf   : > { %37441 = vlog2.f32 %v17397_v20  ;;  %vm7237_vm8 = vcmp.gt.f32.partialorder %v40993_v43, 0.0  ;;  %v30035_v11 = vadd.f32 %v29011_v54, %v27987_v44  ;;  %vm41914_vm2 = vmand %vm24707_vm12, %vm41888_vm13  ;;  %v21445_v8 = vmul.f32 2.0, %v20421_v59  ;;  %v45316_v59 = vld [vmem:[#allocation102_spill] sm:$0xff] }
 0x5c0   : > { %v17381_v31 = vadd.f32 1.0, %v37436_v28  ;;  %v14389_v42 = vsub.f32 0.0, %v12341_v7  ;;  %v28995_v25 = vsel %vm41875_vm4, %v23461_v61, 0.0  ;;  %v23509_v51 = vadd.f32 %v22485_v14, %v21461_v23  ;;  %vm41927_vm15 = vmand %vm24691_vm5, %vm41901_vm14  ;;  %v3578_v28 = vpop.permute.xlu0 %3577 }
 0x5c1   : > { %v45307_v36 = vand.u32 2147483647, %v41500_v22  ;;  %vm45308_vm12 = vcmp.eq.f32.partialorder %v41398_v13, 0.0  ;;  %vm44556_vm13 = vcmp.eq.f32.partialorder %v41862_v2, 0.0  ;;  %vm7285_vm4 = vcmp.gt.f32.partialorder %v40997_v16, 0.0  ;;  %31059 = vst [vmem:[#allocation2 + $0x480] sm:$0xff] %v30035_v11  ;;  %v37438_v62 = vpop.eup %37437 }
 0x5c2   : > { %v30019_v15 = vadd.f32 %v28995_v25, %v27971_v45  ;;  %vm24739_vm5 = vcmp.gt.s32.totalorder %v40931_v55, %v45309_v40  ;;  %37443 = vlog2.f32 %v17381_v31  ;;  %v15685_v49 = vmul.f32 1.442695, %v14389_v42  ;;  %vm8229_vm10 = vmand %vm44556_vm13, %vm7205_vm3 }
 0x5c3   : > { %v22469_v60 = vsel %vm45308_vm12, %v45307_v36, 0.0  ;;  %v29043_v22 = vsel %vm41914_vm2, %v23509_v51, 0.0  ;;  %vm6181_vm9 = vcmp.gt.f32.partialorder %v41862_v2, 0.0  ;;  %v41947_v13 = vsub.f32 %v3573_v35, %v40941_v19 }
 0x5c4   : > { %v23493_v39 = vadd.f32 %v22469_v60, %v21445_v8  ;;  %v41950_v38 = vsub.f32 %v3568_v27, %v40941_v19  ;;  %vm7269_vm0 = vcmp.gt.f32.partialorder %v41002_v9, 0.0  ;;  %31043 = vst [vmem:[#allocation2 + $0x400] sm:$0xff] %v30019_v15  ;;  %v30067_v10 = vadd.f32 %v29043_v22, %v28019_v33  ;;  %vm9253_vm3 = vmor %vm6181_vm9, %vm8229_vm10  ;;  %v45319_v15 = vld [vmem:[#allocation211_spill] sm:$0xff] }
 0x5c5   : > { %37445 = vpow2.f32 %v15685_v49  ;;  %v41956_v48 = vsub.f32 %v3583_v12, %v40941_v19  ;;  %vm45310_vm14 = vcmp.lt.s32.totalorder %v40931_v55, 16  ;;  %vm45311_vm2 = vcmp.lt.s32.totalorder %v45309_v40, 16 }
 0x5c6   : > { %v29027_v44 = vsel %vm41927_vm15, %v23493_v39, 0.0  ;;  %vm41962_vm12 = vmand %vm45311_vm2, %vm45310_vm14  ;;  %v17429_v53 = vadd.f32 1.0, %v37438_v62  ;;  %v45314_v34 = vsub.f32 0.0, %v40982_v6  ;;  %vm5205_vm15 = vcmp.eq.f32.partialorder %v41947_v13, 0.0  ;;  %31091 = vst [vmem:[#allocation2 + $0x580] sm:$0xff] %v30067_v10  ;;  %v45321_v39 = vld [vmem:[#allocation113_spill] sm:$0xff]  ;;  %v3588_v62 = vpop.permute.xlu0 %3587 }
 0x5c7   : > { %v30051_v21 = vadd.f32 %v29027_v44, %v28003_v24  ;;  %v10917_v50 = vsub.f32 0.0, %v41313_v0  ;;  %vm6229_vm10 = vcmp.gt.f32.partialorder %v41947_v13, 0.0  ;;  %vm8277_vm9 = vmand %vm5205_vm15, %vm7253_vm6  ;;  %vm5189_vm14 = vcmp.eq.f32.partialorder %v41950_v38, 0.0  ;;  %v37440_v54 = vpop.eup %37439 }
 0x5c8   : > { %v41969_v20 = vsel %vm9253_vm3, %v45314_v34, %v40982_v6  ;;  %v45315_v6 = vld [vmem:[#allocation217_spill] sm:$0xff]  ;;  %vm24723_vm3 = vcmp.gt.s32.totalorder %v40931_v55, %v45316_v59  ;;  %37447 = vlog2.f32 %v17429_v53  ;;  %vm9301_vm2 = vmor %vm6229_vm10, %vm8277_vm9  ;;  %vm6213_vm13 = vcmp.gt.f32.partialorder %v41950_v38, 0.0  ;;  %v3593_v53 = vpop.permute.xlu1 %3592 }
 0x5c9   : > { %v12325_v14 = vand.u32 2147483647, %v41969_v20  ;;  %v41982_v52 = vsub.f32 %v45315_v6, %v40876_v47  ;;  %31075 = vst [vmem:[#allocation2 + $0x500] sm:$0xff] %v30051_v21  ;;  %vm44559_vm7 = vcmp.eq.f32.partialorder %v41956_v48, 0.0  ;;  %v45317_v61 = vsub.f32 0.0, %v40989_v46  ;;  %vm8261_vm6 = vmand %vm5189_vm14, %vm7237_vm8  ;;  %v37442_v11 = vpop.eup %37441  ;;  %v45333_v6 = vld [vmem:[#allocation112_spill] sm:$0xff] }
 0x5ca   : > { %vm6261_vm10 = vcmp.gt.f32.partialorder %v41956_v48, 0.0  ;;  %v42001_v27 = vsub.f32 %v3578_v28, %v40941_v19  ;;  %v10965_v4 = vsub.f32 0.0, %v41328_v63  ;;  %v13301_v8 = vmax.f32 %v41593_v30, 0.0  ;;  %vm9285_vm9 = vmor %vm6213_vm13, %vm8261_vm6  ;;  %v45325_v30 = vld [vmem:[#allocation213_spill] sm:$0xff] }
 0x5cb   : > { %v14373_v45 = vsub.f32 0.0, %v12325_v14  ;;  %v41993_v23 = vsel %vm9301_vm2, %v45317_v61, %v40989_v46  ;;  %v17413_v31 = vadd.f32 1.0, %v37440_v54  ;;  %v18630_v46 = vmul.f32 0.6931472, %v37442_v11  ;;  %vm8309_vm8 = vmand %vm44559_vm7, %vm7285_vm4 }
 0x5cc   : > { %v12373_v42 = vand.u32 2147483647, %v41993_v23  ;;  %v45318_v33 = vsub.f32 0.0, %v40993_v43  ;;  %vm44558_vm2 = vcmp.eq.f32.partialorder %v42001_v27, 0.0  ;;  %v10949_v32 = vsub.f32 0.0, %v41982_v52  ;;  %vm9333_vm13 = vmor %vm6261_vm10, %vm8309_vm8 }
 0x5cd   : > { %v15653_v25 = vmul.f32 1.442695, %v14373_v45  ;;  %37449 = vlog2.f32 %v17413_v31  ;;  %v20469_v12 = vadd.f32 %v18630_v46, %v13301_v8  ;;  %vm45320_vm6 = vcmp.eq.f32.partialorder %v45319_v15, 0.0  ;;  %vm42037_vm10 = vmand %vm44558_vm2, %vm7269_vm0  ;;  %v45334_v8 = vld [vmem:[#allocation214_spill] sm:$0xff] }
 0x5ce   : > { %v42009_v51 = vsel %vm9285_vm9, %v45318_v33, %v40993_v43  ;;  %v14421_v36 = vsub.f32 0.0, %v12373_v42  ;;  %v37444_v43 = vpop.eup %37443  ;;  %v22517_v24 = vsel %vm45320_vm6, %v12277_v1, 0.0  ;;  %vm24771_vm4 = vcmp.gt.s32.totalorder %v40931_v55, %v45321_v39  ;;  %vm42047_vm8 = vmand %vm24739_vm5, %vm41962_vm12 }
 0x5cf   : > { %v12357_v60 = vand.u32 2147483647, %v42009_v51  ;;  %37451 = vpow2.f32 %v15653_v25  ;;  %v45322_v49 = vsub.f32 0.0, %v40997_v16  ;;  %vm7317_vm9 = vcmp.gt.f32.partialorder %v45325_v30, 0.0  ;;  %v37446_v34 = vpop.eup %37445 }
 0x5d0   : > { %v18598_v10 = vmul.f32 0.6931472, %v37444_v43  ;;  %v15749_v44 = vmul.f32 1.442695, %v14421_v36  ;;  %v21493_v28 = vmul.f32 2.0, %v20469_v12  ;;  %vm45328_vm0 = vcmp.lt.s32.totalorder %v40931_v55, 16 }
 0x5d1   : > { %v42031_v22 = vsel %vm9333_vm13, %v45322_v49, %v40997_v16  ;;  %v13285_v16 = vmax.f32 %v41648_v56, 0.0  ;;  %v14405_v21 = vsub.f32 0.0, %v12357_v60  ;;  %vm45329_vm13 = vcmp.lt.s32.totalorder %v45316_v59, 16  ;;  %v28051_v56 = vld [vmem:[#allocation2 + $0x680] sm:$0xff] }
 0x5d2   : > { %vm42058_vm6 = vmand %vm45329_vm13, %vm45328_vm0  ;;  %vm45332_vm5 = vcmp.eq.f32.partialorder %v41518_v58, 0.0  ;;  %vm24755_vm12 = vcmp.gt.s32.totalorder %v40931_v55, %v45333_v6  ;;  %v12405_v54 = vand.u32 2147483647, %v42031_v22  ;;  %vm6245_vm2 = vcmp.gt.f32.partialorder %v42001_v27, 0.0  ;;  %v37448_v33 = vpop.eup %37447 }
 0x5d3   : > { %v22501_v35 = vsel %vm45332_vm5, %v12261_v3, 0.0  ;;  %v20453_v45 = vadd.f32 %v18598_v10, %v13285_v16  ;;  %v17461_v61 = vadd.f32 1.0, %v37446_v34  ;;  %37453 = vpow2.f32 %v15749_v44  ;;  %vm9317_vm0 = vmor %vm6245_vm2, %vm42037_vm10  ;;  %v45338_v16 = vld [vmem:[#allocation215_spill] sm:$0xff]  ;;  %v28035_v44 = vld [vmem:[#allocation2 + $0x600] sm:$0xff]  ;;  %v3603_v34 = vpop.permute.xlu1 %3602 }
 0x5d4   : > { %v15717_v11 = vmul.f32 1.442695, %v14405_v21  ;;  %vm7301_vm13 = vcmp.gt.f32.partialorder %v45334_v8, 0.0  ;;  %v23541_v31 = vadd.f32 %v22517_v24, %v21493_v28  ;;  %v14453_v58 = vsub.f32 0.0, %v12405_v54  ;;  %vm42092_vm2 = vmand %vm24723_vm3, %vm42058_vm6 }
 0x5d5   : > { %v45335_v3 = vsub.f32 0.0, %v41002_v9  ;;  %v42081_v25 = vsub.f32 %v3593_v53, %v40941_v19  ;;  %v21477_v36 = vmul.f32 2.0, %v20453_v45  ;;  %v13333_v43 = vmax.f32 %v41766_v29, 0.0 }
 0x5d6   : > { %37455 = vlog2.f32 %v17461_v61  ;;  %v29075_v15 = vsel %vm42047_vm8, %v23541_v31, 0.0  ;;  %v18694_v24 = vmul.f32 0.6931472, %v37448_v33  ;;  %v15813_v49 = vmul.f32 1.442695, %v14453_v58  ;;  %v45347_v58 = vld [vmem:[#allocation139_spill] sm:$0xff] }
 0x5d7   : > { %v42078_v46 = vsel %vm9317_vm0, %v45335_v3, %v41002_v9  ;;  %37457 = vpow2.f32 %v15717_v11  ;;  %vm7349_vm10 = vcmp.gt.f32.partialorder %v45338_v16, 0.0  ;;  %v30099_v10 = vadd.f32 %v29075_v15, %v28051_v56  ;;  %v37450_v26 = vpop.eup %37449  ;;  %v45351_v9 = vld [vmem:[#allocation223_spill] sm:$0xff] }
 0x5d8   : > { %v12389_v12 = vand.u32 2147483647, %v42078_v46  ;;  %v23525_v21 = vadd.f32 %v22501_v35, %v21477_v36  ;;  %vm45339_vm8 = vcmp.lt.s32.totalorder %v40931_v55, 16  ;;  %vm45340_vm5 = vcmp.lt.s32.totalorder %v45321_v39, 16 }
 0x5d9   : > { %vm42101_vm0 = vmand %vm45340_vm5, %vm45339_vm8  ;;  %v22549_v59 = vsel %vm5141_vm11, %v12309_v5, 0.0  ;;  %v20501_v28 = vadd.f32 %v18694_v24, %v13333_v43  ;;  %vm45344_vm6 = vcmp.lt.s32.totalorder %v45333_v6, 16  ;;  %37459 = vpow2.f32 %v15813_v49  ;;  %31123 = vst [vmem:[#allocation2 + $0x680] sm:$0xff] %v30099_v10  ;;  %v37452_v61 = vpop.eup %37451  ;;  %v28083_v49 = vld [vmem:[#allocation2 + $0x780] sm:$0xff] }
 0x5da   : > { %v14437_v53 = vsub.f32 0.0, %v12389_v12  ;;  %vm45343_vm3 = vmmov %vm45339_vm8  ;;  %vm44560_vm8 = vcmp.eq.f32.partialorder %v42081_v25, 0.0  ;;  %vm6293_vm5 = vcmp.gt.f32.partialorder %v42081_v25, 0.0  ;;  %v29059_v29 = vsel %vm42092_vm2, %v23525_v21, 0.0  ;;  %v45352_v10 = vld [vmem:[#allocation137_spill] sm:$0xff] }
 0x5db   : > { %vm42115_vm7 = vmand %vm45344_vm6, %vm45343_vm3  ;;  %v13317_v5 = vmax.f32 %v41822_v41, 0.0  ;;  %v42129_v45 = vsub.f32 %v3588_v62, %v40941_v19  ;;  %v30083_v11 = vadd.f32 %v29059_v29, %v28035_v44  ;;  %v21525_v56 = vmul.f32 2.0, %v20501_v28 }
 0x5dc   : > { %v15781_v35 = vmul.f32 1.442695, %v14437_v53  ;;  %vm8341_vm11 = vmand %vm44560_vm8, %vm7317_vm9  ;;  %v18662_v31 = vmul.f32 0.6931472, %v37450_v26  ;;  %vm24803_vm3 = vcmp.gt.s32.totalorder %v40931_v55, %v45347_v58  ;;  %v42134_v3 = vsub.f32 %v3603_v34, %v40941_v19 }
 0x5dd   : > { %vm9365_vm6 = vmor %vm6293_vm5, %vm8341_vm11  ;;  %v17445_v36 = vadd.f32 1.0, %v37452_v61  ;;  %v45350_v43 = vsub.f32 0.0, %v45325_v30  ;;  %vm5253_vm2 = vcmp.eq.f32.partialorder %v42129_v45, 0.0  ;;  %v42153_v24 = vsub.f32 %v45351_v9, %v40876_v47  ;;  %31107 = vst [vmem:[#allocation2 + $0x600] sm:$0xff] %v30083_v11  ;;  %v28067_v11 = vld [vmem:[#allocation2 + $0x700] sm:$0xff]  ;;  %v3598_v9 = vpop.permute.xlu0 %3597 }
 0x5de   : > { %vm42141_vm9 = vmand %vm24771_vm4, %vm42101_vm0  ;;  %37461 = vpow2.f32 %v15781_v35  ;;  %v23573_v39 = vadd.f32 %v22549_v59, %v21525_v56  ;;  %v20485_v62 = vadd.f32 %v18662_v31, %v13317_v5  ;;  %vm24787_vm4 = vcmp.gt.s32.totalorder %v40931_v55, %v45352_v10  ;;  %v45356_v35 = vld [vmem:[#allocation216_spill] sm:$0xff] }
 0x5df   : > { %v42148_v15 = vsel %vm9365_vm6, %v45350_v43, %v45325_v30  ;;  %vm8325_vm0 = vmand %vm5253_vm2, %vm7301_vm13  ;;  %v37454_v30 = vpop.eup %37453  ;;  %37463 = vlog2.f32 %v17445_v36  ;;  %vm6277_vm11 = vcmp.gt.f32.partialorder %v42129_v45, 0.0  ;;  %vm44561_vm6 = vcmp.eq.f32.partialorder %v42134_v3, 0.0 }
 0x5e0   : > { %v12437_v44 = vand.u32 2147483647, %v42148_v15  ;;  %vm42167_vm5 = vmand %vm24755_vm12, %vm42115_vm7  ;;  %vm6325_vm8 = vcmp.gt.f32.partialorder %v42134_v3, 0.0  ;;  %v29107_v1 = vsel %vm42141_vm9, %v23573_v39, 0.0  ;;  %v21509_v59 = vmul.f32 2.0, %v20485_v62  ;;  %v37456_v6 = vpop.eup %37455 }
 0x5e1   : > { %v17493_v53 = vadd.f32 1.0, %v37454_v30  ;;  %vm9349_vm13 = vmor %vm6277_vm11, %vm8325_vm0  ;;  %v30131_v28 = vadd.f32 %v29107_v1, %v28083_v49  ;;  %v22533_v40 = vsel %vm5125_vm1, %v12293_v57, 0.0  ;;  %v13365_v26 = vmax.f32 %v41882_v17, 0.0  ;;  %v37458_v61 = vpop.eup %37457  ;;  %v45357_v57 = vld [vmem:[#allocation224_spill] sm:$0xff]  ;;  %v45359_v49 = vld [vmem:[#allocation218_spill] sm:$0xff] }
 0x5e2   : > { %v14485_v34 = vsub.f32 0.0, %v12437_v44  ;;  %v45355_v29 = vsub.f32 0.0, %v45334_v8  ;;  %vm8373_vm7 = vmand %vm44561_vm6, %vm7349_vm10  ;;  %vm7333_vm12 = vcmp.gt.f32.partialorder %v45356_v35, 0.0  ;;  %v23557_v41 = vadd.f32 %v22533_v40, %v21509_v59 }
 0x5e3   : > { %v18758_v56 = vmul.f32 0.6931472, %v37456_v6  ;;  %37465 = vlog2.f32 %v17493_v53  ;;  %vm9397_vm1 = vmor %vm6325_vm8, %vm8373_vm7  ;;  %31155 = vst [vmem:[#allocation2 + $0x780] sm:$0xff] %v30131_v28  ;;  %v17477_v31 = vadd.f32 1.0, %v37458_v61  ;;  %v45358_v36 = vsub.f32 0.0, %v45338_v16  ;;  %v37460_v39 = vpop.eup %37459  ;;  %v3613_v61 = vpop.permute.xlu1 %3612 }
 0x5e4   : > { %v42186_v5 = vsel %vm9349_vm13, %v45355_v29, %v45334_v8  ;;  %v15877_v18 = vmul.f32 1.442695, %v14485_v34  ;;  %v42197_v8 = vsub.f32 %v45357_v57, %v40876_v47  ;;  %vm7381_vm10 = vcmp.gt.f32.partialorder %v45359_v49, 0.0 }
 0x5e5   : > { %v12421_v33 = vand.u32 2147483647, %v42186_v5  ;;  %v42203_v43 = vsel %vm9397_vm1, %v45358_v36, %v45338_v16  ;;  %v29091_v62 = vsel %vm42167_vm5, %v23557_v41, 0.0  ;;  %vm45360_vm8 = vcmp.lt.s32.totalorder %v40931_v55, 16 }
 0x5e6   : > { %vm45361_vm9 = vcmp.lt.s32.totalorder %v45347_v58, 16  ;;  %v20533_v1 = vadd.f32 %v18758_v56, %v13365_v26  ;;  %37467 = vpow2.f32 %v15877_v18  ;;  %v12469_v16 = vand.u32 2147483647, %v42203_v43  ;;  %vm45365_vm11 = vmmov %vm45360_vm8  ;;  %v45369_v26 = vld [vmem:[#allocation160_spill] sm:$0xff] }
 0x5e7   : > { %vm42212_vm0 = vmand %vm45361_vm9, %vm45360_vm8  ;;  %v30115_v59 = vadd.f32 %v29091_v62, %v28067_v11  ;;  %37469 = vlog2.f32 %v17477_v31  ;;  %v17525_v53 = vadd.f32 1.0, %v37460_v39  ;;  %v14469_v34 = vsub.f32 0.0, %v12421_v33  ;;  %v45370_v11 = vld [vmem:[#allocation219_spill] sm:$0xff]  ;;  %v28115_v18 = vld [vmem:[#allocation2 + $0x880] sm:$0xff] }
 0x5e8   : > { %v10997_v21 = vsub.f32 0.0, %v42153_v24  ;;  %v21557_v6 = vmul.f32 2.0, %v20533_v1  ;;  %vm45364_vm5 = vcmp.eq.f32.partialorder %v41797_v37, 0.0  ;;  %vm45366_vm13 = vcmp.lt.s32.totalorder %v45352_v10, 16  ;;  %v37462_v17 = vpop.eup %37461  ;;  %vm42242_vm9 = vmand %vm24803_vm3, %vm42212_vm0  ;;  %v45376_v10 = vld [vmem:[#allocation158_spill] sm:$0xff] }
 0x5e9   : > { %v22581_v28 = vsel %vm45364_vm5, %v12341_v7, 0.0  ;;  %vm42228_vm7 = vmand %vm45366_vm13, %vm45365_vm11  ;;  %vm24835_vm1 = vcmp.gt.s32.totalorder %v40931_v55, %v45369_v26  ;;  %v14517_v29 = vsub.f32 0.0, %v12469_v16  ;;  %vm7365_vm8 = vcmp.gt.f32.partialorder %v45370_v11, 0.0  ;;  %31139 = vst [vmem:[#allocation2 + $0x700] sm:$0xff] %v30115_v59  ;;  %v37464_v39 = vpop.eup %37463  ;;  %v45377_v59 = vld [vmem:[#allocation65_spill] sm:$0xff] }
 0x5ea   : > { %v13349_v7 = vmax.f32 %v41969_v20, 0.0  ;;  %37471 = vlog2.f32 %v17525_v53  ;;  %v15845_v41 = vmul.f32 1.442695, %v14469_v34  ;;  %v42248_v56 = vsub.f32 %v3598_v9, %v40941_v19  ;;  %vm42259_vm3 = vmand %vm24787_vm4, %vm42228_vm7  ;;  %v3608_v20 = vpop.permute.xlu0 %3607 }
 0x5eb   : > { %v23605_v57 = vadd.f32 %v22581_v28, %v21557_v6  ;;  %vm45373_vm5 = vcmp.eq.f32.partialorder %v41862_v2, 0.0  ;;  %v17509_v36 = vadd.f32 1.0, %v37462_v17  ;;  %v15941_v58 = vmul.f32 1.442695, %v14517_v29 }
 0x5ec   : > { %v22565_v31 = vsel %vm45373_vm5, %v12325_v14, 0.0  ;;  %37473 = vpow2.f32 %v15845_v41  ;;  %vm5285_vm0 = vcmp.eq.f32.partialorder %v42248_v56, 0.0  ;;  %vm6309_vm11 = vcmp.gt.f32.partialorder %v42248_v56, 0.0 }
 0x5ed   : > { %v42266_v2 = vsub.f32 %v3613_v61, %v40941_v19  ;;  %v29139_v14 = vsel %vm42242_vm9, %v23605_v57, 0.0  ;;  %v18726_v9 = vmul.f32 0.6931472, %v37464_v39  ;;  %v13397_v30 = vmax.f32 %v41993_v23, 0.0  ;;  %vm8357_vm13 = vmand %vm5285_vm0, %vm7333_vm12  ;;  %v37466_v53 = vpop.eup %37465 }
 0x5ee   : > { %vm24819_vm4 = vcmp.gt.s32.totalorder %v40931_v55, %v45376_v10  ;;  %37475 = vlog2.f32 %v17509_v36  ;;  %v30163_v1 = vadd.f32 %v29139_v14, %v28115_v18  ;;  %vm24867_vm7 = vcmp.gt.s32.totalorder %v40931_v55, %v45377_v59  ;;  %vm9381_vm5 = vmor %vm6309_vm11, %vm8357_vm13  ;;  %v45384_v18 = vld [vmem:[#allocation22_spill] sm:$0xff] }
 0x5ef   : > { %37477 = vpow2.f32 %v15941_v58  ;;  %vm5333_vm9 = vcmp.eq.f32.partialorder %v42266_v2, 0.0  ;;  %vm6357_vm6 = vcmp.gt.f32.partialorder %v42266_v2, 0.0  ;;  %v20517_v34 = vadd.f32 %v18726_v9, %v13349_v7  ;;  %v3623_v9 = vpop.permute.xlu1 %3622  ;;  %v45468_v2 = vld [vmem:[#allocation202_spill] sm:$0xff] }
 0x5f0   : > { %v22613_v6 = vsel %vm5205_vm15, %v12373_v42, 0.0  ;;  %v45378_v28 = vsub.f32 0.0, %v45356_v35  ;;  %vm8405_vm12 = vmand %vm5333_vm9, %vm7381_vm10  ;;  %v42295_v29 = vsub.f32 %v3608_v20, %v40941_v19  ;;  %31187 = vst [vmem:[#allocation2 + $0x880] sm:$0xff] %v30163_v1  ;;  %v18822_v61 = vmul.f32 0.6931472, %v37466_v53 }
 0x5f1   : > { %v13381_v23 = vmax.f32 %v42009_v51, 0.0  ;;  %v22597_v13 = vsel %vm5189_vm14, %v12357_v60, 0.0  ;;  %vm9429_vm15 = vmor %vm6357_vm6, %vm8405_vm12  ;;  %v21541_v17 = vmul.f32 2.0, %v20517_v34  ;;  %vm45379_vm11 = vcmp.lt.s32.totalorder %v40931_v55, 16 }
 0x5f2   : > { %v42288_v40 = vsel %vm9381_vm5, %v45378_v28, %v45356_v35  ;;  %v37468_v35 = vpop.eup %37467  ;;  %vm45380_vm10 = vcmp.lt.s32.totalorder %v45369_v26, 16  ;;  %v45383_v7 = vsub.f32 0.0, %v45359_v49  ;;  %vm5317_vm14 = vcmp.eq.f32.partialorder %v42295_v29, 0.0 }
 0x5f3   : > { %v12453_v42 = vand.u32 2147483647, %v42288_v40  ;;  %vm42307_vm13 = vmand %vm45380_vm10, %vm45379_vm11  ;;  %vm6341_vm5 = vcmp.gt.f32.partialorder %v42295_v29, 0.0  ;;  %v37470_v38 = vpop.eup %37469  ;;  %v20565_v60 = vadd.f32 %v18822_v61, %v13397_v30  ;;  %v13429_v41 = vmax.f32 %v42031_v22, 0.0  ;;  %v45386_v30 = vld [vmem:[#allocation220_spill] sm:$0xff] }
 0x5f4   : > { %v42314_v51 = vsel %vm9429_vm15, %v45383_v7, %v45359_v49  ;;  %vm24851_vm6 = vcmp.gt.s32.totalorder %v40931_v55, %v45384_v18  ;;  %v17557_v57 = vadd.f32 1.0, %v37468_v35  ;;  %vm8389_vm12 = vmand %vm5317_vm14, %vm7365_vm8  ;;  %v28099_v49 = vld [vmem:[#allocation2 + $0x800] sm:$0xff]  ;;  %v23589_v58 = vadd.f32 %v22565_v31, %v21541_v17  ;;  %v37472_v1 = vpop.eup %37471 }
 0x5f5   : > { %v14501_v36 = vsub.f32 0.0, %v12453_v42  ;;  %v18790_v39 = vmul.f32 0.6931472, %v37470_v38  ;;  %vm45385_vm15 = vcmp.eq.f32.partialorder %v41956_v48, 0.0  ;;  %v12501_v14 = vand.u32 2147483647, %v42314_v51  ;;  %vm9413_vm11 = vmor %vm6341_vm5, %vm8389_vm12 }
 0x5f6   : > { %v22645_v20 = vsel %vm45385_vm15, %v12405_v54, 0.0  ;;  %vm7413_vm10 = vcmp.gt.f32.partialorder %v45386_v30, 0.0  ;;  %vm42338_vm8 = vmand %vm24835_vm1, %vm42307_vm13  ;;  %v21589_v22 = vmul.f32 2.0, %v20565_v60  ;;  %37479 = vlog2.f32 %v17557_v57  ;;  %v37474_v17 = vpop.eup %37473 }
 0x5f7   : > { %v15909_v48 = vmul.f32 1.442695, %v14501_v36  ;;  %v45389_v54 = vsub.f32 0.0, %v45370_v11  ;;  %v29123_v34 = vsel %vm42259_vm3, %v23589_v58, 0.0  ;;  %vm45390_vm5 = vcmp.lt.s32.totalorder %v40931_v55, 16 }
 0x5f8   : > { %vm45391_vm12 = vcmp.lt.s32.totalorder %v45376_v10, 16  ;;  %v20549_v28 = vadd.f32 %v18790_v39, %v13381_v23  ;;  %v18886_v61 = vmul.f32 0.6931472, %v37472_v1  ;;  %v14549_v35 = vsub.f32 0.0, %v12501_v14  ;;  %vm45394_vm1 = vmmov %vm45390_vm5  ;;  %v37476_v23 = vpop.eup %37475 }
 0x5f9   : > { %v42345_v53 = vsel %vm9413_vm11, %v45389_v54, %v45370_v11  ;;  %vm42353_vm15 = vmand %vm45391_vm12, %vm45390_vm5  ;;  %v30147_v37 = vadd.f32 %v29123_v34, %v28099_v49  ;;  %v28147_v11 = vld [vmem:[#allocation2 + $0x980] sm:$0xff]  ;;  %v23637_v7 = vadd.f32 %v22613_v6, %v21589_v22  ;;  %vm45395_vm3 = vcmp.lt.s32.totalorder %v45377_v59, 16  ;;  %v37478_v6 = vpop.eup %37477 }
 0x5fa   : > { %vm42363_vm13 = vmand %vm45395_vm3, %vm45394_vm1  ;;  %37481 = vpow2.f32 %v15909_v48  ;;  %v42368_v38 = vsub.f32 %v3623_v9, %v40941_v19  ;;  %v21573_v60 = vmul.f32 2.0, %v20549_v28  ;;  %v20597_v57 = vadd.f32 %v18886_v61, %v13429_v41  ;;  %v45398_v49 = vld [vmem:[#allocation221_spill] sm:$0xff]  ;;  %v3618_v61 = vpop.permute.xlu0 %3617 }
 0x5fb   : > { %v17541_v36 = vadd.f32 1.0, %v37474_v17  ;;  %v16005_v58 = vmul.f32 1.442695, %v14549_v35  ;;  %vm7397_vm11 = vcmp.gt.f32.partialorder %v45398_v49, 0.0  ;;  %31171 = vst [vmem:[#allocation2 + $0x800] sm:$0xff] %v30147_v37  ;;  %v29171_v39 = vsel %vm42338_vm8, %v23637_v7, 0.0  ;;  %vm42378_vm5 = vmand %vm24819_vm4, %vm42353_vm15 }
 0x5fc   : > { %v13413_v41 = vmax.f32 %v42078_v46, 0.0  ;;  %v18854_v1 = vmul.f32 0.6931472, %v37476_v23  ;;  %v12485_v22 = vand.u32 2147483647, %v42345_v53  ;;  %v30195_v48 = vadd.f32 %v29171_v39, %v28147_v11  ;;  %v28131_v54 = vld [vmem:[#allocation2 + $0x900] sm:$0xff]  ;;  %vm42389_vm8 = vmand %vm24867_vm7, %vm42363_vm13 }
 0x5fd   : > { %v23621_v34 = vadd.f32 %v22597_v13, %v21573_v60  ;;  %v21621_v10 = vmul.f32 2.0, %v20597_v57  ;;  %37483 = vlog2.f32 %v17541_v36  ;;  %vm45403_vm4 = vmmov %vm45394_vm1  ;;  %vm45404_vm12 = vcmp.lt.s32.totalorder %v45384_v18, 16  ;;  %v45407_v35 = vld [vmem:[#allocation222_spill] sm:$0xff]  ;;  %v28179_v37 = vld [vmem:[#allocation2 + $0xa80] sm:$0xff] }
 0x5fe   : > { %vm42397_vm15 = vmand %vm45404_vm12, %vm45403_vm4  ;;  %v20581_v13 = vadd.f32 %v18854_v1, %v13413_v41  ;;  %v17589_v28 = vadd.f32 1.0, %v37478_v6  ;;  %37485 = vpow2.f32 %v16005_v58  ;;  %v14533_v59 = vsub.f32 0.0, %v12485_v22  ;;  %31219 = vst [vmem:[#allocation2 + $0x980] sm:$0xff] %v30195_v48  ;;  %v45408_v7 = vld [vmem:[#allocation186_spill] sm:$0xff]  ;;  %v3633_v6 = vpop.permute.xlu1 %3632  ;;  %v28163_v41 = vld [vmem:[#allocation2 + $0xa00] sm:$0xff] }
 0x5ff   : > { %vm7445_vm7 = vcmp.gt.f32.partialorder %v45407_v35, 0.0  ;;  %v29155_v17 = vsel %vm42378_vm5, %v23621_v34, 0.0  ;;  %v23669_v11 = vadd.f32 %v22645_v20, %v21621_v10  ;;  %vm24899_vm1 = vcmp.gt.s32.totalorder %v40931_v55, %v45408_v7  ;;  %vm42420_vm5 = vmand %vm24851_vm6, %vm42397_vm15  ;;  %v45412_v48 = vld [vmem:[#allocation225_spill] sm:$0xff]  ;;  %v45418_v10 = vld [vmem:[#allocation183_spill] sm:$0xff] }
 0x600   : > { %vm44562_vm3 = vcmp.eq.f32.partialorder %v42368_v38, 0.0  ;;  %v30179_v62 = vadd.f32 %v29155_v17, %v28131_v54  ;;  %v21605_v23 = vmul.f32 2.0, %v20581_v13  ;;  %37487 = vlog2.f32 %v17589_v28  ;;  %v37480_v39 = vpop.eup %37479  ;;  %v3628_v17 = vpop.permute.xlu0 %3627 }
 0x601   : > { %v15973_v60 = vmul.f32 1.442695, %v14533_v59  ;;  %vm8437_vm13 = vmand %vm44562_vm3, %vm7413_vm10  ;;  %v29203_v57 = vsel %vm42389_vm8, %v23669_v11, 0.0  ;;  %vm45411_vm4 = vcmp.eq.f32.partialorder %v42001_v27, 0.0  ;;  %vm6389_vm12 = vcmp.gt.f32.partialorder %v42368_v38, 0.0  ;;  %v45419_v59 = vld [vmem:[#allocation192_spill] sm:$0xff] }
 0x602   : > { %v22629_v36 = vsel %vm45411_vm4, %v12389_v12, 0.0  ;;  %v42430_v58 = vsub.f32 %v3618_v61, %v40941_v19  ;;  %31203 = vst [vmem:[#allocation2 + $0x900] sm:$0xff] %v30179_v62  ;;  %v30227_v9 = vadd.f32 %v29203_v57, %v28179_v37  ;;  %v13461_v1 = vmax.f32 %v42148_v15, 0.0  ;;  %vm9461_vm6 = vmor %vm6389_vm12, %vm8437_vm13  ;;  %v45428_v27 = vld [vmem:[#allocation226_spill] sm:$0xff] }
 0x603   : > { %v23653_v18 = vadd.f32 %v22629_v36, %v21605_v23  ;;  %37489 = vpow2.f32 %v15973_v60  ;;  %vm7429_vm10 = vcmp.gt.f32.partialorder %v45412_v48, 0.0  ;;  %vm45413_vm8 = vcmp.lt.s32.totalorder %v40931_v55, 16 }
 0x604   : > { %vm45414_vm15 = vcmp.lt.s32.totalorder %v45408_v7, 16  ;;  %v18950_v46 = vmul.f32 0.6931472, %v37480_v39  ;;  %v45417_v12 = vsub.f32 0.0, %v45386_v30  ;;  %vm5349_vm3 = vcmp.eq.f32.partialorder %v42430_v58, 0.0  ;;  %v37482_v34 = vpop.eup %37481  ;;  %31251 = vst [vmem:[#allocation2 + $0xa80] sm:$0xff] %v30227_v9 }
 0x605   : > { %vm42438_vm4 = vmand %vm45414_vm15, %vm45413_vm8  ;;  %vm6373_vm13 = vcmp.gt.f32.partialorder %v42430_v58, 0.0  ;;  %v29187_v31 = vsel %vm42420_vm5, %v23653_v18, 0.0  ;;  %vm24883_vm12 = vcmp.gt.s32.totalorder %v40931_v55, %v45418_v10  ;;  %vm24931_vm8 = vcmp.gt.s32.totalorder %v40931_v55, %v45419_v59  ;;  %v28211_v39 = vld [vmem:[#allocation2 + $0xb80] sm:$0xff] }
 0x606   : > { %v42445_v54 = vsel %vm9461_vm6, %v45417_v12, %v45386_v30  ;;  %vm8421_vm6 = vmand %vm5349_vm3, %vm7397_vm11  ;;  %v42459_v30 = vsub.f32 %v3633_v6, %v40941_v19  ;;  %v30211_v13 = vadd.f32 %v29187_v31, %v28163_v41  ;;  %v20629_v28 = vadd.f32 %v18950_v46, %v13461_v1 }
 0x607   : > { %v12533_v26 = vand.u32 2147483647, %v42445_v54  ;;  %v17573_v61 = vadd.f32 1.0, %v37482_v34  ;;  %vm9445_vm5 = vmor %vm6373_vm13, %vm8421_vm6  ;;  %vm45422_vm11 = vcmp.eq.f32.partialorder %v42081_v25, 0.0  ;;  %v45423_v23 = vsub.f32 0.0, %v45398_v49  ;;  %v37484_v7 = vpop.eup %37483 }
 0x608   : > { %vm42468_vm15 = vmand %vm24899_vm1, %vm42438_vm4  ;;  %v22677_v11 = vsel %vm45422_vm11, %v12437_v44, 0.0  ;;  %vm5397_vm13 = vcmp.eq.f32.partialorder %v42459_v30, 0.0  ;;  %31235 = vst [vmem:[#allocation2 + $0xa00] sm:$0xff] %v30211_v13  ;;  %v21653_v57 = vmul.f32 2.0, %v20629_v28  ;;  %v13445_v20 = vmax.f32 %v42186_v5, 0.0  ;;  %v37486_v25 = vpop.eup %37485  ;;  %v45438_v5 = vld [vmem:[#allocation227_spill] sm:$0xff] }
 0x609   : > { %v14581_v62 = vsub.f32 0.0, %v12533_v26  ;;  %v42481_v60 = vsel %vm9445_vm5, %v45423_v23, %v45398_v49  ;;  %37491 = vlog2.f32 %v17573_v61  ;;  %vm8469_vm1 = vmand %vm5397_vm13, %vm7445_vm7  ;;  %vm45424_vm4 = vcmp.lt.s32.totalorder %v40931_v55, 16 }
 0x60a   : > { %v12517_v15 = vand.u32 2147483647, %v42481_v60  ;;  %vm45425_vm6 = vcmp.lt.s32.totalorder %v45418_v10, 16  ;;  %v18918_v49 = vmul.f32 0.6931472, %v37484_v7  ;;  %vm6421_vm11 = vcmp.gt.f32.partialorder %v42459_v30, 0.0  ;;  %v37488_v46 = vpop.eup %37487 }
 0x60b   : > { %vm42494_vm5 = vmand %vm45425_vm6, %vm45424_vm4  ;;  %v16069_v36 = vmul.f32 1.442695, %v14581_v62  ;;  %v42500_v6 = vsub.f32 %v3628_v17, %v40941_v19  ;;  %v23701_v9 = vadd.f32 %v22677_v11, %v21653_v57  ;;  %v13493_v41 = vmax.f32 %v42203_v43, 0.0  ;;  %v3643_v57 = vpop.permute.xlu1 %3642  ;;  %v28243_v17 = vld [vmem:[#allocation2 + $0xc80] sm:$0xff]  ;;  %v45505_v30 = vld [vmem:[#allocation234_spill] sm:$0xff] }
 0x60c   : > { %v17621_v18 = vadd.f32 1.0, %v37486_v25  ;;  %v14565_v1 = vsub.f32 0.0, %v12517_v15  ;;  %vm9493_vm7 = vmor %vm6421_vm11, %vm8469_vm1  ;;  %vm7477_vm4 = vcmp.gt.f32.partialorder %v45428_v27, 0.0  ;;  %v20613_v12 = vadd.f32 %v18918_v49, %v13445_v20  ;;  %v45439_v49 = vld [vmem:[#allocation189_spill] sm:$0xff] }
 0x60d   : > { %37493 = vpow2.f32 %v16069_v36  ;;  %v45429_v34 = vsub.f32 0.0, %v45407_v35  ;;  %vm44563_vm6 = vcmp.eq.f32.partialorder %v42500_v6, 0.0  ;;  %v29235_v13 = vsel %vm42468_vm15, %v23701_v9, 0.0  ;;  %v37490_v11 = vpop.eup %37489  ;;  %vm42527_vm11 = vmand %vm24883_vm12, %vm42494_vm5 }
 0x60e   : > { %v19014_v28 = vmul.f32 0.6931472, %v37488_v46  ;;  %37495 = vlog2.f32 %v17621_v18  ;;  %v16037_v61 = vmul.f32 1.442695, %v14565_v1  ;;  %vm42518_vm1 = vmand %vm44563_vm6, %vm7429_vm10  ;;  %v30259_v62 = vadd.f32 %v29235_v13, %v28211_v39  ;;  %v3638_v13 = vpop.permute.xlu0 %3637 }
 0x60f   : > { %v42509_v31 = vsel %vm9493_vm7, %v45429_v34, %v45407_v35  ;;  %v21637_v37 = vmul.f32 2.0, %v20613_v12  ;;  %v22661_v23 = vsel %vm5253_vm2, %v12421_v33, 0.0  ;;  %vm45434_vm10 = vcmp.lt.s32.totalorder %v40931_v55, 16  ;;  %v28195_v33 = vld [vmem:[#allocation2 + $0xb00] sm:$0xff] }
 0x610   : > { %v12565_v7 = vand.u32 2147483647, %v42509_v31  ;;  %vm45435_vm15 = vcmp.lt.s32.totalorder %v45419_v59, 16  ;;  %v20661_v10 = vadd.f32 %v19014_v28, %v13493_v41  ;;  %v17605_v25 = vadd.f32 1.0, %v37490_v11  ;;  %31283 = vst [vmem:[#allocation2 + $0xb80] sm:$0xff] %v30259_v62  ;;  %v45449_v35 = vld [vmem:[#allocation236_spill] sm:$0xff] }
 0x611   : > { %vm42540_vm7 = vmand %vm45435_vm15, %vm45434_vm10  ;;  %37497 = vpow2.f32 %v16037_v61  ;;  %vm6405_vm12 = vcmp.gt.f32.partialorder %v42500_v6, 0.0  ;;  %vm7461_vm5 = vcmp.gt.f32.partialorder %v45438_v5, 0.0  ;;  %v10981_v45 = vsub.f32 0.0, %v42197_v8  ;;  %v28227_v59 = vld [vmem:[#allocation2 + $0xc00] sm:$0xff] }
 0x612   : > { %v23685_v44 = vadd.f32 %v22661_v23, %v21637_v37  ;;  %vm24915_vm2 = vcmp.gt.s32.totalorder %v40931_v55, %v45439_v49  ;;  %v14613_v36 = vsub.f32 0.0, %v12565_v7  ;;  %vm9477_vm10 = vmor %vm6405_vm12, %vm42518_vm1  ;;  %v21685_v39 = vmul.f32 2.0, %v20661_v10 }
 0x613   : > { %37499 = vlog2.f32 %v17605_v25  ;;  %v45440_v9 = vsub.f32 0.0, %v45412_v48  ;;  %v42559_v18 = vsub.f32 %v3643_v57, %v40941_v19  ;;  %vm42568_vm15 = vmand %vm24931_vm8, %vm42540_vm7  ;;  %vm45443_vm1 = vcmp.eq.f32.partialorder %v42134_v3, 0.0  ;;  %v37492_v28 = vpop.eup %37491  ;;  %v45448_v3 = vld [vmem:[#allocation228_spill] sm:$0xff]  ;;  %v45450_v57 = vld [vmem:[#allocation198_spill] sm:$0xff] }
 0x614   : > { %v29219_v1 = vsel %vm42527_vm11, %v23685_v44, 0.0  ;;  %v16133_v12 = vmul.f32 1.442695, %v14613_v36  ;;  %vm45444_vm11 = vcmp.lt.s32.totalorder %v40931_v55, 16  ;;  %vm45445_vm8 = vcmp.lt.s32.totalorder %v45439_v49, 16 }
 0x615   : > { %v42556_v41 = vsel %vm9477_vm10, %v45440_v9, %v45412_v48  ;;  %v22709_v48 = vsel %vm45443_vm1, %v12469_v16, 0.0  ;;  %v30243_v61 = vadd.f32 %v29219_v1, %v28195_v33  ;;  %vm42581_vm7 = vmand %vm45445_vm8, %vm45444_vm11  ;;  %vm5429_vm12 = vcmp.eq.f32.partialorder %v42559_v18, 0.0  ;;  %v3653_v9 = vpop.permute.xlu1 %3652 }
 0x616   : > { %v12549_v34 = vand.u32 2147483647, %v42556_v41  ;;  %v23733_v11 = vadd.f32 %v22709_v48, %v21685_v39  ;;  %vm6453_vm10 = vcmp.gt.f32.partialorder %v42559_v18, 0.0  ;;  %vm7509_vm1 = vcmp.gt.f32.partialorder %v45448_v3, 0.0  ;;  %vm8501_vm11 = vmand %vm5429_vm12, %vm7477_vm4 }
 0x617   : > { %v13477_v43 = vmax.f32 %v42288_v40, 0.0  ;;  %v18982_v16 = vmul.f32 0.6931472, %v37492_v28  ;;  %37501 = vpow2.f32 %v16133_v12  ;;  %v42597_v37 = vsub.f32 %v45449_v35, %v40876_v47  ;;  %31267 = vst [vmem:[#allocation2 + $0xb00] sm:$0xff] %v30243_v61  ;;  %vm9525_vm6 = vmor %vm6453_vm10, %vm8501_vm11  ;;  %v37494_v10 = vpop.eup %37493  ;;  %v45459_v35 = vld [vmem:[#allocation229_spill] sm:$0xff] }
 0x618   : > { %v14597_v62 = vsub.f32 0.0, %v12549_v34  ;;  %v29267_v23 = vsel %vm42568_vm15, %v23733_v11, 0.0  ;;  %vm24963_vm8 = vcmp.gt.s32.totalorder %v40931_v55, %v45450_v57  ;;  %v42604_v20 = vsub.f32 %v3638_v13, %v40941_v19  ;;  %v37496_v1 = vpop.eup %37495  ;;  %vm42616_vm4 = vmand %vm24915_vm2, %vm42581_vm7 }
 0x619   : > { %v30291_v25 = vadd.f32 %v29267_v23, %v28243_v17  ;;  %v20645_v33 = vadd.f32 %v18982_v16, %v13477_v43  ;;  %v45451_v36 = vsub.f32 0.0, %v45428_v27  ;;  %v13525_v48 = vmax.f32 %v42314_v51, 0.0 }
 0x61a   : > { %v16101_v44 = vmul.f32 1.442695, %v14597_v62  ;;  %v17653_v12 = vadd.f32 1.0, %v37494_v10  ;;  %vm44565_vm15 = vcmp.eq.f32.partialorder %v42604_v20, 0.0  ;;  %v19078_v28 = vmul.f32 0.6931472, %v37496_v1  ;;  %v3648_v1 = vpop.permute.xlu0 %3647 }
 0x61b   : > { %v42609_v39 = vsel %vm9525_vm6, %v45451_v36, %v45428_v27  ;;  %31315 = vst [vmem:[#allocation2 + $0xc80] sm:$0xff] %v30291_v25  ;;  %v21669_v27 = vmul.f32 2.0, %v20645_v33  ;;  %vm6437_vm6 = vcmp.gt.f32.partialorder %v42604_v20, 0.0  ;;  %vm8485_vm2 = vmand %vm44565_vm15, %vm7461_vm5  ;;  %v37498_v49 = vpop.eup %37497  ;;  %v22693_v61 = vsel %vm5285_vm0, %v12453_v42, 0.0 }
 0x61c   : > { %v12597_v13 = vand.u32 2147483647, %v42609_v39  ;;  %37503 = vpow2.f32 %v16101_v44  ;;  %vm9509_vm7 = vmor %vm6437_vm6, %vm8485_vm2  ;;  %v42635_v11 = vsub.f32 %v3653_v9, %v40941_v19  ;;  %vm45454_vm10 = vcmp.lt.s32.totalorder %v40931_v55, 16 }
 0x61d   : > { %37505 = vlog2.f32 %v17653_v12  ;;  %v23717_v43 = vadd.f32 %v22693_v61, %v21669_v27  ;;  %vm45455_vm5 = vcmp.lt.s32.totalorder %v45450_v57, 16  ;;  %v20693_v56 = vadd.f32 %v19078_v28, %v13525_v48  ;;  %v37500_v23 = vpop.eup %37499  ;;  %v45462_v48 = vld [vmem:[#allocation230_spill] sm:$0xff] }
 0x61e   : > { %v14645_v17 = vsub.f32 0.0, %v12597_v13  ;;  %vm42641_vm11 = vmand %vm45455_vm5, %vm45454_vm10  ;;  %v17637_v40 = vadd.f32 1.0, %v37498_v49  ;;  %v45458_v42 = vsub.f32 0.0, %v45438_v5  ;;  %vm7493_vm0 = vcmp.gt.f32.partialorder %v45459_v35, 0.0  ;;  %v3663_v49 = vpop.permute.xlu1 %3662 }
 0x61f   : > { %v13509_v10 = vmax.f32 %v42345_v53, 0.0  ;;  %vm44564_vm6 = vcmp.eq.f32.partialorder %v42635_v11, 0.0  ;;  %v29251_v44 = vsel %vm42616_vm4, %v23717_v43, 0.0  ;;  %v21717_v36 = vmul.f32 2.0, %v20693_v56  ;;  %vm42670_vm4 = vmand %vm24963_vm8, %vm42641_vm11  ;;  %v45465_v43 = vld [vmem:[#allocation195_spill] sm:$0xff]  ;;  %v45477_v53 = vld [vmem:[#allocation200_spill] sm:$0xff] }
 0x620   : > { %v42648_v62 = vsel %vm9509_vm7, %v45458_v42, %v45438_v5  ;;  %v16197_v25 = vmul.f32 1.442695, %v14645_v17  ;;  %v19046_v9 = vmul.f32 0.6931472, %v37500_v23  ;;  %37507 = vlog2.f32 %v17637_v40  ;;  %vm42660_vm2 = vmand %vm44564_vm6, %vm7509_vm1  ;;  %v28275_v17 = vld [vmem:[#allocation2 + $0xd80] sm:$0xff] }
 0x621   : > { %v12581_v33 = vand.u32 2147483647, %v42648_v62  ;;  %vm7541_vm7 = vcmp.gt.f32.partialorder %v45462_v48, 0.0  ;;  %v30275_v12 = vadd.f32 %v29251_v44, %v28227_v59  ;;  %v22741_v27 = vsel %vm5333_vm9, %v12501_v14, 0.0  ;;  %v37502_v61 = vpop.eup %37501  ;;  %vm45466_vm8 = vmmov %vm45454_vm10  ;;  %v45480_v44 = vld [vmem:[#allocation232_spill] sm:$0xff] }
 0x622   : > { %37509 = vpow2.f32 %v16197_v25  ;;  %v23765_v59 = vadd.f32 %v22741_v27, %v21717_v36  ;;  %vm24947_vm1 = vcmp.gt.s32.totalorder %v40931_v55, %v45465_v43  ;;  %vm45467_vm10 = vcmp.lt.s32.totalorder %v45465_v43, 16 }
 0x623   : > { %v14629_v28 = vsub.f32 0.0, %v12581_v33  ;;  %vm26211_vm5 = vmand %vm45467_vm10, %vm45466_vm8  ;;  %v20677_v51 = vadd.f32 %v19046_v9, %v13509_v10  ;;  %vm6485_vm11 = vcmp.gt.f32.partialorder %v42635_v11, 0.0  ;;  %31299 = vst [vmem:[#allocation2 + $0xc00] sm:$0xff] %v30275_v12  ;;  %vm24995_vm9 = vcmp.gt.s32.totalorder %v40931_v55, %v45468_v2  ;;  %v45472_v9 = vld [vmem:[#allocation231_spill] sm:$0xff] }
 0x624   : > { %v17685_v14 = vadd.f32 1.0, %v37502_v61  ;;  %vm9557_vm6 = vmor %vm6485_vm11, %vm42660_vm2  ;;  %v42692_v16 = vsub.f32 %v3648_v1, %v40941_v19  ;;  %v29299_v56 = vsel %vm42670_vm4, %v23765_v59, 0.0  ;;  %v45469_v42 = vsub.f32 0.0, %v45448_v3  ;;  %v28259_v1 = vld [vmem:[#allocation2 + $0xd00] sm:$0xff] }
 0x625   : > { %v16165_v57 = vmul.f32 1.442695, %v14629_v28  ;;  %v21701_v40 = vmul.f32 2.0, %v20677_v51  ;;  %v42702_v10 = vsub.f32 %v3663_v49, %v40941_v19  ;;  %v30323_v25 = vadd.f32 %v29299_v56, %v28275_v17  ;;  %vm42707_vm2 = vmand %vm24947_vm1, %vm26211_vm5  ;;  %v3658_v28 = vpop.permute.xlu0 %3657 }
 0x626   : > { %v42699_v23 = vsel %vm9557_vm6, %v45469_v42, %v45448_v3  ;;  %v22725_v36 = vsel %vm5317_vm14, %v12485_v22, 0.0  ;;  %37511 = vlog2.f32 %v17685_v14  ;;  %vm7525_vm6 = vcmp.gt.f32.partialorder %v45472_v9, 0.0  ;;  %v37504_v5 = vpop.eup %37503  ;;  %vm45473_vm4 = vmmov %vm45466_vm8 }
 0x627   : > { %v12629_v3 = vand.u32 2147483647, %v42699_v23  ;;  %v23749_v12 = vadd.f32 %v22725_v36, %v21701_v40  ;;  %vm45474_vm1 = vcmp.lt.s32.totalorder %v45468_v2, 16  ;;  %37513 = vpow2.f32 %v16165_v57  ;;  %v37506_v29 = vpop.eup %37505  ;;  %31347 = vst [vmem:[#allocation2 + $0xd80] sm:$0xff] %v30323_v25  ;;  %v45479_v40 = vld [vmem:[#allocation204_spill] sm:$0xff] }
 0x628   : > { %vm42721_vm8 = vmand %vm45474_vm1, %vm45473_vm4  ;;  %vm5445_vm10 = vcmp.eq.f32.partialorder %v42692_v16, 0.0  ;;  %vm6469_vm14 = vcmp.gt.f32.partialorder %v42692_v16, 0.0  ;;  %vm24979_vm5 = vcmp.gt.s32.totalorder %v40931_v55, %v45477_v53  ;;  %v17669_v22 = vadd.f32 1.0, %v37504_v5 }
 0x629   : > { %v14677_v27 = vsub.f32 0.0, %v12629_v3  ;;  %vm8517_vm11 = vmand %vm5445_vm10, %vm7493_vm0  ;;  %vm5493_vm4 = vcmp.eq.f32.partialorder %v42702_v10, 0.0  ;;  %v29283_v49 = vsel %vm42707_vm2, %v23749_v12, 0.0  ;;  %v13557_v61 = vmax.f32 %v42445_v54, 0.0 }
 0x62a   : > { %v19142_v17 = vmul.f32 0.6931472, %v37506_v29  ;;  %vm9541_vm1 = vmor %vm6469_vm14, %vm8517_vm11  ;;  %vm6517_vm15 = vcmp.gt.f32.partialorder %v42702_v10, 0.0  ;;  %v30307_v59 = vadd.f32 %v29283_v49, %v28259_v1  ;;  %37515 = vlog2.f32 %v17669_v22  ;;  %v37508_v57 = vpop.eup %37507 }
 0x62b   : > { %v16261_v43 = vmul.f32 1.442695, %v14677_v27  ;;  %v45478_v51 = vsub.f32 0.0, %v45459_v35  ;;  %vm8565_vm0 = vmand %vm5493_vm4, %vm7541_vm7  ;;  %vm25027_vm2 = vcmp.gt.s32.totalorder %v40931_v55, %v45479_v40  ;;  %v42753_v25 = vsub.f32 %v3658_v28, %v40941_v19 }
 0x62c   : > { %v20725_v56 = vadd.f32 %v19142_v17, %v13557_v61  ;;  %vm9589_vm14 = vmor %vm6517_vm15, %vm8565_vm0  ;;  %vm7573_vm11 = vcmp.gt.f32.partialorder %v45480_v44, 0.0  ;;  %31331 = vst [vmem:[#allocation2 + $0xd00] sm:$0xff] %v30307_v59  ;;  %v13541_v36 = vmax.f32 %v42481_v60, 0.0  ;;  %v19110_v5 = vmul.f32 0.6931472, %v37508_v57  ;;  %v28307_v17 = vld [vmem:[#allocation2 + $0xe80] sm:$0xff] }
 0x62d   : > { %v42743_v14 = vsel %vm9541_vm1, %v45478_v51, %v45459_v35  ;;  %v37510_v35 = vpop.eup %37509  ;;  %37517 = vpow2.f32 %v16261_v43  ;;  %v45481_v1 = vsub.f32 0.0, %v45462_v48  ;;  %vm45482_vm15 = vcmp.eq.f32.partialorder %v42368_v38, 0.0  ;;  %v45489_v51 = vld [vmem:[#allocation233_spill] sm:$0xff]  ;;  %v45497_v38 = vld [vmem:[#allocation203_spill] sm:$0xff] }
 0x62e   : > { %v12613_v42 = vand.u32 2147483647, %v42743_v14  ;;  %v21749_v29 = vmul.f32 2.0, %v20725_v56  ;;  %v22773_v22 = vsel %vm45482_vm15, %v12533_v26, 0.0  ;;  %vm45483_vm7 = vcmp.lt.s32.totalorder %v40931_v55, 16 }
 0x62f   : > { %v42760_v12 = vsel %vm9589_vm14, %v45481_v1, %v45462_v48  ;;  %vm45484_vm1 = vcmp.lt.s32.totalorder %v45477_v53, 16  ;;  %v17717_v28 = vadd.f32 1.0, %v37510_v35  ;;  %v3673_v48 = vpop.permute.xlu1 %3672  ;;  %vm42781_vm14 = vmand %vm24995_vm9, %vm42721_vm8  ;;  %v20709_v54 = vadd.f32 %v19110_v5, %v13541_v36 }
 0x630   : > { %vm42770_vm0 = vmand %vm45484_vm1, %vm45483_vm7  ;;  %v14661_v49 = vsub.f32 0.0, %v12613_v42  ;;  %v22757_v26 = vsel %vm5349_vm3, %v12517_v15, 0.0  ;;  %v12661_v61 = vand.u32 2147483647, %v42760_v12  ;;  %vm5477_vm15 = vcmp.eq.f32.partialorder %v42753_v25, 0.0  ;;  %v37512_v2 = vpop.eup %37511 }
 0x631   : > { %v23797_v59 = vadd.f32 %v22773_v22, %v21749_v29  ;;  %37519 = vlog2.f32 %v17717_v28  ;;  %vm6501_vm7 = vcmp.gt.f32.partialorder %v42753_v25, 0.0  ;;  %vm8549_vm9 = vmand %vm5477_vm15, %vm7525_vm6  ;;  %v21733_v60 = vmul.f32 2.0, %v20709_v54  ;;  %v37514_v57 = vpop.eup %37513  ;;  %v28291_v22 = vld [vmem:[#allocation2 + $0xe00] sm:$0xff] }
 0x632   : > { %v16229_v46 = vmul.f32 1.442695, %v14661_v49  ;;  %v13589_v58 = vmax.f32 %v42509_v31, 0.0  ;;  %v14709_v15 = vsub.f32 0.0, %v12661_v61  ;;  %vm9573_vm3 = vmor %vm6501_vm7, %vm8549_vm9  ;;  %v42800_v43 = vsub.f32 %v3673_v48, %v40941_v19 }
 0x633   : > { %vm7557_vm8 = vcmp.gt.f32.partialorder %v45489_v51, 0.0  ;;  %v29331_v56 = vsel %vm42781_vm14, %v23797_v59, 0.0  ;;  %vm42810_vm6 = vmand %vm24979_vm5, %vm42770_vm0  ;;  %v19206_v36 = vmul.f32 0.6931472, %v37512_v2  ;;  %v45492_v5 = vsub.f32 0.0, %v45472_v9 }
 0x634   : > { %37521 = vpow2.f32 %v16229_v46  ;;  %v30355_v29 = vadd.f32 %v29331_v56, %v28307_v17  ;;  %v23781_v28 = vadd.f32 %v22757_v26, %v21733_v60  ;;  %vm45493_vm1 = vcmp.lt.s32.totalorder %v40931_v55, 16  ;;  %v3668_v26 = vpop.permute.xlu0 %3667  ;;  %v37516_v17 = vpop.eup %37515 }
 0x635   : > { %v42817_v1 = vsel %vm9573_vm3, %v45492_v5, %v45472_v9  ;;  %vm45494_vm14 = vcmp.lt.s32.totalorder %v45479_v40, 16  ;;  %v17701_v27 = vadd.f32 1.0, %v37514_v57  ;;  %v16325_v49 = vmul.f32 1.442695, %v14709_v15  ;;  %vm45498_vm0 = vmmov %vm45493_vm1  ;;  %v28339_v40 = vld [vmem:[#allocation2 + $0xf80] sm:$0xff] }
 0x636   : > { %vm42823_vm7 = vmand %vm45494_vm14, %vm45493_vm1  ;;  %v20757_v48 = vadd.f32 %v19206_v36, %v13589_v58  ;;  %vm25011_vm5 = vcmp.gt.s32.totalorder %v40931_v55, %v45497_v38  ;;  %vm45499_vm9 = vcmp.lt.s32.totalorder %v45497_v38, 16  ;;  %v12645_v54 = vand.u32 2147483647, %v42817_v1  ;;  %31379 = vst [vmem:[#allocation2 + $0xe80] sm:$0xff] %v30355_v29 }
 0x637   : > { %vm42833_vm3 = vmand %vm45499_vm9, %vm45498_vm0  ;;  %vm44568_vm1 = vcmp.eq.f32.partialorder %v42800_v43, 0.0  ;;  %v29315_v59 = vsel %vm42810_vm6, %v23781_v28, 0.0  ;;  %v13573_v46 = vmax.f32 %v42556_v41, 0.0  ;;  %37523 = vlog2.f32 %v17701_v27  ;;  %v37518_v15 = vpop.eup %37517 }
 0x638   : > { %vm6549_vm14 = vcmp.gt.f32.partialorder %v42800_v43, 0.0  ;;  %vm8597_vm0 = vmand %vm44568_vm1, %vm7573_vm11  ;;  %v30339_v2 = vadd.f32 %v29315_v59, %v28291_v22  ;;  %v21781_v60 = vmul.f32 2.0, %v20757_v48  ;;  %v19174_v58 = vmul.f32 0.6931472, %v37516_v17  ;;  %v45509_v17 = vld [vmem:[#allocation235_spill] sm:$0xff] }
 0x639   : > { %37525 = vpow2.f32 %v16325_v49  ;;  %vm9621_vm9 = vmor %vm6549_vm14, %vm8597_vm0  ;;  %v22805_v56 = vsel %vm5397_vm13, %v12565_v7, 0.0  ;;  %v14693_v35 = vsub.f32 0.0, %v12645_v54  ;;  %v45504_v36 = vsub.f32 0.0, %v45480_v44  ;;  %v3683_v49 = vpop.permute.xlu1 %3682 }
 0x63a   : > { %vm42852_vm6 = vmand %vm25027_vm2, %vm42823_vm7  ;;  %v42868_v29 = vsub.f32 %v3668_v26, %v40941_v19  ;;  %31363 = vst [vmem:[#allocation2 + $0xe00] sm:$0xff] %v30339_v2  ;;  %v23829_v22 = vadd.f32 %v22805_v56, %v21781_v60  ;;  %v20741_v28 = vadd.f32 %v19174_v58, %v13573_v46  ;;  %v17749_v53 = vadd.f32 1.0, %v37518_v15  ;;  %v28323_v46 = vld [vmem:[#allocation2 + $0xf00] sm:$0xff]  ;;  %v45510_v60 = vld [vmem:[#allocation23_spill] sm:$0xff] }
 0x63b   : > { %v42865_v5 = vsel %vm9621_vm9, %v45504_v36, %v45480_v44  ;;  %vm7605_vm13 = vcmp.gt.f32.partialorder %v45505_v30, 0.0  ;;  %vm42877_vm2 = vmand %vm25011_vm5, %vm42833_vm3  ;;  %vm45508_vm11 = vcmp.eq.f32.partialorder %v42500_v6, 0.0  ;;  %v16293_v27 = vmul.f32 1.442695, %v14693_v35  ;;  %v37520_v48 = vpop.eup %37519  ;;  %v45516_v36 = vld [vmem:[#allocation205_spill] sm:$0xff] }
 0x63c   : > { %v12693_v31 = vand.u32 2147483647, %v42865_v5  ;;  %v22789_v44 = vsel %vm45508_vm11, %v12549_v34, 0.0  ;;  %vm44566_vm7 = vcmp.eq.f32.partialorder %v42868_v29, 0.0  ;;  %vm6533_vm14 = vcmp.gt.f32.partialorder %v42868_v29, 0.0 }
 0x63d   : > { %v29363_v9 = vsel %vm42852_vm6, %v23829_v22, 0.0  ;;  %v21765_v38 = vmul.f32 2.0, %v20741_v28  ;;  %37527 = vlog2.f32 %v17749_v53  ;;  %vm8581_vm5 = vmand %vm44566_vm7, %vm7557_vm8  ;;  %v13621_v41 = vmax.f32 %v42609_v39, 0.0  ;;  %v3693_v39 = vpop.permute.xlu1 %3692 }
 0x63e   : > { %v14741_v26 = vsub.f32 0.0, %v12693_v31  ;;  %v30387_v6 = vadd.f32 %v29363_v9, %v28339_v40  ;;  %v19270_v34 = vmul.f32 0.6931472, %v37520_v48  ;;  %37529 = vpow2.f32 %v16293_v27  ;;  %vm9605_vm3 = vmor %vm6533_vm14, %vm8581_vm5  ;;  %v37522_v59 = vpop.eup %37521  ;;  %v45517_v27 = vld [vmem:[#allocation238_spill] sm:$0xff] }
 0x63f   : > { %vm7589_vm0 = vcmp.gt.f32.partialorder %v45509_v17, 0.0  ;;  %v23813_v2 = vadd.f32 %v22789_v44, %v21765_v38  ;;  %vm25059_vm9 = vcmp.gt.s32.totalorder %v40931_v55, %v45510_v60  ;;  %v45511_v15 = vsub.f32 0.0, %v45489_v51  ;;  %v3678_v44 = vpop.permute.xlu0 %3677 }
 0x640   : > { %v16389_v58 = vmul.f32 1.442695, %v14741_v26  ;;  %31411 = vst [vmem:[#allocation2 + $0xf80] sm:$0xff] %v30387_v6  ;;  %vm45512_vm8 = vcmp.lt.s32.totalorder %v40931_v55, 16  ;;  %vm45513_vm6 = vcmp.lt.s32.totalorder %v45510_v60, 16  ;;  %v20789_v35 = vadd.f32 %v19270_v34, %v13621_v41  ;;  %v28371_v41 = vld [vmem:[#allocation2 + $0x1080] sm:$0xff] }
 0x641   : > { %v42902_v57 = vsel %vm9605_vm3, %v45511_v15, %v45489_v51  ;;  %vm42908_vm11 = vmand %vm45513_vm6, %vm45512_vm8  ;;  %vm25043_vm14 = vcmp.gt.s32.totalorder %v40931_v55, %v45516_v36  ;;  %v17733_v40 = vadd.f32 1.0, %v37522_v59  ;;  %v29347_v51 = vsel %vm42877_vm2, %v23813_v2, 0.0  ;;  %v37524_v48 = vpop.eup %37523  ;;  %v45525_v15 = vld [vmem:[#allocation25_spill] sm:$0xff] }
 0x642   : > { %v12677_v22 = vand.u32 2147483647, %v42902_v57  ;;  %v22837_v28 = vsel %vm5429_vm12, %v12597_v13, 0.0  ;;  %37531 = vpow2.f32 %v16389_v58  ;;  %v42922_v53 = vsub.f32 %v3683_v49, %v40941_v19  ;;  %vm45518_vm3 = vmmov %vm45512_vm8 }
 0x643   : > { %vm7637_vm5 = vcmp.gt.f32.partialorder %v45517_v27, 0.0  ;;  %v30371_v9 = vadd.f32 %v29347_v51, %v28323_v46  ;;  %v21813_v38 = vmul.f32 2.0, %v20789_v35  ;;  %vm45519_vm8 = vcmp.lt.s32.totalorder %v45516_v36, 16  ;;  %v37526_v13 = vpop.eup %37525  ;;  %vm42940_vm12 = vmand %vm25059_vm9, %vm42908_vm11 }
 0x644   : > { %vm42929_vm2 = vmand %vm45519_vm8, %vm45518_vm3  ;;  %37533 = vlog2.f32 %v17733_v40  ;;  %v14725_v18 = vsub.f32 0.0, %v12677_v22  ;;  %v13605_v26 = vmax.f32 %v42648_v62, 0.0  ;;  %v19238_v6 = vmul.f32 0.6931472, %v37524_v48 }
 0x645   : > { %vm44567_vm6 = vcmp.eq.f32.partialorder %v42922_v53, 0.0  ;;  %vm6581_vm3 = vcmp.gt.f32.partialorder %v42922_v53, 0.0  ;;  %31395 = vst [vmem:[#allocation2 + $0xf00] sm:$0xff] %v30371_v9  ;;  %v23861_v34 = vadd.f32 %v22837_v28, %v21813_v38  ;;  %v17781_v59 = vadd.f32 1.0, %v37526_v13  ;;  %v3688_v9 = vpop.permute.xlu0 %3687  ;;  %v28355_v13 = vld [vmem:[#allocation2 + $0x1000] sm:$0xff] }
 0x646   : > { %v16357_v46 = vmul.f32 1.442695, %v14725_v18  ;;  %vm8629_vm9 = vmand %vm44567_vm6, %vm7605_vm13  ;;  %v42952_v2 = vsub.f32 %v3678_v44, %v40941_v19  ;;  %v20773_v60 = vadd.f32 %v19238_v6, %v13605_v26  ;;  %vm45524_vm11 = vcmp.eq.f32.partialorder %v42604_v20, 0.0  ;;  %v45534_v26 = vld [vmem:[#allocation24_spill] sm:$0xff] }
 0x647   : > { %v22821_v58 = vsel %vm45524_vm11, %v12581_v33, 0.0  ;;  %vm25091_vm8 = vcmp.gt.s32.totalorder %v40931_v55, %v45525_v15  ;;  %vm9653_vm7 = vmor %vm6581_vm3, %vm8629_vm9  ;;  %v42961_v56 = vsub.f32 %v3693_v39, %v40941_v19  ;;  %v29395_v35 = vsel %vm42940_vm12, %v23861_v34, 0.0  ;;  %v45531_v33 = vld [vmem:[#allocation239_spill] sm:$0xff]  ;;  %v37528_v51 = vpop.eup %37527 }
 0x648   : > { %vm45526_vm13 = vcmp.lt.s32.totalorder %v40931_v55, 16  ;;  %vm45527_vm6 = vcmp.lt.s32.totalorder %v45525_v15, 16  ;;  %37535 = vlog2.f32 %v17781_v59  ;;  %v45530_v20 = vsub.f32 0.0, %v45505_v30  ;;  %v37530_v38 = vpop.eup %37529 }
 0x649   : > { %vm42969_vm1 = vmand %vm45527_vm6, %vm45526_vm13  ;;  %vm44570_vm3 = vcmp.eq.f32.partialorder %v42952_v2, 0.0  ;;  %vm7621_vm9 = vcmp.gt.f32.partialorder %v45531_v33, 0.0  ;;  %v30419_v28 = vadd.f32 %v29395_v35, %v28371_v41  ;;  %v21797_v44 = vmul.f32 2.0, %v20773_v60 }
 0x64a   : > { %v42976_v62 = vsel %vm9653_vm7, %v45530_v20, %v45505_v30  ;;  %37537 = vpow2.f32 %v16357_v46  ;;  %vm8613_vm12 = vmand %vm44570_vm3, %vm7589_vm0  ;;  %v13653_v18 = vmax.f32 %v42699_v23, 0.0  ;;  %v19334_v39 = vmul.f32 0.6931472, %v37528_v51  ;;  %v3703_v23 = vpop.permute.xlu1 %3702  ;;  %v45553_v30 = vld [vmem:[#allocation241_spill] sm:$0xff] }
 0x64b   : > { %v12725_v48 = vand.u32 2147483647, %v42976_v62  ;;  %vm42990_vm7 = vmand %vm25043_vm14, %vm42929_vm2  ;;  %vm6565_vm6 = vcmp.gt.f32.partialorder %v42952_v2, 0.0  ;;  %vm44569_vm11 = vcmp.eq.f32.partialorder %v42961_v56, 0.0  ;;  %31443 = vst [vmem:[#allocation2 + $0x1080] sm:$0xff] %v30419_v28  ;;  %v23845_v49 = vadd.f32 %v22821_v58, %v21797_v44 }
 0x64c   : > { %vm25075_vm0 = vcmp.gt.s32.totalorder %v40931_v55, %v45534_v26  ;;  %v17765_v7 = vadd.f32 1.0, %v37530_v38  ;;  %vm9637_vm14 = vmor %vm6565_vm6, %vm8613_vm12  ;;  %v20821_v6 = vadd.f32 %v19334_v39, %v13653_v18  ;;  %v45535_v41 = vsub.f32 0.0, %v45509_v17  ;;  %v37532_v46 = vpop.eup %37531  ;;  %v45539_v38 = vld [vmem:[#allocation240_spill] sm:$0xff] }
 0x64d   : > { %v14773_v36 = vsub.f32 0.0, %v12725_v48  ;;  %vm6613_vm2 = vcmp.gt.f32.partialorder %v42961_v56, 0.0  ;;  %vm8661_vm13 = vmand %vm44569_vm11, %vm7637_vm5  ;;  %v43012_v59 = vsub.f32 %v3688_v9, %v40941_v19  ;;  %v29379_v60 = vsel %vm42990_vm7, %v23845_v49, 0.0 }
 0x64e   : > { %v43004_v34 = vsel %vm9637_vm14, %v45535_v41, %v45509_v17  ;;  %37539 = vlog2.f32 %v17765_v7  ;;  %vm43017_vm12 = vmor %vm6613_vm2, %vm8661_vm13  ;;  %v37534_v20 = vpop.eup %37533  ;;  %v30403_v51 = vadd.f32 %v29379_v60, %v28355_v13  ;;  %v21845_v28 = vmul.f32 2.0, %v20821_v6  ;;  %v45552_v17 = vld [vmem:[#allocation26_spill] sm:$0xff] }
 0x64f   : > { %v16453_v58 = vmul.f32 1.442695, %v14773_v36  ;;  %v12709_v35 = vand.u32 2147483647, %v43004_v34  ;;  %vm45538_vm5 = vcmp.eq.f32.partialorder %v42635_v11, 0.0  ;;  %v17813_v9 = vadd.f32 1.0, %v37532_v46  ;;  %vm43031_vm7 = vmand %vm25091_vm8, %vm42969_vm1 }
 0x650   : > { %v22869_v44 = vsel %vm45538_vm5, %v12629_v3, 0.0  ;;  %vm7669_vm6 = vcmp.gt.f32.partialorder %v45539_v38, 0.0  ;;  %v13637_v18 = vmax.f32 %v42743_v14, 0.0  ;;  %v19302_v39 = vmul.f32 0.6931472, %v37534_v20  ;;  %31427 = vst [vmem:[#allocation2 + $0x1000] sm:$0xff] %v30403_v51 }
 0x651   : > { %37541 = vpow2.f32 %v16453_v58  ;;  %v14757_v11 = vsub.f32 0.0, %v12709_v35  ;;  %v28403_v3 = vld [vmem:[#allocation2 + $0x1180] sm:$0xff]  ;;  %v23893_v13 = vadd.f32 %v22869_v44, %v21845_v28  ;;  %vm45542_vm14 = vcmp.lt.s32.totalorder %v40931_v55, 16  ;;  %v45547_v36 = vld [vmem:[#allocation27_spill] sm:$0xff] }
 0x652   : > { %vm45543_vm2 = vcmp.lt.s32.totalorder %v45534_v26, 16  ;;  %37543 = vlog2.f32 %v17813_v9  ;;  %v45546_v40 = vsub.f32 0.0, %v45517_v27  ;;  %vm5573_vm1 = vcmp.eq.f32.partialorder %v43012_v59, 0.0  ;;  %v37536_v46 = vpop.eup %37535  ;;  %v28387_v26 = vld [vmem:[#allocation2 + $0x1100] sm:$0xff] }
 0x653   : > { %vm43042_vm13 = vmand %vm45543_vm2, %vm45542_vm14  ;;  %v20805_v7 = vadd.f32 %v19302_v39, %v13637_v18  ;;  %vm25123_vm8 = vcmp.gt.s32.totalorder %v40931_v55, %v45547_v36  ;;  %v16421_v6 = vmul.f32 1.442695, %v14757_v11  ;;  %v29427_v60 = vsel %vm43031_vm7, %v23893_v13, 0.0 }
 0x654   : > { %v43051_v49 = vsel %vm43017_vm12, %v45546_v40, %v45517_v27  ;;  %vm8645_vm5 = vmand %vm5573_vm1, %vm7621_vm9  ;;  %v13685_v58 = vmax.f32 %v42760_v12, 0.0  ;;  %vm25107_vm11 = vcmp.gt.s32.totalorder %v40931_v55, %v45552_v17  ;;  %vm6597_vm3 = vcmp.gt.f32.partialorder %v43012_v59, 0.0  ;;  %v37538_v51 = vpop.eup %37537 }
 0x655   : > { %v12757_v41 = vand.u32 2147483647, %v43051_v49  ;;  %vm45548_vm12 = vmmov %vm45542_vm14  ;;  %vm45549_vm14 = vcmp.lt.s32.totalorder %v45547_v36, 16  ;;  %v43076_v20 = vsub.f32 %v3703_v23, %v40941_v19  ;;  %v30451_v28 = vadd.f32 %v29427_v60, %v28403_v3 }
 0x656   : > { %vm43067_vm2 = vmand %vm45549_vm14, %vm45548_vm12  ;;  %v21829_v44 = vmul.f32 2.0, %v20805_v7  ;;  %v19398_v9 = vmul.f32 0.6931472, %v37536_v46  ;;  %37545 = vpow2.f32 %v16421_v6  ;;  %vm7653_vm7 = vcmp.gt.f32.partialorder %v45553_v30, 0.0  ;;  %v45557_v7 = vld [vmem:[#allocation29_spill] sm:$0xff] }
 0x657   : > { %vm9669_vm9 = vmor %vm6597_vm3, %vm8645_vm5  ;;  %v22853_v39 = vsel %vm5445_vm10, %v12613_v42, 0.0  ;;  %v17797_v11 = vadd.f32 1.0, %v37538_v51  ;;  %v14805_v23 = vsub.f32 0.0, %v12757_v41  ;;  %v45556_v3 = vsub.f32 0.0, %v45531_v33  ;;  %31475 = vst [vmem:[#allocation2 + $0x1180] sm:$0xff] %v30451_v28 }
 0x658   : > { %vm43084_vm12 = vmand %vm25075_vm0, %vm43042_vm13  ;;  %v23877_v15 = vadd.f32 %v22853_v39, %v21829_v44  ;;  %v20853_v40 = vadd.f32 %v19398_v9, %v13685_v58  ;;  %vm25155_vm3 = vcmp.gt.s32.totalorder %v40931_v55, %v45557_v7  ;;  %vm5621_vm0 = vcmp.eq.f32.partialorder %v43076_v20, 0.0  ;;  %v37540_v6 = vpop.eup %37539  ;;  %v28435_v9 = vld [vmem:[#allocation2 + $0x1280] sm:$0xff] }
 0x659   : > { %v43097_v13 = vsel %vm9669_vm9, %v45556_v3, %v45531_v33  ;;  %vm43107_vm10 = vmand %vm25123_vm8, %vm43067_vm2  ;;  %37547 = vlog2.f32 %v17797_v11  ;;  %v16517_v42 = vmul.f32 1.442695, %v14805_v23  ;;  %vm6645_vm13 = vcmp.gt.f32.partialorder %v43076_v20, 0.0  ;;  %v3698_v33 = vpop.permute.xlu0 %3697 }
 0x65a   : > { %v12741_v14 = vand.u32 2147483647, %v43097_v13  ;;  %v29411_v46 = vsel %vm43084_vm12, %v23877_v15, 0.0  ;;  %v21877_v60 = vmul.f32 2.0, %v20853_v40  ;;  %v22901_v36 = vsel %vm5493_vm4, %v12661_v61, 0.0  ;;  %vm8693_vm8 = vmand %vm5621_vm0, %vm7669_vm6  ;;  %v45565_v40 = vld [vmem:[#allocation242_spill] sm:$0xff] }
 0x65b   : > { %v30435_v58 = vadd.f32 %v29411_v46, %v28387_v26  ;;  %v13669_v51 = vmax.f32 %v42817_v1, 0.0  ;;  %v19366_v28 = vmul.f32 0.6931472, %v37540_v6  ;;  %37549 = vpow2.f32 %v16517_v42  ;;  %vm9717_vm5 = vmor %vm6645_vm13, %vm8693_vm8  ;;  %v37542_v44 = vpop.eup %37541  ;;  %v3713_v46 = vpop.permute.xlu1 %3712 }
 0x65c   : > { %v14789_v27 = vsub.f32 0.0, %v12741_v14  ;;  %v23925_v12 = vadd.f32 %v22901_v36, %v21877_v60  ;;  %v45560_v10 = vsub.f32 0.0, %v45539_v38  ;;  %v43132_v39 = vsub.f32 %v3698_v33, %v40941_v19  ;;  %v37544_v11 = vpop.eup %37543  ;;  %v45585_v33 = vld [vmem:[#allocation31_spill] sm:$0xff] }
 0x65d   : > { %31459 = vst [vmem:[#allocation2 + $0x1100] sm:$0xff] %v30435_v58  ;;  %vm45561_vm4 = vcmp.lt.s32.totalorder %v40931_v55, 16  ;;  %vm45562_vm6 = vcmp.lt.s32.totalorder %v45552_v17, 16  ;;  %v20837_v3 = vadd.f32 %v19366_v28, %v13669_v51  ;;  %v13717_v26 = vmax.f32 %v42865_v5, 0.0  ;;  %v45570_v58 = vld [vmem:[#allocation243_spill] sm:$0xff]  ;;  %v45580_v5 = vld [vmem:[#allocation244_spill] sm:$0xff] }
 0x65e   : > { %v16485_v18 = vmul.f32 1.442695, %v14789_v27  ;;  %v43129_v61 = vsel %vm9717_vm5, %v45560_v10, %v45539_v38  ;;  %vm43138_vm14 = vmand %vm45562_vm6, %vm45561_vm4  ;;  %v17845_v15 = vadd.f32 1.0, %v37542_v44  ;;  %vm7701_vm2 = vcmp.gt.f32.partialorder %v45565_v40, 0.0  ;;  %v3708_v27 = vpop.permute.xlu0 %3707 }
 0x65f   : > { %v12789_v38 = vand.u32 2147483647, %v43129_v61  ;;  %v29459_v42 = vsel %vm43107_vm10, %v23925_v12, 0.0  ;;  %vm45566_vm9 = vmmov %vm45561_vm4  ;;  %vm45567_vm12 = vcmp.lt.s32.totalorder %v45557_v7, 16  ;;  %v19462_v6 = vmul.f32 0.6931472, %v37544_v11  ;;  %v3723_v28 = vpop.permute.xlu1 %3722 }
 0x660   : > { %vm43151_vm13 = vmand %vm45567_vm12, %vm45566_vm9  ;;  %37551 = vpow2.f32 %v16485_v18  ;;  %vm5605_vm8 = vcmp.eq.f32.partialorder %v43132_v39, 0.0  ;;  %v30483_v60 = vadd.f32 %v29459_v42, %v28435_v9  ;;  %v21861_v36 = vmul.f32 2.0, %v20837_v3  ;;  %v37546_v51 = vpop.eup %37545  ;;  %v45573_v12 = vld [vmem:[#allocation28_spill] sm:$0xff] }
 0x661   : > { %37553 = vlog2.f32 %v17845_v15  ;;  %v14837_v16 = vsub.f32 0.0, %v12789_v38  ;;  %vm8677_vm10 = vmand %vm5605_vm8, %vm7653_vm7  ;;  %vm7685_vm5 = vcmp.gt.f32.partialorder %v45570_v58, 0.0  ;;  %v22885_v44 = vsel %vm5477_vm15, %v12645_v54, 0.0  ;;  %v28419_v18 = vld [vmem:[#allocation2 + $0x1200] sm:$0xff] }
 0x662   : > { %vm43168_vm4 = vmand %vm25107_vm11, %vm43138_vm14  ;;  %v20885_v9 = vadd.f32 %v19462_v6, %v13717_v26  ;;  %vm25139_vm7 = vcmp.gt.s32.totalorder %v40931_v55, %v45573_v12  ;;  %vm6629_vm6 = vcmp.gt.f32.partialorder %v43132_v39, 0.0  ;;  %31507 = vst [vmem:[#allocation2 + $0x1280] sm:$0xff] %v30483_v60  ;;  %v23909_v10 = vadd.f32 %v22885_v44, %v21861_v36  ;;  %v28467_v60 = vld [vmem:[#allocation2 + $0x1380] sm:$0xff] }
 0x663   : > { %v17829_v11 = vadd.f32 1.0, %v37546_v51  ;;  %v16581_v17 = vmul.f32 1.442695, %v14837_v16  ;;  %vm9701_vm11 = vmor %vm6629_vm6, %vm8677_vm10  ;;  %v43180_v23 = vsub.f32 %v3713_v46, %v40941_v19  ;;  %vm45574_vm15 = vcmp.eq.f32.partialorder %v42800_v43, 0.0  ;;  %v37548_v43 = vpop.eup %37547  ;;  %v45651_v39 = vld [vmem:[#allocation36_spill] sm:$0xff] }
 0x664   : > { %v21909_v3 = vmul.f32 2.0, %v20885_v9  ;;  %v22933_v25 = vsel %vm45574_vm15, %v12693_v31, 0.0  ;;  %vm45575_vm14 = vmmov %vm45566_vm9  ;;  %vm45576_vm9 = vcmp.lt.s32.totalorder %v45573_v12, 16  ;;  %v45579_v54 = vsub.f32 0.0, %v45553_v30 }
 0x665   : > { %vm43190_vm12 = vmand %vm45576_vm9, %vm45575_vm14  ;;  %v43200_v15 = vsub.f32 %v3708_v27, %v40941_v19  ;;  %vm7733_vm10 = vcmp.gt.f32.partialorder %v45580_v5, 0.0  ;;  %v29443_v31 = vsel %vm43168_vm4, %v23909_v10, 0.0  ;;  %37555 = vlog2.f32 %v17829_v11  ;;  %v37550_v27 = vpop.eup %37549 }
 0x666   : > { %v43197_v26 = vsel %vm9701_vm11, %v45579_v54, %v45553_v30  ;;  %vm43210_vm6 = vmand %vm25155_vm3, %vm43151_vm13  ;;  %v13701_v30 = vmax.f32 %v42902_v57, 0.0  ;;  %v30467_v46 = vadd.f32 %v29443_v31, %v28419_v18  ;;  %v23957_v36 = vadd.f32 %v22933_v25, %v21909_v3  ;;  %v28451_v31 = vld [vmem:[#allocation2 + $0x1300] sm:$0xff] }
 0x667   : > { %v12773_v6 = vand.u32 2147483647, %v43197_v26  ;;  %v19430_v16 = vmul.f32 0.6931472, %v37548_v43  ;;  %37557 = vpow2.f32 %v16581_v17  ;;  %vm43221_vm3 = vmand %vm25139_vm7, %vm43190_vm12  ;;  %vm25187_vm13 = vcmp.gt.s32.totalorder %v40931_v55, %v45585_v33 }
 0x668   : > { %vm44573_vm4 = vcmp.eq.f32.partialorder %v43180_v23, 0.0  ;;  %vm6677_vm11 = vcmp.gt.f32.partialorder %v43180_v23, 0.0  ;;  %31491 = vst [vmem:[#allocation2 + $0x1200] sm:$0xff] %v30467_v46  ;;  %v29491_v44 = vsel %vm43210_vm6, %v23957_v36, 0.0  ;;  %v17877_v12 = vadd.f32 1.0, %v37550_v27  ;;  %v45590_v36 = vld [vmem:[#allocation30_spill] sm:$0xff] }
 0x669   : > { %v14821_v51 = vsub.f32 0.0, %v12773_v6  ;;  %v20869_v9 = vadd.f32 %v19430_v16, %v13701_v30  ;;  %vm8725_vm7 = vmand %vm44573_vm4, %vm7701_vm2  ;;  %vm44571_vm15 = vcmp.eq.f32.partialorder %v43200_v15, 0.0  ;;  %v30515_v18 = vadd.f32 %v29491_v44, %v28467_v60  ;;  %v45589_v60 = vld [vmem:[#allocation245_spill] sm:$0xff] }
 0x66a   : > { %vm45586_vm14 = vcmp.eq.f32.partialorder %v42868_v29, 0.0  ;;  %vm9749_vm9 = vmor %vm6677_vm11, %vm8725_vm7  ;;  %vm6661_vm12 = vcmp.gt.f32.partialorder %v43200_v15, 0.0  ;;  %v37552_v17 = vpop.eup %37551  ;;  %37559 = vlog2.f32 %v17877_v12  ;;  %v45587_v25 = vsub.f32 0.0, %v45565_v40  ;;  %v45595_v44 = vld [vmem:[#allocation33_spill] sm:$0xff] }
 0x66b   : > { %v22917_v10 = vsel %vm45586_vm14, %v12677_v22, 0.0  ;;  %v16549_v11 = vmul.f32 1.442695, %v14821_v51  ;;  %v21893_v3 = vmul.f32 2.0, %v20869_v9  ;;  %vm8709_vm2 = vmand %vm44571_vm15, %vm7685_vm5  ;;  %v43253_v29 = vsub.f32 %v3723_v28, %v40941_v19  ;;  %v37554_v57 = vpop.eup %37553  ;;  %31539 = vst [vmem:[#allocation2 + $0x1380] sm:$0xff] %v30515_v18  ;;  %v3718_v9 = vpop.permute.xlu0 %3717 }
 0x66c   : > { %v43246_v1 = vsel %vm9749_vm9, %v45587_v25, %v45565_v40  ;;  %v13749_v22 = vmax.f32 %v42976_v62, 0.0  ;;  %v17861_v54 = vadd.f32 1.0, %v37552_v17  ;;  %vm9733_vm6 = vmor %vm6661_vm12, %vm8709_vm2  ;;  %v19526_v42 = vmul.f32 0.6931472, %v37554_v57 }
 0x66d   : > { %37561 = vpow2.f32 %v16549_v11  ;;  %v12821_v43 = vand.u32 2147483647, %v43246_v1  ;;  %v23941_v40 = vadd.f32 %v22917_v10, %v21893_v3  ;;  %v45588_v30 = vsub.f32 0.0, %v45570_v58 }
 0x66e   : > { %vm44572_vm5 = vcmp.eq.f32.partialorder %v43253_v29, 0.0  ;;  %vm7717_vm11 = vcmp.gt.f32.partialorder %v45589_v60, 0.0  ;;  %vm25171_vm7 = vcmp.gt.s32.totalorder %v40931_v55, %v45590_v36  ;;  %37563 = vlog2.f32 %v17861_v54 }
 0x66f   : > { %v43260_v46 = vsel %vm9733_vm6, %v45588_v30, %v45570_v58  ;;  %v14869_v16 = vsub.f32 0.0, %v12821_v43  ;;  %vm8757_vm14 = vmand %vm44572_vm5, %vm7733_vm10  ;;  %v29475_v58 = vsel %vm43221_vm3, %v23941_v40, 0.0  ;;  %vm45591_vm9 = vcmp.lt.s32.totalorder %v40931_v55, 16  ;;  %v37556_v12 = vpop.eup %37555  ;;  %v28499_v30 = vld [vmem:[#allocation2 + $0x1480] sm:$0xff] }
 0x670   : > { %v12805_v27 = vand.u32 2147483647, %v43260_v46  ;;  %vm45592_vm12 = vcmp.lt.s32.totalorder %v45585_v33, 16  ;;  %v20917_v28 = vadd.f32 %v19526_v42, %v13749_v22  ;;  %vm25219_vm6 = vcmp.gt.s32.totalorder %v40931_v55, %v45595_v44  ;;  %v45603_v42 = vld [vmem:[#allocation246_spill] sm:$0xff] }
 0x671   : > { %vm43279_vm2 = vmand %vm45592_vm12, %vm45591_vm9  ;;  %vm6709_vm15 = vcmp.gt.f32.partialorder %v43253_v29, 0.0  ;;  %v30499_v18 = vadd.f32 %v29475_v58, %v28451_v31  ;;  %vm45596_vm10 = vcmp.eq.f32.partialorder %v42922_v53, 0.0  ;;  %v16645_v10 = vmul.f32 1.442695, %v14869_v16  ;;  %v37558_v17 = vpop.eup %37557  ;;  %v45608_v58 = vld [vmem:[#allocation32_spill] sm:$0xff] }
 0x672   : > { %v22965_v7 = vsel %vm45596_vm10, %v12725_v48, 0.0  ;;  %v14853_v11 = vsub.f32 0.0, %v12805_v27  ;;  %vm9781_vm3 = vmor %vm6709_vm15, %vm8757_vm14  ;;  %v21941_v3 = vmul.f32 2.0, %v20917_v28  ;;  %vm45597_vm12 = vcmp.lt.s32.totalorder %v45590_v36, 16  ;;  %v28483_v36 = vld [vmem:[#allocation2 + $0x1400] sm:$0xff] }
 0x673   : > { %vm43296_vm5 = vmand %vm45597_vm12, %vm45591_vm9  ;;  %v13733_v62 = vmax.f32 %v43004_v34, 0.0  ;;  %v19494_v57 = vmul.f32 0.6931472, %v37556_v12  ;;  %v45600_v53 = vsub.f32 0.0, %v45580_v5  ;;  %31523 = vst [vmem:[#allocation2 + $0x1300] sm:$0xff] %v30499_v18  ;;  %v17909_v54 = vadd.f32 1.0, %v37558_v17  ;;  %v3728_v17 = vpop.permute.xlu0 %3727 }
 0x674   : > { %vm43311_vm15 = vmand %vm25187_vm13, %vm43279_vm2  ;;  %37565 = vpow2.f32 %v16645_v10  ;;  %v16613_v31 = vmul.f32 1.442695, %v14853_v11  ;;  %vm7765_vm14 = vcmp.gt.f32.partialorder %v45603_v42, 0.0  ;;  %vm25203_vm13 = vcmp.gt.s32.totalorder %v40931_v55, %v45608_v58  ;;  %v45614_v10 = vld [vmem:[#allocation206_spill] sm:$0xff]  ;;  %v37560_v34 = vpop.eup %37559 }
 0x675   : > { %v43304_v48 = vsel %vm9781_vm3, %v45600_v53, %v45580_v5  ;;  %v23989_v5 = vadd.f32 %v22965_v7, %v21941_v3  ;;  %v20901_v16 = vadd.f32 %v19494_v57, %v13733_v62  ;;  %vm45604_vm10 = vmmov %vm45591_vm9  ;;  %vm45605_vm3 = vcmp.lt.s32.totalorder %v45595_v44, 16  ;;  %v3733_v7 = vpop.permute.xlu1 %3732 }
 0x676   : > { %v12853_v40 = vand.u32 2147483647, %v43304_v48  ;;  %vm43321_vm9 = vmand %vm45605_vm3, %vm45604_vm10  ;;  %v43328_v51 = vsub.f32 %v3718_v9, %v40941_v19  ;;  %vm45609_vm2 = vcmp.eq.f32.partialorder %v42952_v2, 0.0  ;;  %v13781_v12 = vmax.f32 %v43051_v49, 0.0 }
 0x677   : > { %v22949_v28 = vsel %vm45609_vm2, %v12709_v35, 0.0  ;;  %vm45610_vm12 = vmmov %vm45604_vm10  ;;  %vm45611_vm10 = vcmp.lt.s32.totalorder %v45608_v58, 16  ;;  %37567 = vlog2.f32 %v17909_v54  ;;  %vm7749_vm4 = vcmp.gt.f32.partialorder %v45614_v10, 0.0  ;;  %v37562_v3 = vpop.eup %37561  ;;  %v3738_v44 = vpop.permute.xlu0 %3737 }
 0x678   : > { %vm43339_vm3 = vmand %vm45611_vm10, %vm45610_vm12  ;;  %v14901_v9 = vsub.f32 0.0, %v12853_v40  ;;  %v29523_v2 = vsel %vm43311_vm15, %v23989_v5, 0.0  ;;  %v21925_v11 = vmul.f32 2.0, %v20901_v16  ;;  %37569 = vpow2.f32 %v16613_v31  ;;  %v37564_v5 = vpop.eup %37563 }
 0x679   : > { %vm43353_vm2 = vmand %vm25171_vm7, %vm43296_vm5  ;;  %vm5669_vm12 = vcmp.eq.f32.partialorder %v43328_v51, 0.0  ;;  %v30547_v62 = vadd.f32 %v29523_v2, %v28499_v30  ;;  %v19590_v57 = vmul.f32 0.6931472, %v37560_v34  ;;  %vm6693_vm15 = vcmp.gt.f32.partialorder %v43328_v51, 0.0  ;;  %v45620_v2 = vld [vmem:[#allocation207_spill] sm:$0xff]  ;;  %v3743_v58 = vpop.permute.xlu1 %3742 }
 0x67a   : > { %v16709_v53 = vmul.f32 1.442695, %v14901_v9  ;;  %vm8741_vm10 = vmand %vm5669_vm12, %vm7717_vm11  ;;  %v23973_v25 = vadd.f32 %v22949_v28, %v21925_v11  ;;  %v13765_v22 = vmax.f32 %v43097_v13, 0.0  ;;  %v17893_v54 = vadd.f32 1.0, %v37562_v3  ;;  %v45621_v11 = vld [vmem:[#allocation237_spill] sm:$0xff] }
 0x67b   : > { %vm9765_vm5 = vmor %vm6693_vm15, %vm8741_vm10  ;;  %v43365_v31 = vsub.f32 %v3733_v7, %v40941_v19  ;;  %31571 = vst [vmem:[#allocation2 + $0x1480] sm:$0xff] %v30547_v62  ;;  %v20949_v30 = vadd.f32 %v19590_v57, %v13781_v12  ;;  %v45617_v16 = vsub.f32 0.0, %v45589_v60  ;;  %v43373_v34 = vsub.f32 %v3728_v17, %v40941_v19  ;;  %v28531_v57 = vld [vmem:[#allocation2 + $0x1580] sm:$0xff] }
 0x67c   : > { %37571 = vpow2.f32 %v16709_v53  ;;  %v29507_v28 = vsel %vm43353_vm2, %v23973_v25, 0.0  ;;  %vm43382_vm11 = vmand %vm25219_vm6, %vm43321_vm9  ;;  %v19558_v12 = vmul.f32 0.6931472, %v37564_v5  ;;  %vm7797_vm7 = vcmp.gt.f32.partialorder %v45620_v2, 0.0 }
 0x67d   : > { %v43370_v9 = vsel %vm9765_vm5, %v45617_v16, %v45589_v60  ;;  %37573 = vlog2.f32 %v17893_v54  ;;  %v43390_v17 = vsub.f32 %v45621_v11, %v40876_v47  ;;  %v30531_v35 = vadd.f32 %v29507_v28, %v28483_v36  ;;  %vm43397_vm6 = vmand %vm25203_vm13, %vm43339_vm3  ;;  %v28515_v28 = vld [vmem:[#allocation2 + $0x1500] sm:$0xff] }
 0x67e   : > { %v12837_v60 = vand.u32 2147483647, %v43370_v9  ;;  %v21973_v3 = vmul.f32 2.0, %v20949_v30  ;;  %vm5717_vm9 = vcmp.eq.f32.partialorder %v43365_v31, 0.0  ;;  %vm45624_vm2 = vcmp.eq.f32.partialorder %v42961_v56, 0.0  ;;  %v37566_v18 = vpop.eup %37565 }
 0x67f   : > { %v22997_v33 = vsel %vm45624_vm2, %v12757_v41, 0.0  ;;  %v20933_v47 = vadd.f32 %v19558_v12, %v13765_v22  ;;  %vm6741_vm15 = vcmp.gt.f32.partialorder %v43365_v31, 0.0  ;;  %vm8789_vm13 = vmand %vm5717_vm9, %vm7765_vm14  ;;  %31555 = vst [vmem:[#allocation2 + $0x1400] sm:$0xff] %v30531_v35  ;;  %v22981_v56 = vsel %vm5573_vm1, %v12741_v14, 0.0  ;;  %v45628_v35 = vld [vmem:[#allocation35_spill] sm:$0xff] }
 0x680   : > { %v14885_v62 = vsub.f32 0.0, %v12837_v60  ;;  %v24021_v53 = vadd.f32 %v22997_v33, %v21973_v3  ;;  %vm9813_vm3 = vmor %vm6741_vm15, %vm8789_vm13  ;;  %vm44575_vm10 = vcmp.eq.f32.partialorder %v43373_v34, 0.0  ;;  %vm6725_vm5 = vcmp.gt.f32.partialorder %v43373_v34, 0.0 }
 0x681   : > { %v21957_v49 = vmul.f32 2.0, %v20933_v47  ;;  %v17941_v41 = vadd.f32 1.0, %v37566_v18  ;;  %v45625_v25 = vsub.f32 0.0, %v45603_v42  ;;  %vm8773_vm14 = vmand %vm44575_vm10, %vm7749_vm4  ;;  %v37568_v59 = vpop.eup %37567  ;;  %v13813_v14 = vmax.f32 %v43129_v61, 0.0 }
 0x682   : > { %v16677_v36 = vmul.f32 1.442695, %v14885_v62  ;;  %v29555_v13 = vsel %vm43382_vm11, %v24021_v53, 0.0  ;;  %vm43432_vm1 = vmor %vm6725_vm5, %vm8773_vm14  ;;  %v37570_v30 = vpop.eup %37569  ;;  %v19654_v11 = vmul.f32 0.6931472, %v37568_v59  ;;  %vm25251_vm4 = vcmp.gt.s32.totalorder %v40931_v55, %v45628_v35 }
 0x683   : > { %v43422_v22 = vsel %vm9813_vm3, %v45625_v25, %v45603_v42  ;;  %v43437_v42 = vsub.f32 %v3743_v58, %v40941_v19  ;;  %v30579_v16 = vadd.f32 %v29555_v13, %v28531_v57  ;;  %v24005_v12 = vadd.f32 %v22981_v56, %v21957_v49  ;;  %v45634_v57 = vld [vmem:[#allocation208_spill] sm:$0xff] }
 0x684   : > { %v12885_v54 = vand.u32 2147483647, %v43422_v22  ;;  %37575 = vlog2.f32 %v17941_v41  ;;  %vm45629_vm11 = vcmp.lt.s32.totalorder %v40931_v55, 16  ;;  %vm45630_vm2 = vcmp.lt.s32.totalorder %v45628_v35, 16 }
 0x685   : > { %vm43445_vm15 = vmand %vm45630_vm2, %vm45629_vm11  ;;  %v17925_v3 = vadd.f32 1.0, %v37570_v30  ;;  %37577 = vpow2.f32 %v16677_v36  ;;  %31603 = vst [vmem:[#allocation2 + $0x1580] sm:$0xff] %v30579_v16  ;;  %v29539_v47 = vsel %vm43397_vm6, %v24005_v12, 0.0  ;;  %v20981_v62 = vadd.f32 %v19654_v11, %v13813_v14  ;;  %v45637_v14 = vld [vmem:[#allocation209_spill] sm:$0xff]  ;;  %v45638_v11 = vld [vmem:[#allocation34_spill] sm:$0xff] }
 0x686   : > { %v14933_v33 = vsub.f32 0.0, %v12885_v54  ;;  %v45633_v58 = vsub.f32 0.0, %v45614_v10  ;;  %vm44574_vm13 = vcmp.eq.f32.partialorder %v43437_v42, 0.0  ;;  %vm7781_vm3 = vcmp.gt.f32.partialorder %v45634_v57, 0.0  ;;  %v37572_v53 = vpop.eup %37571  ;;  %vm43472_vm5 = vmand %vm25251_vm4, %vm43445_vm15  ;;  %v28563_v12 = vld [vmem:[#allocation2 + $0x1680] sm:$0xff] }
 0x687   : > { %v30563_v56 = vadd.f32 %v29539_v47, %v28515_v28  ;;  %37579 = vlog2.f32 %v17925_v3  ;;  %vm8821_vm6 = vmand %vm44574_vm13, %vm7797_vm7  ;;  %v37574_v36 = vpop.eup %37573  ;;  %v22005_v25 = vmul.f32 2.0, %v20981_v62  ;;  %v23029_v59 = vsel %vm5621_vm0, %v12789_v38, 0.0  ;;  %v3753_v28 = vpop.permute.xlu1 %3752  ;;  %v45644_v3 = vld [vmem:[#allocation37_spill] sm:$0xff]  ;;  %v45645_v62 = vld [vmem:[#allocation210_spill] sm:$0xff] }
 0x688   : > { %v43458_v18 = vsel %vm43432_vm1, %v45633_v58, %v45614_v10  ;;  %v16773_v49 = vmul.f32 1.442695, %v14933_v33  ;;  %v17973_v13 = vadd.f32 1.0, %v37572_v53  ;;  %vm6773_vm7 = vcmp.gt.f32.partialorder %v43437_v42, 0.0  ;;  %vm45640_vm4 = vmmov %vm45629_vm11 }
 0x689   : > { %v12869_v41 = vand.u32 2147483647, %v43458_v18  ;;  %vm7829_vm14 = vcmp.gt.f32.partialorder %v45637_v14, 0.0  ;;  %31587 = vst [vmem:[#allocation2 + $0x1500] sm:$0xff] %v30563_v56  ;;  %v13797_v5 = vmax.f32 %v43197_v26, 0.0  ;;  %vm9845_vm1 = vmor %vm6773_vm7, %vm8821_vm6  ;;  %v24053_v61 = vadd.f32 %v23029_v59, %v22005_v25  ;;  %v3748_v25 = vpop.permute.xlu0 %3747  ;;  %v45660_v59 = vld [vmem:[#allocation39_spill] sm:$0xff] }
 0x68a   : > { %v19622_v30 = vmul.f32 0.6931472, %v37574_v36  ;;  %37581 = vpow2.f32 %v16773_v49  ;;  %vm25235_vm0 = vcmp.gt.s32.totalorder %v40931_v55, %v45638_v11  ;;  %v45639_v20 = vsub.f32 0.0, %v45620_v2  ;;  %vm45646_vm7 = vmmov %vm45640_vm4 }
 0x68b   : > { %v14917_v16 = vsub.f32 0.0, %v12869_v41  ;;  %37583 = vlog2.f32 %v17973_v13  ;;  %vm45641_vm11 = vcmp.lt.s32.totalorder %v45638_v11, 16  ;;  %vm25283_vm15 = vcmp.gt.s32.totalorder %v40931_v55, %v45644_v3 }
 0x68c   : > { %v43490_v38 = vsel %vm9845_vm1, %v45639_v20, %v45620_v2  ;;  %vm43496_vm2 = vmand %vm45641_vm11, %vm45640_vm4  ;;  %v20965_v7 = vadd.f32 %v19622_v30, %v13797_v5  ;;  %vm7813_vm6 = vcmp.gt.f32.partialorder %v45645_v62, 0.0  ;;  %v29587_v2 = vsel %vm43472_vm5, %v24053_v61, 0.0  ;;  %v28547_v30 = vld [vmem:[#allocation2 + $0x1600] sm:$0xff] }
 0x68d   : > { %v16741_v33 = vmul.f32 1.442695, %v14917_v16  ;;  %v12917_v47 = vand.u32 2147483647, %v43490_v38  ;;  %v23013_v58 = vsel %vm5605_vm8, %v12773_v6, 0.0  ;;  %vm45647_vm1 = vcmp.lt.s32.totalorder %v45644_v3, 16  ;;  %vm45650_vm5 = vmmov %vm45646_vm7 }
 0x68e   : > { %vm43514_vm4 = vmand %vm45647_vm1, %vm45646_vm7  ;;  %v43519_v56 = vsub.f32 %v3738_v44, %v40941_v19  ;;  %v43522_v49 = vsub.f32 %v3753_v28, %v40941_v19  ;;  %v30611_v36 = vadd.f32 %v29587_v2, %v28563_v12  ;;  %v21989_v10 = vmul.f32 2.0, %v20965_v7  ;;  %v37576_v44 = vpop.eup %37575 }
 0x68f   : > { %vm45652_vm8 = vcmp.lt.s32.totalorder %v45651_v39, 16  ;;  %37585 = vpow2.f32 %v16741_v33  ;;  %v14965_v6 = vsub.f32 0.0, %v12917_v47  ;;  %vm43539_vm7 = vmand %vm25235_vm0, %vm43496_vm2  ;;  %v13845_v13 = vmax.f32 %v43246_v1, 0.0  ;;  %v37578_v5 = vpop.eup %37577 }
 0x690   : > { %vm43528_vm11 = vmand %vm45652_vm8, %vm45650_vm5  ;;  %vm5733_vm1 = vcmp.eq.f32.partialorder %v43519_v56, 0.0  ;;  %vm6757_vm5 = vcmp.gt.f32.partialorder %v43519_v56, 0.0  ;;  %vm5781_vm8 = vcmp.eq.f32.partialorder %v43522_v49, 0.0  ;;  %31635 = vst [vmem:[#allocation2 + $0x1680] sm:$0xff] %v30611_v36  ;;  %v24037_v16 = vadd.f32 %v23013_v58, %v21989_v10 }
 0x691   : > { %v19718_v28 = vmul.f32 0.6931472, %v37576_v44  ;;  %v16837_v12 = vmul.f32 1.442695, %v14965_v6  ;;  %vm8805_vm0 = vmand %vm5733_vm1, %vm7781_vm3  ;;  %vm6805_vm2 = vcmp.gt.f32.partialorder %v43522_v49, 0.0  ;;  %vm25267_vm13 = vcmp.gt.s32.totalorder %v40931_v55, %v45651_v39  ;;  %v37580_v35 = vpop.eup %37579 }
 0x692   : > { %v13829_v61 = vmax.f32 %v43260_v46, 0.0  ;;  %v17957_v11 = vadd.f32 1.0, %v37578_v5  ;;  %vm9829_vm10 = vmor %vm6757_vm5, %vm8805_vm0  ;;  %v43556_v20 = vsub.f32 %v3748_v25, %v40941_v19  ;;  %v29571_v7 = vsel %vm43539_vm7, %v24037_v16, 0.0 }
 0x693   : > { %v21013_v33 = vadd.f32 %v19718_v28, %v13845_v13  ;;  %37587 = vpow2.f32 %v16837_v12  ;;  %v45657_v2 = vsub.f32 0.0, %v45634_v57  ;;  %vm8853_vm3 = vmand %vm5781_vm8, %vm7829_vm14  ;;  %v30595_v36 = vadd.f32 %v29571_v7, %v28547_v30  ;;  %v45662_v30 = vld [vmem:[#allocation247_spill] sm:$0xff] }
 0x694   : > { %v19686_v10 = vmul.f32 0.6931472, %v37580_v35  ;;  %37589 = vlog2.f32 %v17957_v11  ;;  %vm9877_vm7 = vmor %vm6805_vm2, %vm8853_vm3  ;;  %v37582_v25 = vpop.eup %37581  ;;  %vm25315_vm14 = vcmp.gt.s32.totalorder %v40931_v55, %v45660_v59  ;;  %v45661_v13 = vsub.f32 0.0, %v45637_v14  ;;  %v28595_v11 = vld [vmem:[#allocation2 + $0x1780] sm:$0xff] }
 0x695   : > { %v43563_v58 = vsel %vm9829_vm10, %v45657_v2, %v45634_v57  ;;  %vm43577_vm10 = vmand %vm25283_vm15, %vm43514_vm4  ;;  %v22037_v44 = vmul.f32 2.0, %v21013_v33  ;;  %vm44576_vm5 = vcmp.eq.f32.partialorder %v43556_v20, 0.0  ;;  %vm7861_vm0 = vcmp.gt.f32.partialorder %v45662_v30, 0.0  ;;  %v37584_v53 = vpop.eup %37583  ;;  %31619 = vst [vmem:[#allocation2 + $0x1600] sm:$0xff] %v30595_v36  ;;  %v3763_v36 = vpop.permute.xlu1 %3762 }
 0x696   : > { %v12901_v6 = vand.u32 2147483647, %v43563_v58  ;;  %v43586_v5 = vsel %vm9877_vm7, %v45661_v13, %v45637_v14  ;;  %vm45663_vm15 = vcmp.eq.f32.partialorder %v43180_v23, 0.0  ;;  %v20997_v16 = vadd.f32 %v19686_v10, %v13829_v61  ;;  %vm43600_vm4 = vmand %vm44576_vm5, %vm7813_vm6 }
 0x697   : > { %v23061_v3 = vsel %vm45663_vm15, %v12821_v43, 0.0  ;;  %v18005_v28 = vadd.f32 1.0, %v37582_v25  ;;  %vm45666_vm2 = vcmp.lt.s32.totalorder %v40931_v55, 16  ;;  %vm45667_vm3 = vcmp.lt.s32.totalorder %v45660_v59, 16  ;;  %vm43619_vm6 = vmand %vm25267_vm13, %vm43528_vm11 }
 0x698   : > { %v14949_v12 = vsub.f32 0.0, %v12901_v6  ;;  %v24085_v35 = vadd.f32 %v23061_v3, %v22037_v44  ;;  %vm43608_vm7 = vmand %vm45667_vm3, %vm45666_vm2  ;;  %v13877_v1 = vmax.f32 %v43304_v48, 0.0  ;;  %v19782_v43 = vmul.f32 0.6931472, %v37584_v53  ;;  %v28579_v53 = vld [vmem:[#allocation2 + $0x1700] sm:$0xff] }
 0x699   : > { %v12949_v61 = vand.u32 2147483647, %v43586_v5  ;;  %v22021_v33 = vmul.f32 2.0, %v20997_v16  ;;  %37591 = vlog2.f32 %v18005_v28  ;;  %vm6789_vm15 = vcmp.gt.f32.partialorder %v43556_v20, 0.0  ;;  %v37586_v10 = vpop.eup %37585 }
 0x69a   : > { %v16805_v2 = vmul.f32 1.442695, %v14949_v12  ;;  %v29619_v25 = vsel %vm43577_vm10, %v24085_v35, 0.0  ;;  %vm45672_vm2 = vcmp.eq.f32.partialorder %v43200_v15, 0.0  ;;  %v21045_v39 = vadd.f32 %v19782_v43, %v13877_v1  ;;  %vm9861_vm13 = vmor %vm6789_vm15, %vm43600_vm4  ;;  %v3758_v35 = vpop.permute.xlu0 %3757  ;;  %v28627_v43 = vld [vmem:[#allocation2 + $0x1880] sm:$0xff] }
 0x69b   : > { %v23045_v26 = vsel %vm45672_vm2, %v12805_v27, 0.0  ;;  %v14997_v44 = vsub.f32 0.0, %v12949_v61  ;;  %vm7845_vm11 = vcmp.gt.f32.partialorder %v41313_v0, 0.0  ;;  %v30643_v13 = vadd.f32 %v29619_v25, %v28595_v11  ;;  %vm43650_vm10 = vmand %vm25315_vm14, %vm43608_vm7  ;;  %v3773_v25 = vpop.permute.xlu1 %3772 }
 0x69c   : > { %v24069_v3 = vadd.f32 %v23045_v26, %v22021_v33  ;;  %v17989_v16 = vadd.f32 1.0, %v37586_v10  ;;  %37593 = vpow2.f32 %v16805_v2  ;;  %v22069_v57 = vmul.f32 2.0, %v21045_v39  ;;  %v45677_v33 = vld [vmem:[#allocation38_spill] sm:$0xff] }
 0x69d   : > { %v16901_v28 = vmul.f32 1.442695, %v14997_v44  ;;  %v45673_v15 = vsub.f32 0.0, %v45645_v62  ;;  %v43641_v27 = vsub.f32 %v3763_v36, %v40941_v19  ;;  %31667 = vst [vmem:[#allocation2 + $0x1780] sm:$0xff] %v30643_v13  ;;  %vm45676_vm4 = vcmp.eq.f32.partialorder %v43253_v29, 0.0  ;;  %v37588_v1 = vpop.eup %37587 }
 0x69e   : > { %v29603_v12 = vsel %vm43619_vm6, %v24069_v3, 0.0  ;;  %37595 = vlog2.f32 %v17989_v16  ;;  %vm7893_vm3 = vcmp.gt.f32.partialorder %v41328_v63, 0.0  ;;  %v37590_v59 = vpop.eup %37589  ;;  %vm25299_vm7 = vcmp.gt.s32.totalorder %v40931_v55, %v45677_v33  ;;  %v45683_v16 = vld [vmem:[#allocation41_spill] sm:$0xff] }
 0x69f   : > { %v43638_v46 = vsel %vm9861_vm13, %v45673_v15, %v45645_v62  ;;  %v23093_v62 = vsel %vm45676_vm4, %v12853_v40, 0.0  ;;  %v30627_v23 = vadd.f32 %v29603_v12, %v28579_v53  ;;  %37597 = vpow2.f32 %v16901_v28 }
 0x6a0   : > { %v12933_v11 = vand.u32 2147483647, %v43638_v46  ;;  %v24117_v7 = vadd.f32 %v23093_v62, %v22069_v57  ;;  %vm44577_vm14 = vcmp.eq.f32.partialorder %v43641_v27, 0.0  ;;  %v18037_v48 = vadd.f32 1.0, %v37588_v1 }
 0x6a1   : > { %vm6837_vm6 = vcmp.gt.f32.partialorder %v43641_v27, 0.0  ;;  %vm8885_vm15 = vmand %vm44577_vm14, %vm7861_vm0  ;;  %31651 = vst [vmem:[#allocation2 + $0x1700] sm:$0xff] %v30627_v23  ;;  %v13861_v2 = vmax.f32 %v43370_v9, 0.0  ;;  %v19750_v36 = vmul.f32 0.6931472, %v37590_v59  ;;  %v43674_v10 = vsub.f32 %v3758_v35, %v40941_v19  ;;  %v3768_v23 = vpop.permute.xlu0 %3767 }
 0x6a2   : > { %v14981_v29 = vsub.f32 0.0, %v12933_v11  ;;  %v29651_v40 = vsel %vm43650_vm10, %v24117_v7, 0.0  ;;  %vm9909_vm2 = vmor %vm6837_vm6, %vm8885_vm15  ;;  %vm45678_vm13 = vcmp.lt.s32.totalorder %v40931_v55, 16  ;;  %vm45679_vm4 = vcmp.lt.s32.totalorder %v45677_v33, 16 }
 0x6a3   : > { %v30675_v26 = vadd.f32 %v29651_v40, %v28627_v43  ;;  %vm43680_vm5 = vmand %vm45679_vm4, %vm45678_vm13  ;;  %37599 = vlog2.f32 %v18037_v48  ;;  %v45682_v13 = vsub.f32 0.0, %v45662_v30  ;;  %v21029_v3 = vadd.f32 %v19750_v36, %v13861_v2  ;;  %v37592_v15 = vpop.eup %37591  ;;  %v45691_v2 = vld [vmem:[#allocation43_spill] sm:$0xff] }
 0x6a4   : > { %v16869_v44 = vmul.f32 1.442695, %v14981_v29  ;;  %vm25347_vm0 = vcmp.gt.s32.totalorder %v40931_v55, %v45683_v16  ;;  %vm45684_vm10 = vmmov %vm45678_vm13  ;;  %vm45685_vm6 = vcmp.lt.s32.totalorder %v45683_v16, 16  ;;  %vm5797_vm13 = vcmp.eq.f32.partialorder %v43674_v10, 0.0  ;;  %v28611_v29 = vld [vmem:[#allocation2 + $0x1800] sm:$0xff] }
 0x6a5   : > { %v43687_v53 = vsel %vm9909_vm2, %v45682_v13, %v45662_v30  ;;  %vm43695_vm15 = vmand %vm45685_vm6, %vm45684_vm10  ;;  %31699 = vst [vmem:[#allocation2 + $0x1880] sm:$0xff] %v30675_v26  ;;  %v45688_v30 = vld [vmem:[#allocation40_spill] sm:$0xff]  ;;  %vm6821_vm4 = vcmp.gt.f32.partialorder %v43674_v10, 0.0  ;;  %v43709_v12 = vsub.f32 %v3773_v25, %v40941_v19  ;;  %v22053_v14 = vmul.f32 2.0, %v21029_v3  ;;  %v45707_v25 = vld [vmem:[#allocation42_spill] sm:$0xff] }
 0x6a6   : > { %v12981_v28 = vand.u32 2147483647, %v43687_v53  ;;  %vm25331_vm2 = vcmp.gt.s32.totalorder %v40931_v55, %v45688_v30  ;;  %37601 = vpow2.f32 %v16869_v44  ;;  %vm8869_vm10 = vmand %vm5797_vm13, %vm7845_vm11  ;;  %v13909_v62 = vmax.f32 %v43422_v22, 0.0  ;;  %v37594_v43 = vpop.eup %37593 }
 0x6a7   : > { %v19846_v35 = vmul.f32 0.6931472, %v37592_v15  ;;  %vm9893_vm6 = vmor %vm6821_vm4, %vm8869_vm10  ;;  %v23077_v59 = vsel %vm5669_vm12, %v12837_v60, 0.0  ;;  %vm5845_vm11 = vcmp.eq.f32.partialorder %v43709_v12, 0.0  ;;  %vm6869_vm4 = vcmp.gt.f32.partialorder %v43709_v12, 0.0 }
 0x6a8   : > { %v15029_v1 = vsub.f32 0.0, %v12981_v28  ;;  %vm43719_vm14 = vmand %vm25299_vm7, %vm43680_vm5  ;;  %v43730_v48 = vsel %vm9893_vm6, %v10917_v50, %v41313_v0  ;;  %v24101_v33 = vadd.f32 %v23077_v59, %v22053_v14  ;;  %vm25379_vm5 = vcmp.gt.s32.totalorder %v40931_v55, %v45691_v2  ;;  %v37596_v51 = vpop.eup %37595 }
 0x6a9   : > { %v21077_v40 = vadd.f32 %v19846_v35, %v13909_v62  ;;  %v18021_v36 = vadd.f32 1.0, %v37594_v43  ;;  %vm8917_vm12 = vmand %vm5845_vm11, %vm7893_vm3  ;;  %v23125_v0 = vsel %vm5717_vm9, %v12885_v54, 0.0  ;;  %v13893_v50 = vmax.f32 %v43458_v18, 0.0  ;;  %v37598_v39 = vpop.eup %37597  ;;  %v28659_v62 = vld [vmem:[#allocation2 + $0x1980] sm:$0xff] }
 0x6aa   : > { %v16965_v9 = vmul.f32 1.442695, %v15029_v1  ;;  %v12965_v60 = vand.u32 2147483647, %v43730_v48  ;;  %vm43746_vm7 = vmor %vm6869_vm4, %vm8917_vm12  ;;  %v43751_v26 = vsub.f32 %v3768_v23, %v40941_v19  ;;  %v29635_v44 = vsel %vm43719_vm14, %v24101_v33, 0.0  ;;  %v3783_v33 = vpop.permute.xlu1 %3782 }
 0x6ab   : > { %v22101_v13 = vmul.f32 2.0, %v21077_v40  ;;  %vm45694_vm3 = vcmp.lt.s32.totalorder %v40931_v55, 16  ;;  %vm45695_vm9 = vcmp.lt.s32.totalorder %v45688_v30, 16  ;;  %v19814_v22 = vmul.f32 0.6931472, %v37596_v51  ;;  %vm43768_vm6 = vmand %vm25347_vm0, %vm43695_vm15  ;;  %v28643_v51 = vld [vmem:[#allocation2 + $0x1900] sm:$0xff] }
 0x6ac   : > { %vm43759_vm10 = vmand %vm45695_vm9, %vm45694_vm3  ;;  %37603 = vlog2.f32 %v18021_v36  ;;  %v30659_v54 = vadd.f32 %v29635_v44, %v28611_v29  ;;  %v18069_v15 = vadd.f32 1.0, %v37598_v39  ;;  %v15013_v14 = vsub.f32 0.0, %v12965_v60 }
 0x6ad   : > { %37605 = vpow2.f32 %v16965_v9  ;;  %v24149_v35 = vadd.f32 %v23125_v0, %v22101_v13  ;;  %v21061_v1 = vadd.f32 %v19814_v22, %v13893_v50  ;;  %v13941_v23 = vmax.f32 %v43490_v38, 0.0  ;;  %v37600_v57 = vpop.eup %37599  ;;  %vm43791_vm0 = vmand %vm25331_vm2, %vm43759_vm10 }
 0x6ae   : > { %v43780_v16 = vsel %vm43746_vm7, %v10965_v4, %v41328_v63  ;;  %31683 = vst [vmem:[#allocation2 + $0x1800] sm:$0xff] %v30659_v54  ;;  %37607 = vlog2.f32 %v18069_v15  ;;  %v16933_v43 = vmul.f32 1.442695, %v15013_v14  ;;  %vm7877_vm14 = vcmp.gt.f32.partialorder %v41982_v52, 0.0  ;;  %vm45703_vm12 = vmmov %vm45694_vm3  ;;  %v3778_v54 = vpop.permute.xlu0 %3777  ;;  %v3793_v50 = vpop.permute.xlu1 %3792 }
 0x6af   : > { %v13013_v7 = vand.u32 2147483647, %v43780_v16  ;;  %v29683_v59 = vsel %vm43768_vm6, %v24149_v35, 0.0  ;;  %v22085_v63 = vmul.f32 2.0, %v21061_v1  ;;  %v19910_v4 = vmul.f32 0.6931472, %v37600_v57 }
 0x6b0   : > { %vm5829_vm15 = vcmp.eq.f32.partialorder %v43751_v26, 0.0  ;;  %v37602_v40 = vpop.eup %37601  ;;  %v30707_v36 = vadd.f32 %v29683_v59, %v28659_v62  ;;  %vm45702_vm4 = vcmp.eq.f32.partialorder %v43373_v34, 0.0  ;;  %37609 = vpow2.f32 %v16933_v43  ;;  %v28691_v62 = vld [vmem:[#allocation2 + $0x1a80] sm:$0xff] }
 0x6b1   : > { %v23109_v9 = vsel %vm45702_vm4, %v12869_v41, 0.0  ;;  %v15061_v30 = vsub.f32 0.0, %v13013_v7  ;;  %vm8901_vm2 = vmand %vm5829_vm15, %vm7877_vm14  ;;  %vm45704_vm7 = vcmp.lt.s32.totalorder %v45691_v2, 16  ;;  %v21109_v18 = vadd.f32 %v19910_v4, %v13941_v23  ;;  %v45715_v43 = vld [vmem:[#allocation45_spill] sm:$0xff] }
 0x6b2   : > { %v24133_v0 = vadd.f32 %v23109_v9, %v22085_v63  ;;  %vm43808_vm3 = vmand %vm45704_vm7, %vm45703_vm12  ;;  %v18053_v34 = vadd.f32 1.0, %v37602_v40  ;;  %vm6853_vm9 = vcmp.gt.f32.partialorder %v43751_v26, 0.0  ;;  %v11029_v41 = vsub.f32 0.0, %v42597_v37  ;;  %31731 = vst [vmem:[#allocation2 + $0x1980] sm:$0xff] %v30707_v36  ;;  %v45716_v40 = vld [vmem:[#allocation44_spill] sm:$0xff] }
 0x6b3   : > { %vm25363_vm10 = vcmp.gt.s32.totalorder %v40931_v55, %v45707_v25  ;;  %v17029_v39 = vmul.f32 1.442695, %v15061_v30  ;;  %vm9925_vm6 = vmor %vm6853_vm9, %vm8901_vm2  ;;  %v43817_v44 = vsub.f32 %v3783_v33, %v40941_v19  ;;  %v22133_v31 = vmul.f32 2.0, %v21109_v18  ;;  %v28707_v30 = vld [vmem:[#allocation2 + $0x1b00] sm:$0xff] }
 0x6b4   : > { %v29667_v13 = vsel %vm43791_vm0, %v24133_v0, 0.0  ;;  %37611 = vlog2.f32 %v18053_v34  ;;  %v43824_v22 = vsel %vm9925_vm6, %v10949_v32, %v41982_v52  ;;  %vm43831_vm14 = vmand %vm25379_vm5, %vm43808_vm3  ;;  %vm45710_vm0 = vcmp.eq.f32.partialorder %v43437_v42, 0.0 }
 0x6b5   : > { %v30691_v3 = vadd.f32 %v29667_v13, %v28643_v51  ;;  %v23157_v14 = vsel %vm45710_vm0, %v12917_v47, 0.0  ;;  %37613 = vpow2.f32 %v17029_v39  ;;  %v12997_v52 = vand.u32 2147483647, %v43824_v22  ;;  %vm45711_vm4 = vmmov %vm45703_vm12 }
 0x6b6   : > { %v37604_v32 = vpop.eup %37603  ;;  %v24181_v35 = vadd.f32 %v23157_v14, %v22133_v31  ;;  %vm45712_vm2 = vcmp.lt.s32.totalorder %v45707_v25, 16  ;;  %vm5877_vm5 = vcmp.eq.f32.partialorder %v43817_v44, 0.0  ;;  %vm6901_vm7 = vcmp.gt.f32.partialorder %v43817_v44, 0.0  ;;  %v28675_v31 = vld [vmem:[#allocation2 + $0x1a00] sm:$0xff] }
 0x6b7   : > { %vm43844_vm12 = vmand %vm45712_vm2, %vm45711_vm4  ;;  %vm7925_vm3 = vcmp.gt.f32.partialorder %v42153_v24, 0.0  ;;  %v37606_v42 = vpop.eup %37605  ;;  %31715 = vst [vmem:[#allocation2 + $0x1900] sm:$0xff] %v30691_v3  ;;  %v13925_v38 = vmax.f32 %v43563_v58, 0.0  ;;  %v19878_v47 = vmul.f32 0.6931472, %v37604_v32  ;;  %v15045_v1 = vsub.f32 0.0, %v12997_v52 }
 0x6b8   : > { %vm8949_vm9 = vmand %vm5877_vm5, %vm7925_vm3  ;;  %v43857_v23 = vsub.f32 %v3778_v54, %v40941_v19  ;;  %v29715_v57 = vsel %vm43831_vm14, %v24181_v35, 0.0  ;;  %vm25411_vm6 = vcmp.gt.s32.totalorder %v40931_v55, %v45715_v43  ;;  %v13973_v59 = vmax.f32 %v43586_v5, 0.0  ;;  %v37608_v63 = vpop.eup %37607  ;;  %v3788_v35 = vpop.permute.xlu0 %3787 }
 0x6b9   : > { %v18101_v29 = vadd.f32 1.0, %v37606_v42  ;;  %vm9973_vm0 = vmor %vm6901_vm7, %vm8949_vm9  ;;  %v30739_v4 = vadd.f32 %v29715_v57, %v28691_v62  ;;  %v21093_v33 = vadd.f32 %v19878_v47, %v13925_v38  ;;  %vm25395_vm4 = vcmp.gt.s32.totalorder %v40931_v55, %v45716_v40  ;;  %v28723_v42 = vld [vmem:[#allocation2 + $0x1b80] sm:$0xff] }
 0x6ba   : > { %v16997_v36 = vmul.f32 1.442695, %v15045_v1  ;;  %v43869_v9 = vsel %vm9973_vm0, %v10997_v21, %v42153_v24  ;;  %vm45717_vm14 = vcmp.lt.s32.totalorder %v40931_v55, 16  ;;  %vm45718_vm2 = vcmp.lt.s32.totalorder %v45715_v43, 16  ;;  %v37610_v18 = vpop.eup %37609  ;;  %vm43886_vm9 = vmand %vm25363_vm10, %vm43844_vm12  ;;  %v45732_v24 = vld [vmem:[#allocation47_spill] sm:$0xff] }
 0x6bb   : > { %vm43875_vm3 = vmand %vm45718_vm2, %vm45717_vm14  ;;  %v19974_v51 = vmul.f32 0.6931472, %v37608_v63  ;;  %37615 = vlog2.f32 %v18101_v29  ;;  %v13045_v0 = vand.u32 2147483647, %v43869_v9  ;;  %vm7909_vm7 = vcmp.gt.f32.partialorder %v42197_v8, 0.0  ;;  %31763 = vst [vmem:[#allocation2 + $0x1a80] sm:$0xff] %v30739_v4 }
 0x6bc   : > { %v22117_v21 = vmul.f32 2.0, %v21093_v33  ;;  %37617 = vpow2.f32 %v16997_v36  ;;  %vm5861_vm0 = vcmp.eq.f32.partialorder %v43857_v23, 0.0  ;;  %vm6885_vm14 = vcmp.gt.f32.partialorder %v43857_v23, 0.0  ;;  %v28787_v33 = vld [vmem:[#allocation2 + $0x1d80] sm:$0xff] }
 0x6bd   : > { %v23141_v34 = vsel %vm5733_vm1, %v12901_v6, 0.0  ;;  %v21141_v39 = vadd.f32 %v19974_v51, %v13973_v59  ;;  %v18085_v13 = vadd.f32 1.0, %v37610_v18  ;;  %v15093_v25 = vsub.f32 0.0, %v13045_v0  ;;  %vm8933_vm10 = vmand %vm5861_vm0, %vm7909_vm7 }
 0x6be   : > { %v24165_v54 = vadd.f32 %v23141_v34, %v22117_v21  ;;  %v23189_v3 = vsel %vm5781_vm8, %v12949_v61, 0.0  ;;  %v13957_v58 = vmax.f32 %v43638_v46, 0.0  ;;  %vm9957_vm12 = vmor %vm6885_vm14, %vm8933_vm10  ;;  %v43906_v56 = vsub.f32 %v3793_v50, %v40941_v19  ;;  %v37612_v6 = vpop.eup %37611 }
 0x6bf   : > { %v22165_v15 = vmul.f32 2.0, %v21141_v39  ;;  %37619 = vlog2.f32 %v18085_v13  ;;  %v17093_v14 = vmul.f32 1.442695, %v15093_v25  ;;  %v43911_v32 = vsel %vm9957_vm12, %v10981_v45, %v42197_v8  ;;  %v37614_v62 = vpop.eup %37613  ;;  %vm43920_vm1 = vmand %vm25411_vm6, %vm43875_vm3 }
 0x6c0   : > { %v29699_v49 = vsel %vm43886_vm9, %v24165_v54, 0.0  ;;  %v19942_v61 = vmul.f32 0.6931472, %v37612_v6  ;;  %vm45725_vm8 = vcmp.eq.f32.partialorder %v43556_v20, 0.0  ;;  %v13029_v45 = vand.u32 2147483647, %v43911_v32 }
 0x6c1   : > { %v23173_v8 = vsel %vm45725_vm8, %v12933_v11, 0.0  ;;  %v30723_v2 = vadd.f32 %v29699_v49, %v28675_v31  ;;  %v24213_v38 = vadd.f32 %v23189_v3, %v22165_v15  ;;  %v18133_v47 = vadd.f32 1.0, %v37614_v62  ;;  %v45738_v62 = vld [vmem:[#allocation46_spill] sm:$0xff]  ;;  %v28755_v49 = vld [vmem:[#allocation2 + $0x1c80] sm:$0xff] }
 0x6c2   : > { %37621 = vpow2.f32 %v17093_v14  ;;  %vm45726_vm2 = vcmp.lt.s32.totalorder %v40931_v55, 16  ;;  %vm45727_vm6 = vcmp.lt.s32.totalorder %v45716_v40, 16  ;;  %v21125_v46 = vadd.f32 %v19942_v61, %v13957_v58 }
 0x6c3   : > { %vm43933_vm3 = vmand %vm45727_vm6, %vm45726_vm2  ;;  %v15077_v20 = vsub.f32 0.0, %v13029_v45  ;;  %vm5909_vm7 = vcmp.eq.f32.partialorder %v43906_v56, 0.0  ;;  %vm7957_vm9 = vcmp.gt.f32.partialorder %v42597_v37, 0.0  ;;  %31747 = vst [vmem:[#allocation2 + $0x1a00] sm:$0xff] %v30723_v2  ;;  %v29747_v11 = vsel %vm43920_vm1, %v24213_v38, 0.0 }
 0x6c4   : > { %37623 = vlog2.f32 %v18133_v47  ;;  %vm6933_vm14 = vcmp.gt.f32.partialorder %v43906_v56, 0.0  ;;  %vm8981_vm10 = vmand %vm5909_vm7, %vm7957_vm9  ;;  %v43947_v57 = vsub.f32 %v3788_v35, %v40941_v19  ;;  %v30771_v43 = vadd.f32 %v29747_v11, %v28723_v42 }
 0x6c5   : > { %v22149_v59 = vmul.f32 2.0, %v21125_v46  ;;  %v14005_v29 = vmax.f32 %v43687_v53, 0.0  ;;  %v17061_v63 = vmul.f32 1.442695, %v15077_v20  ;;  %vm10005_vm12 = vmor %vm6933_vm14, %vm8981_vm10  ;;  %v37616_v4 = vpop.eup %37615  ;;  %vm7941_vm6 = vcmp.gt.f32.partialorder %v43390_v17, 0.0  ;;  %v28739_v20 = vld [vmem:[#allocation2 + $0x1c00] sm:$0xff] }
 0x6c6   : > { %vm43955_vm1 = vmand %vm25395_vm4, %vm43933_vm3  ;;  %v43962_v19 = vsel %vm10005_vm12, %v11029_v41, %v42597_v37  ;;  %vm5893_vm8 = vcmp.eq.f32.partialorder %v43947_v57, 0.0  ;;  %vm6917_vm2 = vcmp.gt.f32.partialorder %v43947_v57, 0.0  ;;  %v37618_v36 = vpop.eup %37617  ;;  %31795 = vst [vmem:[#allocation2 + $0x1b80] sm:$0xff] %v30771_v43  ;;  %v20038_v40 = vmul.f32 0.6931472, %v37616_v4  ;;  %v45741_v43 = vld [vmem:[#allocation49_spill] sm:$0xff] }
 0x6c7   : > { %v24197_v51 = vadd.f32 %v23173_v8, %v22149_v59  ;;  %37625 = vpow2.f32 %v17061_v63  ;;  %v13077_v50 = vand.u32 2147483647, %v43962_v19  ;;  %vm8965_vm4 = vmand %vm5893_vm8, %vm7941_vm6  ;;  %v11013_v37 = vsub.f32 0.0, %v43390_v17 }
 0x6c8   : > { %v18117_v41 = vadd.f32 1.0, %v37618_v36  ;;  %vm9989_vm3 = vmor %vm6917_vm2, %vm8965_vm4  ;;  %vm25443_vm9 = vcmp.gt.s32.totalorder %v40931_v55, %v45732_v24  ;;  %vm45733_vm14 = vcmp.lt.s32.totalorder %v40931_v55, 16  ;;  %vm45734_vm10 = vcmp.lt.s32.totalorder %v45732_v24, 16 }
 0x6c9   : > { %v29731_v18 = vsel %vm43955_vm1, %v24197_v51, 0.0  ;;  %vm26707_vm12 = vmand %vm45734_vm10, %vm45733_vm14  ;;  %v21173_v21 = vadd.f32 %v20038_v40, %v14005_v29  ;;  %v15125_v34 = vsub.f32 0.0, %v13077_v50  ;;  %v37620_v39 = vpop.eup %37619  ;;  %v43982_v25 = vsel %vm9989_vm3, %v11013_v37, %v43390_v17 }
 0x6ca   : > { %v30755_v13 = vadd.f32 %v29731_v18, %v28707_v30  ;;  %37627 = vlog2.f32 %v18117_v41  ;;  %v13989_v54 = vmax.f32 %v43730_v48, 0.0  ;;  %v20006_v3 = vmul.f32 0.6931472, %v37620_v39  ;;  %vm43985_vm1 = vmand %vm25443_vm9, %vm26707_vm12  ;;  %v45744_v41 = vld [vmem:[#allocation48_spill] sm:$0xff] }
 0x6cb   : > { %v22197_v31 = vmul.f32 2.0, %v21173_v21  ;;  %v17157_v58 = vmul.f32 1.442695, %v15125_v34  ;;  %vm45737_vm2 = vcmp.eq.f32.partialorder %v43641_v27, 0.0  ;;  %vm25427_vm6 = vcmp.gt.s32.totalorder %v40931_v55, %v45738_v62  ;;  %vm45739_vm4 = vmmov %vm45733_vm14 }
 0x6cc   : > { %v37622_v6 = vpop.eup %37621  ;;  %31779 = vst [vmem:[#allocation2 + $0x1b00] sm:$0xff] %v30755_v13  ;;  %v23221_v14 = vsel %vm45737_vm2, %v12981_v28, 0.0  ;;  %v13061_v17 = vand.u32 2147483647, %v43982_v25  ;;  %vm45740_vm3 = vcmp.lt.s32.totalorder %v45738_v62, 16  ;;  %v21157_v61 = vadd.f32 %v20006_v3, %v13989_v54  ;;  %vm45742_vm12 = vmmov %vm45739_vm4  ;;  %v28771_v13 = vld [vmem:[#allocation2 + $0x1d00] sm:$0xff] }
 0x6cd   : > { %v24245_v5 = vadd.f32 %v23221_v14, %v22197_v31  ;;  %vm26691_vm9 = vmand %vm45740_vm3, %vm45739_vm4  ;;  %v18165_v8 = vadd.f32 1.0, %v37622_v6  ;;  %37629 = vpow2.f32 %v17157_v58  ;;  %v14037_v53 = vmax.f32 %v43780_v16, 0.0  ;;  %v45746_v3 = vld [vmem:[#allocation51_spill] sm:$0xff] }
 0x6ce   : > { %v37624_v35 = vpop.eup %37623  ;;  %v15109_v27 = vsub.f32 0.0, %v13061_v17  ;;  %v22181_v2 = vmul.f32 2.0, %v21157_v61  ;;  %vm27715_vm14 = vmand %vm25427_vm6, %vm26691_vm9  ;;  %v23205_v47 = vsel %vm5797_vm13, %v12965_v60, 0.0  ;;  %vm25475_vm10 = vcmp.gt.s32.totalorder %v40931_v55, %v45741_v43 }
 0x6cf   : > { %v29779_v28 = vsel %vm43985_vm1, %v24245_v5, 0.0  ;;  %v20102_v42 = vmul.f32 0.6931472, %v37624_v35  ;;  %37631 = vlog2.f32 %v18165_v8  ;;  %vm45743_vm1 = vcmp.lt.s32.totalorder %v45741_v43, 16  ;;  %v28819_v5 = vld [vmem:[#allocation2 + $0x1e80] sm:$0xff]  ;;  %v45749_v8 = vld [vmem:[#allocation50_spill] sm:$0xff] }
 0x6d0   : > { %v30803_v38 = vadd.f32 %v29779_v28, %v28755_v49  ;;  %v17125_v1 = vmul.f32 1.442695, %v15109_v27  ;;  %v24229_v11 = vadd.f32 %v23205_v47, %v22181_v2  ;;  %vm26739_vm2 = vmand %vm45743_vm1, %vm45742_vm12  ;;  %v23253_v4 = vsel %vm5845_vm11, %v13013_v7, 0.0  ;;  %v28803_v28 = vld [vmem:[#allocation2 + $0x1e00] sm:$0xff] }
 0x6d1   : > { %v37626_v46 = vpop.eup %37625  ;;  %v21205_v59 = vadd.f32 %v20102_v42, %v14037_v53  ;;  %vm27763_vm13 = vmand %vm25475_vm10, %vm26739_vm2  ;;  %v14021_v30 = vmax.f32 %v43824_v22, 0.0  ;;  %vm25459_vm6 = vcmp.gt.s32.totalorder %v40931_v55, %v45744_v41  ;;  %vm45745_vm3 = vcmp.lt.s32.totalorder %v45744_v41, 16 }
 0x6d2   : > { %31827 = vst [vmem:[#allocation2 + $0x1c80] sm:$0xff] %v30803_v38  ;;  %v18149_v29 = vadd.f32 1.0, %v37626_v46  ;;  %37633 = vpow2.f32 %v17125_v1  ;;  %v29763_v48 = vsel %vm27715_vm14, %v24229_v11, 0.0  ;;  %vm26723_vm9 = vmand %vm45745_vm3, %vm45739_vm4  ;;  %v23237_v21 = vsel %vm5829_vm15, %v12997_v52, 0.0  ;;  %v45752_v1 = vld [vmem:[#allocation53_spill] sm:$0xff] }
 0x6d3   : > { %v22229_v63 = vmul.f32 2.0, %v21205_v59  ;;  %v30787_v60 = vadd.f32 %v29763_v48, %v28739_v20  ;;  %vm27747_vm11 = vmand %vm25459_vm6, %vm26723_vm9  ;;  %v14069_v34 = vmax.f32 %v43869_v9, 0.0  ;;  %vm25507_vm14 = vcmp.gt.s32.totalorder %v40931_v55, %v45746_v3  ;;  %v28851_v59 = vld [vmem:[#allocation2 + $0x1f80] sm:$0xff] }
 0x6d4   : > { %v37628_v10 = vpop.eup %37627  ;;  %37635 = vlog2.f32 %v18149_v29  ;;  %vm45747_vm10 = vmmov %vm45739_vm4  ;;  %vm45748_vm12 = vcmp.lt.s32.totalorder %v45746_v3, 16  ;;  %v23285_v14 = vsel %vm5877_vm5, %v13045_v0, 0.0  ;;  %v14053_v62 = vmax.f32 %v43911_v32, 0.0  ;;  %v45755_v48 = vld [vmem:[#allocation52_spill] sm:$0xff] }
 0x6d5   : > { %v24277_v36 = vadd.f32 %v23253_v4, %v22229_v63  ;;  %v20070_v51 = vmul.f32 0.6931472, %v37628_v10  ;;  %31811 = vst [vmem:[#allocation2 + $0x1c00] sm:$0xff] %v30787_v60  ;;  %vm26771_vm1 = vmand %vm45748_vm12, %vm45747_vm10  ;;  %vm25491_vm2 = vcmp.gt.s32.totalorder %v40931_v55, %v45749_v8  ;;  %vm45751_vm6 = vcmp.lt.s32.totalorder %v45749_v8, 16 }
 0x6d6   : > { %vm27795_vm15 = vmand %vm25507_vm14, %vm26771_vm1  ;;  %v23269_v27 = vsel %vm5861_vm0, %v13029_v45, 0.0  ;;  %v14101_v42 = vmax.f32 %v43962_v19, 0.0  ;;  %vm25539_vm3 = vcmp.gt.s32.totalorder %v40931_v55, %v45752_v1  ;;  %v23317_v45 = vsel %vm5909_vm7, %v13077_v50, 0.0  ;;  %v28835_v50 = vld [vmem:[#allocation2 + $0x1f00] sm:$0xff] }
 0x6d7   : > { %v37630_v40 = vpop.eup %37629  ;;  %v29811_v37 = vsel %vm27763_vm13, %v24277_v36, 0.0  ;;  %v21189_v16 = vadd.f32 %v20070_v51, %v14021_v30  ;;  %vm45750_vm13 = vmmov %vm45739_vm4  ;;  %v14085_v11 = vmax.f32 %v43982_v25, 0.0  ;;  %vm45757_vm1 = vcmp.lt.s32.totalorder %v45755_v48, 16 }
 0x6d8   : > { %v30835_v12 = vadd.f32 %v29811_v37, %v28787_v33  ;;  %v18197_v7 = vadd.f32 1.0, %v37630_v40  ;;  %vm26755_vm4 = vmand %vm45751_vm6, %vm45750_vm13  ;;  %v23301_v56 = vsel %vm5893_vm8, %v13061_v17, 0.0 }
 0x6d9   : > { %v37632_v18 = vpop.eup %37631  ;;  %v22213_v24 = vmul.f32 2.0, %v21189_v16  ;;  %vm27779_vm5 = vmand %vm25491_vm2, %vm26755_vm4 }
 0x6da   : > { %31859 = vst [vmem:[#allocation2 + $0x1d80] sm:$0xff] %v30835_v12  ;;  %v20166_v39 = vmul.f32 0.6931472, %v37632_v18  ;;  %37637 = vlog2.f32 %v18197_v7  ;;  %vm45753_vm9 = vmmov %vm45747_vm10  ;;  %vm25523_vm10 = vcmp.gt.s32.totalorder %v40931_v55, %v45755_v48 }
 0x6db   : > { %v24261_v31 = vadd.f32 %v23237_v21, %v22213_v24  ;;  %vm45756_vm12 = vmmov %vm45753_vm9 }
 0x6dc   : > { %v37634_v54 = vpop.eup %37633  ;;  %v21237_v58 = vadd.f32 %v20166_v39, %v14069_v34 }
 0x6dd   : > { %v29795_v22 = vsel %vm27747_vm11, %v24261_v31, 0.0  ;;  %v18181_v6 = vadd.f32 1.0, %v37634_v54  ;;  %vm45754_vm11 = vcmp.lt.s32.totalorder %v45752_v1, 16 }
 0x6de   : > { %v37636_v26 = vpop.eup %37635  ;;  %v30819_v52 = vadd.f32 %v29795_v22, %v28771_v13  ;;  %v22261_v15 = vmul.f32 2.0, %v21237_v58  ;;  %vm26803_vm14 = vmand %vm45754_vm11, %vm45753_vm9 }
 0x6df   : > { %v20134_v49 = vmul.f32 0.6931472, %v37636_v26  ;;  %37639 = vlog2.f32 %v18181_v6  ;;  %vm27827_vm0 = vmand %vm25539_vm3, %vm26803_vm14 }
 0x6e0   : > { %31843 = vst [vmem:[#allocation2 + $0x1d00] sm:$0xff] %v30819_v52  ;;  %v24309_v61 = vadd.f32 %v23285_v14, %v22261_v15 }
 0x6e1   : > { %v21221_v35 = vadd.f32 %v20134_v49, %v14053_v62 }
 0x6e2   : > { %v29843_v9 = vsel %vm27795_vm15, %v24309_v61, 0.0  ;;  %vm26787_vm15 = vmand %vm45757_vm1, %vm45756_vm12 }
 0x6e3   : > { %v30867_v53 = vadd.f32 %v29843_v9, %v28819_v5  ;;  %v22245_v44 = vmul.f32 2.0, %v21221_v35  ;;  %vm27811_vm2 = vmand %vm25523_vm10, %vm26787_vm15 }
 0x6e4   : > { %v37638_v0 = vpop.eup %37637 }
 0x6e5   : > { %31891 = vst [vmem:[#allocation2 + $0x1e80] sm:$0xff] %v30867_v53  ;;  %v24293_v2 = vadd.f32 %v23269_v27, %v22245_v44  ;;  %v20230_v38 = vmul.f32 0.6931472, %v37638_v0 }
 0x6e7   : > { %v29827_v47 = vsel %vm27779_vm5, %v24293_v2, 0.0  ;;  %v21269_v46 = vadd.f32 %v20230_v38, %v14101_v42 }
 0x6e8   : > { %v30851_v32 = vadd.f32 %v29827_v47, %v28803_v28 }
 0x6e9   : > { %v37640_v20 = vpop.eup %37639  ;;  %v22293_v23 = vmul.f32 2.0, %v21269_v46 }
 0x6ea   : > { %31875 = vst [vmem:[#allocation2 + $0x1e00] sm:$0xff] %v30851_v32  ;;  %v20198_v43 = vmul.f32 0.6931472, %v37640_v20 }
 0x6eb   : > { %v24341_v29 = vadd.f32 %v23317_v45, %v22293_v23 }
 0x6ec   : > { %v21253_v63 = vadd.f32 %v20198_v43, %v14085_v11 }
 0x6ed   : > { %v29875_v10 = vsel %vm27827_vm0, %v24341_v29, 0.0 }
 0x6ee   : > { %v30899_v60 = vadd.f32 %v29875_v10, %v28851_v59  ;;  %v22277_v19 = vmul.f32 2.0, %v21253_v63 }
 0x6f0   : > { %31923 = vst [vmem:[#allocation2 + $0x1f80] sm:$0xff] %v30899_v60  ;;  %v24325_v4 = vadd.f32 %v23301_v56, %v22277_v19 }
 0x6f2   : > { %v29859_v33 = vsel %vm27811_vm2, %v24325_v4, 0.0 }
 0x6f3   : > { %v30883_v36 = vadd.f32 %v29859_v33, %v28835_v50 }
 0x6f5   : > { %31907 = vst [vmem:[#allocation2 + $0x1f00] sm:$0xff] %v30883_v36 }
 0x6f6 PF: > { %v35017_v55 = vld [vmem:[#allocation2] sm:$0xff]  ;;  %v35018_v30 = vld [vmem:[#allocation2 + $0x8] sm:$0xff]  ;;  %v35019_v51 = vld [vmem:[#allocation2 + $0x10] sm:$0xff]  ;;  %s37274_s12 = sshll.u32 %s37875_s21, 4  ;;  %s37105_s16 = sshll.u32 %s344_s25, 4  ;;  %s37106_s16 = int_to_ptr.vmem [resolvable:$true] %s37105_s16 }
 0x6f7   : > { %v36041_v40 = vadd.f32 %v35018_v30, %v35017_v55  ;;  %v35020_v37 = vld [vmem:[#allocation2 + $0x18] sm:$0xff]  ;;  %v35021_v16 = vld [vmem:[#allocation2 + $0x20] sm:$0xff]  ;;  %v35022_v7 = vld [vmem:[#allocation2 + $0x28] sm:$0xff]  ;;  %s44083_s0 = scalar_lea.hbm %s44167_s5, %s37274_s12  ;;  %s37080_s26 = scalar_lea.sflag [#allocation13], %s38153_s14 }
 0x6f8   : > { %v35023_v18 = vld [vmem:[#allocation2 + $0x30] sm:$0xff]  ;;  %v35024_v17 = vld [vmem:[#allocation2 + $0x38] sm:$0xff]  ;;  %v35025_v21 = vld [vmem:[#allocation2 + $0x40] sm:$0xff]  ;;  %s37757_s17 = scalar_lea.vmem %s37106_s16, 16  ;;  %p45758_p12 = scmp.ne.s32.totalorder %s44583_s29, 0 }
 0x6f9   : > { %v36042_v41 = vadd.f32 %v36041_v40, %v35019_v51  ;;  %v35026_v39 = vld [vmem:[#allocation2 + $0x48] sm:$0xff]  ;;  %v35027_v31 = vld [vmem:[#allocation2 + $0x50] sm:$0xff]  ;;  %v35028_v3 = vld [vmem:[#allocation2 + $0x58] sm:$0xff]  ;;  %p37758_p4 = scmp.ne.s32.totalorder %s37106_s16, %s37757_s17  ;;  %s37893_s27 = smov [#allocation12]  }
 0x6fa   : > { %v35029_v22 = vld [vmem:[#allocation2 + $0x60] sm:$0xff]  ;;  %v35030_v26 = vld [vmem:[#allocation2 + $0x68] sm:$0xff]  ;;  %v35031_v15 = vld [vmem:[#allocation2 + $0x70] sm:$0xff]  ;;  %s37761_s8 = sshll.u32 %s37893_s27, 4  ;;  %s37762_s8 = int_to_ptr.vmem [resolvable:$false] %s37761_s8 }
 0x6fb   : > { %v36043_v12 = vadd.f32 %v36042_v41, %v35020_v37  ;;  %v35032_v62 = vld [vmem:[#allocation2 + $0x78] sm:$0xff]  ;;  %v35033_v5 = vld [vmem:[#allocation2 + $0x80] sm:$0xff]  ;;  %v35034_v8 = vld [vmem:[#allocation2 + $0x88] sm:$0xff]  ;;  %p37759_p6 = pnand %p37758_p4, %p45758_p12  ;;  %s37763_s13 = scalar_lea.vmem %s37762_s8, 32 }
 0x6fc   : > { %v35035_v9 = vld [vmem:[#allocation2 + $0x90] sm:$0xff]  ;;  %v35036_v44 = vld [vmem:[#allocation2 + $0x98] sm:$0xff]  ;;  %v35037_v27 = vld [vmem:[#allocation2 + $0xa0] sm:$0xff]  ;;  %p37764_p13 = scmp.lt.s32.totalorder %s37106_s16, %s37762_s8  ;;  %p37765_p8 = scmp.lt.s32.totalorder %s37763_s13, %s37757_s17 }
 0x6fd   : > { %v36044_v25 = vadd.f32 %v36043_v12, %v35021_v16  ;;  %v35038_v2 = vld [vmem:[#allocation2 + $0xa8] sm:$0xff]  ;;  %v35039_v38 = vld [vmem:[#allocation2 + $0xb0] sm:$0xff]  ;;  %v35040_v1 = vld [vmem:[#allocation2 + $0xb8] sm:$0xff]  ;;  %p37760_p11 = pneg %p37759_p6 }
 0x6fe   : > { %v35041_v32 = vld [vmem:[#allocation2 + $0xc0] sm:$0xff]  ;;  %v35042_v23 = vld [vmem:[#allocation2 + $0xc8] sm:$0xff]  ;;  %v35043_v11 = vld [vmem:[#allocation2 + $0xd0] sm:$0xff]  ;;  %p37766_p10 = por %p37765_p8, %p37764_p13 }
 0x6ff   : > { %v36045_v57 = vadd.f32 %v36044_v25, %v35022_v7  ;;  %v35044_v59 = vld [vmem:[#allocation2 + $0xd8] sm:$0xff]  ;;  %v35045_v48 = vld [vmem:[#allocation2 + $0xe0] sm:$0xff]  ;;  %v35046_v10 = vld [vmem:[#allocation2 + $0xe8] sm:$0xff] }
 0x700   : > { %v35047_v19 = vld [vmem:[#allocation2 + $0xf0] sm:$0xff]  ;;  %v35048_v50 = vld [vmem:[#allocation2 + $0xf8] sm:$0xff]  ;;  %v35049_v33 = vld [vmem:[#allocation2 + $0x100] sm:$0xff]  ;;  %p37767_p7 = pnand %p37766_p10, %p37760_p11 }
 0x701   : > { %v36046_v24 = vadd.f32 %v36045_v57, %v35023_v18  ;;  %v35050_v55 = vld [vmem:[#allocation2 + $0x108] sm:$0xff]  ;;  %v35051_v51 = vld [vmem:[#allocation2 + $0x110] sm:$0xff]  ;;  %v35052_v37 = vld [vmem:[#allocation2 + $0x118] sm:$0xff] }
 0x702   : > { %v35053_v16 = vld [vmem:[#allocation2 + $0x120] sm:$0xff]  ;;  %v35054_v7 = vld [vmem:[#allocation2 + $0x128] sm:$0xff]  ;;  %v35055_v18 = vld [vmem:[#allocation2 + $0x130] sm:$0xff] }
 0x703   : > { %v36047_v34 = vadd.f32 %v36046_v24, %v35024_v17  ;;  %v35056_v17 = vld [vmem:[#allocation2 + $0x138] sm:$0xff] }
 0x705   : > { %v36048_v13 = vadd.f32 %v36047_v34, %v35025_v21  ;;  %v35057_v21 = vld [vmem:[#allocation2 + $0x140] sm:$0xff] }
 0x707   : > { %v36049_v54 = vadd.f32 %v36048_v13, %v35026_v39  ;;  %v35058_v39 = vld [vmem:[#allocation2 + $0x148] sm:$0xff] }
 0x709   : > { %v36050_v58 = vadd.f32 %v36049_v54, %v35027_v31  ;;  %v35059_v31 = vld [vmem:[#allocation2 + $0x150] sm:$0xff] }
 0x70b   : > { %v36051_v6 = vadd.f32 %v36050_v58, %v35028_v3  ;;  %v35060_v3 = vld [vmem:[#allocation2 + $0x158] sm:$0xff] }
 0x70d   : > { %v36052_v52 = vadd.f32 %v36051_v6, %v35029_v22  ;;  %v35061_v22 = vld [vmem:[#allocation2 + $0x160] sm:$0xff] }
 0x70f   : > { %v36053_v14 = vadd.f32 %v36052_v52, %v35030_v26  ;;  %v35062_v26 = vld [vmem:[#allocation2 + $0x168] sm:$0xff] }
 0x711   : > { %v36054_v49 = vadd.f32 %v36053_v14, %v35031_v15  ;;  %v35063_v15 = vld [vmem:[#allocation2 + $0x170] sm:$0xff] }
 0x713   : > { %v36055_v61 = vadd.f32 %v36054_v49, %v35032_v62  ;;  %v35064_v62 = vld [vmem:[#allocation2 + $0x178] sm:$0xff] }
 0x715   : > { %v36056_v35 = vadd.f32 %v36055_v61, %v35033_v5  ;;  %v35065_v5 = vld [vmem:[#allocation2 + $0x180] sm:$0xff] }
 0x717   : > { %v36057_v53 = vadd.f32 %v36056_v35, %v35034_v8  ;;  %v35066_v8 = vld [vmem:[#allocation2 + $0x188] sm:$0xff] }
 0x719   : > { %v36058_v0 = vadd.f32 %v36057_v53, %v35035_v9  ;;  %v35067_v9 = vld [vmem:[#allocation2 + $0x190] sm:$0xff] }
 0x71b   : > { %v36059_v28 = vadd.f32 %v36058_v0, %v35036_v44  ;;  %v35068_v44 = vld [vmem:[#allocation2 + $0x198] sm:$0xff] }
 0x71d   : > { %v36060_v42 = vadd.f32 %v36059_v28, %v35037_v27  ;;  %v35069_v27 = vld [vmem:[#allocation2 + $0x1a0] sm:$0xff] }
 0x71f   : > { %v36061_v47 = vadd.f32 %v36060_v42, %v35038_v2  ;;  %v35070_v2 = vld [vmem:[#allocation2 + $0x1a8] sm:$0xff] }
 0x721   : > { %v36062_v46 = vadd.f32 %v36061_v47, %v35039_v38  ;;  %v35071_v38 = vld [vmem:[#allocation2 + $0x1b0] sm:$0xff] }
 0x723   : > { %v36063_v20 = vadd.f32 %v36062_v46, %v35040_v1  ;;  %v35072_v1 = vld [vmem:[#allocation2 + $0x1b8] sm:$0xff] }
 0x725   : > { %v36064_v45 = vadd.f32 %v36063_v20, %v35041_v32  ;;  %v35073_v32 = vld [vmem:[#allocation2 + $0x1c0] sm:$0xff] }
 0x727   : > { %v36065_v43 = vadd.f32 %v36064_v45, %v35042_v23  ;;  %v35074_v23 = vld [vmem:[#allocation2 + $0x1c8] sm:$0xff] }
 0x729   : > { %v36066_v29 = vadd.f32 %v36065_v43, %v35043_v11  ;;  %v35075_v11 = vld [vmem:[#allocation2 + $0x1d0] sm:$0xff] }
 0x72b   : > { %v36067_v63 = vadd.f32 %v36066_v29, %v35044_v59  ;;  %v35076_v59 = vld [vmem:[#allocation2 + $0x1d8] sm:$0xff] }
 0x72d   : > { %v36068_v60 = vadd.f32 %v36067_v63, %v35045_v48  ;;  %v35077_v48 = vld [vmem:[#allocation2 + $0x1e0] sm:$0xff] }
 0x72f   : > { %v36069_v56 = vadd.f32 %v36068_v60, %v35046_v10  ;;  %v35078_v10 = vld [vmem:[#allocation2 + $0x1e8] sm:$0xff] }
 0x731   : > { %v36070_v4 = vadd.f32 %v36069_v56, %v35047_v19  ;;  %v35079_v19 = vld [vmem:[#allocation2 + $0x1f0] sm:$0xff] }
 0x733   : > { %v36071_v36 = vadd.f32 %v36070_v4, %v35048_v50  ;;  %v35080_v50 = vld [vmem:[#allocation2 + $0x1f8] sm:$0xff] }
 0x735   : > { %v36072_v30 = vadd.f32 %v36071_v36, %v35049_v33  ;;  %v35081_v33 = vld [vmem:[#allocation2 + $0x200] sm:$0xff] }
 0x737   : > { %v36073_v40 = vadd.f32 %v36072_v30, %v35050_v55  ;;  %v35082_v55 = vld [vmem:[#allocation2 + $0x208] sm:$0xff] }
 0x739   : > { %v36074_v41 = vadd.f32 %v36073_v40, %v35051_v51  ;;  %v35083_v51 = vld [vmem:[#allocation2 + $0x210] sm:$0xff] }
 0x73b   : > { %v36075_v12 = vadd.f32 %v36074_v41, %v35052_v37  ;;  %v35084_v37 = vld [vmem:[#allocation2 + $0x218] sm:$0xff] }
 0x73d   : > { %v36076_v25 = vadd.f32 %v36075_v12, %v35053_v16  ;;  %v35085_v16 = vld [vmem:[#allocation2 + $0x220] sm:$0xff] }
 0x73f   : > { %v36077_v57 = vadd.f32 %v36076_v25, %v35054_v7  ;;  %v35086_v7 = vld [vmem:[#allocation2 + $0x228] sm:$0xff] }
 0x741   : > { %v36078_v24 = vadd.f32 %v36077_v57, %v35055_v18  ;;  %v35087_v18 = vld [vmem:[#allocation2 + $0x230] sm:$0xff] }
 0x743   : > { %v36079_v34 = vadd.f32 %v36078_v24, %v35056_v17  ;;  %v35088_v17 = vld [vmem:[#allocation2 + $0x238] sm:$0xff] }
 0x745   : > { %v36080_v13 = vadd.f32 %v36079_v34, %v35057_v21  ;;  %v35089_v21 = vld [vmem:[#allocation2 + $0x240] sm:$0xff] }
 0x747   : > { %v36081_v54 = vadd.f32 %v36080_v13, %v35058_v39  ;;  %v35090_v39 = vld [vmem:[#allocation2 + $0x248] sm:$0xff] }
 0x749   : > { %v36082_v58 = vadd.f32 %v36081_v54, %v35059_v31  ;;  %v35091_v31 = vld [vmem:[#allocation2 + $0x250] sm:$0xff] }
 0x74b   : > { %v36083_v6 = vadd.f32 %v36082_v58, %v35060_v3  ;;  %v35092_v3 = vld [vmem:[#allocation2 + $0x258] sm:$0xff] }
 0x74d   : > { %v36084_v52 = vadd.f32 %v36083_v6, %v35061_v22  ;;  %v35093_v22 = vld [vmem:[#allocation2 + $0x260] sm:$0xff] }
 0x74f   : > { %v36085_v14 = vadd.f32 %v36084_v52, %v35062_v26  ;;  %v35094_v26 = vld [vmem:[#allocation2 + $0x268] sm:$0xff] }
 0x751   : > { %v36086_v49 = vadd.f32 %v36085_v14, %v35063_v15  ;;  %v35095_v15 = vld [vmem:[#allocation2 + $0x270] sm:$0xff] }
 0x753   : > { %v36087_v61 = vadd.f32 %v36086_v49, %v35064_v62  ;;  %v35096_v62 = vld [vmem:[#allocation2 + $0x278] sm:$0xff] }
 0x755   : > { %v36088_v35 = vadd.f32 %v36087_v61, %v35065_v5  ;;  %v35097_v5 = vld [vmem:[#allocation2 + $0x280] sm:$0xff] }
 0x757   : > { %v36089_v53 = vadd.f32 %v36088_v35, %v35066_v8  ;;  %v35098_v8 = vld [vmem:[#allocation2 + $0x288] sm:$0xff] }
 0x759   : > { %v36090_v0 = vadd.f32 %v36089_v53, %v35067_v9  ;;  %v35099_v9 = vld [vmem:[#allocation2 + $0x290] sm:$0xff] }
 0x75b   : > { %v36091_v28 = vadd.f32 %v36090_v0, %v35068_v44  ;;  %v35100_v44 = vld [vmem:[#allocation2 + $0x298] sm:$0xff] }
 0x75d   : > { %v36092_v42 = vadd.f32 %v36091_v28, %v35069_v27  ;;  %v35101_v27 = vld [vmem:[#allocation2 + $0x2a0] sm:$0xff] }
 0x75f   : > { %v36093_v47 = vadd.f32 %v36092_v42, %v35070_v2  ;;  %v35102_v2 = vld [vmem:[#allocation2 + $0x2a8] sm:$0xff] }
 0x761   : > { %v36094_v46 = vadd.f32 %v36093_v47, %v35071_v38  ;;  %v35103_v38 = vld [vmem:[#allocation2 + $0x2b0] sm:$0xff] }
 0x763   : > { %v36095_v20 = vadd.f32 %v36094_v46, %v35072_v1  ;;  %v35104_v1 = vld [vmem:[#allocation2 + $0x2b8] sm:$0xff] }
 0x765   : > { %v36096_v45 = vadd.f32 %v36095_v20, %v35073_v32  ;;  %v35105_v32 = vld [vmem:[#allocation2 + $0x2c0] sm:$0xff] }
 0x767   : > { %v36097_v43 = vadd.f32 %v36096_v45, %v35074_v23  ;;  %v35106_v23 = vld [vmem:[#allocation2 + $0x2c8] sm:$0xff] }
 0x769   : > { %v36098_v29 = vadd.f32 %v36097_v43, %v35075_v11  ;;  %v35107_v11 = vld [vmem:[#allocation2 + $0x2d0] sm:$0xff] }
 0x76b   : > { %v36099_v63 = vadd.f32 %v36098_v29, %v35076_v59  ;;  %v35108_v59 = vld [vmem:[#allocation2 + $0x2d8] sm:$0xff] }
 0x76d   : > { %v36100_v60 = vadd.f32 %v36099_v63, %v35077_v48  ;;  %v35109_v48 = vld [vmem:[#allocation2 + $0x2e0] sm:$0xff] }
 0x76f   : > { %v36101_v56 = vadd.f32 %v36100_v60, %v35078_v10  ;;  %v35110_v10 = vld [vmem:[#allocation2 + $0x2e8] sm:$0xff] }
 0x771   : > { %v36102_v4 = vadd.f32 %v36101_v56, %v35079_v19  ;;  %v35111_v19 = vld [vmem:[#allocation2 + $0x2f0] sm:$0xff] }
 0x773   : > { %v36103_v36 = vadd.f32 %v36102_v4, %v35080_v50  ;;  %v35112_v50 = vld [vmem:[#allocation2 + $0x2f8] sm:$0xff] }
 0x775   : > { %v36104_v30 = vadd.f32 %v36103_v36, %v35081_v33  ;;  %v35113_v33 = vld [vmem:[#allocation2 + $0x300] sm:$0xff] }
 0x777   : > { %v36105_v40 = vadd.f32 %v36104_v30, %v35082_v55  ;;  %v35114_v55 = vld [vmem:[#allocation2 + $0x308] sm:$0xff] }
 0x779   : > { %v36106_v41 = vadd.f32 %v36105_v40, %v35083_v51  ;;  %v35115_v51 = vld [vmem:[#allocation2 + $0x310] sm:$0xff] }
 0x77b   : > { %v36107_v12 = vadd.f32 %v36106_v41, %v35084_v37  ;;  %v35116_v37 = vld [vmem:[#allocation2 + $0x318] sm:$0xff] }
 0x77d   : > { %v36108_v25 = vadd.f32 %v36107_v12, %v35085_v16  ;;  %v35117_v16 = vld [vmem:[#allocation2 + $0x320] sm:$0xff] }
 0x77f   : > { %v36109_v57 = vadd.f32 %v36108_v25, %v35086_v7  ;;  %v35118_v7 = vld [vmem:[#allocation2 + $0x328] sm:$0xff] }
 0x781   : > { %v36110_v24 = vadd.f32 %v36109_v57, %v35087_v18  ;;  %v35119_v18 = vld [vmem:[#allocation2 + $0x330] sm:$0xff] }
 0x783   : > { %v36111_v34 = vadd.f32 %v36110_v24, %v35088_v17  ;;  %v35120_v17 = vld [vmem:[#allocation2 + $0x338] sm:$0xff] }
 0x785   : > { %v36112_v13 = vadd.f32 %v36111_v34, %v35089_v21  ;;  %v35121_v21 = vld [vmem:[#allocation2 + $0x340] sm:$0xff] }
 0x787   : > { %v36113_v54 = vadd.f32 %v36112_v13, %v35090_v39  ;;  %v35122_v39 = vld [vmem:[#allocation2 + $0x348] sm:$0xff] }
 0x789   : > { %v36114_v58 = vadd.f32 %v36113_v54, %v35091_v31  ;;  %v35123_v31 = vld [vmem:[#allocation2 + $0x350] sm:$0xff] }
 0x78b   : > { %v36115_v6 = vadd.f32 %v36114_v58, %v35092_v3  ;;  %v35124_v3 = vld [vmem:[#allocation2 + $0x358] sm:$0xff] }
 0x78d   : > { %v36116_v52 = vadd.f32 %v36115_v6, %v35093_v22  ;;  %v35125_v22 = vld [vmem:[#allocation2 + $0x360] sm:$0xff] }
 0x78f   : > { %v36117_v14 = vadd.f32 %v36116_v52, %v35094_v26  ;;  %v35126_v26 = vld [vmem:[#allocation2 + $0x368] sm:$0xff] }
 0x791   : > { %v36118_v49 = vadd.f32 %v36117_v14, %v35095_v15  ;;  %v35127_v15 = vld [vmem:[#allocation2 + $0x370] sm:$0xff] }
 0x793   : > { %v36119_v61 = vadd.f32 %v36118_v49, %v35096_v62  ;;  %v35128_v62 = vld [vmem:[#allocation2 + $0x378] sm:$0xff] }
 0x795   : > { %v36120_v35 = vadd.f32 %v36119_v61, %v35097_v5  ;;  %v35129_v5 = vld [vmem:[#allocation2 + $0x380] sm:$0xff] }
 0x797   : > { %v36121_v53 = vadd.f32 %v36120_v35, %v35098_v8  ;;  %v35130_v8 = vld [vmem:[#allocation2 + $0x388] sm:$0xff] }
 0x799   : > { %v36122_v0 = vadd.f32 %v36121_v53, %v35099_v9  ;;  %v35131_v9 = vld [vmem:[#allocation2 + $0x390] sm:$0xff] }
 0x79b   : > { %v36123_v28 = vadd.f32 %v36122_v0, %v35100_v44  ;;  %v35132_v44 = vld [vmem:[#allocation2 + $0x398] sm:$0xff] }
 0x79d   : > { %v36124_v42 = vadd.f32 %v36123_v28, %v35101_v27  ;;  %v35133_v27 = vld [vmem:[#allocation2 + $0x3a0] sm:$0xff] }
 0x79f   : > { %v36125_v47 = vadd.f32 %v36124_v42, %v35102_v2  ;;  %v35134_v2 = vld [vmem:[#allocation2 + $0x3a8] sm:$0xff] }
 0x7a1   : > { %v36126_v46 = vadd.f32 %v36125_v47, %v35103_v38  ;;  %v35135_v38 = vld [vmem:[#allocation2 + $0x3b0] sm:$0xff] }
 0x7a3   : > { %v36127_v20 = vadd.f32 %v36126_v46, %v35104_v1  ;;  %v35136_v1 = vld [vmem:[#allocation2 + $0x3b8] sm:$0xff] }
 0x7a5   : > { %v36128_v45 = vadd.f32 %v36127_v20, %v35105_v32  ;;  %v35137_v32 = vld [vmem:[#allocation2 + $0x3c0] sm:$0xff] }
 0x7a7   : > { %v36129_v43 = vadd.f32 %v36128_v45, %v35106_v23  ;;  %v35138_v23 = vld [vmem:[#allocation2 + $0x3c8] sm:$0xff] }
 0x7a9   : > { %v36130_v29 = vadd.f32 %v36129_v43, %v35107_v11  ;;  %v35139_v11 = vld [vmem:[#allocation2 + $0x3d0] sm:$0xff] }
 0x7ab   : > { %v36131_v63 = vadd.f32 %v36130_v29, %v35108_v59  ;;  %v35140_v59 = vld [vmem:[#allocation2 + $0x3d8] sm:$0xff] }
 0x7ad   : > { %v36132_v60 = vadd.f32 %v36131_v63, %v35109_v48  ;;  %v35141_v48 = vld [vmem:[#allocation2 + $0x3e0] sm:$0xff] }
 0x7af   : > { %v36133_v56 = vadd.f32 %v36132_v60, %v35110_v10  ;;  %v35142_v10 = vld [vmem:[#allocation2 + $0x3e8] sm:$0xff] }
 0x7b1   : > { %v36134_v4 = vadd.f32 %v36133_v56, %v35111_v19  ;;  %v35143_v19 = vld [vmem:[#allocation2 + $0x3f0] sm:$0xff] }
 0x7b3   : > { %v36135_v36 = vadd.f32 %v36134_v4, %v35112_v50  ;;  %v35144_v50 = vld [vmem:[#allocation2 + $0x3f8] sm:$0xff] }
 0x7b5   : > { %v36136_v30 = vadd.f32 %v36135_v36, %v35113_v33  ;;  %v35145_v33 = vld [vmem:[#allocation2 + $0x400] sm:$0xff] }
 0x7b7   : > { %v36137_v40 = vadd.f32 %v36136_v30, %v35114_v55  ;;  %v35146_v55 = vld [vmem:[#allocation2 + $0x408] sm:$0xff] }
 0x7b9   : > { %v36138_v41 = vadd.f32 %v36137_v40, %v35115_v51  ;;  %v35147_v51 = vld [vmem:[#allocation2 + $0x410] sm:$0xff] }
 0x7bb   : > { %v36139_v12 = vadd.f32 %v36138_v41, %v35116_v37  ;;  %v35148_v37 = vld [vmem:[#allocation2 + $0x418] sm:$0xff] }
 0x7bd   : > { %v36140_v25 = vadd.f32 %v36139_v12, %v35117_v16  ;;  %v35149_v16 = vld [vmem:[#allocation2 + $0x420] sm:$0xff] }
 0x7bf   : > { %v36141_v57 = vadd.f32 %v36140_v25, %v35118_v7  ;;  %v35150_v7 = vld [vmem:[#allocation2 + $0x428] sm:$0xff] }
 0x7c1   : > { %v36142_v24 = vadd.f32 %v36141_v57, %v35119_v18  ;;  %v35151_v18 = vld [vmem:[#allocation2 + $0x430] sm:$0xff] }
 0x7c3   : > { %v36143_v34 = vadd.f32 %v36142_v24, %v35120_v17  ;;  %v35152_v17 = vld [vmem:[#allocation2 + $0x438] sm:$0xff] }
 0x7c5   : > { %v36144_v13 = vadd.f32 %v36143_v34, %v35121_v21  ;;  %v35153_v21 = vld [vmem:[#allocation2 + $0x440] sm:$0xff] }
 0x7c7   : > { %v36145_v54 = vadd.f32 %v36144_v13, %v35122_v39  ;;  %v35154_v39 = vld [vmem:[#allocation2 + $0x448] sm:$0xff] }
 0x7c9   : > { %v36146_v58 = vadd.f32 %v36145_v54, %v35123_v31  ;;  %v35155_v31 = vld [vmem:[#allocation2 + $0x450] sm:$0xff] }
 0x7cb   : > { %v36147_v6 = vadd.f32 %v36146_v58, %v35124_v3  ;;  %v35156_v3 = vld [vmem:[#allocation2 + $0x458] sm:$0xff] }
 0x7cd   : > { %v36148_v52 = vadd.f32 %v36147_v6, %v35125_v22  ;;  %v35157_v22 = vld [vmem:[#allocation2 + $0x460] sm:$0xff] }
 0x7cf   : > { %v36149_v14 = vadd.f32 %v36148_v52, %v35126_v26  ;;  %v35158_v26 = vld [vmem:[#allocation2 + $0x468] sm:$0xff] }
 0x7d1   : > { %v36150_v49 = vadd.f32 %v36149_v14, %v35127_v15  ;;  %v35159_v15 = vld [vmem:[#allocation2 + $0x470] sm:$0xff] }
 0x7d3   : > { %v36151_v61 = vadd.f32 %v36150_v49, %v35128_v62  ;;  %v35160_v62 = vld [vmem:[#allocation2 + $0x478] sm:$0xff] }
 0x7d5   : > { %v36152_v35 = vadd.f32 %v36151_v61, %v35129_v5  ;;  %v35161_v5 = vld [vmem:[#allocation2 + $0x480] sm:$0xff] }
 0x7d7   : > { %v36153_v53 = vadd.f32 %v36152_v35, %v35130_v8  ;;  %v35162_v8 = vld [vmem:[#allocation2 + $0x488] sm:$0xff] }
 0x7d9   : > { %v36154_v0 = vadd.f32 %v36153_v53, %v35131_v9  ;;  %v35163_v9 = vld [vmem:[#allocation2 + $0x490] sm:$0xff] }
 0x7db   : > { %v36155_v28 = vadd.f32 %v36154_v0, %v35132_v44  ;;  %v35164_v44 = vld [vmem:[#allocation2 + $0x498] sm:$0xff] }
 0x7dd   : > { %v36156_v42 = vadd.f32 %v36155_v28, %v35133_v27  ;;  %v35165_v27 = vld [vmem:[#allocation2 + $0x4a0] sm:$0xff] }
 0x7df   : > { %v36157_v47 = vadd.f32 %v36156_v42, %v35134_v2  ;;  %v35166_v2 = vld [vmem:[#allocation2 + $0x4a8] sm:$0xff] }
 0x7e1   : > { %v36158_v46 = vadd.f32 %v36157_v47, %v35135_v38  ;;  %v35167_v38 = vld [vmem:[#allocation2 + $0x4b0] sm:$0xff] }
 0x7e3   : > { %v36159_v20 = vadd.f32 %v36158_v46, %v35136_v1  ;;  %v35168_v1 = vld [vmem:[#allocation2 + $0x4b8] sm:$0xff] }
 0x7e5   : > { %v36160_v45 = vadd.f32 %v36159_v20, %v35137_v32  ;;  %v35169_v32 = vld [vmem:[#allocation2 + $0x4c0] sm:$0xff] }
 0x7e7   : > { %v36161_v43 = vadd.f32 %v36160_v45, %v35138_v23  ;;  %v35170_v23 = vld [vmem:[#allocation2 + $0x4c8] sm:$0xff] }
 0x7e9   : > { %v36162_v29 = vadd.f32 %v36161_v43, %v35139_v11  ;;  %v35171_v11 = vld [vmem:[#allocation2 + $0x4d0] sm:$0xff] }
 0x7eb   : > { %v36163_v63 = vadd.f32 %v36162_v29, %v35140_v59  ;;  %v35172_v59 = vld [vmem:[#allocation2 + $0x4d8] sm:$0xff] }
 0x7ed   : > { %v36164_v60 = vadd.f32 %v36163_v63, %v35141_v48  ;;  %v35173_v48 = vld [vmem:[#allocation2 + $0x4e0] sm:$0xff] }
 0x7ef   : > { %v36165_v56 = vadd.f32 %v36164_v60, %v35142_v10  ;;  %v35174_v10 = vld [vmem:[#allocation2 + $0x4e8] sm:$0xff] }
 0x7f1   : > { %v36166_v4 = vadd.f32 %v36165_v56, %v35143_v19  ;;  %v35175_v19 = vld [vmem:[#allocation2 + $0x4f0] sm:$0xff] }
 0x7f3   : > { %v36167_v36 = vadd.f32 %v36166_v4, %v35144_v50  ;;  %v35176_v50 = vld [vmem:[#allocation2 + $0x4f8] sm:$0xff] }
 0x7f5   : > { %v36168_v30 = vadd.f32 %v36167_v36, %v35145_v33  ;;  %v35177_v33 = vld [vmem:[#allocation2 + $0x500] sm:$0xff] }
 0x7f7   : > { %v36169_v40 = vadd.f32 %v36168_v30, %v35146_v55  ;;  %v35178_v55 = vld [vmem:[#allocation2 + $0x508] sm:$0xff] }
 0x7f9   : > { %v36170_v41 = vadd.f32 %v36169_v40, %v35147_v51  ;;  %v35179_v51 = vld [vmem:[#allocation2 + $0x510] sm:$0xff] }
 0x7fb   : > { %v36171_v12 = vadd.f32 %v36170_v41, %v35148_v37  ;;  %v35180_v37 = vld [vmem:[#allocation2 + $0x518] sm:$0xff] }
 0x7fd   : > { %v36172_v25 = vadd.f32 %v36171_v12, %v35149_v16  ;;  %v35181_v16 = vld [vmem:[#allocation2 + $0x520] sm:$0xff] }
 0x7ff   : > { %v36173_v57 = vadd.f32 %v36172_v25, %v35150_v7  ;;  %v35182_v7 = vld [vmem:[#allocation2 + $0x528] sm:$0xff] }
 0x801   : > { %v36174_v24 = vadd.f32 %v36173_v57, %v35151_v18  ;;  %v35183_v18 = vld [vmem:[#allocation2 + $0x530] sm:$0xff] }
 0x803   : > { %v36175_v34 = vadd.f32 %v36174_v24, %v35152_v17  ;;  %v35184_v17 = vld [vmem:[#allocation2 + $0x538] sm:$0xff] }
 0x805   : > { %v36176_v13 = vadd.f32 %v36175_v34, %v35153_v21  ;;  %v35185_v21 = vld [vmem:[#allocation2 + $0x540] sm:$0xff] }
 0x807   : > { %v36177_v54 = vadd.f32 %v36176_v13, %v35154_v39  ;;  %v35186_v39 = vld [vmem:[#allocation2 + $0x548] sm:$0xff] }
 0x809   : > { %v36178_v58 = vadd.f32 %v36177_v54, %v35155_v31  ;;  %v35187_v31 = vld [vmem:[#allocation2 + $0x550] sm:$0xff] }
 0x80b   : > { %v36179_v6 = vadd.f32 %v36178_v58, %v35156_v3  ;;  %v35188_v3 = vld [vmem:[#allocation2 + $0x558] sm:$0xff] }
 0x80d   : > { %v36180_v52 = vadd.f32 %v36179_v6, %v35157_v22  ;;  %v35189_v22 = vld [vmem:[#allocation2 + $0x560] sm:$0xff] }
 0x80f   : > { %v36181_v14 = vadd.f32 %v36180_v52, %v35158_v26  ;;  %v35190_v26 = vld [vmem:[#allocation2 + $0x568] sm:$0xff] }
 0x811   : > { %v36182_v49 = vadd.f32 %v36181_v14, %v35159_v15  ;;  %v35191_v15 = vld [vmem:[#allocation2 + $0x570] sm:$0xff] }
 0x813   : > { %v36183_v61 = vadd.f32 %v36182_v49, %v35160_v62  ;;  %v35192_v62 = vld [vmem:[#allocation2 + $0x578] sm:$0xff] }
 0x815   : > { %v36184_v35 = vadd.f32 %v36183_v61, %v35161_v5  ;;  %v35193_v5 = vld [vmem:[#allocation2 + $0x580] sm:$0xff] }
 0x817   : > { %v36185_v53 = vadd.f32 %v36184_v35, %v35162_v8  ;;  %v35194_v8 = vld [vmem:[#allocation2 + $0x588] sm:$0xff] }
 0x819   : > { %v36186_v0 = vadd.f32 %v36185_v53, %v35163_v9  ;;  %v35195_v9 = vld [vmem:[#allocation2 + $0x590] sm:$0xff] }
 0x81b   : > { %v36187_v28 = vadd.f32 %v36186_v0, %v35164_v44  ;;  %v35196_v44 = vld [vmem:[#allocation2 + $0x598] sm:$0xff] }
 0x81d   : > { %v36188_v42 = vadd.f32 %v36187_v28, %v35165_v27  ;;  %v35197_v27 = vld [vmem:[#allocation2 + $0x5a0] sm:$0xff] }
 0x81f   : > { %v36189_v47 = vadd.f32 %v36188_v42, %v35166_v2  ;;  %v35198_v2 = vld [vmem:[#allocation2 + $0x5a8] sm:$0xff] }
 0x821   : > { %v36190_v46 = vadd.f32 %v36189_v47, %v35167_v38  ;;  %v35199_v38 = vld [vmem:[#allocation2 + $0x5b0] sm:$0xff] }
 0x823   : > { %v36191_v20 = vadd.f32 %v36190_v46, %v35168_v1  ;;  %v35200_v1 = vld [vmem:[#allocation2 + $0x5b8] sm:$0xff] }
 0x825   : > { %v36192_v45 = vadd.f32 %v36191_v20, %v35169_v32  ;;  %v35201_v32 = vld [vmem:[#allocation2 + $0x5c0] sm:$0xff] }
 0x827   : > { %v36193_v43 = vadd.f32 %v36192_v45, %v35170_v23  ;;  %v35202_v23 = vld [vmem:[#allocation2 + $0x5c8] sm:$0xff] }
 0x829   : > { %v36194_v29 = vadd.f32 %v36193_v43, %v35171_v11  ;;  %v35203_v11 = vld [vmem:[#allocation2 + $0x5d0] sm:$0xff] }
 0x82b   : > { %v36195_v63 = vadd.f32 %v36194_v29, %v35172_v59  ;;  %v35204_v59 = vld [vmem:[#allocation2 + $0x5d8] sm:$0xff] }
 0x82d   : > { %v36196_v60 = vadd.f32 %v36195_v63, %v35173_v48  ;;  %v35205_v48 = vld [vmem:[#allocation2 + $0x5e0] sm:$0xff] }
 0x82f   : > { %v36197_v56 = vadd.f32 %v36196_v60, %v35174_v10  ;;  %v35206_v10 = vld [vmem:[#allocation2 + $0x5e8] sm:$0xff] }
 0x831   : > { %v36198_v4 = vadd.f32 %v36197_v56, %v35175_v19  ;;  %v35207_v19 = vld [vmem:[#allocation2 + $0x5f0] sm:$0xff] }
 0x833   : > { %v36199_v36 = vadd.f32 %v36198_v4, %v35176_v50  ;;  %v35208_v50 = vld [vmem:[#allocation2 + $0x5f8] sm:$0xff] }
 0x835   : > { %v36200_v30 = vadd.f32 %v36199_v36, %v35177_v33  ;;  %v35209_v33 = vld [vmem:[#allocation2 + $0x600] sm:$0xff] }
 0x837   : > { %v36201_v40 = vadd.f32 %v36200_v30, %v35178_v55  ;;  %v35210_v55 = vld [vmem:[#allocation2 + $0x608] sm:$0xff] }
 0x839   : > { %v36202_v41 = vadd.f32 %v36201_v40, %v35179_v51  ;;  %v35211_v51 = vld [vmem:[#allocation2 + $0x610] sm:$0xff] }
 0x83b   : > { %v36203_v12 = vadd.f32 %v36202_v41, %v35180_v37  ;;  %v35212_v37 = vld [vmem:[#allocation2 + $0x618] sm:$0xff] }
 0x83d   : > { %v36204_v25 = vadd.f32 %v36203_v12, %v35181_v16  ;;  %v35213_v16 = vld [vmem:[#allocation2 + $0x620] sm:$0xff] }
 0x83f   : > { %v36205_v57 = vadd.f32 %v36204_v25, %v35182_v7  ;;  %v35214_v7 = vld [vmem:[#allocation2 + $0x628] sm:$0xff] }
 0x841   : > { %v36206_v24 = vadd.f32 %v36205_v57, %v35183_v18  ;;  %v35215_v18 = vld [vmem:[#allocation2 + $0x630] sm:$0xff] }
 0x843   : > { %v36207_v34 = vadd.f32 %v36206_v24, %v35184_v17  ;;  %v35216_v17 = vld [vmem:[#allocation2 + $0x638] sm:$0xff] }
 0x845   : > { %v36208_v13 = vadd.f32 %v36207_v34, %v35185_v21  ;;  %v35217_v21 = vld [vmem:[#allocation2 + $0x640] sm:$0xff] }
 0x847   : > { %v36209_v54 = vadd.f32 %v36208_v13, %v35186_v39  ;;  %v35218_v39 = vld [vmem:[#allocation2 + $0x648] sm:$0xff] }
 0x849   : > { %v36210_v58 = vadd.f32 %v36209_v54, %v35187_v31  ;;  %v35219_v31 = vld [vmem:[#allocation2 + $0x650] sm:$0xff] }
 0x84b   : > { %v36211_v6 = vadd.f32 %v36210_v58, %v35188_v3  ;;  %v35220_v3 = vld [vmem:[#allocation2 + $0x658] sm:$0xff] }
 0x84d   : > { %v36212_v52 = vadd.f32 %v36211_v6, %v35189_v22  ;;  %v35221_v22 = vld [vmem:[#allocation2 + $0x660] sm:$0xff] }
 0x84f   : > { %v36213_v14 = vadd.f32 %v36212_v52, %v35190_v26  ;;  %v35222_v26 = vld [vmem:[#allocation2 + $0x668] sm:$0xff] }
 0x851   : > { %v36214_v49 = vadd.f32 %v36213_v14, %v35191_v15  ;;  %v35223_v15 = vld [vmem:[#allocation2 + $0x670] sm:$0xff] }
 0x853   : > { %v36215_v61 = vadd.f32 %v36214_v49, %v35192_v62  ;;  %v35224_v62 = vld [vmem:[#allocation2 + $0x678] sm:$0xff] }
 0x855   : > { %v36216_v35 = vadd.f32 %v36215_v61, %v35193_v5  ;;  %v35225_v5 = vld [vmem:[#allocation2 + $0x680] sm:$0xff] }
 0x857   : > { %v36217_v53 = vadd.f32 %v36216_v35, %v35194_v8  ;;  %v35226_v8 = vld [vmem:[#allocation2 + $0x688] sm:$0xff] }
 0x859   : > { %v36218_v0 = vadd.f32 %v36217_v53, %v35195_v9  ;;  %v35227_v9 = vld [vmem:[#allocation2 + $0x690] sm:$0xff] }
 0x85b   : > { %v36219_v28 = vadd.f32 %v36218_v0, %v35196_v44  ;;  %v35228_v44 = vld [vmem:[#allocation2 + $0x698] sm:$0xff] }
 0x85d   : > { %v36220_v42 = vadd.f32 %v36219_v28, %v35197_v27  ;;  %v35229_v27 = vld [vmem:[#allocation2 + $0x6a0] sm:$0xff] }
 0x85f   : > { %v36221_v47 = vadd.f32 %v36220_v42, %v35198_v2  ;;  %v35230_v2 = vld [vmem:[#allocation2 + $0x6a8] sm:$0xff] }
 0x861   : > { %v36222_v46 = vadd.f32 %v36221_v47, %v35199_v38  ;;  %v35231_v38 = vld [vmem:[#allocation2 + $0x6b0] sm:$0xff] }
 0x863   : > { %v36223_v20 = vadd.f32 %v36222_v46, %v35200_v1  ;;  %v35232_v1 = vld [vmem:[#allocation2 + $0x6b8] sm:$0xff] }
 0x865   : > { %v36224_v45 = vadd.f32 %v36223_v20, %v35201_v32  ;;  %v35233_v32 = vld [vmem:[#allocation2 + $0x6c0] sm:$0xff] }
 0x867   : > { %v36225_v43 = vadd.f32 %v36224_v45, %v35202_v23  ;;  %v35234_v23 = vld [vmem:[#allocation2 + $0x6c8] sm:$0xff] }
 0x869   : > { %v36226_v29 = vadd.f32 %v36225_v43, %v35203_v11  ;;  %v35235_v11 = vld [vmem:[#allocation2 + $0x6d0] sm:$0xff] }
 0x86b   : > { %v36227_v63 = vadd.f32 %v36226_v29, %v35204_v59  ;;  %v35236_v59 = vld [vmem:[#allocation2 + $0x6d8] sm:$0xff] }
 0x86d   : > { %v36228_v60 = vadd.f32 %v36227_v63, %v35205_v48  ;;  %v35237_v48 = vld [vmem:[#allocation2 + $0x6e0] sm:$0xff] }
 0x86f   : > { %v36229_v56 = vadd.f32 %v36228_v60, %v35206_v10  ;;  %v35238_v10 = vld [vmem:[#allocation2 + $0x6e8] sm:$0xff] }
 0x871   : > { %v36230_v4 = vadd.f32 %v36229_v56, %v35207_v19  ;;  %v35239_v19 = vld [vmem:[#allocation2 + $0x6f0] sm:$0xff] }
 0x873   : > { %v36231_v36 = vadd.f32 %v36230_v4, %v35208_v50  ;;  %v35240_v50 = vld [vmem:[#allocation2 + $0x6f8] sm:$0xff] }
 0x875   : > { %v36232_v30 = vadd.f32 %v36231_v36, %v35209_v33  ;;  %v35241_v33 = vld [vmem:[#allocation2 + $0x700] sm:$0xff] }
 0x877   : > { %v36233_v40 = vadd.f32 %v36232_v30, %v35210_v55  ;;  %v35242_v55 = vld [vmem:[#allocation2 + $0x708] sm:$0xff] }
 0x879   : > { %v36234_v41 = vadd.f32 %v36233_v40, %v35211_v51  ;;  %v35243_v51 = vld [vmem:[#allocation2 + $0x710] sm:$0xff] }
 0x87b   : > { %v36235_v12 = vadd.f32 %v36234_v41, %v35212_v37  ;;  %v35244_v37 = vld [vmem:[#allocation2 + $0x718] sm:$0xff] }
 0x87d   : > { %v36236_v25 = vadd.f32 %v36235_v12, %v35213_v16  ;;  %v35245_v16 = vld [vmem:[#allocation2 + $0x720] sm:$0xff] }
 0x87f   : > { %v36237_v57 = vadd.f32 %v36236_v25, %v35214_v7  ;;  %v35246_v7 = vld [vmem:[#allocation2 + $0x728] sm:$0xff] }
 0x881   : > { %v36238_v24 = vadd.f32 %v36237_v57, %v35215_v18  ;;  %v35247_v18 = vld [vmem:[#allocation2 + $0x730] sm:$0xff] }
 0x883   : > { %v36239_v34 = vadd.f32 %v36238_v24, %v35216_v17  ;;  %v35248_v17 = vld [vmem:[#allocation2 + $0x738] sm:$0xff] }
 0x885   : > { %v36240_v13 = vadd.f32 %v36239_v34, %v35217_v21  ;;  %v35249_v21 = vld [vmem:[#allocation2 + $0x740] sm:$0xff] }
 0x887   : > { %v36241_v54 = vadd.f32 %v36240_v13, %v35218_v39  ;;  %v35250_v39 = vld [vmem:[#allocation2 + $0x748] sm:$0xff] }
 0x889   : > { %v36242_v58 = vadd.f32 %v36241_v54, %v35219_v31  ;;  %v35251_v31 = vld [vmem:[#allocation2 + $0x750] sm:$0xff] }
 0x88b   : > { %v36243_v6 = vadd.f32 %v36242_v58, %v35220_v3  ;;  %v35252_v3 = vld [vmem:[#allocation2 + $0x758] sm:$0xff] }
 0x88d   : > { %v36244_v52 = vadd.f32 %v36243_v6, %v35221_v22  ;;  %v35253_v22 = vld [vmem:[#allocation2 + $0x760] sm:$0xff] }
 0x88f   : > { %v36245_v14 = vadd.f32 %v36244_v52, %v35222_v26  ;;  %v35254_v26 = vld [vmem:[#allocation2 + $0x768] sm:$0xff] }
 0x891   : > { %v36246_v49 = vadd.f32 %v36245_v14, %v35223_v15  ;;  %v35255_v15 = vld [vmem:[#allocation2 + $0x770] sm:$0xff] }
 0x893   : > { %v36247_v61 = vadd.f32 %v36246_v49, %v35224_v62  ;;  %v35256_v62 = vld [vmem:[#allocation2 + $0x778] sm:$0xff] }
 0x895   : > { %v36248_v35 = vadd.f32 %v36247_v61, %v35225_v5  ;;  %v35257_v5 = vld [vmem:[#allocation2 + $0x780] sm:$0xff] }
 0x897   : > { %v36249_v53 = vadd.f32 %v36248_v35, %v35226_v8  ;;  %v35258_v8 = vld [vmem:[#allocation2 + $0x788] sm:$0xff] }
 0x899   : > { %v36250_v0 = vadd.f32 %v36249_v53, %v35227_v9  ;;  %v35259_v9 = vld [vmem:[#allocation2 + $0x790] sm:$0xff] }
 0x89b   : > { %v36251_v28 = vadd.f32 %v36250_v0, %v35228_v44  ;;  %v35260_v44 = vld [vmem:[#allocation2 + $0x798] sm:$0xff] }
 0x89d   : > { %v36252_v42 = vadd.f32 %v36251_v28, %v35229_v27  ;;  %v35261_v27 = vld [vmem:[#allocation2 + $0x7a0] sm:$0xff] }
 0x89f   : > { %v36253_v47 = vadd.f32 %v36252_v42, %v35230_v2  ;;  %v35262_v2 = vld [vmem:[#allocation2 + $0x7a8] sm:$0xff] }
 0x8a1   : > { %v36254_v46 = vadd.f32 %v36253_v47, %v35231_v38  ;;  %v35263_v38 = vld [vmem:[#allocation2 + $0x7b0] sm:$0xff] }
 0x8a3   : > { %v36255_v20 = vadd.f32 %v36254_v46, %v35232_v1  ;;  %v35264_v1 = vld [vmem:[#allocation2 + $0x7b8] sm:$0xff] }
 0x8a5   : > { %v36256_v45 = vadd.f32 %v36255_v20, %v35233_v32  ;;  %v35265_v32 = vld [vmem:[#allocation2 + $0x7c0] sm:$0xff] }
 0x8a7   : > { %v36257_v43 = vadd.f32 %v36256_v45, %v35234_v23  ;;  %v35266_v23 = vld [vmem:[#allocation2 + $0x7c8] sm:$0xff] }
 0x8a9   : > { %v36258_v29 = vadd.f32 %v36257_v43, %v35235_v11  ;;  %v35267_v11 = vld [vmem:[#allocation2 + $0x7d0] sm:$0xff] }
 0x8ab   : > { %v36259_v63 = vadd.f32 %v36258_v29, %v35236_v59  ;;  %v35268_v59 = vld [vmem:[#allocation2 + $0x7d8] sm:$0xff] }
 0x8ad   : > { %v36260_v60 = vadd.f32 %v36259_v63, %v35237_v48  ;;  %v35269_v48 = vld [vmem:[#allocation2 + $0x7e0] sm:$0xff] }
 0x8af   : > { %v36261_v56 = vadd.f32 %v36260_v60, %v35238_v10  ;;  %v35270_v10 = vld [vmem:[#allocation2 + $0x7e8] sm:$0xff] }
 0x8b1   : > { %v36262_v4 = vadd.f32 %v36261_v56, %v35239_v19  ;;  %v35271_v19 = vld [vmem:[#allocation2 + $0x7f0] sm:$0xff] }
 0x8b3   : > { %v36263_v36 = vadd.f32 %v36262_v4, %v35240_v50  ;;  %v35272_v50 = vld [vmem:[#allocation2 + $0x7f8] sm:$0xff] }
 0x8b5   : > { %v36264_v30 = vadd.f32 %v36263_v36, %v35241_v33  ;;  %v35273_v33 = vld [vmem:[#allocation2 + $0x800] sm:$0xff] }
 0x8b7   : > { %v36265_v40 = vadd.f32 %v36264_v30, %v35242_v55  ;;  %v35274_v55 = vld [vmem:[#allocation2 + $0x808] sm:$0xff] }
 0x8b9   : > { %v36266_v41 = vadd.f32 %v36265_v40, %v35243_v51  ;;  %v35275_v51 = vld [vmem:[#allocation2 + $0x810] sm:$0xff] }
 0x8bb   : > { %v36267_v12 = vadd.f32 %v36266_v41, %v35244_v37  ;;  %v35276_v37 = vld [vmem:[#allocation2 + $0x818] sm:$0xff] }
 0x8bd   : > { %v36268_v25 = vadd.f32 %v36267_v12, %v35245_v16  ;;  %v35277_v16 = vld [vmem:[#allocation2 + $0x820] sm:$0xff] }
 0x8bf   : > { %v36269_v57 = vadd.f32 %v36268_v25, %v35246_v7  ;;  %v35278_v7 = vld [vmem:[#allocation2 + $0x828] sm:$0xff] }
 0x8c1   : > { %v36270_v24 = vadd.f32 %v36269_v57, %v35247_v18  ;;  %v35279_v18 = vld [vmem:[#allocation2 + $0x830] sm:$0xff] }
 0x8c3   : > { %v36271_v34 = vadd.f32 %v36270_v24, %v35248_v17  ;;  %v35280_v17 = vld [vmem:[#allocation2 + $0x838] sm:$0xff] }
 0x8c5   : > { %v36272_v13 = vadd.f32 %v36271_v34, %v35249_v21  ;;  %v35281_v21 = vld [vmem:[#allocation2 + $0x840] sm:$0xff] }
 0x8c7   : > { %v36273_v54 = vadd.f32 %v36272_v13, %v35250_v39  ;;  %v35282_v39 = vld [vmem:[#allocation2 + $0x848] sm:$0xff] }
 0x8c9   : > { %v36274_v58 = vadd.f32 %v36273_v54, %v35251_v31  ;;  %v35283_v31 = vld [vmem:[#allocation2 + $0x850] sm:$0xff] }
 0x8cb   : > { %v36275_v6 = vadd.f32 %v36274_v58, %v35252_v3  ;;  %v35284_v3 = vld [vmem:[#allocation2 + $0x858] sm:$0xff] }
 0x8cd   : > { %v36276_v52 = vadd.f32 %v36275_v6, %v35253_v22  ;;  %v35285_v22 = vld [vmem:[#allocation2 + $0x860] sm:$0xff] }
 0x8cf   : > { %v36277_v14 = vadd.f32 %v36276_v52, %v35254_v26  ;;  %v35286_v26 = vld [vmem:[#allocation2 + $0x868] sm:$0xff] }
 0x8d1   : > { %v36278_v49 = vadd.f32 %v36277_v14, %v35255_v15  ;;  %v35287_v15 = vld [vmem:[#allocation2 + $0x870] sm:$0xff] }
 0x8d3   : > { %v36279_v61 = vadd.f32 %v36278_v49, %v35256_v62  ;;  %v35288_v62 = vld [vmem:[#allocation2 + $0x878] sm:$0xff] }
 0x8d5   : > { %v36280_v35 = vadd.f32 %v36279_v61, %v35257_v5  ;;  %v35289_v5 = vld [vmem:[#allocation2 + $0x880] sm:$0xff] }
 0x8d7   : > { %v36281_v53 = vadd.f32 %v36280_v35, %v35258_v8  ;;  %v35290_v8 = vld [vmem:[#allocation2 + $0x888] sm:$0xff] }
 0x8d9   : > { %v36282_v0 = vadd.f32 %v36281_v53, %v35259_v9  ;;  %v35291_v9 = vld [vmem:[#allocation2 + $0x890] sm:$0xff] }
 0x8db   : > { %v36283_v28 = vadd.f32 %v36282_v0, %v35260_v44  ;;  %v35292_v44 = vld [vmem:[#allocation2 + $0x898] sm:$0xff] }
 0x8dd   : > { %v36284_v42 = vadd.f32 %v36283_v28, %v35261_v27  ;;  %v35293_v27 = vld [vmem:[#allocation2 + $0x8a0] sm:$0xff] }
 0x8df   : > { %v36285_v47 = vadd.f32 %v36284_v42, %v35262_v2  ;;  %v35294_v2 = vld [vmem:[#allocation2 + $0x8a8] sm:$0xff] }
 0x8e1   : > { %v36286_v46 = vadd.f32 %v36285_v47, %v35263_v38  ;;  %v35295_v38 = vld [vmem:[#allocation2 + $0x8b0] sm:$0xff] }
 0x8e3   : > { %v36287_v20 = vadd.f32 %v36286_v46, %v35264_v1  ;;  %v35296_v1 = vld [vmem:[#allocation2 + $0x8b8] sm:$0xff] }
 0x8e5   : > { %v36288_v45 = vadd.f32 %v36287_v20, %v35265_v32  ;;  %v35297_v32 = vld [vmem:[#allocation2 + $0x8c0] sm:$0xff] }
 0x8e7   : > { %v36289_v43 = vadd.f32 %v36288_v45, %v35266_v23  ;;  %v35298_v23 = vld [vmem:[#allocation2 + $0x8c8] sm:$0xff] }
 0x8e9   : > { %v36290_v29 = vadd.f32 %v36289_v43, %v35267_v11  ;;  %v35299_v11 = vld [vmem:[#allocation2 + $0x8d0] sm:$0xff] }
 0x8eb   : > { %v36291_v63 = vadd.f32 %v36290_v29, %v35268_v59  ;;  %v35300_v59 = vld [vmem:[#allocation2 + $0x8d8] sm:$0xff] }
 0x8ed   : > { %v36292_v60 = vadd.f32 %v36291_v63, %v35269_v48  ;;  %v35301_v48 = vld [vmem:[#allocation2 + $0x8e0] sm:$0xff] }
 0x8ef   : > { %v36293_v56 = vadd.f32 %v36292_v60, %v35270_v10  ;;  %v35302_v10 = vld [vmem:[#allocation2 + $0x8e8] sm:$0xff] }
 0x8f1   : > { %v36294_v4 = vadd.f32 %v36293_v56, %v35271_v19  ;;  %v35303_v19 = vld [vmem:[#allocation2 + $0x8f0] sm:$0xff] }
 0x8f3   : > { %v36295_v36 = vadd.f32 %v36294_v4, %v35272_v50  ;;  %v35304_v50 = vld [vmem:[#allocation2 + $0x8f8] sm:$0xff] }
 0x8f5   : > { %v36296_v30 = vadd.f32 %v36295_v36, %v35273_v33  ;;  %v35305_v33 = vld [vmem:[#allocation2 + $0x900] sm:$0xff] }
 0x8f7   : > { %v36297_v40 = vadd.f32 %v36296_v30, %v35274_v55  ;;  %v35306_v55 = vld [vmem:[#allocation2 + $0x908] sm:$0xff] }
 0x8f9   : > { %v36298_v41 = vadd.f32 %v36297_v40, %v35275_v51  ;;  %v35307_v51 = vld [vmem:[#allocation2 + $0x910] sm:$0xff] }
 0x8fb   : > { %v36299_v12 = vadd.f32 %v36298_v41, %v35276_v37  ;;  %v35308_v37 = vld [vmem:[#allocation2 + $0x918] sm:$0xff] }
 0x8fd   : > { %v36300_v25 = vadd.f32 %v36299_v12, %v35277_v16  ;;  %v35309_v16 = vld [vmem:[#allocation2 + $0x920] sm:$0xff] }
 0x8ff   : > { %v36301_v57 = vadd.f32 %v36300_v25, %v35278_v7  ;;  %v35310_v7 = vld [vmem:[#allocation2 + $0x928] sm:$0xff] }
 0x901   : > { %v36302_v24 = vadd.f32 %v36301_v57, %v35279_v18  ;;  %v35311_v18 = vld [vmem:[#allocation2 + $0x930] sm:$0xff] }
 0x903   : > { %v36303_v34 = vadd.f32 %v36302_v24, %v35280_v17  ;;  %v35312_v17 = vld [vmem:[#allocation2 + $0x938] sm:$0xff] }
 0x905   : > { %v36304_v13 = vadd.f32 %v36303_v34, %v35281_v21  ;;  %v35313_v21 = vld [vmem:[#allocation2 + $0x940] sm:$0xff] }
 0x907   : > { %v36305_v54 = vadd.f32 %v36304_v13, %v35282_v39  ;;  %v35314_v39 = vld [vmem:[#allocation2 + $0x948] sm:$0xff] }
 0x909   : > { %v36306_v58 = vadd.f32 %v36305_v54, %v35283_v31  ;;  %v35315_v31 = vld [vmem:[#allocation2 + $0x950] sm:$0xff] }
 0x90b   : > { %v36307_v6 = vadd.f32 %v36306_v58, %v35284_v3  ;;  %v35316_v3 = vld [vmem:[#allocation2 + $0x958] sm:$0xff] }
 0x90d   : > { %v36308_v52 = vadd.f32 %v36307_v6, %v35285_v22  ;;  %v35317_v22 = vld [vmem:[#allocation2 + $0x960] sm:$0xff] }
 0x90f   : > { %v36309_v14 = vadd.f32 %v36308_v52, %v35286_v26  ;;  %v35318_v26 = vld [vmem:[#allocation2 + $0x968] sm:$0xff] }
 0x911   : > { %v36310_v49 = vadd.f32 %v36309_v14, %v35287_v15  ;;  %v35319_v15 = vld [vmem:[#allocation2 + $0x970] sm:$0xff] }
 0x913   : > { %v36311_v61 = vadd.f32 %v36310_v49, %v35288_v62  ;;  %v35320_v62 = vld [vmem:[#allocation2 + $0x978] sm:$0xff] }
 0x915   : > { %v36312_v35 = vadd.f32 %v36311_v61, %v35289_v5  ;;  %v35321_v5 = vld [vmem:[#allocation2 + $0x980] sm:$0xff] }
 0x917   : > { %v36313_v53 = vadd.f32 %v36312_v35, %v35290_v8  ;;  %v35322_v8 = vld [vmem:[#allocation2 + $0x988] sm:$0xff] }
 0x919   : > { %v36314_v0 = vadd.f32 %v36313_v53, %v35291_v9  ;;  %v35323_v9 = vld [vmem:[#allocation2 + $0x990] sm:$0xff] }
 0x91b   : > { %v36315_v28 = vadd.f32 %v36314_v0, %v35292_v44  ;;  %v35324_v44 = vld [vmem:[#allocation2 + $0x998] sm:$0xff] }
 0x91d   : > { %v36316_v42 = vadd.f32 %v36315_v28, %v35293_v27  ;;  %v35325_v27 = vld [vmem:[#allocation2 + $0x9a0] sm:$0xff] }
 0x91f   : > { %v36317_v47 = vadd.f32 %v36316_v42, %v35294_v2  ;;  %v35326_v2 = vld [vmem:[#allocation2 + $0x9a8] sm:$0xff] }
 0x921   : > { %v36318_v46 = vadd.f32 %v36317_v47, %v35295_v38  ;;  %v35327_v38 = vld [vmem:[#allocation2 + $0x9b0] sm:$0xff] }
 0x923   : > { %v36319_v20 = vadd.f32 %v36318_v46, %v35296_v1  ;;  %v35328_v1 = vld [vmem:[#allocation2 + $0x9b8] sm:$0xff] }
 0x925   : > { %v36320_v45 = vadd.f32 %v36319_v20, %v35297_v32  ;;  %v35329_v32 = vld [vmem:[#allocation2 + $0x9c0] sm:$0xff] }
 0x927   : > { %v36321_v43 = vadd.f32 %v36320_v45, %v35298_v23  ;;  %v35330_v23 = vld [vmem:[#allocation2 + $0x9c8] sm:$0xff] }
 0x929   : > { %v36322_v29 = vadd.f32 %v36321_v43, %v35299_v11  ;;  %v35331_v11 = vld [vmem:[#allocation2 + $0x9d0] sm:$0xff] }
 0x92b   : > { %v36323_v63 = vadd.f32 %v36322_v29, %v35300_v59  ;;  %v35332_v59 = vld [vmem:[#allocation2 + $0x9d8] sm:$0xff] }
 0x92d   : > { %v36324_v60 = vadd.f32 %v36323_v63, %v35301_v48  ;;  %v35333_v48 = vld [vmem:[#allocation2 + $0x9e0] sm:$0xff] }
 0x92f   : > { %v36325_v56 = vadd.f32 %v36324_v60, %v35302_v10  ;;  %v35334_v10 = vld [vmem:[#allocation2 + $0x9e8] sm:$0xff] }
 0x931   : > { %v36326_v4 = vadd.f32 %v36325_v56, %v35303_v19  ;;  %v35335_v19 = vld [vmem:[#allocation2 + $0x9f0] sm:$0xff] }
 0x933   : > { %v36327_v36 = vadd.f32 %v36326_v4, %v35304_v50  ;;  %v35336_v50 = vld [vmem:[#allocation2 + $0x9f8] sm:$0xff] }
 0x935   : > { %v36328_v30 = vadd.f32 %v36327_v36, %v35305_v33  ;;  %v35337_v33 = vld [vmem:[#allocation2 + $0xa00] sm:$0xff] }
 0x937   : > { %v36329_v40 = vadd.f32 %v36328_v30, %v35306_v55  ;;  %v35338_v55 = vld [vmem:[#allocation2 + $0xa08] sm:$0xff] }
 0x939   : > { %v36330_v41 = vadd.f32 %v36329_v40, %v35307_v51  ;;  %v35339_v51 = vld [vmem:[#allocation2 + $0xa10] sm:$0xff] }
 0x93b   : > { %v36331_v12 = vadd.f32 %v36330_v41, %v35308_v37  ;;  %v35340_v37 = vld [vmem:[#allocation2 + $0xa18] sm:$0xff] }
 0x93d   : > { %v36332_v25 = vadd.f32 %v36331_v12, %v35309_v16  ;;  %v35341_v16 = vld [vmem:[#allocation2 + $0xa20] sm:$0xff] }
 0x93f   : > { %v36333_v57 = vadd.f32 %v36332_v25, %v35310_v7  ;;  %v35342_v7 = vld [vmem:[#allocation2 + $0xa28] sm:$0xff] }
 0x941   : > { %v36334_v24 = vadd.f32 %v36333_v57, %v35311_v18  ;;  %v35343_v18 = vld [vmem:[#allocation2 + $0xa30] sm:$0xff] }
 0x943   : > { %v36335_v34 = vadd.f32 %v36334_v24, %v35312_v17  ;;  %v35344_v17 = vld [vmem:[#allocation2 + $0xa38] sm:$0xff] }
 0x945   : > { %v36336_v13 = vadd.f32 %v36335_v34, %v35313_v21  ;;  %v35345_v21 = vld [vmem:[#allocation2 + $0xa40] sm:$0xff] }
 0x947   : > { %v36337_v54 = vadd.f32 %v36336_v13, %v35314_v39  ;;  %v35346_v39 = vld [vmem:[#allocation2 + $0xa48] sm:$0xff] }
 0x949   : > { %v36338_v58 = vadd.f32 %v36337_v54, %v35315_v31  ;;  %v35347_v31 = vld [vmem:[#allocation2 + $0xa50] sm:$0xff] }
 0x94b   : > { %v36339_v6 = vadd.f32 %v36338_v58, %v35316_v3  ;;  %v35348_v3 = vld [vmem:[#allocation2 + $0xa58] sm:$0xff] }
 0x94d   : > { %v36340_v52 = vadd.f32 %v36339_v6, %v35317_v22  ;;  %v35349_v22 = vld [vmem:[#allocation2 + $0xa60] sm:$0xff] }
 0x94f   : > { %v36341_v14 = vadd.f32 %v36340_v52, %v35318_v26  ;;  %v35350_v26 = vld [vmem:[#allocation2 + $0xa68] sm:$0xff] }
 0x951   : > { %v36342_v49 = vadd.f32 %v36341_v14, %v35319_v15  ;;  %v35351_v15 = vld [vmem:[#allocation2 + $0xa70] sm:$0xff] }
 0x953   : > { %v36343_v61 = vadd.f32 %v36342_v49, %v35320_v62  ;;  %v35352_v62 = vld [vmem:[#allocation2 + $0xa78] sm:$0xff] }
 0x955   : > { %v36344_v35 = vadd.f32 %v36343_v61, %v35321_v5  ;;  %v35353_v5 = vld [vmem:[#allocation2 + $0xa80] sm:$0xff] }
 0x957   : > { %v36345_v53 = vadd.f32 %v36344_v35, %v35322_v8  ;;  %v35354_v8 = vld [vmem:[#allocation2 + $0xa88] sm:$0xff] }
 0x959   : > { %v36346_v0 = vadd.f32 %v36345_v53, %v35323_v9  ;;  %v35355_v9 = vld [vmem:[#allocation2 + $0xa90] sm:$0xff] }
 0x95b   : > { %v36347_v28 = vadd.f32 %v36346_v0, %v35324_v44  ;;  %v35356_v44 = vld [vmem:[#allocation2 + $0xa98] sm:$0xff] }
 0x95d   : > { %v36348_v42 = vadd.f32 %v36347_v28, %v35325_v27  ;;  %v35357_v27 = vld [vmem:[#allocation2 + $0xaa0] sm:$0xff] }
 0x95f   : > { %v36349_v47 = vadd.f32 %v36348_v42, %v35326_v2  ;;  %v35358_v2 = vld [vmem:[#allocation2 + $0xaa8] sm:$0xff] }
 0x961   : > { %v36350_v46 = vadd.f32 %v36349_v47, %v35327_v38  ;;  %v35359_v38 = vld [vmem:[#allocation2 + $0xab0] sm:$0xff] }
 0x963   : > { %v36351_v20 = vadd.f32 %v36350_v46, %v35328_v1  ;;  %v35360_v1 = vld [vmem:[#allocation2 + $0xab8] sm:$0xff] }
 0x965   : > { %v36352_v45 = vadd.f32 %v36351_v20, %v35329_v32  ;;  %v35361_v32 = vld [vmem:[#allocation2 + $0xac0] sm:$0xff] }
 0x967   : > { %v36353_v43 = vadd.f32 %v36352_v45, %v35330_v23  ;;  %v35362_v23 = vld [vmem:[#allocation2 + $0xac8] sm:$0xff] }
 0x969   : > { %v36354_v29 = vadd.f32 %v36353_v43, %v35331_v11  ;;  %v35363_v11 = vld [vmem:[#allocation2 + $0xad0] sm:$0xff] }
 0x96b   : > { %v36355_v63 = vadd.f32 %v36354_v29, %v35332_v59  ;;  %v35364_v59 = vld [vmem:[#allocation2 + $0xad8] sm:$0xff] }
 0x96d   : > { %v36356_v60 = vadd.f32 %v36355_v63, %v35333_v48  ;;  %v35365_v48 = vld [vmem:[#allocation2 + $0xae0] sm:$0xff] }
 0x96f   : > { %v36357_v56 = vadd.f32 %v36356_v60, %v35334_v10  ;;  %v35366_v10 = vld [vmem:[#allocation2 + $0xae8] sm:$0xff] }
 0x971   : > { %v36358_v4 = vadd.f32 %v36357_v56, %v35335_v19  ;;  %v35367_v19 = vld [vmem:[#allocation2 + $0xaf0] sm:$0xff] }
 0x973   : > { %v36359_v36 = vadd.f32 %v36358_v4, %v35336_v50  ;;  %v35368_v50 = vld [vmem:[#allocation2 + $0xaf8] sm:$0xff] }
 0x975   : > { %v36360_v30 = vadd.f32 %v36359_v36, %v35337_v33  ;;  %v35369_v33 = vld [vmem:[#allocation2 + $0xb00] sm:$0xff] }
 0x977   : > { %v36361_v40 = vadd.f32 %v36360_v30, %v35338_v55  ;;  %v35370_v55 = vld [vmem:[#allocation2 + $0xb08] sm:$0xff] }
 0x979   : > { %v36362_v41 = vadd.f32 %v36361_v40, %v35339_v51  ;;  %v35371_v51 = vld [vmem:[#allocation2 + $0xb10] sm:$0xff] }
 0x97b   : > { %v36363_v12 = vadd.f32 %v36362_v41, %v35340_v37  ;;  %v35372_v37 = vld [vmem:[#allocation2 + $0xb18] sm:$0xff] }
 0x97d   : > { %v36364_v25 = vadd.f32 %v36363_v12, %v35341_v16  ;;  %v35373_v16 = vld [vmem:[#allocation2 + $0xb20] sm:$0xff] }
 0x97f   : > { %v36365_v57 = vadd.f32 %v36364_v25, %v35342_v7  ;;  %v35374_v7 = vld [vmem:[#allocation2 + $0xb28] sm:$0xff] }
 0x981   : > { %v36366_v24 = vadd.f32 %v36365_v57, %v35343_v18  ;;  %v35375_v18 = vld [vmem:[#allocation2 + $0xb30] sm:$0xff] }
 0x983   : > { %v36367_v34 = vadd.f32 %v36366_v24, %v35344_v17  ;;  %v35376_v17 = vld [vmem:[#allocation2 + $0xb38] sm:$0xff] }
 0x985   : > { %v36368_v13 = vadd.f32 %v36367_v34, %v35345_v21  ;;  %v35377_v21 = vld [vmem:[#allocation2 + $0xb40] sm:$0xff] }
 0x987   : > { %v36369_v54 = vadd.f32 %v36368_v13, %v35346_v39  ;;  %v35378_v39 = vld [vmem:[#allocation2 + $0xb48] sm:$0xff] }
 0x989   : > { %v36370_v58 = vadd.f32 %v36369_v54, %v35347_v31  ;;  %v35379_v31 = vld [vmem:[#allocation2 + $0xb50] sm:$0xff] }
 0x98b   : > { %v36371_v6 = vadd.f32 %v36370_v58, %v35348_v3  ;;  %v35380_v3 = vld [vmem:[#allocation2 + $0xb58] sm:$0xff] }
 0x98d   : > { %v36372_v52 = vadd.f32 %v36371_v6, %v35349_v22  ;;  %v35381_v22 = vld [vmem:[#allocation2 + $0xb60] sm:$0xff] }
 0x98f   : > { %v36373_v14 = vadd.f32 %v36372_v52, %v35350_v26  ;;  %v35382_v26 = vld [vmem:[#allocation2 + $0xb68] sm:$0xff] }
 0x991   : > { %v36374_v49 = vadd.f32 %v36373_v14, %v35351_v15  ;;  %v35383_v15 = vld [vmem:[#allocation2 + $0xb70] sm:$0xff] }
 0x993   : > { %v36375_v61 = vadd.f32 %v36374_v49, %v35352_v62  ;;  %v35384_v62 = vld [vmem:[#allocation2 + $0xb78] sm:$0xff] }
 0x995   : > { %v36376_v35 = vadd.f32 %v36375_v61, %v35353_v5  ;;  %v35385_v5 = vld [vmem:[#allocation2 + $0xb80] sm:$0xff] }
 0x997   : > { %v36377_v53 = vadd.f32 %v36376_v35, %v35354_v8  ;;  %v35386_v8 = vld [vmem:[#allocation2 + $0xb88] sm:$0xff] }
 0x999   : > { %v36378_v0 = vadd.f32 %v36377_v53, %v35355_v9  ;;  %v35387_v9 = vld [vmem:[#allocation2 + $0xb90] sm:$0xff] }
 0x99b   : > { %v36379_v28 = vadd.f32 %v36378_v0, %v35356_v44  ;;  %v35388_v44 = vld [vmem:[#allocation2 + $0xb98] sm:$0xff] }
 0x99d   : > { %v36380_v42 = vadd.f32 %v36379_v28, %v35357_v27  ;;  %v35389_v27 = vld [vmem:[#allocation2 + $0xba0] sm:$0xff] }
 0x99f   : > { %v36381_v47 = vadd.f32 %v36380_v42, %v35358_v2  ;;  %v35390_v2 = vld [vmem:[#allocation2 + $0xba8] sm:$0xff] }
 0x9a1   : > { %v36382_v46 = vadd.f32 %v36381_v47, %v35359_v38  ;;  %v35391_v38 = vld [vmem:[#allocation2 + $0xbb0] sm:$0xff] }
 0x9a3   : > { %v36383_v20 = vadd.f32 %v36382_v46, %v35360_v1  ;;  %v35392_v1 = vld [vmem:[#allocation2 + $0xbb8] sm:$0xff] }
 0x9a5   : > { %v36384_v45 = vadd.f32 %v36383_v20, %v35361_v32  ;;  %v35393_v32 = vld [vmem:[#allocation2 + $0xbc0] sm:$0xff] }
 0x9a7   : > { %v36385_v43 = vadd.f32 %v36384_v45, %v35362_v23  ;;  %v35394_v23 = vld [vmem:[#allocation2 + $0xbc8] sm:$0xff] }
 0x9a9   : > { %v36386_v29 = vadd.f32 %v36385_v43, %v35363_v11  ;;  %v35395_v11 = vld [vmem:[#allocation2 + $0xbd0] sm:$0xff] }
 0x9ab   : > { %v36387_v63 = vadd.f32 %v36386_v29, %v35364_v59  ;;  %v35396_v59 = vld [vmem:[#allocation2 + $0xbd8] sm:$0xff] }
 0x9ad   : > { %v36388_v60 = vadd.f32 %v36387_v63, %v35365_v48  ;;  %v35397_v48 = vld [vmem:[#allocation2 + $0xbe0] sm:$0xff] }
 0x9af   : > { %v36389_v56 = vadd.f32 %v36388_v60, %v35366_v10  ;;  %v35398_v10 = vld [vmem:[#allocation2 + $0xbe8] sm:$0xff] }
 0x9b1   : > { %v36390_v4 = vadd.f32 %v36389_v56, %v35367_v19  ;;  %v35399_v19 = vld [vmem:[#allocation2 + $0xbf0] sm:$0xff] }
 0x9b3   : > { %v36391_v36 = vadd.f32 %v36390_v4, %v35368_v50  ;;  %v35400_v50 = vld [vmem:[#allocation2 + $0xbf8] sm:$0xff] }
 0x9b5   : > { %v36392_v30 = vadd.f32 %v36391_v36, %v35369_v33  ;;  %v35401_v33 = vld [vmem:[#allocation2 + $0xc00] sm:$0xff] }
 0x9b7   : > { %v36393_v40 = vadd.f32 %v36392_v30, %v35370_v55  ;;  %v35402_v55 = vld [vmem:[#allocation2 + $0xc08] sm:$0xff] }
 0x9b9   : > { %v36394_v41 = vadd.f32 %v36393_v40, %v35371_v51  ;;  %v35403_v51 = vld [vmem:[#allocation2 + $0xc10] sm:$0xff] }
 0x9bb   : > { %v36395_v12 = vadd.f32 %v36394_v41, %v35372_v37  ;;  %v35404_v37 = vld [vmem:[#allocation2 + $0xc18] sm:$0xff] }
 0x9bd   : > { %v36396_v25 = vadd.f32 %v36395_v12, %v35373_v16  ;;  %v35405_v16 = vld [vmem:[#allocation2 + $0xc20] sm:$0xff] }
 0x9bf   : > { %v36397_v57 = vadd.f32 %v36396_v25, %v35374_v7  ;;  %v35406_v7 = vld [vmem:[#allocation2 + $0xc28] sm:$0xff] }
 0x9c1   : > { %v36398_v24 = vadd.f32 %v36397_v57, %v35375_v18  ;;  %v35407_v18 = vld [vmem:[#allocation2 + $0xc30] sm:$0xff] }
 0x9c3   : > { %v36399_v34 = vadd.f32 %v36398_v24, %v35376_v17  ;;  %v35408_v17 = vld [vmem:[#allocation2 + $0xc38] sm:$0xff] }
 0x9c5   : > { %v36400_v13 = vadd.f32 %v36399_v34, %v35377_v21  ;;  %v35409_v21 = vld [vmem:[#allocation2 + $0xc40] sm:$0xff] }
 0x9c7   : > { %v36401_v54 = vadd.f32 %v36400_v13, %v35378_v39  ;;  %v35410_v39 = vld [vmem:[#allocation2 + $0xc48] sm:$0xff] }
 0x9c9   : > { %v36402_v58 = vadd.f32 %v36401_v54, %v35379_v31  ;;  %v35411_v31 = vld [vmem:[#allocation2 + $0xc50] sm:$0xff] }
 0x9cb   : > { %v36403_v6 = vadd.f32 %v36402_v58, %v35380_v3  ;;  %v35412_v3 = vld [vmem:[#allocation2 + $0xc58] sm:$0xff] }
 0x9cd   : > { %v36404_v52 = vadd.f32 %v36403_v6, %v35381_v22  ;;  %v35413_v22 = vld [vmem:[#allocation2 + $0xc60] sm:$0xff] }
 0x9cf   : > { %v36405_v14 = vadd.f32 %v36404_v52, %v35382_v26  ;;  %v35414_v26 = vld [vmem:[#allocation2 + $0xc68] sm:$0xff] }
 0x9d1   : > { %v36406_v49 = vadd.f32 %v36405_v14, %v35383_v15  ;;  %v35415_v15 = vld [vmem:[#allocation2 + $0xc70] sm:$0xff] }
 0x9d3   : > { %v36407_v61 = vadd.f32 %v36406_v49, %v35384_v62  ;;  %v35416_v62 = vld [vmem:[#allocation2 + $0xc78] sm:$0xff] }
 0x9d5   : > { %v36408_v35 = vadd.f32 %v36407_v61, %v35385_v5  ;;  %v35417_v5 = vld [vmem:[#allocation2 + $0xc80] sm:$0xff] }
 0x9d7   : > { %v36409_v53 = vadd.f32 %v36408_v35, %v35386_v8  ;;  %v35418_v8 = vld [vmem:[#allocation2 + $0xc88] sm:$0xff] }
 0x9d9   : > { %v36410_v0 = vadd.f32 %v36409_v53, %v35387_v9  ;;  %v35419_v9 = vld [vmem:[#allocation2 + $0xc90] sm:$0xff] }
 0x9db   : > { %v36411_v28 = vadd.f32 %v36410_v0, %v35388_v44  ;;  %v35420_v44 = vld [vmem:[#allocation2 + $0xc98] sm:$0xff] }
 0x9dd   : > { %v36412_v42 = vadd.f32 %v36411_v28, %v35389_v27  ;;  %v35421_v27 = vld [vmem:[#allocation2 + $0xca0] sm:$0xff] }
 0x9df   : > { %v36413_v47 = vadd.f32 %v36412_v42, %v35390_v2  ;;  %v35422_v2 = vld [vmem:[#allocation2 + $0xca8] sm:$0xff] }
 0x9e1   : > { %v36414_v46 = vadd.f32 %v36413_v47, %v35391_v38  ;;  %v35423_v38 = vld [vmem:[#allocation2 + $0xcb0] sm:$0xff] }
 0x9e3   : > { %v36415_v20 = vadd.f32 %v36414_v46, %v35392_v1  ;;  %v35424_v1 = vld [vmem:[#allocation2 + $0xcb8] sm:$0xff] }
 0x9e5   : > { %v36416_v45 = vadd.f32 %v36415_v20, %v35393_v32  ;;  %v35425_v32 = vld [vmem:[#allocation2 + $0xcc0] sm:$0xff] }
 0x9e7   : > { %v36417_v43 = vadd.f32 %v36416_v45, %v35394_v23  ;;  %v35426_v23 = vld [vmem:[#allocation2 + $0xcc8] sm:$0xff] }
 0x9e9   : > { %v36418_v29 = vadd.f32 %v36417_v43, %v35395_v11  ;;  %v35427_v11 = vld [vmem:[#allocation2 + $0xcd0] sm:$0xff] }
 0x9eb   : > { %v36419_v63 = vadd.f32 %v36418_v29, %v35396_v59  ;;  %v35428_v59 = vld [vmem:[#allocation2 + $0xcd8] sm:$0xff] }
 0x9ed   : > { %v36420_v60 = vadd.f32 %v36419_v63, %v35397_v48  ;;  %v35429_v48 = vld [vmem:[#allocation2 + $0xce0] sm:$0xff] }
 0x9ef   : > { %v36421_v56 = vadd.f32 %v36420_v60, %v35398_v10  ;;  %v35430_v10 = vld [vmem:[#allocation2 + $0xce8] sm:$0xff] }
 0x9f1   : > { %v36422_v4 = vadd.f32 %v36421_v56, %v35399_v19  ;;  %v35431_v19 = vld [vmem:[#allocation2 + $0xcf0] sm:$0xff] }
 0x9f3   : > { %v36423_v36 = vadd.f32 %v36422_v4, %v35400_v50  ;;  %v35432_v50 = vld [vmem:[#allocation2 + $0xcf8] sm:$0xff] }
 0x9f5   : > { %v36424_v30 = vadd.f32 %v36423_v36, %v35401_v33  ;;  %v35433_v33 = vld [vmem:[#allocation2 + $0xd00] sm:$0xff] }
 0x9f7   : > { %v36425_v40 = vadd.f32 %v36424_v30, %v35402_v55  ;;  %v35434_v55 = vld [vmem:[#allocation2 + $0xd08] sm:$0xff] }
 0x9f9   : > { %v36426_v41 = vadd.f32 %v36425_v40, %v35403_v51  ;;  %v35435_v51 = vld [vmem:[#allocation2 + $0xd10] sm:$0xff] }
 0x9fb   : > { %v36427_v12 = vadd.f32 %v36426_v41, %v35404_v37  ;;  %v35436_v37 = vld [vmem:[#allocation2 + $0xd18] sm:$0xff] }
 0x9fd   : > { %v36428_v25 = vadd.f32 %v36427_v12, %v35405_v16  ;;  %v35437_v16 = vld [vmem:[#allocation2 + $0xd20] sm:$0xff] }
 0x9ff   : > { %v36429_v57 = vadd.f32 %v36428_v25, %v35406_v7  ;;  %v35438_v7 = vld [vmem:[#allocation2 + $0xd28] sm:$0xff] }
 0xa01   : > { %v36430_v24 = vadd.f32 %v36429_v57, %v35407_v18  ;;  %v35439_v18 = vld [vmem:[#allocation2 + $0xd30] sm:$0xff] }
 0xa03   : > { %v36431_v34 = vadd.f32 %v36430_v24, %v35408_v17  ;;  %v35440_v17 = vld [vmem:[#allocation2 + $0xd38] sm:$0xff] }
 0xa05   : > { %v36432_v13 = vadd.f32 %v36431_v34, %v35409_v21  ;;  %v35441_v21 = vld [vmem:[#allocation2 + $0xd40] sm:$0xff] }
 0xa07   : > { %v36433_v54 = vadd.f32 %v36432_v13, %v35410_v39  ;;  %v35442_v39 = vld [vmem:[#allocation2 + $0xd48] sm:$0xff] }
 0xa09   : > { %v36434_v58 = vadd.f32 %v36433_v54, %v35411_v31  ;;  %v35443_v31 = vld [vmem:[#allocation2 + $0xd50] sm:$0xff] }
 0xa0b   : > { %v36435_v6 = vadd.f32 %v36434_v58, %v35412_v3  ;;  %v35444_v3 = vld [vmem:[#allocation2 + $0xd58] sm:$0xff] }
 0xa0d   : > { %v36436_v52 = vadd.f32 %v36435_v6, %v35413_v22  ;;  %v35445_v22 = vld [vmem:[#allocation2 + $0xd60] sm:$0xff] }
 0xa0f   : > { %v36437_v14 = vadd.f32 %v36436_v52, %v35414_v26  ;;  %v35446_v26 = vld [vmem:[#allocation2 + $0xd68] sm:$0xff] }
 0xa11   : > { %v36438_v49 = vadd.f32 %v36437_v14, %v35415_v15  ;;  %v35447_v15 = vld [vmem:[#allocation2 + $0xd70] sm:$0xff] }
 0xa13   : > { %v36439_v61 = vadd.f32 %v36438_v49, %v35416_v62  ;;  %v35448_v62 = vld [vmem:[#allocation2 + $0xd78] sm:$0xff] }
 0xa15   : > { %v36440_v35 = vadd.f32 %v36439_v61, %v35417_v5  ;;  %v35449_v5 = vld [vmem:[#allocation2 + $0xd80] sm:$0xff] }
 0xa17   : > { %v36441_v53 = vadd.f32 %v36440_v35, %v35418_v8  ;;  %v35450_v8 = vld [vmem:[#allocation2 + $0xd88] sm:$0xff] }
 0xa19   : > { %v36442_v0 = vadd.f32 %v36441_v53, %v35419_v9  ;;  %v35451_v9 = vld [vmem:[#allocation2 + $0xd90] sm:$0xff] }
 0xa1b   : > { %v36443_v28 = vadd.f32 %v36442_v0, %v35420_v44  ;;  %v35452_v44 = vld [vmem:[#allocation2 + $0xd98] sm:$0xff] }
 0xa1d   : > { %v36444_v42 = vadd.f32 %v36443_v28, %v35421_v27  ;;  %v35453_v27 = vld [vmem:[#allocation2 + $0xda0] sm:$0xff] }
 0xa1f   : > { %v36445_v47 = vadd.f32 %v36444_v42, %v35422_v2  ;;  %v35454_v2 = vld [vmem:[#allocation2 + $0xda8] sm:$0xff] }
 0xa21   : > { %v36446_v46 = vadd.f32 %v36445_v47, %v35423_v38  ;;  %v35455_v38 = vld [vmem:[#allocation2 + $0xdb0] sm:$0xff] }
 0xa23   : > { %v36447_v20 = vadd.f32 %v36446_v46, %v35424_v1  ;;  %v35456_v1 = vld [vmem:[#allocation2 + $0xdb8] sm:$0xff] }
 0xa25   : > { %v36448_v45 = vadd.f32 %v36447_v20, %v35425_v32  ;;  %v35457_v32 = vld [vmem:[#allocation2 + $0xdc0] sm:$0xff] }
 0xa27   : > { %v36449_v43 = vadd.f32 %v36448_v45, %v35426_v23  ;;  %v35458_v23 = vld [vmem:[#allocation2 + $0xdc8] sm:$0xff] }
 0xa29   : > { %v36450_v29 = vadd.f32 %v36449_v43, %v35427_v11  ;;  %v35459_v11 = vld [vmem:[#allocation2 + $0xdd0] sm:$0xff] }
 0xa2b   : > { %v36451_v63 = vadd.f32 %v36450_v29, %v35428_v59  ;;  %v35460_v59 = vld [vmem:[#allocation2 + $0xdd8] sm:$0xff] }
 0xa2d   : > { %v36452_v60 = vadd.f32 %v36451_v63, %v35429_v48  ;;  %v35461_v48 = vld [vmem:[#allocation2 + $0xde0] sm:$0xff] }
 0xa2f   : > { %v36453_v56 = vadd.f32 %v36452_v60, %v35430_v10  ;;  %v35462_v10 = vld [vmem:[#allocation2 + $0xde8] sm:$0xff] }
 0xa31   : > { %v36454_v4 = vadd.f32 %v36453_v56, %v35431_v19  ;;  %v35463_v19 = vld [vmem:[#allocation2 + $0xdf0] sm:$0xff] }
 0xa33   : > { %v36455_v36 = vadd.f32 %v36454_v4, %v35432_v50  ;;  %v35464_v50 = vld [vmem:[#allocation2 + $0xdf8] sm:$0xff] }
 0xa35   : > { %v36456_v30 = vadd.f32 %v36455_v36, %v35433_v33  ;;  %v35465_v33 = vld [vmem:[#allocation2 + $0xe00] sm:$0xff] }
 0xa37   : > { %v36457_v40 = vadd.f32 %v36456_v30, %v35434_v55  ;;  %v35466_v55 = vld [vmem:[#allocation2 + $0xe08] sm:$0xff] }
 0xa39   : > { %v36458_v41 = vadd.f32 %v36457_v40, %v35435_v51  ;;  %v35467_v51 = vld [vmem:[#allocation2 + $0xe10] sm:$0xff] }
 0xa3b   : > { %v36459_v12 = vadd.f32 %v36458_v41, %v35436_v37  ;;  %v35468_v37 = vld [vmem:[#allocation2 + $0xe18] sm:$0xff] }
 0xa3d   : > { %v36460_v25 = vadd.f32 %v36459_v12, %v35437_v16  ;;  %v35469_v16 = vld [vmem:[#allocation2 + $0xe20] sm:$0xff] }
 0xa3f   : > { %v36461_v57 = vadd.f32 %v36460_v25, %v35438_v7  ;;  %v35470_v7 = vld [vmem:[#allocation2 + $0xe28] sm:$0xff] }
 0xa41   : > { %v36462_v24 = vadd.f32 %v36461_v57, %v35439_v18  ;;  %v35471_v18 = vld [vmem:[#allocation2 + $0xe30] sm:$0xff] }
 0xa43   : > { %v36463_v34 = vadd.f32 %v36462_v24, %v35440_v17  ;;  %v35472_v17 = vld [vmem:[#allocation2 + $0xe38] sm:$0xff] }
 0xa45   : > { %v36464_v13 = vadd.f32 %v36463_v34, %v35441_v21  ;;  %v35473_v21 = vld [vmem:[#allocation2 + $0xe40] sm:$0xff] }
 0xa47   : > { %v36465_v54 = vadd.f32 %v36464_v13, %v35442_v39  ;;  %v35474_v39 = vld [vmem:[#allocation2 + $0xe48] sm:$0xff] }
 0xa49   : > { %v36466_v58 = vadd.f32 %v36465_v54, %v35443_v31  ;;  %v35475_v31 = vld [vmem:[#allocation2 + $0xe50] sm:$0xff] }
 0xa4b   : > { %v36467_v6 = vadd.f32 %v36466_v58, %v35444_v3  ;;  %v35476_v3 = vld [vmem:[#allocation2 + $0xe58] sm:$0xff] }
 0xa4d   : > { %v36468_v52 = vadd.f32 %v36467_v6, %v35445_v22  ;;  %v35477_v22 = vld [vmem:[#allocation2 + $0xe60] sm:$0xff] }
 0xa4f   : > { %v36469_v14 = vadd.f32 %v36468_v52, %v35446_v26  ;;  %v35478_v26 = vld [vmem:[#allocation2 + $0xe68] sm:$0xff] }
 0xa51   : > { %v36470_v49 = vadd.f32 %v36469_v14, %v35447_v15  ;;  %v35479_v15 = vld [vmem:[#allocation2 + $0xe70] sm:$0xff] }
 0xa53   : > { %v36471_v61 = vadd.f32 %v36470_v49, %v35448_v62  ;;  %v35480_v62 = vld [vmem:[#allocation2 + $0xe78] sm:$0xff] }
 0xa55   : > { %v36472_v35 = vadd.f32 %v36471_v61, %v35449_v5  ;;  %v35481_v5 = vld [vmem:[#allocation2 + $0xe80] sm:$0xff] }
 0xa57   : > { %v36473_v53 = vadd.f32 %v36472_v35, %v35450_v8  ;;  %v35482_v8 = vld [vmem:[#allocation2 + $0xe88] sm:$0xff] }
 0xa59   : > { %v36474_v0 = vadd.f32 %v36473_v53, %v35451_v9  ;;  %v35483_v9 = vld [vmem:[#allocation2 + $0xe90] sm:$0xff] }
 0xa5b   : > { %v36475_v28 = vadd.f32 %v36474_v0, %v35452_v44  ;;  %v35484_v44 = vld [vmem:[#allocation2 + $0xe98] sm:$0xff] }
 0xa5d   : > { %v36476_v42 = vadd.f32 %v36475_v28, %v35453_v27  ;;  %v35485_v27 = vld [vmem:[#allocation2 + $0xea0] sm:$0xff] }
 0xa5f   : > { %v36477_v47 = vadd.f32 %v36476_v42, %v35454_v2  ;;  %v35486_v2 = vld [vmem:[#allocation2 + $0xea8] sm:$0xff] }
 0xa61   : > { %v36478_v46 = vadd.f32 %v36477_v47, %v35455_v38  ;;  %v35487_v38 = vld [vmem:[#allocation2 + $0xeb0] sm:$0xff] }
 0xa63   : > { %v36479_v20 = vadd.f32 %v36478_v46, %v35456_v1  ;;  %v35488_v1 = vld [vmem:[#allocation2 + $0xeb8] sm:$0xff] }
 0xa65   : > { %v36480_v45 = vadd.f32 %v36479_v20, %v35457_v32  ;;  %v35489_v32 = vld [vmem:[#allocation2 + $0xec0] sm:$0xff] }
 0xa67   : > { %v36481_v43 = vadd.f32 %v36480_v45, %v35458_v23  ;;  %v35490_v23 = vld [vmem:[#allocation2 + $0xec8] sm:$0xff] }
 0xa69   : > { %v36482_v29 = vadd.f32 %v36481_v43, %v35459_v11  ;;  %v35491_v11 = vld [vmem:[#allocation2 + $0xed0] sm:$0xff] }
 0xa6b   : > { %v36483_v63 = vadd.f32 %v36482_v29, %v35460_v59  ;;  %v35492_v59 = vld [vmem:[#allocation2 + $0xed8] sm:$0xff] }
 0xa6d   : > { %v36484_v60 = vadd.f32 %v36483_v63, %v35461_v48  ;;  %v35493_v48 = vld [vmem:[#allocation2 + $0xee0] sm:$0xff] }
 0xa6f   : > { %v36485_v56 = vadd.f32 %v36484_v60, %v35462_v10  ;;  %v35494_v10 = vld [vmem:[#allocation2 + $0xee8] sm:$0xff] }
 0xa71   : > { %v36486_v4 = vadd.f32 %v36485_v56, %v35463_v19  ;;  %v35495_v19 = vld [vmem:[#allocation2 + $0xef0] sm:$0xff] }
 0xa73   : > { %v36487_v36 = vadd.f32 %v36486_v4, %v35464_v50  ;;  %v35496_v50 = vld [vmem:[#allocation2 + $0xef8] sm:$0xff] }
 0xa75   : > { %v36488_v30 = vadd.f32 %v36487_v36, %v35465_v33  ;;  %v35497_v33 = vld [vmem:[#allocation2 + $0xf00] sm:$0xff] }
 0xa77   : > { %v36489_v40 = vadd.f32 %v36488_v30, %v35466_v55  ;;  %v35498_v55 = vld [vmem:[#allocation2 + $0xf08] sm:$0xff] }
 0xa79   : > { %v36490_v41 = vadd.f32 %v36489_v40, %v35467_v51  ;;  %v35499_v51 = vld [vmem:[#allocation2 + $0xf10] sm:$0xff] }
 0xa7b   : > { %v36491_v12 = vadd.f32 %v36490_v41, %v35468_v37  ;;  %v35500_v37 = vld [vmem:[#allocation2 + $0xf18] sm:$0xff] }
 0xa7d   : > { %v36492_v25 = vadd.f32 %v36491_v12, %v35469_v16  ;;  %v35501_v16 = vld [vmem:[#allocation2 + $0xf20] sm:$0xff] }
 0xa7f   : > { %v36493_v57 = vadd.f32 %v36492_v25, %v35470_v7  ;;  %v35502_v7 = vld [vmem:[#allocation2 + $0xf28] sm:$0xff] }
 0xa81   : > { %v36494_v24 = vadd.f32 %v36493_v57, %v35471_v18  ;;  %v35503_v18 = vld [vmem:[#allocation2 + $0xf30] sm:$0xff] }
 0xa83   : > { %v36495_v34 = vadd.f32 %v36494_v24, %v35472_v17  ;;  %v35504_v17 = vld [vmem:[#allocation2 + $0xf38] sm:$0xff] }
 0xa85   : > { %v36496_v13 = vadd.f32 %v36495_v34, %v35473_v21  ;;  %v35505_v21 = vld [vmem:[#allocation2 + $0xf40] sm:$0xff] }
 0xa87   : > { %v36497_v54 = vadd.f32 %v36496_v13, %v35474_v39  ;;  %v35506_v39 = vld [vmem:[#allocation2 + $0xf48] sm:$0xff] }
 0xa89   : > { %v36498_v58 = vadd.f32 %v36497_v54, %v35475_v31  ;;  %v35507_v31 = vld [vmem:[#allocation2 + $0xf50] sm:$0xff] }
 0xa8b   : > { %v36499_v6 = vadd.f32 %v36498_v58, %v35476_v3  ;;  %v35508_v3 = vld [vmem:[#allocation2 + $0xf58] sm:$0xff] }
 0xa8d   : > { %v36500_v52 = vadd.f32 %v36499_v6, %v35477_v22  ;;  %v35509_v22 = vld [vmem:[#allocation2 + $0xf60] sm:$0xff] }
 0xa8f   : > { %v36501_v14 = vadd.f32 %v36500_v52, %v35478_v26  ;;  %v35510_v26 = vld [vmem:[#allocation2 + $0xf68] sm:$0xff] }
 0xa91   : > { %v36502_v49 = vadd.f32 %v36501_v14, %v35479_v15  ;;  %v35511_v15 = vld [vmem:[#allocation2 + $0xf70] sm:$0xff] }
 0xa93   : > { %v36503_v61 = vadd.f32 %v36502_v49, %v35480_v62  ;;  %v35512_v62 = vld [vmem:[#allocation2 + $0xf78] sm:$0xff] }
 0xa95   : > { %v36504_v35 = vadd.f32 %v36503_v61, %v35481_v5  ;;  %v35513_v5 = vld [vmem:[#allocation2 + $0xf80] sm:$0xff] }
 0xa97   : > { %v36505_v53 = vadd.f32 %v36504_v35, %v35482_v8  ;;  %v35514_v8 = vld [vmem:[#allocation2 + $0xf88] sm:$0xff] }
 0xa99   : > { %v36506_v0 = vadd.f32 %v36505_v53, %v35483_v9  ;;  %v35515_v9 = vld [vmem:[#allocation2 + $0xf90] sm:$0xff] }
 0xa9b   : > { %v36507_v28 = vadd.f32 %v36506_v0, %v35484_v44  ;;  %v35516_v44 = vld [vmem:[#allocation2 + $0xf98] sm:$0xff] }
 0xa9d   : > { %v36508_v42 = vadd.f32 %v36507_v28, %v35485_v27  ;;  %v35517_v27 = vld [vmem:[#allocation2 + $0xfa0] sm:$0xff] }
 0xa9f   : > { %v36509_v47 = vadd.f32 %v36508_v42, %v35486_v2  ;;  %v35518_v2 = vld [vmem:[#allocation2 + $0xfa8] sm:$0xff] }
 0xaa1   : > { %v36510_v46 = vadd.f32 %v36509_v47, %v35487_v38  ;;  %v35519_v38 = vld [vmem:[#allocation2 + $0xfb0] sm:$0xff] }
 0xaa3   : > { %v36511_v20 = vadd.f32 %v36510_v46, %v35488_v1  ;;  %v35520_v1 = vld [vmem:[#allocation2 + $0xfb8] sm:$0xff] }
 0xaa5   : > { %v36512_v45 = vadd.f32 %v36511_v20, %v35489_v32  ;;  %v35521_v32 = vld [vmem:[#allocation2 + $0xfc0] sm:$0xff] }
 0xaa7   : > { %v36513_v43 = vadd.f32 %v36512_v45, %v35490_v23  ;;  %v35522_v23 = vld [vmem:[#allocation2 + $0xfc8] sm:$0xff] }
 0xaa9   : > { %v36514_v29 = vadd.f32 %v36513_v43, %v35491_v11  ;;  %v35523_v11 = vld [vmem:[#allocation2 + $0xfd0] sm:$0xff] }
 0xaab   : > { %v36515_v63 = vadd.f32 %v36514_v29, %v35492_v59  ;;  %v35524_v59 = vld [vmem:[#allocation2 + $0xfd8] sm:$0xff] }
 0xaad   : > { %v36516_v60 = vadd.f32 %v36515_v63, %v35493_v48  ;;  %v35525_v48 = vld [vmem:[#allocation2 + $0xfe0] sm:$0xff] }
 0xaaf   : > { %v36517_v56 = vadd.f32 %v36516_v60, %v35494_v10  ;;  %v35526_v10 = vld [vmem:[#allocation2 + $0xfe8] sm:$0xff] }
 0xab1   : > { %v36518_v4 = vadd.f32 %v36517_v56, %v35495_v19  ;;  %v35527_v19 = vld [vmem:[#allocation2 + $0xff0] sm:$0xff] }
 0xab3   : > { %v36519_v36 = vadd.f32 %v36518_v4, %v35496_v50  ;;  %v35528_v50 = vld [vmem:[#allocation2 + $0xff8] sm:$0xff] }
 0xab5   : > { %v36520_v30 = vadd.f32 %v36519_v36, %v35497_v33  ;;  %v35529_v33 = vld [vmem:[#allocation2 + $0x1000] sm:$0xff] }
 0xab7   : > { %v36521_v40 = vadd.f32 %v36520_v30, %v35498_v55  ;;  %v35530_v55 = vld [vmem:[#allocation2 + $0x1008] sm:$0xff] }
 0xab9   : > { %v36522_v41 = vadd.f32 %v36521_v40, %v35499_v51  ;;  %v35531_v51 = vld [vmem:[#allocation2 + $0x1010] sm:$0xff] }
 0xabb   : > { %v36523_v12 = vadd.f32 %v36522_v41, %v35500_v37  ;;  %v35532_v37 = vld [vmem:[#allocation2 + $0x1018] sm:$0xff] }
 0xabd   : > { %v36524_v25 = vadd.f32 %v36523_v12, %v35501_v16  ;;  %v35533_v16 = vld [vmem:[#allocation2 + $0x1020] sm:$0xff] }
 0xabf   : > { %v36525_v57 = vadd.f32 %v36524_v25, %v35502_v7  ;;  %v35534_v7 = vld [vmem:[#allocation2 + $0x1028] sm:$0xff] }
 0xac1   : > { %v36526_v24 = vadd.f32 %v36525_v57, %v35503_v18  ;;  %v35535_v18 = vld [vmem:[#allocation2 + $0x1030] sm:$0xff] }
 0xac3   : > { %v36527_v34 = vadd.f32 %v36526_v24, %v35504_v17  ;;  %v35536_v17 = vld [vmem:[#allocation2 + $0x1038] sm:$0xff] }
 0xac5   : > { %v36528_v13 = vadd.f32 %v36527_v34, %v35505_v21  ;;  %v35537_v21 = vld [vmem:[#allocation2 + $0x1040] sm:$0xff] }
 0xac7   : > { %v36529_v54 = vadd.f32 %v36528_v13, %v35506_v39  ;;  %v35538_v39 = vld [vmem:[#allocation2 + $0x1048] sm:$0xff] }
 0xac9   : > { %v36530_v58 = vadd.f32 %v36529_v54, %v35507_v31  ;;  %v35539_v31 = vld [vmem:[#allocation2 + $0x1050] sm:$0xff] }
 0xacb   : > { %v36531_v6 = vadd.f32 %v36530_v58, %v35508_v3  ;;  %v35540_v3 = vld [vmem:[#allocation2 + $0x1058] sm:$0xff] }
 0xacd   : > { %v36532_v52 = vadd.f32 %v36531_v6, %v35509_v22  ;;  %v35541_v22 = vld [vmem:[#allocation2 + $0x1060] sm:$0xff] }
 0xacf   : > { %v36533_v14 = vadd.f32 %v36532_v52, %v35510_v26  ;;  %v35542_v26 = vld [vmem:[#allocation2 + $0x1068] sm:$0xff] }
 0xad1   : > { %v36534_v49 = vadd.f32 %v36533_v14, %v35511_v15  ;;  %v35543_v15 = vld [vmem:[#allocation2 + $0x1070] sm:$0xff] }
 0xad3   : > { %v36535_v61 = vadd.f32 %v36534_v49, %v35512_v62  ;;  %v35544_v62 = vld [vmem:[#allocation2 + $0x1078] sm:$0xff] }
 0xad5   : > { %v36536_v35 = vadd.f32 %v36535_v61, %v35513_v5  ;;  %v35545_v5 = vld [vmem:[#allocation2 + $0x1080] sm:$0xff] }
 0xad7   : > { %v36537_v53 = vadd.f32 %v36536_v35, %v35514_v8  ;;  %v35546_v8 = vld [vmem:[#allocation2 + $0x1088] sm:$0xff] }
 0xad9   : > { %v36538_v0 = vadd.f32 %v36537_v53, %v35515_v9  ;;  %v35547_v9 = vld [vmem:[#allocation2 + $0x1090] sm:$0xff] }
 0xadb   : > { %v36539_v28 = vadd.f32 %v36538_v0, %v35516_v44  ;;  %v35548_v44 = vld [vmem:[#allocation2 + $0x1098] sm:$0xff] }
 0xadd   : > { %v36540_v42 = vadd.f32 %v36539_v28, %v35517_v27  ;;  %v35549_v27 = vld [vmem:[#allocation2 + $0x10a0] sm:$0xff] }
 0xadf   : > { %v36541_v47 = vadd.f32 %v36540_v42, %v35518_v2  ;;  %v35550_v2 = vld [vmem:[#allocation2 + $0x10a8] sm:$0xff] }
 0xae1   : > { %v36542_v46 = vadd.f32 %v36541_v47, %v35519_v38  ;;  %v35551_v38 = vld [vmem:[#allocation2 + $0x10b0] sm:$0xff] }
 0xae3   : > { %v36543_v20 = vadd.f32 %v36542_v46, %v35520_v1  ;;  %v35552_v1 = vld [vmem:[#allocation2 + $0x10b8] sm:$0xff] }
 0xae5   : > { %v36544_v45 = vadd.f32 %v36543_v20, %v35521_v32  ;;  %v35553_v32 = vld [vmem:[#allocation2 + $0x10c0] sm:$0xff] }
 0xae7   : > { %v36545_v43 = vadd.f32 %v36544_v45, %v35522_v23  ;;  %v35554_v23 = vld [vmem:[#allocation2 + $0x10c8] sm:$0xff] }
 0xae9   : > { %v36546_v29 = vadd.f32 %v36545_v43, %v35523_v11  ;;  %v35555_v11 = vld [vmem:[#allocation2 + $0x10d0] sm:$0xff] }
 0xaeb   : > { %v36547_v63 = vadd.f32 %v36546_v29, %v35524_v59  ;;  %v35556_v59 = vld [vmem:[#allocation2 + $0x10d8] sm:$0xff] }
 0xaed   : > { %v36548_v60 = vadd.f32 %v36547_v63, %v35525_v48  ;;  %v35557_v48 = vld [vmem:[#allocation2 + $0x10e0] sm:$0xff] }
 0xaef   : > { %v36549_v56 = vadd.f32 %v36548_v60, %v35526_v10  ;;  %v35558_v10 = vld [vmem:[#allocation2 + $0x10e8] sm:$0xff] }
 0xaf1   : > { %v36550_v4 = vadd.f32 %v36549_v56, %v35527_v19  ;;  %v35559_v19 = vld [vmem:[#allocation2 + $0x10f0] sm:$0xff] }
 0xaf3   : > { %v36551_v36 = vadd.f32 %v36550_v4, %v35528_v50  ;;  %v35560_v50 = vld [vmem:[#allocation2 + $0x10f8] sm:$0xff] }
 0xaf5   : > { %v36552_v30 = vadd.f32 %v36551_v36, %v35529_v33  ;;  %v35561_v33 = vld [vmem:[#allocation2 + $0x1100] sm:$0xff] }
 0xaf7   : > { %v36553_v40 = vadd.f32 %v36552_v30, %v35530_v55  ;;  %v35562_v55 = vld [vmem:[#allocation2 + $0x1108] sm:$0xff] }
 0xaf9   : > { %v36554_v41 = vadd.f32 %v36553_v40, %v35531_v51  ;;  %v35563_v51 = vld [vmem:[#allocation2 + $0x1110] sm:$0xff] }
 0xafb   : > { %v36555_v12 = vadd.f32 %v36554_v41, %v35532_v37  ;;  %v35564_v37 = vld [vmem:[#allocation2 + $0x1118] sm:$0xff] }
 0xafd   : > { %v36556_v25 = vadd.f32 %v36555_v12, %v35533_v16  ;;  %v35565_v16 = vld [vmem:[#allocation2 + $0x1120] sm:$0xff] }
 0xaff   : > { %v36557_v57 = vadd.f32 %v36556_v25, %v35534_v7  ;;  %v35566_v7 = vld [vmem:[#allocation2 + $0x1128] sm:$0xff] }
 0xb01   : > { %v36558_v24 = vadd.f32 %v36557_v57, %v35535_v18  ;;  %v35567_v18 = vld [vmem:[#allocation2 + $0x1130] sm:$0xff] }
 0xb03   : > { %v36559_v34 = vadd.f32 %v36558_v24, %v35536_v17  ;;  %v35568_v17 = vld [vmem:[#allocation2 + $0x1138] sm:$0xff] }
 0xb05   : > { %v36560_v13 = vadd.f32 %v36559_v34, %v35537_v21  ;;  %v35569_v21 = vld [vmem:[#allocation2 + $0x1140] sm:$0xff] }
 0xb07   : > { %v36561_v54 = vadd.f32 %v36560_v13, %v35538_v39  ;;  %v35570_v39 = vld [vmem:[#allocation2 + $0x1148] sm:$0xff] }
 0xb09   : > { %v36562_v58 = vadd.f32 %v36561_v54, %v35539_v31  ;;  %v35571_v31 = vld [vmem:[#allocation2 + $0x1150] sm:$0xff] }
 0xb0b   : > { %v36563_v6 = vadd.f32 %v36562_v58, %v35540_v3  ;;  %v35572_v3 = vld [vmem:[#allocation2 + $0x1158] sm:$0xff] }
 0xb0d   : > { %v36564_v52 = vadd.f32 %v36563_v6, %v35541_v22  ;;  %v35573_v22 = vld [vmem:[#allocation2 + $0x1160] sm:$0xff] }
 0xb0f   : > { %v36565_v14 = vadd.f32 %v36564_v52, %v35542_v26  ;;  %v35574_v26 = vld [vmem:[#allocation2 + $0x1168] sm:$0xff] }
 0xb11   : > { %v36566_v49 = vadd.f32 %v36565_v14, %v35543_v15  ;;  %v35575_v15 = vld [vmem:[#allocation2 + $0x1170] sm:$0xff] }
 0xb13   : > { %v36567_v61 = vadd.f32 %v36566_v49, %v35544_v62  ;;  %v35576_v62 = vld [vmem:[#allocation2 + $0x1178] sm:$0xff] }
 0xb15   : > { %v36568_v35 = vadd.f32 %v36567_v61, %v35545_v5  ;;  %v35577_v5 = vld [vmem:[#allocation2 + $0x1180] sm:$0xff] }
 0xb17   : > { %v36569_v53 = vadd.f32 %v36568_v35, %v35546_v8  ;;  %v35578_v8 = vld [vmem:[#allocation2 + $0x1188] sm:$0xff] }
 0xb19   : > { %v36570_v0 = vadd.f32 %v36569_v53, %v35547_v9  ;;  %v35579_v9 = vld [vmem:[#allocation2 + $0x1190] sm:$0xff] }
 0xb1b   : > { %v36571_v28 = vadd.f32 %v36570_v0, %v35548_v44  ;;  %v35580_v44 = vld [vmem:[#allocation2 + $0x1198] sm:$0xff] }
 0xb1d   : > { %v36572_v42 = vadd.f32 %v36571_v28, %v35549_v27  ;;  %v35581_v27 = vld [vmem:[#allocation2 + $0x11a0] sm:$0xff] }
 0xb1f   : > { %v36573_v47 = vadd.f32 %v36572_v42, %v35550_v2  ;;  %v35582_v2 = vld [vmem:[#allocation2 + $0x11a8] sm:$0xff] }
 0xb21   : > { %v36574_v46 = vadd.f32 %v36573_v47, %v35551_v38  ;;  %v35583_v38 = vld [vmem:[#allocation2 + $0x11b0] sm:$0xff] }
 0xb23   : > { %v36575_v20 = vadd.f32 %v36574_v46, %v35552_v1  ;;  %v35584_v1 = vld [vmem:[#allocation2 + $0x11b8] sm:$0xff] }
 0xb25   : > { %v36576_v45 = vadd.f32 %v36575_v20, %v35553_v32  ;;  %v35585_v32 = vld [vmem:[#allocation2 + $0x11c0] sm:$0xff] }
 0xb27   : > { %v36577_v43 = vadd.f32 %v36576_v45, %v35554_v23  ;;  %v35586_v23 = vld [vmem:[#allocation2 + $0x11c8] sm:$0xff] }
 0xb29   : > { %v36578_v29 = vadd.f32 %v36577_v43, %v35555_v11  ;;  %v35587_v11 = vld [vmem:[#allocation2 + $0x11d0] sm:$0xff] }
 0xb2b   : > { %v36579_v63 = vadd.f32 %v36578_v29, %v35556_v59  ;;  %v35588_v59 = vld [vmem:[#allocation2 + $0x11d8] sm:$0xff] }
 0xb2d   : > { %v36580_v60 = vadd.f32 %v36579_v63, %v35557_v48  ;;  %v35589_v48 = vld [vmem:[#allocation2 + $0x11e0] sm:$0xff] }
 0xb2f   : > { %v36581_v56 = vadd.f32 %v36580_v60, %v35558_v10  ;;  %v35590_v10 = vld [vmem:[#allocation2 + $0x11e8] sm:$0xff] }
 0xb31   : > { %v36582_v4 = vadd.f32 %v36581_v56, %v35559_v19  ;;  %v35591_v19 = vld [vmem:[#allocation2 + $0x11f0] sm:$0xff] }
 0xb33   : > { %v36583_v36 = vadd.f32 %v36582_v4, %v35560_v50  ;;  %v35592_v50 = vld [vmem:[#allocation2 + $0x11f8] sm:$0xff] }
 0xb35   : > { %v36584_v30 = vadd.f32 %v36583_v36, %v35561_v33  ;;  %v35593_v33 = vld [vmem:[#allocation2 + $0x1200] sm:$0xff] }
 0xb37   : > { %v36585_v40 = vadd.f32 %v36584_v30, %v35562_v55  ;;  %v35594_v55 = vld [vmem:[#allocation2 + $0x1208] sm:$0xff] }
 0xb39   : > { %v36586_v41 = vadd.f32 %v36585_v40, %v35563_v51  ;;  %v35595_v51 = vld [vmem:[#allocation2 + $0x1210] sm:$0xff] }
 0xb3b   : > { %v36587_v12 = vadd.f32 %v36586_v41, %v35564_v37  ;;  %v35596_v37 = vld [vmem:[#allocation2 + $0x1218] sm:$0xff] }
 0xb3d   : > { %v36588_v25 = vadd.f32 %v36587_v12, %v35565_v16  ;;  %v35597_v16 = vld [vmem:[#allocation2 + $0x1220] sm:$0xff] }
 0xb3f   : > { %v36589_v57 = vadd.f32 %v36588_v25, %v35566_v7  ;;  %v35598_v7 = vld [vmem:[#allocation2 + $0x1228] sm:$0xff] }
 0xb41   : > { %v36590_v24 = vadd.f32 %v36589_v57, %v35567_v18  ;;  %v35599_v18 = vld [vmem:[#allocation2 + $0x1230] sm:$0xff] }
 0xb43   : > { %v36591_v34 = vadd.f32 %v36590_v24, %v35568_v17  ;;  %v35600_v17 = vld [vmem:[#allocation2 + $0x1238] sm:$0xff] }
 0xb45   : > { %v36592_v13 = vadd.f32 %v36591_v34, %v35569_v21  ;;  %v35601_v21 = vld [vmem:[#allocation2 + $0x1240] sm:$0xff] }
 0xb47   : > { %v36593_v54 = vadd.f32 %v36592_v13, %v35570_v39  ;;  %v35602_v39 = vld [vmem:[#allocation2 + $0x1248] sm:$0xff] }
 0xb49   : > { %v36594_v58 = vadd.f32 %v36593_v54, %v35571_v31  ;;  %v35603_v31 = vld [vmem:[#allocation2 + $0x1250] sm:$0xff] }
 0xb4b   : > { %v36595_v6 = vadd.f32 %v36594_v58, %v35572_v3  ;;  %v35604_v3 = vld [vmem:[#allocation2 + $0x1258] sm:$0xff] }
 0xb4d   : > { %v36596_v52 = vadd.f32 %v36595_v6, %v35573_v22  ;;  %v35605_v22 = vld [vmem:[#allocation2 + $0x1260] sm:$0xff] }
 0xb4f   : > { %v36597_v14 = vadd.f32 %v36596_v52, %v35574_v26  ;;  %v35606_v26 = vld [vmem:[#allocation2 + $0x1268] sm:$0xff] }
 0xb51   : > { %v36598_v49 = vadd.f32 %v36597_v14, %v35575_v15  ;;  %v35607_v15 = vld [vmem:[#allocation2 + $0x1270] sm:$0xff] }
 0xb53   : > { %v36599_v61 = vadd.f32 %v36598_v49, %v35576_v62  ;;  %v35608_v62 = vld [vmem:[#allocation2 + $0x1278] sm:$0xff] }
 0xb55   : > { %v36600_v35 = vadd.f32 %v36599_v61, %v35577_v5  ;;  %v35609_v5 = vld [vmem:[#allocation2 + $0x1280] sm:$0xff] }
 0xb57   : > { %v36601_v53 = vadd.f32 %v36600_v35, %v35578_v8  ;;  %v35610_v8 = vld [vmem:[#allocation2 + $0x1288] sm:$0xff] }
 0xb59   : > { %v36602_v0 = vadd.f32 %v36601_v53, %v35579_v9  ;;  %v35611_v9 = vld [vmem:[#allocation2 + $0x1290] sm:$0xff] }
 0xb5b   : > { %v36603_v28 = vadd.f32 %v36602_v0, %v35580_v44  ;;  %v35612_v44 = vld [vmem:[#allocation2 + $0x1298] sm:$0xff] }
 0xb5d   : > { %v36604_v42 = vadd.f32 %v36603_v28, %v35581_v27  ;;  %v35613_v27 = vld [vmem:[#allocation2 + $0x12a0] sm:$0xff] }
 0xb5f   : > { %v36605_v47 = vadd.f32 %v36604_v42, %v35582_v2  ;;  %v35614_v2 = vld [vmem:[#allocation2 + $0x12a8] sm:$0xff] }
 0xb61   : > { %v36606_v46 = vadd.f32 %v36605_v47, %v35583_v38  ;;  %v35615_v38 = vld [vmem:[#allocation2 + $0x12b0] sm:$0xff] }
 0xb63   : > { %v36607_v20 = vadd.f32 %v36606_v46, %v35584_v1  ;;  %v35616_v1 = vld [vmem:[#allocation2 + $0x12b8] sm:$0xff] }
 0xb65   : > { %v36608_v45 = vadd.f32 %v36607_v20, %v35585_v32  ;;  %v35617_v32 = vld [vmem:[#allocation2 + $0x12c0] sm:$0xff] }
 0xb67   : > { %v36609_v43 = vadd.f32 %v36608_v45, %v35586_v23  ;;  %v35618_v23 = vld [vmem:[#allocation2 + $0x12c8] sm:$0xff] }
 0xb69   : > { %v36610_v29 = vadd.f32 %v36609_v43, %v35587_v11  ;;  %v35619_v11 = vld [vmem:[#allocation2 + $0x12d0] sm:$0xff] }
 0xb6b   : > { %v36611_v63 = vadd.f32 %v36610_v29, %v35588_v59  ;;  %v35620_v59 = vld [vmem:[#allocation2 + $0x12d8] sm:$0xff] }
 0xb6d   : > { %v36612_v60 = vadd.f32 %v36611_v63, %v35589_v48  ;;  %v35621_v48 = vld [vmem:[#allocation2 + $0x12e0] sm:$0xff] }
 0xb6f   : > { %v36613_v56 = vadd.f32 %v36612_v60, %v35590_v10  ;;  %v35622_v10 = vld [vmem:[#allocation2 + $0x12e8] sm:$0xff] }
 0xb71   : > { %v36614_v4 = vadd.f32 %v36613_v56, %v35591_v19  ;;  %v35623_v19 = vld [vmem:[#allocation2 + $0x12f0] sm:$0xff] }
 0xb73   : > { %v36615_v36 = vadd.f32 %v36614_v4, %v35592_v50  ;;  %v35624_v50 = vld [vmem:[#allocation2 + $0x12f8] sm:$0xff] }
 0xb75   : > { %v36616_v30 = vadd.f32 %v36615_v36, %v35593_v33  ;;  %v35625_v33 = vld [vmem:[#allocation2 + $0x1300] sm:$0xff] }
 0xb77   : > { %v36617_v40 = vadd.f32 %v36616_v30, %v35594_v55  ;;  %v35626_v55 = vld [vmem:[#allocation2 + $0x1308] sm:$0xff] }
 0xb79   : > { %v36618_v41 = vadd.f32 %v36617_v40, %v35595_v51  ;;  %v35627_v51 = vld [vmem:[#allocation2 + $0x1310] sm:$0xff] }
 0xb7b   : > { %v36619_v12 = vadd.f32 %v36618_v41, %v35596_v37  ;;  %v35628_v37 = vld [vmem:[#allocation2 + $0x1318] sm:$0xff] }
 0xb7d   : > { %v36620_v25 = vadd.f32 %v36619_v12, %v35597_v16  ;;  %v35629_v16 = vld [vmem:[#allocation2 + $0x1320] sm:$0xff] }
 0xb7f   : > { %v36621_v57 = vadd.f32 %v36620_v25, %v35598_v7  ;;  %v35630_v7 = vld [vmem:[#allocation2 + $0x1328] sm:$0xff] }
 0xb81   : > { %v36622_v24 = vadd.f32 %v36621_v57, %v35599_v18  ;;  %v35631_v18 = vld [vmem:[#allocation2 + $0x1330] sm:$0xff] }
 0xb83   : > { %v36623_v34 = vadd.f32 %v36622_v24, %v35600_v17  ;;  %v35632_v17 = vld [vmem:[#allocation2 + $0x1338] sm:$0xff] }
 0xb85   : > { %v36624_v13 = vadd.f32 %v36623_v34, %v35601_v21  ;;  %v35633_v21 = vld [vmem:[#allocation2 + $0x1340] sm:$0xff] }
 0xb87   : > { %v36625_v54 = vadd.f32 %v36624_v13, %v35602_v39  ;;  %v35634_v39 = vld [vmem:[#allocation2 + $0x1348] sm:$0xff] }
 0xb89   : > { %v36626_v58 = vadd.f32 %v36625_v54, %v35603_v31  ;;  %v35635_v31 = vld [vmem:[#allocation2 + $0x1350] sm:$0xff] }
 0xb8b   : > { %v36627_v6 = vadd.f32 %v36626_v58, %v35604_v3  ;;  %v35636_v3 = vld [vmem:[#allocation2 + $0x1358] sm:$0xff] }
 0xb8d   : > { %v36628_v52 = vadd.f32 %v36627_v6, %v35605_v22  ;;  %v35637_v22 = vld [vmem:[#allocation2 + $0x1360] sm:$0xff] }
 0xb8f   : > { %v36629_v14 = vadd.f32 %v36628_v52, %v35606_v26  ;;  %v35638_v26 = vld [vmem:[#allocation2 + $0x1368] sm:$0xff] }
 0xb91   : > { %v36630_v49 = vadd.f32 %v36629_v14, %v35607_v15  ;;  %v35639_v15 = vld [vmem:[#allocation2 + $0x1370] sm:$0xff] }
 0xb93   : > { %v36631_v61 = vadd.f32 %v36630_v49, %v35608_v62  ;;  %v35640_v62 = vld [vmem:[#allocation2 + $0x1378] sm:$0xff] }
 0xb95   : > { %v36632_v35 = vadd.f32 %v36631_v61, %v35609_v5  ;;  %v35641_v5 = vld [vmem:[#allocation2 + $0x1380] sm:$0xff] }
 0xb97   : > { %v36633_v53 = vadd.f32 %v36632_v35, %v35610_v8  ;;  %v35642_v8 = vld [vmem:[#allocation2 + $0x1388] sm:$0xff] }
 0xb99   : > { %v36634_v0 = vadd.f32 %v36633_v53, %v35611_v9  ;;  %v35643_v9 = vld [vmem:[#allocation2 + $0x1390] sm:$0xff] }
 0xb9b   : > { %v36635_v28 = vadd.f32 %v36634_v0, %v35612_v44  ;;  %v35644_v44 = vld [vmem:[#allocation2 + $0x1398] sm:$0xff] }
 0xb9d   : > { %v36636_v42 = vadd.f32 %v36635_v28, %v35613_v27  ;;  %v35645_v27 = vld [vmem:[#allocation2 + $0x13a0] sm:$0xff] }
 0xb9f   : > { %v36637_v47 = vadd.f32 %v36636_v42, %v35614_v2  ;;  %v35646_v2 = vld [vmem:[#allocation2 + $0x13a8] sm:$0xff] }
 0xba1   : > { %v36638_v46 = vadd.f32 %v36637_v47, %v35615_v38  ;;  %v35647_v38 = vld [vmem:[#allocation2 + $0x13b0] sm:$0xff] }
 0xba3   : > { %v36639_v20 = vadd.f32 %v36638_v46, %v35616_v1  ;;  %v35648_v1 = vld [vmem:[#allocation2 + $0x13b8] sm:$0xff] }
 0xba5   : > { %v36640_v45 = vadd.f32 %v36639_v20, %v35617_v32  ;;  %v35649_v32 = vld [vmem:[#allocation2 + $0x13c0] sm:$0xff] }
 0xba7   : > { %v36641_v43 = vadd.f32 %v36640_v45, %v35618_v23  ;;  %v35650_v23 = vld [vmem:[#allocation2 + $0x13c8] sm:$0xff] }
 0xba9   : > { %v36642_v29 = vadd.f32 %v36641_v43, %v35619_v11  ;;  %v35651_v11 = vld [vmem:[#allocation2 + $0x13d0] sm:$0xff] }
 0xbab   : > { %v36643_v63 = vadd.f32 %v36642_v29, %v35620_v59  ;;  %v35652_v59 = vld [vmem:[#allocation2 + $0x13d8] sm:$0xff] }
 0xbad   : > { %v36644_v60 = vadd.f32 %v36643_v63, %v35621_v48  ;;  %v35653_v48 = vld [vmem:[#allocation2 + $0x13e0] sm:$0xff] }
 0xbaf   : > { %v36645_v56 = vadd.f32 %v36644_v60, %v35622_v10  ;;  %v35654_v10 = vld [vmem:[#allocation2 + $0x13e8] sm:$0xff] }
 0xbb1   : > { %v36646_v4 = vadd.f32 %v36645_v56, %v35623_v19  ;;  %v35655_v19 = vld [vmem:[#allocation2 + $0x13f0] sm:$0xff] }
 0xbb3   : > { %v36647_v36 = vadd.f32 %v36646_v4, %v35624_v50  ;;  %v35656_v50 = vld [vmem:[#allocation2 + $0x13f8] sm:$0xff] }
 0xbb5   : > { %v36648_v30 = vadd.f32 %v36647_v36, %v35625_v33  ;;  %v35657_v33 = vld [vmem:[#allocation2 + $0x1400] sm:$0xff] }
 0xbb7   : > { %v36649_v40 = vadd.f32 %v36648_v30, %v35626_v55  ;;  %v35658_v55 = vld [vmem:[#allocation2 + $0x1408] sm:$0xff] }
 0xbb9   : > { %v36650_v41 = vadd.f32 %v36649_v40, %v35627_v51  ;;  %v35659_v51 = vld [vmem:[#allocation2 + $0x1410] sm:$0xff] }
 0xbbb   : > { %v36651_v12 = vadd.f32 %v36650_v41, %v35628_v37  ;;  %v35660_v37 = vld [vmem:[#allocation2 + $0x1418] sm:$0xff] }
 0xbbd   : > { %v36652_v25 = vadd.f32 %v36651_v12, %v35629_v16  ;;  %v35661_v16 = vld [vmem:[#allocation2 + $0x1420] sm:$0xff] }
 0xbbf   : > { %v36653_v57 = vadd.f32 %v36652_v25, %v35630_v7  ;;  %v35662_v7 = vld [vmem:[#allocation2 + $0x1428] sm:$0xff] }
 0xbc1   : > { %v36654_v24 = vadd.f32 %v36653_v57, %v35631_v18  ;;  %v35663_v18 = vld [vmem:[#allocation2 + $0x1430] sm:$0xff] }
 0xbc3   : > { %v36655_v34 = vadd.f32 %v36654_v24, %v35632_v17  ;;  %v35664_v17 = vld [vmem:[#allocation2 + $0x1438] sm:$0xff] }
 0xbc5   : > { %v36656_v13 = vadd.f32 %v36655_v34, %v35633_v21  ;;  %v35665_v21 = vld [vmem:[#allocation2 + $0x1440] sm:$0xff] }
 0xbc7   : > { %v36657_v54 = vadd.f32 %v36656_v13, %v35634_v39  ;;  %v35666_v39 = vld [vmem:[#allocation2 + $0x1448] sm:$0xff] }
 0xbc9   : > { %v36658_v58 = vadd.f32 %v36657_v54, %v35635_v31  ;;  %v35667_v31 = vld [vmem:[#allocation2 + $0x1450] sm:$0xff] }
 0xbcb   : > { %v36659_v6 = vadd.f32 %v36658_v58, %v35636_v3  ;;  %v35668_v3 = vld [vmem:[#allocation2 + $0x1458] sm:$0xff] }
 0xbcd   : > { %v36660_v52 = vadd.f32 %v36659_v6, %v35637_v22  ;;  %v35669_v22 = vld [vmem:[#allocation2 + $0x1460] sm:$0xff] }
 0xbcf   : > { %v36661_v14 = vadd.f32 %v36660_v52, %v35638_v26  ;;  %v35670_v26 = vld [vmem:[#allocation2 + $0x1468] sm:$0xff] }
 0xbd1   : > { %v36662_v49 = vadd.f32 %v36661_v14, %v35639_v15  ;;  %v35671_v15 = vld [vmem:[#allocation2 + $0x1470] sm:$0xff] }
 0xbd3   : > { %v36663_v61 = vadd.f32 %v36662_v49, %v35640_v62  ;;  %v35672_v62 = vld [vmem:[#allocation2 + $0x1478] sm:$0xff] }
 0xbd5   : > { %v36664_v35 = vadd.f32 %v36663_v61, %v35641_v5  ;;  %v35673_v5 = vld [vmem:[#allocation2 + $0x1480] sm:$0xff] }
 0xbd7   : > { %v36665_v53 = vadd.f32 %v36664_v35, %v35642_v8  ;;  %v35674_v8 = vld [vmem:[#allocation2 + $0x1488] sm:$0xff] }
 0xbd9   : > { %v36666_v0 = vadd.f32 %v36665_v53, %v35643_v9  ;;  %v35675_v9 = vld [vmem:[#allocation2 + $0x1490] sm:$0xff] }
 0xbdb   : > { %v36667_v28 = vadd.f32 %v36666_v0, %v35644_v44  ;;  %v35676_v44 = vld [vmem:[#allocation2 + $0x1498] sm:$0xff] }
 0xbdd   : > { %v36668_v42 = vadd.f32 %v36667_v28, %v35645_v27  ;;  %v35677_v27 = vld [vmem:[#allocation2 + $0x14a0] sm:$0xff] }
 0xbdf   : > { %v36669_v47 = vadd.f32 %v36668_v42, %v35646_v2  ;;  %v35678_v2 = vld [vmem:[#allocation2 + $0x14a8] sm:$0xff] }
 0xbe1   : > { %v36670_v46 = vadd.f32 %v36669_v47, %v35647_v38  ;;  %v35679_v38 = vld [vmem:[#allocation2 + $0x14b0] sm:$0xff] }
 0xbe3   : > { %v36671_v20 = vadd.f32 %v36670_v46, %v35648_v1  ;;  %v35680_v1 = vld [vmem:[#allocation2 + $0x14b8] sm:$0xff] }
 0xbe5   : > { %v36672_v45 = vadd.f32 %v36671_v20, %v35649_v32  ;;  %v35681_v32 = vld [vmem:[#allocation2 + $0x14c0] sm:$0xff] }
 0xbe7   : > { %v36673_v43 = vadd.f32 %v36672_v45, %v35650_v23  ;;  %v35682_v23 = vld [vmem:[#allocation2 + $0x14c8] sm:$0xff] }
 0xbe9   : > { %v36674_v29 = vadd.f32 %v36673_v43, %v35651_v11  ;;  %v35683_v11 = vld [vmem:[#allocation2 + $0x14d0] sm:$0xff] }
 0xbeb   : > { %v36675_v63 = vadd.f32 %v36674_v29, %v35652_v59  ;;  %v35684_v59 = vld [vmem:[#allocation2 + $0x14d8] sm:$0xff] }
 0xbed   : > { %v36676_v60 = vadd.f32 %v36675_v63, %v35653_v48  ;;  %v35685_v48 = vld [vmem:[#allocation2 + $0x14e0] sm:$0xff] }
 0xbef   : > { %v36677_v56 = vadd.f32 %v36676_v60, %v35654_v10  ;;  %v35686_v10 = vld [vmem:[#allocation2 + $0x14e8] sm:$0xff] }
 0xbf1   : > { %v36678_v4 = vadd.f32 %v36677_v56, %v35655_v19  ;;  %v35687_v19 = vld [vmem:[#allocation2 + $0x14f0] sm:$0xff] }
 0xbf3   : > { %v36679_v36 = vadd.f32 %v36678_v4, %v35656_v50  ;;  %v35688_v50 = vld [vmem:[#allocation2 + $0x14f8] sm:$0xff] }
 0xbf5   : > { %v36680_v30 = vadd.f32 %v36679_v36, %v35657_v33  ;;  %v35689_v33 = vld [vmem:[#allocation2 + $0x1500] sm:$0xff] }
 0xbf7   : > { %v36681_v40 = vadd.f32 %v36680_v30, %v35658_v55  ;;  %v35690_v55 = vld [vmem:[#allocation2 + $0x1508] sm:$0xff] }
 0xbf9   : > { %v36682_v41 = vadd.f32 %v36681_v40, %v35659_v51  ;;  %v35691_v51 = vld [vmem:[#allocation2 + $0x1510] sm:$0xff] }
 0xbfb   : > { %v36683_v12 = vadd.f32 %v36682_v41, %v35660_v37  ;;  %v35692_v37 = vld [vmem:[#allocation2 + $0x1518] sm:$0xff] }
 0xbfd   : > { %v36684_v25 = vadd.f32 %v36683_v12, %v35661_v16  ;;  %v35693_v16 = vld [vmem:[#allocation2 + $0x1520] sm:$0xff] }
 0xbff   : > { %v36685_v57 = vadd.f32 %v36684_v25, %v35662_v7  ;;  %v35694_v7 = vld [vmem:[#allocation2 + $0x1528] sm:$0xff] }
 0xc01   : > { %v36686_v24 = vadd.f32 %v36685_v57, %v35663_v18  ;;  %v35695_v18 = vld [vmem:[#allocation2 + $0x1530] sm:$0xff] }
 0xc03   : > { %v36687_v34 = vadd.f32 %v36686_v24, %v35664_v17  ;;  %v35696_v17 = vld [vmem:[#allocation2 + $0x1538] sm:$0xff] }
 0xc05   : > { %v36688_v13 = vadd.f32 %v36687_v34, %v35665_v21  ;;  %v35697_v21 = vld [vmem:[#allocation2 + $0x1540] sm:$0xff] }
 0xc07   : > { %v36689_v54 = vadd.f32 %v36688_v13, %v35666_v39  ;;  %v35698_v39 = vld [vmem:[#allocation2 + $0x1548] sm:$0xff] }
 0xc09   : > { %v36690_v58 = vadd.f32 %v36689_v54, %v35667_v31  ;;  %v35699_v31 = vld [vmem:[#allocation2 + $0x1550] sm:$0xff] }
 0xc0b   : > { %v36691_v6 = vadd.f32 %v36690_v58, %v35668_v3  ;;  %v35700_v3 = vld [vmem:[#allocation2 + $0x1558] sm:$0xff] }
 0xc0d   : > { %v36692_v52 = vadd.f32 %v36691_v6, %v35669_v22  ;;  %v35701_v22 = vld [vmem:[#allocation2 + $0x1560] sm:$0xff] }
 0xc0f   : > { %v36693_v14 = vadd.f32 %v36692_v52, %v35670_v26  ;;  %v35702_v26 = vld [vmem:[#allocation2 + $0x1568] sm:$0xff] }
 0xc11   : > { %v36694_v49 = vadd.f32 %v36693_v14, %v35671_v15  ;;  %v35703_v15 = vld [vmem:[#allocation2 + $0x1570] sm:$0xff] }
 0xc13   : > { %v36695_v61 = vadd.f32 %v36694_v49, %v35672_v62  ;;  %v35704_v62 = vld [vmem:[#allocation2 + $0x1578] sm:$0xff] }
 0xc15   : > { %v36696_v35 = vadd.f32 %v36695_v61, %v35673_v5  ;;  %v35705_v5 = vld [vmem:[#allocation2 + $0x1580] sm:$0xff] }
 0xc17   : > { %v36697_v53 = vadd.f32 %v36696_v35, %v35674_v8  ;;  %v35706_v8 = vld [vmem:[#allocation2 + $0x1588] sm:$0xff] }
 0xc19   : > { %v36698_v0 = vadd.f32 %v36697_v53, %v35675_v9  ;;  %v35707_v9 = vld [vmem:[#allocation2 + $0x1590] sm:$0xff] }
 0xc1b   : > { %v36699_v28 = vadd.f32 %v36698_v0, %v35676_v44  ;;  %v35708_v44 = vld [vmem:[#allocation2 + $0x1598] sm:$0xff] }
 0xc1d   : > { %v36700_v42 = vadd.f32 %v36699_v28, %v35677_v27  ;;  %v35709_v27 = vld [vmem:[#allocation2 + $0x15a0] sm:$0xff] }
 0xc1f   : > { %v36701_v47 = vadd.f32 %v36700_v42, %v35678_v2  ;;  %v35710_v2 = vld [vmem:[#allocation2 + $0x15a8] sm:$0xff] }
 0xc21   : > { %v36702_v46 = vadd.f32 %v36701_v47, %v35679_v38  ;;  %v35711_v38 = vld [vmem:[#allocation2 + $0x15b0] sm:$0xff] }
 0xc23   : > { %v36703_v20 = vadd.f32 %v36702_v46, %v35680_v1  ;;  %v35712_v1 = vld [vmem:[#allocation2 + $0x15b8] sm:$0xff] }
 0xc25   : > { %v36704_v45 = vadd.f32 %v36703_v20, %v35681_v32  ;;  %v35713_v32 = vld [vmem:[#allocation2 + $0x15c0] sm:$0xff] }
 0xc27   : > { %v36705_v43 = vadd.f32 %v36704_v45, %v35682_v23  ;;  %v35714_v23 = vld [vmem:[#allocation2 + $0x15c8] sm:$0xff] }
 0xc29   : > { %v36706_v29 = vadd.f32 %v36705_v43, %v35683_v11  ;;  %v35715_v11 = vld [vmem:[#allocation2 + $0x15d0] sm:$0xff] }
 0xc2b   : > { %v36707_v63 = vadd.f32 %v36706_v29, %v35684_v59  ;;  %v35716_v59 = vld [vmem:[#allocation2 + $0x15d8] sm:$0xff] }
 0xc2d   : > { %v36708_v60 = vadd.f32 %v36707_v63, %v35685_v48  ;;  %v35717_v48 = vld [vmem:[#allocation2 + $0x15e0] sm:$0xff] }
 0xc2f   : > { %v36709_v56 = vadd.f32 %v36708_v60, %v35686_v10  ;;  %v35718_v10 = vld [vmem:[#allocation2 + $0x15e8] sm:$0xff] }
 0xc31   : > { %v36710_v4 = vadd.f32 %v36709_v56, %v35687_v19  ;;  %v35719_v19 = vld [vmem:[#allocation2 + $0x15f0] sm:$0xff] }
 0xc33   : > { %v36711_v36 = vadd.f32 %v36710_v4, %v35688_v50  ;;  %v35720_v50 = vld [vmem:[#allocation2 + $0x15f8] sm:$0xff] }
 0xc35   : > { %v36712_v30 = vadd.f32 %v36711_v36, %v35689_v33  ;;  %v35721_v33 = vld [vmem:[#allocation2 + $0x1600] sm:$0xff] }
 0xc37   : > { %v36713_v40 = vadd.f32 %v36712_v30, %v35690_v55  ;;  %v35722_v55 = vld [vmem:[#allocation2 + $0x1608] sm:$0xff] }
 0xc39   : > { %v36714_v41 = vadd.f32 %v36713_v40, %v35691_v51  ;;  %v35723_v51 = vld [vmem:[#allocation2 + $0x1610] sm:$0xff] }
 0xc3b   : > { %v36715_v12 = vadd.f32 %v36714_v41, %v35692_v37  ;;  %v35724_v37 = vld [vmem:[#allocation2 + $0x1618] sm:$0xff] }
 0xc3d   : > { %v36716_v25 = vadd.f32 %v36715_v12, %v35693_v16  ;;  %v35725_v16 = vld [vmem:[#allocation2 + $0x1620] sm:$0xff] }
 0xc3f   : > { %v36717_v57 = vadd.f32 %v36716_v25, %v35694_v7  ;;  %v35726_v7 = vld [vmem:[#allocation2 + $0x1628] sm:$0xff] }
 0xc41   : > { %v36718_v24 = vadd.f32 %v36717_v57, %v35695_v18  ;;  %v35727_v18 = vld [vmem:[#allocation2 + $0x1630] sm:$0xff] }
 0xc43   : > { %v36719_v34 = vadd.f32 %v36718_v24, %v35696_v17  ;;  %v35728_v17 = vld [vmem:[#allocation2 + $0x1638] sm:$0xff] }
 0xc45   : > { %v36720_v13 = vadd.f32 %v36719_v34, %v35697_v21  ;;  %v35729_v21 = vld [vmem:[#allocation2 + $0x1640] sm:$0xff] }
 0xc47   : > { %v36721_v54 = vadd.f32 %v36720_v13, %v35698_v39  ;;  %v35730_v39 = vld [vmem:[#allocation2 + $0x1648] sm:$0xff] }
 0xc49   : > { %v36722_v58 = vadd.f32 %v36721_v54, %v35699_v31  ;;  %v35731_v31 = vld [vmem:[#allocation2 + $0x1650] sm:$0xff] }
 0xc4b   : > { %v36723_v6 = vadd.f32 %v36722_v58, %v35700_v3  ;;  %v35732_v3 = vld [vmem:[#allocation2 + $0x1658] sm:$0xff] }
 0xc4d   : > { %v36724_v52 = vadd.f32 %v36723_v6, %v35701_v22  ;;  %v35733_v22 = vld [vmem:[#allocation2 + $0x1660] sm:$0xff] }
 0xc4f   : > { %v36725_v14 = vadd.f32 %v36724_v52, %v35702_v26  ;;  %v35734_v26 = vld [vmem:[#allocation2 + $0x1668] sm:$0xff] }
 0xc51   : > { %v36726_v49 = vadd.f32 %v36725_v14, %v35703_v15  ;;  %v35735_v15 = vld [vmem:[#allocation2 + $0x1670] sm:$0xff] }
 0xc53   : > { %v36727_v61 = vadd.f32 %v36726_v49, %v35704_v62  ;;  %v35736_v62 = vld [vmem:[#allocation2 + $0x1678] sm:$0xff] }
 0xc55   : > { %v36728_v35 = vadd.f32 %v36727_v61, %v35705_v5  ;;  %v35737_v5 = vld [vmem:[#allocation2 + $0x1680] sm:$0xff] }
 0xc57   : > { %v36729_v53 = vadd.f32 %v36728_v35, %v35706_v8  ;;  %v35738_v8 = vld [vmem:[#allocation2 + $0x1688] sm:$0xff] }
 0xc59   : > { %v36730_v0 = vadd.f32 %v36729_v53, %v35707_v9  ;;  %v35739_v9 = vld [vmem:[#allocation2 + $0x1690] sm:$0xff] }
 0xc5b   : > { %v36731_v28 = vadd.f32 %v36730_v0, %v35708_v44  ;;  %v35740_v44 = vld [vmem:[#allocation2 + $0x1698] sm:$0xff] }
 0xc5d   : > { %v36732_v42 = vadd.f32 %v36731_v28, %v35709_v27  ;;  %v35741_v27 = vld [vmem:[#allocation2 + $0x16a0] sm:$0xff] }
 0xc5f   : > { %v36733_v47 = vadd.f32 %v36732_v42, %v35710_v2  ;;  %v35742_v2 = vld [vmem:[#allocation2 + $0x16a8] sm:$0xff] }
 0xc61   : > { %v36734_v46 = vadd.f32 %v36733_v47, %v35711_v38  ;;  %v35743_v38 = vld [vmem:[#allocation2 + $0x16b0] sm:$0xff] }
 0xc63   : > { %v36735_v20 = vadd.f32 %v36734_v46, %v35712_v1  ;;  %v35744_v1 = vld [vmem:[#allocation2 + $0x16b8] sm:$0xff] }
 0xc65   : > { %v36736_v45 = vadd.f32 %v36735_v20, %v35713_v32  ;;  %v35745_v32 = vld [vmem:[#allocation2 + $0x16c0] sm:$0xff] }
 0xc67   : > { %v36737_v43 = vadd.f32 %v36736_v45, %v35714_v23  ;;  %v35746_v23 = vld [vmem:[#allocation2 + $0x16c8] sm:$0xff] }
 0xc69   : > { %v36738_v29 = vadd.f32 %v36737_v43, %v35715_v11  ;;  %v35747_v11 = vld [vmem:[#allocation2 + $0x16d0] sm:$0xff] }
 0xc6b   : > { %v36739_v63 = vadd.f32 %v36738_v29, %v35716_v59  ;;  %v35748_v59 = vld [vmem:[#allocation2 + $0x16d8] sm:$0xff] }
 0xc6d   : > { %v36740_v60 = vadd.f32 %v36739_v63, %v35717_v48  ;;  %v35749_v48 = vld [vmem:[#allocation2 + $0x16e0] sm:$0xff] }
 0xc6f   : > { %v36741_v56 = vadd.f32 %v36740_v60, %v35718_v10  ;;  %v35750_v10 = vld [vmem:[#allocation2 + $0x16e8] sm:$0xff] }
 0xc71   : > { %v36742_v4 = vadd.f32 %v36741_v56, %v35719_v19  ;;  %v35751_v19 = vld [vmem:[#allocation2 + $0x16f0] sm:$0xff] }
 0xc73   : > { %v36743_v36 = vadd.f32 %v36742_v4, %v35720_v50  ;;  %v35752_v50 = vld [vmem:[#allocation2 + $0x16f8] sm:$0xff] }
 0xc75   : > { %v36744_v30 = vadd.f32 %v36743_v36, %v35721_v33  ;;  %v35753_v33 = vld [vmem:[#allocation2 + $0x1700] sm:$0xff] }
 0xc77   : > { %v36745_v40 = vadd.f32 %v36744_v30, %v35722_v55  ;;  %v35754_v55 = vld [vmem:[#allocation2 + $0x1708] sm:$0xff] }
 0xc79   : > { %v36746_v41 = vadd.f32 %v36745_v40, %v35723_v51  ;;  %v35755_v51 = vld [vmem:[#allocation2 + $0x1710] sm:$0xff] }
 0xc7b   : > { %v36747_v12 = vadd.f32 %v36746_v41, %v35724_v37  ;;  %v35756_v37 = vld [vmem:[#allocation2 + $0x1718] sm:$0xff] }
 0xc7d   : > { %v36748_v25 = vadd.f32 %v36747_v12, %v35725_v16  ;;  %v35757_v16 = vld [vmem:[#allocation2 + $0x1720] sm:$0xff] }
 0xc7f   : > { %v36749_v57 = vadd.f32 %v36748_v25, %v35726_v7  ;;  %v35758_v7 = vld [vmem:[#allocation2 + $0x1728] sm:$0xff] }
 0xc81   : > { %v36750_v24 = vadd.f32 %v36749_v57, %v35727_v18  ;;  %v35759_v18 = vld [vmem:[#allocation2 + $0x1730] sm:$0xff] }
 0xc83   : > { %v36751_v34 = vadd.f32 %v36750_v24, %v35728_v17  ;;  %v35760_v17 = vld [vmem:[#allocation2 + $0x1738] sm:$0xff] }
 0xc85   : > { %v36752_v13 = vadd.f32 %v36751_v34, %v35729_v21  ;;  %v35761_v21 = vld [vmem:[#allocation2 + $0x1740] sm:$0xff] }
 0xc87   : > { %v36753_v54 = vadd.f32 %v36752_v13, %v35730_v39  ;;  %v35762_v39 = vld [vmem:[#allocation2 + $0x1748] sm:$0xff] }
 0xc89   : > { %v36754_v58 = vadd.f32 %v36753_v54, %v35731_v31  ;;  %v35763_v31 = vld [vmem:[#allocation2 + $0x1750] sm:$0xff] }
 0xc8b   : > { %v36755_v6 = vadd.f32 %v36754_v58, %v35732_v3  ;;  %v35764_v3 = vld [vmem:[#allocation2 + $0x1758] sm:$0xff] }
 0xc8d   : > { %v36756_v52 = vadd.f32 %v36755_v6, %v35733_v22  ;;  %v35765_v22 = vld [vmem:[#allocation2 + $0x1760] sm:$0xff] }
 0xc8f   : > { %v36757_v14 = vadd.f32 %v36756_v52, %v35734_v26  ;;  %v35766_v26 = vld [vmem:[#allocation2 + $0x1768] sm:$0xff] }
 0xc91   : > { %v36758_v49 = vadd.f32 %v36757_v14, %v35735_v15  ;;  %v35767_v15 = vld [vmem:[#allocation2 + $0x1770] sm:$0xff] }
 0xc93   : > { %v36759_v61 = vadd.f32 %v36758_v49, %v35736_v62  ;;  %v35768_v62 = vld [vmem:[#allocation2 + $0x1778] sm:$0xff] }
 0xc95   : > { %v36760_v35 = vadd.f32 %v36759_v61, %v35737_v5  ;;  %v35769_v5 = vld [vmem:[#allocation2 + $0x1780] sm:$0xff] }
 0xc97   : > { %v36761_v53 = vadd.f32 %v36760_v35, %v35738_v8  ;;  %v35770_v8 = vld [vmem:[#allocation2 + $0x1788] sm:$0xff] }
 0xc99   : > { %v36762_v0 = vadd.f32 %v36761_v53, %v35739_v9  ;;  %v35771_v9 = vld [vmem:[#allocation2 + $0x1790] sm:$0xff] }
 0xc9b   : > { %v36763_v28 = vadd.f32 %v36762_v0, %v35740_v44  ;;  %v35772_v44 = vld [vmem:[#allocation2 + $0x1798] sm:$0xff] }
 0xc9d   : > { %v36764_v42 = vadd.f32 %v36763_v28, %v35741_v27  ;;  %v35773_v27 = vld [vmem:[#allocation2 + $0x17a0] sm:$0xff] }
 0xc9f   : > { %v36765_v47 = vadd.f32 %v36764_v42, %v35742_v2  ;;  %v35774_v2 = vld [vmem:[#allocation2 + $0x17a8] sm:$0xff] }
 0xca1   : > { %v36766_v46 = vadd.f32 %v36765_v47, %v35743_v38  ;;  %v35775_v38 = vld [vmem:[#allocation2 + $0x17b0] sm:$0xff] }
 0xca3   : > { %v36767_v20 = vadd.f32 %v36766_v46, %v35744_v1  ;;  %v35776_v1 = vld [vmem:[#allocation2 + $0x17b8] sm:$0xff] }
 0xca5   : > { %v36768_v45 = vadd.f32 %v36767_v20, %v35745_v32  ;;  %v35777_v32 = vld [vmem:[#allocation2 + $0x17c0] sm:$0xff] }
 0xca7   : > { %v36769_v43 = vadd.f32 %v36768_v45, %v35746_v23  ;;  %v35778_v23 = vld [vmem:[#allocation2 + $0x17c8] sm:$0xff] }
 0xca9   : > { %v36770_v29 = vadd.f32 %v36769_v43, %v35747_v11  ;;  %v35779_v11 = vld [vmem:[#allocation2 + $0x17d0] sm:$0xff] }
 0xcab   : > { %v36771_v63 = vadd.f32 %v36770_v29, %v35748_v59  ;;  %v35780_v59 = vld [vmem:[#allocation2 + $0x17d8] sm:$0xff] }
 0xcad   : > { %v36772_v60 = vadd.f32 %v36771_v63, %v35749_v48  ;;  %v35781_v48 = vld [vmem:[#allocation2 + $0x17e0] sm:$0xff] }
 0xcaf   : > { %v36773_v56 = vadd.f32 %v36772_v60, %v35750_v10  ;;  %v35782_v10 = vld [vmem:[#allocation2 + $0x17e8] sm:$0xff] }
 0xcb1   : > { %v36774_v4 = vadd.f32 %v36773_v56, %v35751_v19  ;;  %v35783_v19 = vld [vmem:[#allocation2 + $0x17f0] sm:$0xff] }
 0xcb3   : > { %v36775_v36 = vadd.f32 %v36774_v4, %v35752_v50  ;;  %v35784_v50 = vld [vmem:[#allocation2 + $0x17f8] sm:$0xff] }
 0xcb5   : > { %v36776_v30 = vadd.f32 %v36775_v36, %v35753_v33  ;;  %v35785_v33 = vld [vmem:[#allocation2 + $0x1800] sm:$0xff] }
 0xcb7   : > { %v36777_v40 = vadd.f32 %v36776_v30, %v35754_v55  ;;  %v35786_v55 = vld [vmem:[#allocation2 + $0x1808] sm:$0xff] }
 0xcb9   : > { %v36778_v41 = vadd.f32 %v36777_v40, %v35755_v51  ;;  %v35787_v51 = vld [vmem:[#allocation2 + $0x1810] sm:$0xff] }
 0xcbb   : > { %v36779_v12 = vadd.f32 %v36778_v41, %v35756_v37  ;;  %v35788_v37 = vld [vmem:[#allocation2 + $0x1818] sm:$0xff] }
 0xcbd   : > { %v36780_v25 = vadd.f32 %v36779_v12, %v35757_v16  ;;  %v35789_v16 = vld [vmem:[#allocation2 + $0x1820] sm:$0xff] }
 0xcbf   : > { %v36781_v57 = vadd.f32 %v36780_v25, %v35758_v7  ;;  %v35790_v7 = vld [vmem:[#allocation2 + $0x1828] sm:$0xff] }
 0xcc1   : > { %v36782_v24 = vadd.f32 %v36781_v57, %v35759_v18  ;;  %v35791_v18 = vld [vmem:[#allocation2 + $0x1830] sm:$0xff] }
 0xcc3   : > { %v36783_v34 = vadd.f32 %v36782_v24, %v35760_v17  ;;  %v35792_v17 = vld [vmem:[#allocation2 + $0x1838] sm:$0xff] }
 0xcc5   : > { %v36784_v13 = vadd.f32 %v36783_v34, %v35761_v21  ;;  %v35793_v21 = vld [vmem:[#allocation2 + $0x1840] sm:$0xff] }
 0xcc7   : > { %v36785_v54 = vadd.f32 %v36784_v13, %v35762_v39  ;;  %v35794_v39 = vld [vmem:[#allocation2 + $0x1848] sm:$0xff] }
 0xcc9   : > { %v36786_v58 = vadd.f32 %v36785_v54, %v35763_v31  ;;  %v35795_v31 = vld [vmem:[#allocation2 + $0x1850] sm:$0xff] }
 0xccb   : > { %v36787_v6 = vadd.f32 %v36786_v58, %v35764_v3  ;;  %v35796_v3 = vld [vmem:[#allocation2 + $0x1858] sm:$0xff] }
 0xccd   : > { %v36788_v52 = vadd.f32 %v36787_v6, %v35765_v22  ;;  %v35797_v22 = vld [vmem:[#allocation2 + $0x1860] sm:$0xff] }
 0xccf   : > { %v36789_v14 = vadd.f32 %v36788_v52, %v35766_v26  ;;  %v35798_v26 = vld [vmem:[#allocation2 + $0x1868] sm:$0xff] }
 0xcd1   : > { %v36790_v49 = vadd.f32 %v36789_v14, %v35767_v15  ;;  %v35799_v15 = vld [vmem:[#allocation2 + $0x1870] sm:$0xff] }
 0xcd3   : > { %v36791_v61 = vadd.f32 %v36790_v49, %v35768_v62  ;;  %v35800_v62 = vld [vmem:[#allocation2 + $0x1878] sm:$0xff] }
 0xcd5   : > { %v36792_v35 = vadd.f32 %v36791_v61, %v35769_v5  ;;  %v35801_v5 = vld [vmem:[#allocation2 + $0x1880] sm:$0xff] }
 0xcd7   : > { %v36793_v53 = vadd.f32 %v36792_v35, %v35770_v8  ;;  %v35802_v8 = vld [vmem:[#allocation2 + $0x1888] sm:$0xff] }
 0xcd9   : > { %v36794_v0 = vadd.f32 %v36793_v53, %v35771_v9  ;;  %v35803_v9 = vld [vmem:[#allocation2 + $0x1890] sm:$0xff] }
 0xcdb   : > { %v36795_v28 = vadd.f32 %v36794_v0, %v35772_v44  ;;  %v35804_v44 = vld [vmem:[#allocation2 + $0x1898] sm:$0xff] }
 0xcdd   : > { %v36796_v42 = vadd.f32 %v36795_v28, %v35773_v27  ;;  %v35805_v27 = vld [vmem:[#allocation2 + $0x18a0] sm:$0xff] }
 0xcdf   : > { %v36797_v47 = vadd.f32 %v36796_v42, %v35774_v2  ;;  %v35806_v2 = vld [vmem:[#allocation2 + $0x18a8] sm:$0xff] }
 0xce1   : > { %v36798_v46 = vadd.f32 %v36797_v47, %v35775_v38  ;;  %v35807_v38 = vld [vmem:[#allocation2 + $0x18b0] sm:$0xff] }
 0xce3   : > { %v36799_v20 = vadd.f32 %v36798_v46, %v35776_v1  ;;  %v35808_v1 = vld [vmem:[#allocation2 + $0x18b8] sm:$0xff] }
 0xce5   : > { %v36800_v45 = vadd.f32 %v36799_v20, %v35777_v32  ;;  %v35809_v32 = vld [vmem:[#allocation2 + $0x18c0] sm:$0xff] }
 0xce7   : > { %v36801_v43 = vadd.f32 %v36800_v45, %v35778_v23  ;;  %v35810_v23 = vld [vmem:[#allocation2 + $0x18c8] sm:$0xff] }
 0xce9   : > { %v36802_v29 = vadd.f32 %v36801_v43, %v35779_v11  ;;  %v35811_v11 = vld [vmem:[#allocation2 + $0x18d0] sm:$0xff] }
 0xceb   : > { %v36803_v63 = vadd.f32 %v36802_v29, %v35780_v59  ;;  %v35812_v59 = vld [vmem:[#allocation2 + $0x18d8] sm:$0xff] }
 0xced   : > { %v36804_v60 = vadd.f32 %v36803_v63, %v35781_v48  ;;  %v35813_v48 = vld [vmem:[#allocation2 + $0x18e0] sm:$0xff] }
 0xcef   : > { %v36805_v56 = vadd.f32 %v36804_v60, %v35782_v10  ;;  %v35814_v10 = vld [vmem:[#allocation2 + $0x18e8] sm:$0xff] }
 0xcf1   : > { %v36806_v4 = vadd.f32 %v36805_v56, %v35783_v19  ;;  %v35815_v19 = vld [vmem:[#allocation2 + $0x18f0] sm:$0xff] }
 0xcf3   : > { %v36807_v36 = vadd.f32 %v36806_v4, %v35784_v50  ;;  %v35816_v50 = vld [vmem:[#allocation2 + $0x18f8] sm:$0xff] }
 0xcf5   : > { %v36808_v30 = vadd.f32 %v36807_v36, %v35785_v33  ;;  %v35817_v33 = vld [vmem:[#allocation2 + $0x1900] sm:$0xff] }
 0xcf7   : > { %v36809_v40 = vadd.f32 %v36808_v30, %v35786_v55  ;;  %v35818_v55 = vld [vmem:[#allocation2 + $0x1908] sm:$0xff] }
 0xcf9   : > { %v36810_v41 = vadd.f32 %v36809_v40, %v35787_v51  ;;  %v35819_v51 = vld [vmem:[#allocation2 + $0x1910] sm:$0xff] }
 0xcfb   : > { %v36811_v12 = vadd.f32 %v36810_v41, %v35788_v37  ;;  %v35820_v37 = vld [vmem:[#allocation2 + $0x1918] sm:$0xff] }
 0xcfd   : > { %v36812_v25 = vadd.f32 %v36811_v12, %v35789_v16  ;;  %v35821_v16 = vld [vmem:[#allocation2 + $0x1920] sm:$0xff] }
 0xcff   : > { %v36813_v57 = vadd.f32 %v36812_v25, %v35790_v7  ;;  %v35822_v7 = vld [vmem:[#allocation2 + $0x1928] sm:$0xff] }
 0xd01   : > { %v36814_v24 = vadd.f32 %v36813_v57, %v35791_v18  ;;  %v35823_v18 = vld [vmem:[#allocation2 + $0x1930] sm:$0xff] }
 0xd03   : > { %v36815_v34 = vadd.f32 %v36814_v24, %v35792_v17  ;;  %v35824_v17 = vld [vmem:[#allocation2 + $0x1938] sm:$0xff] }
 0xd05   : > { %v36816_v13 = vadd.f32 %v36815_v34, %v35793_v21  ;;  %v35825_v21 = vld [vmem:[#allocation2 + $0x1940] sm:$0xff] }
 0xd07   : > { %v36817_v54 = vadd.f32 %v36816_v13, %v35794_v39  ;;  %v35826_v39 = vld [vmem:[#allocation2 + $0x1948] sm:$0xff] }
 0xd09   : > { %v36818_v58 = vadd.f32 %v36817_v54, %v35795_v31  ;;  %v35827_v31 = vld [vmem:[#allocation2 + $0x1950] sm:$0xff] }
 0xd0b   : > { %v36819_v6 = vadd.f32 %v36818_v58, %v35796_v3  ;;  %v35828_v3 = vld [vmem:[#allocation2 + $0x1958] sm:$0xff] }
 0xd0d   : > { %v36820_v52 = vadd.f32 %v36819_v6, %v35797_v22  ;;  %v35829_v22 = vld [vmem:[#allocation2 + $0x1960] sm:$0xff] }
 0xd0f   : > { %v36821_v14 = vadd.f32 %v36820_v52, %v35798_v26  ;;  %v35830_v26 = vld [vmem:[#allocation2 + $0x1968] sm:$0xff] }
 0xd11   : > { %v36822_v49 = vadd.f32 %v36821_v14, %v35799_v15  ;;  %v35831_v15 = vld [vmem:[#allocation2 + $0x1970] sm:$0xff] }
 0xd13   : > { %v36823_v61 = vadd.f32 %v36822_v49, %v35800_v62  ;;  %v35832_v62 = vld [vmem:[#allocation2 + $0x1978] sm:$0xff] }
 0xd15   : > { %v36824_v35 = vadd.f32 %v36823_v61, %v35801_v5  ;;  %v35833_v5 = vld [vmem:[#allocation2 + $0x1980] sm:$0xff] }
 0xd17   : > { %v36825_v53 = vadd.f32 %v36824_v35, %v35802_v8  ;;  %v35834_v8 = vld [vmem:[#allocation2 + $0x1988] sm:$0xff] }
 0xd19   : > { %v36826_v0 = vadd.f32 %v36825_v53, %v35803_v9  ;;  %v35835_v9 = vld [vmem:[#allocation2 + $0x1990] sm:$0xff] }
 0xd1b   : > { %v36827_v28 = vadd.f32 %v36826_v0, %v35804_v44  ;;  %v35836_v44 = vld [vmem:[#allocation2 + $0x1998] sm:$0xff] }
 0xd1d   : > { %v36828_v42 = vadd.f32 %v36827_v28, %v35805_v27  ;;  %v35837_v27 = vld [vmem:[#allocation2 + $0x19a0] sm:$0xff] }
 0xd1f   : > { %v36829_v47 = vadd.f32 %v36828_v42, %v35806_v2  ;;  %v35838_v2 = vld [vmem:[#allocation2 + $0x19a8] sm:$0xff] }
 0xd21   : > { %v36830_v46 = vadd.f32 %v36829_v47, %v35807_v38  ;;  %v35839_v38 = vld [vmem:[#allocation2 + $0x19b0] sm:$0xff] }
 0xd23   : > { %v36831_v20 = vadd.f32 %v36830_v46, %v35808_v1  ;;  %v35840_v1 = vld [vmem:[#allocation2 + $0x19b8] sm:$0xff] }
 0xd25   : > { %v36832_v45 = vadd.f32 %v36831_v20, %v35809_v32  ;;  %v35841_v32 = vld [vmem:[#allocation2 + $0x19c0] sm:$0xff] }
 0xd27   : > { %v36833_v43 = vadd.f32 %v36832_v45, %v35810_v23  ;;  %v35842_v23 = vld [vmem:[#allocation2 + $0x19c8] sm:$0xff] }
 0xd29   : > { %v36834_v29 = vadd.f32 %v36833_v43, %v35811_v11  ;;  %v35843_v11 = vld [vmem:[#allocation2 + $0x19d0] sm:$0xff] }
 0xd2b   : > { %v36835_v63 = vadd.f32 %v36834_v29, %v35812_v59  ;;  %v35844_v59 = vld [vmem:[#allocation2 + $0x19d8] sm:$0xff] }
 0xd2d   : > { %v36836_v60 = vadd.f32 %v36835_v63, %v35813_v48  ;;  %v35845_v48 = vld [vmem:[#allocation2 + $0x19e0] sm:$0xff] }
 0xd2f   : > { %v36837_v56 = vadd.f32 %v36836_v60, %v35814_v10  ;;  %v35846_v10 = vld [vmem:[#allocation2 + $0x19e8] sm:$0xff] }
 0xd31   : > { %v36838_v4 = vadd.f32 %v36837_v56, %v35815_v19  ;;  %v35847_v19 = vld [vmem:[#allocation2 + $0x19f0] sm:$0xff] }
 0xd33   : > { %v36839_v36 = vadd.f32 %v36838_v4, %v35816_v50  ;;  %v35848_v50 = vld [vmem:[#allocation2 + $0x19f8] sm:$0xff] }
 0xd35   : > { %v36840_v30 = vadd.f32 %v36839_v36, %v35817_v33  ;;  %v35849_v33 = vld [vmem:[#allocation2 + $0x1a00] sm:$0xff] }
 0xd37   : > { %v36841_v40 = vadd.f32 %v36840_v30, %v35818_v55  ;;  %v35850_v55 = vld [vmem:[#allocation2 + $0x1a08] sm:$0xff] }
 0xd39   : > { %v36842_v41 = vadd.f32 %v36841_v40, %v35819_v51  ;;  %v35851_v51 = vld [vmem:[#allocation2 + $0x1a10] sm:$0xff] }
 0xd3b   : > { %v36843_v12 = vadd.f32 %v36842_v41, %v35820_v37  ;;  %v35852_v37 = vld [vmem:[#allocation2 + $0x1a18] sm:$0xff] }
 0xd3d   : > { %v36844_v25 = vadd.f32 %v36843_v12, %v35821_v16  ;;  %v35853_v16 = vld [vmem:[#allocation2 + $0x1a20] sm:$0xff] }
 0xd3f   : > { %v36845_v57 = vadd.f32 %v36844_v25, %v35822_v7  ;;  %v35854_v7 = vld [vmem:[#allocation2 + $0x1a28] sm:$0xff] }
 0xd41   : > { %v36846_v24 = vadd.f32 %v36845_v57, %v35823_v18  ;;  %v35855_v18 = vld [vmem:[#allocation2 + $0x1a30] sm:$0xff] }
 0xd43   : > { %v36847_v34 = vadd.f32 %v36846_v24, %v35824_v17  ;;  %v35856_v17 = vld [vmem:[#allocation2 + $0x1a38] sm:$0xff] }
 0xd45   : > { %v36848_v13 = vadd.f32 %v36847_v34, %v35825_v21  ;;  %v35857_v21 = vld [vmem:[#allocation2 + $0x1a40] sm:$0xff] }
 0xd47   : > { %v36849_v54 = vadd.f32 %v36848_v13, %v35826_v39  ;;  %v35858_v39 = vld [vmem:[#allocation2 + $0x1a48] sm:$0xff] }
 0xd49   : > { %v36850_v58 = vadd.f32 %v36849_v54, %v35827_v31  ;;  %v35859_v31 = vld [vmem:[#allocation2 + $0x1a50] sm:$0xff] }
 0xd4b   : > { %v36851_v6 = vadd.f32 %v36850_v58, %v35828_v3  ;;  %v35860_v3 = vld [vmem:[#allocation2 + $0x1a58] sm:$0xff] }
 0xd4d   : > { %v36852_v52 = vadd.f32 %v36851_v6, %v35829_v22  ;;  %v35861_v22 = vld [vmem:[#allocation2 + $0x1a60] sm:$0xff] }
 0xd4f   : > { %v36853_v14 = vadd.f32 %v36852_v52, %v35830_v26  ;;  %v35862_v26 = vld [vmem:[#allocation2 + $0x1a68] sm:$0xff] }
 0xd51   : > { %v36854_v49 = vadd.f32 %v36853_v14, %v35831_v15  ;;  %v35863_v15 = vld [vmem:[#allocation2 + $0x1a70] sm:$0xff] }
 0xd53   : > { %v36855_v61 = vadd.f32 %v36854_v49, %v35832_v62  ;;  %v35864_v62 = vld [vmem:[#allocation2 + $0x1a78] sm:$0xff] }
 0xd55   : > { %v36856_v35 = vadd.f32 %v36855_v61, %v35833_v5  ;;  %v35865_v5 = vld [vmem:[#allocation2 + $0x1a80] sm:$0xff] }
 0xd57   : > { %v36857_v53 = vadd.f32 %v36856_v35, %v35834_v8  ;;  %v35866_v8 = vld [vmem:[#allocation2 + $0x1a88] sm:$0xff] }
 0xd59   : > { %v36858_v0 = vadd.f32 %v36857_v53, %v35835_v9  ;;  %v35867_v9 = vld [vmem:[#allocation2 + $0x1a90] sm:$0xff] }
 0xd5b   : > { %v36859_v28 = vadd.f32 %v36858_v0, %v35836_v44  ;;  %v35868_v44 = vld [vmem:[#allocation2 + $0x1a98] sm:$0xff] }
 0xd5d   : > { %v36860_v42 = vadd.f32 %v36859_v28, %v35837_v27  ;;  %v35869_v27 = vld [vmem:[#allocation2 + $0x1aa0] sm:$0xff] }
 0xd5f   : > { %v36861_v47 = vadd.f32 %v36860_v42, %v35838_v2  ;;  %v35870_v2 = vld [vmem:[#allocation2 + $0x1aa8] sm:$0xff] }
 0xd61   : > { %v36862_v46 = vadd.f32 %v36861_v47, %v35839_v38  ;;  %v35871_v38 = vld [vmem:[#allocation2 + $0x1ab0] sm:$0xff] }
 0xd63   : > { %v36863_v20 = vadd.f32 %v36862_v46, %v35840_v1  ;;  %v35872_v1 = vld [vmem:[#allocation2 + $0x1ab8] sm:$0xff] }
 0xd65   : > { %v36864_v45 = vadd.f32 %v36863_v20, %v35841_v32  ;;  %v35873_v32 = vld [vmem:[#allocation2 + $0x1ac0] sm:$0xff] }
 0xd67   : > { %v36865_v43 = vadd.f32 %v36864_v45, %v35842_v23  ;;  %v35874_v23 = vld [vmem:[#allocation2 + $0x1ac8] sm:$0xff] }
 0xd69   : > { %v36866_v29 = vadd.f32 %v36865_v43, %v35843_v11  ;;  %v35875_v11 = vld [vmem:[#allocation2 + $0x1ad0] sm:$0xff] }
 0xd6b   : > { %v36867_v63 = vadd.f32 %v36866_v29, %v35844_v59  ;;  %v35876_v59 = vld [vmem:[#allocation2 + $0x1ad8] sm:$0xff] }
 0xd6d   : > { %v36868_v60 = vadd.f32 %v36867_v63, %v35845_v48  ;;  %v35877_v48 = vld [vmem:[#allocation2 + $0x1ae0] sm:$0xff] }
 0xd6f   : > { %v36869_v56 = vadd.f32 %v36868_v60, %v35846_v10  ;;  %v35878_v10 = vld [vmem:[#allocation2 + $0x1ae8] sm:$0xff] }
 0xd71   : > { %v36870_v4 = vadd.f32 %v36869_v56, %v35847_v19  ;;  %v35879_v19 = vld [vmem:[#allocation2 + $0x1af0] sm:$0xff] }
 0xd73   : > { %v36871_v36 = vadd.f32 %v36870_v4, %v35848_v50  ;;  %v35880_v50 = vld [vmem:[#allocation2 + $0x1af8] sm:$0xff] }
 0xd75   : > { %v36872_v30 = vadd.f32 %v36871_v36, %v35849_v33  ;;  %v35881_v33 = vld [vmem:[#allocation2 + $0x1b00] sm:$0xff] }
 0xd77   : > { %v36873_v40 = vadd.f32 %v36872_v30, %v35850_v55  ;;  %v35882_v55 = vld [vmem:[#allocation2 + $0x1b08] sm:$0xff] }
 0xd79   : > { %v36874_v41 = vadd.f32 %v36873_v40, %v35851_v51  ;;  %v35883_v51 = vld [vmem:[#allocation2 + $0x1b10] sm:$0xff] }
 0xd7b   : > { %v36875_v12 = vadd.f32 %v36874_v41, %v35852_v37  ;;  %v35884_v37 = vld [vmem:[#allocation2 + $0x1b18] sm:$0xff] }
 0xd7d   : > { %v36876_v25 = vadd.f32 %v36875_v12, %v35853_v16  ;;  %v35885_v16 = vld [vmem:[#allocation2 + $0x1b20] sm:$0xff] }
 0xd7f   : > { %v36877_v57 = vadd.f32 %v36876_v25, %v35854_v7  ;;  %v35886_v7 = vld [vmem:[#allocation2 + $0x1b28] sm:$0xff] }
 0xd81   : > { %v36878_v24 = vadd.f32 %v36877_v57, %v35855_v18  ;;  %v35887_v18 = vld [vmem:[#allocation2 + $0x1b30] sm:$0xff] }
 0xd83   : > { %v36879_v34 = vadd.f32 %v36878_v24, %v35856_v17  ;;  %v35888_v17 = vld [vmem:[#allocation2 + $0x1b38] sm:$0xff] }
 0xd85   : > { %v36880_v13 = vadd.f32 %v36879_v34, %v35857_v21  ;;  %v35889_v21 = vld [vmem:[#allocation2 + $0x1b40] sm:$0xff] }
 0xd87   : > { %v36881_v54 = vadd.f32 %v36880_v13, %v35858_v39  ;;  %v35890_v39 = vld [vmem:[#allocation2 + $0x1b48] sm:$0xff] }
 0xd89   : > { %v36882_v58 = vadd.f32 %v36881_v54, %v35859_v31  ;;  %v35891_v31 = vld [vmem:[#allocation2 + $0x1b50] sm:$0xff] }
 0xd8b   : > { %v36883_v6 = vadd.f32 %v36882_v58, %v35860_v3  ;;  %v35892_v3 = vld [vmem:[#allocation2 + $0x1b58] sm:$0xff] }
 0xd8d   : > { %v36884_v52 = vadd.f32 %v36883_v6, %v35861_v22  ;;  %v35893_v22 = vld [vmem:[#allocation2 + $0x1b60] sm:$0xff] }
 0xd8f   : > { %v36885_v14 = vadd.f32 %v36884_v52, %v35862_v26  ;;  %v35894_v26 = vld [vmem:[#allocation2 + $0x1b68] sm:$0xff] }
 0xd91   : > { %v36886_v49 = vadd.f32 %v36885_v14, %v35863_v15  ;;  %v35895_v15 = vld [vmem:[#allocation2 + $0x1b70] sm:$0xff] }
 0xd93   : > { %v36887_v61 = vadd.f32 %v36886_v49, %v35864_v62  ;;  %v35896_v62 = vld [vmem:[#allocation2 + $0x1b78] sm:$0xff] }
 0xd95   : > { %v36888_v35 = vadd.f32 %v36887_v61, %v35865_v5  ;;  %v35897_v5 = vld [vmem:[#allocation2 + $0x1b80] sm:$0xff] }
 0xd97   : > { %v36889_v53 = vadd.f32 %v36888_v35, %v35866_v8  ;;  %v35898_v8 = vld [vmem:[#allocation2 + $0x1b88] sm:$0xff] }
 0xd99   : > { %v36890_v0 = vadd.f32 %v36889_v53, %v35867_v9  ;;  %v35899_v9 = vld [vmem:[#allocation2 + $0x1b90] sm:$0xff] }
 0xd9b   : > { %v36891_v28 = vadd.f32 %v36890_v0, %v35868_v44  ;;  %v35900_v44 = vld [vmem:[#allocation2 + $0x1b98] sm:$0xff] }
 0xd9d   : > { %v36892_v42 = vadd.f32 %v36891_v28, %v35869_v27  ;;  %v35901_v27 = vld [vmem:[#allocation2 + $0x1ba0] sm:$0xff] }
 0xd9f   : > { %v36893_v47 = vadd.f32 %v36892_v42, %v35870_v2  ;;  %v35902_v2 = vld [vmem:[#allocation2 + $0x1ba8] sm:$0xff] }
 0xda1   : > { %v36894_v46 = vadd.f32 %v36893_v47, %v35871_v38  ;;  %v35903_v38 = vld [vmem:[#allocation2 + $0x1bb0] sm:$0xff] }
 0xda3   : > { %v36895_v20 = vadd.f32 %v36894_v46, %v35872_v1  ;;  %v35904_v1 = vld [vmem:[#allocation2 + $0x1bb8] sm:$0xff] }
 0xda5   : > { %v36896_v45 = vadd.f32 %v36895_v20, %v35873_v32  ;;  %v35905_v32 = vld [vmem:[#allocation2 + $0x1bc0] sm:$0xff] }
 0xda7   : > { %v36897_v43 = vadd.f32 %v36896_v45, %v35874_v23  ;;  %v35906_v23 = vld [vmem:[#allocation2 + $0x1bc8] sm:$0xff] }
 0xda9   : > { %v36898_v29 = vadd.f32 %v36897_v43, %v35875_v11  ;;  %v35907_v11 = vld [vmem:[#allocation2 + $0x1bd0] sm:$0xff] }
 0xdab   : > { %v36899_v63 = vadd.f32 %v36898_v29, %v35876_v59  ;;  %v35908_v59 = vld [vmem:[#allocation2 + $0x1bd8] sm:$0xff] }
 0xdad   : > { %v36900_v60 = vadd.f32 %v36899_v63, %v35877_v48  ;;  %v35909_v48 = vld [vmem:[#allocation2 + $0x1be0] sm:$0xff] }
 0xdaf   : > { %v36901_v56 = vadd.f32 %v36900_v60, %v35878_v10  ;;  %v35910_v10 = vld [vmem:[#allocation2 + $0x1be8] sm:$0xff] }
 0xdb1   : > { %v36902_v4 = vadd.f32 %v36901_v56, %v35879_v19  ;;  %v35911_v19 = vld [vmem:[#allocation2 + $0x1bf0] sm:$0xff] }
 0xdb3   : > { %v36903_v36 = vadd.f32 %v36902_v4, %v35880_v50  ;;  %v35912_v50 = vld [vmem:[#allocation2 + $0x1bf8] sm:$0xff] }
 0xdb5   : > { %v36904_v30 = vadd.f32 %v36903_v36, %v35881_v33  ;;  %v35913_v33 = vld [vmem:[#allocation2 + $0x1c00] sm:$0xff] }
 0xdb7   : > { %v36905_v40 = vadd.f32 %v36904_v30, %v35882_v55  ;;  %v35914_v55 = vld [vmem:[#allocation2 + $0x1c08] sm:$0xff] }
 0xdb9   : > { %v36906_v41 = vadd.f32 %v36905_v40, %v35883_v51  ;;  %v35915_v51 = vld [vmem:[#allocation2 + $0x1c10] sm:$0xff] }
 0xdbb   : > { %v36907_v12 = vadd.f32 %v36906_v41, %v35884_v37  ;;  %v35916_v37 = vld [vmem:[#allocation2 + $0x1c18] sm:$0xff] }
 0xdbd   : > { %v36908_v25 = vadd.f32 %v36907_v12, %v35885_v16  ;;  %v35917_v16 = vld [vmem:[#allocation2 + $0x1c20] sm:$0xff] }
 0xdbf   : > { %v36909_v57 = vadd.f32 %v36908_v25, %v35886_v7  ;;  %v35918_v7 = vld [vmem:[#allocation2 + $0x1c28] sm:$0xff] }
 0xdc1   : > { %v36910_v24 = vadd.f32 %v36909_v57, %v35887_v18  ;;  %v35919_v18 = vld [vmem:[#allocation2 + $0x1c30] sm:$0xff] }
 0xdc3   : > { %v36911_v34 = vadd.f32 %v36910_v24, %v35888_v17  ;;  %v35920_v17 = vld [vmem:[#allocation2 + $0x1c38] sm:$0xff] }
 0xdc5   : > { %v36912_v13 = vadd.f32 %v36911_v34, %v35889_v21  ;;  %v35921_v21 = vld [vmem:[#allocation2 + $0x1c40] sm:$0xff] }
 0xdc7   : > { %v36913_v54 = vadd.f32 %v36912_v13, %v35890_v39  ;;  %v35922_v39 = vld [vmem:[#allocation2 + $0x1c48] sm:$0xff] }
 0xdc9   : > { %v36914_v58 = vadd.f32 %v36913_v54, %v35891_v31  ;;  %v35923_v31 = vld [vmem:[#allocation2 + $0x1c50] sm:$0xff] }
 0xdcb   : > { %v36915_v6 = vadd.f32 %v36914_v58, %v35892_v3  ;;  %v35924_v3 = vld [vmem:[#allocation2 + $0x1c58] sm:$0xff] }
 0xdcd   : > { %v36916_v52 = vadd.f32 %v36915_v6, %v35893_v22  ;;  %v35925_v22 = vld [vmem:[#allocation2 + $0x1c60] sm:$0xff] }
 0xdcf   : > { %v36917_v14 = vadd.f32 %v36916_v52, %v35894_v26  ;;  %v35926_v26 = vld [vmem:[#allocation2 + $0x1c68] sm:$0xff] }
 0xdd1   : > { %v36918_v49 = vadd.f32 %v36917_v14, %v35895_v15  ;;  %v35927_v15 = vld [vmem:[#allocation2 + $0x1c70] sm:$0xff] }
 0xdd3   : > { %v36919_v61 = vadd.f32 %v36918_v49, %v35896_v62  ;;  %v35928_v62 = vld [vmem:[#allocation2 + $0x1c78] sm:$0xff] }
 0xdd5   : > { %v36920_v35 = vadd.f32 %v36919_v61, %v35897_v5  ;;  %v35929_v5 = vld [vmem:[#allocation2 + $0x1c80] sm:$0xff] }
 0xdd7   : > { %v36921_v53 = vadd.f32 %v36920_v35, %v35898_v8  ;;  %v35930_v8 = vld [vmem:[#allocation2 + $0x1c88] sm:$0xff] }
 0xdd9   : > { %v36922_v0 = vadd.f32 %v36921_v53, %v35899_v9  ;;  %v35931_v9 = vld [vmem:[#allocation2 + $0x1c90] sm:$0xff] }
 0xddb   : > { %v36923_v28 = vadd.f32 %v36922_v0, %v35900_v44  ;;  %v35932_v44 = vld [vmem:[#allocation2 + $0x1c98] sm:$0xff] }
 0xddd   : > { %v36924_v42 = vadd.f32 %v36923_v28, %v35901_v27  ;;  %v35933_v27 = vld [vmem:[#allocation2 + $0x1ca0] sm:$0xff] }
 0xddf   : > { %v36925_v47 = vadd.f32 %v36924_v42, %v35902_v2  ;;  %v35934_v2 = vld [vmem:[#allocation2 + $0x1ca8] sm:$0xff] }
 0xde1   : > { %v36926_v46 = vadd.f32 %v36925_v47, %v35903_v38  ;;  %v35935_v38 = vld [vmem:[#allocation2 + $0x1cb0] sm:$0xff] }
 0xde3   : > { %v36927_v20 = vadd.f32 %v36926_v46, %v35904_v1  ;;  %v35936_v1 = vld [vmem:[#allocation2 + $0x1cb8] sm:$0xff] }
 0xde5   : > { %v36928_v45 = vadd.f32 %v36927_v20, %v35905_v32  ;;  %v35937_v32 = vld [vmem:[#allocation2 + $0x1cc0] sm:$0xff] }
 0xde7   : > { %v36929_v43 = vadd.f32 %v36928_v45, %v35906_v23  ;;  %v35938_v23 = vld [vmem:[#allocation2 + $0x1cc8] sm:$0xff] }
 0xde9   : > { %v36930_v29 = vadd.f32 %v36929_v43, %v35907_v11  ;;  %v35939_v11 = vld [vmem:[#allocation2 + $0x1cd0] sm:$0xff] }
 0xdeb   : > { %v36931_v63 = vadd.f32 %v36930_v29, %v35908_v59  ;;  %v35940_v59 = vld [vmem:[#allocation2 + $0x1cd8] sm:$0xff] }
 0xded   : > { %v36932_v60 = vadd.f32 %v36931_v63, %v35909_v48  ;;  %v35941_v48 = vld [vmem:[#allocation2 + $0x1ce0] sm:$0xff] }
 0xdef   : > { %v36933_v56 = vadd.f32 %v36932_v60, %v35910_v10  ;;  %v35942_v10 = vld [vmem:[#allocation2 + $0x1ce8] sm:$0xff] }
 0xdf1   : > { %v36934_v4 = vadd.f32 %v36933_v56, %v35911_v19  ;;  %v35943_v19 = vld [vmem:[#allocation2 + $0x1cf0] sm:$0xff] }
 0xdf3   : > { %v36935_v36 = vadd.f32 %v36934_v4, %v35912_v50  ;;  %v35944_v50 = vld [vmem:[#allocation2 + $0x1cf8] sm:$0xff] }
 0xdf5   : > { %v36936_v30 = vadd.f32 %v36935_v36, %v35913_v33  ;;  %v35945_v33 = vld [vmem:[#allocation2 + $0x1d00] sm:$0xff] }
 0xdf7   : > { %v36937_v40 = vadd.f32 %v36936_v30, %v35914_v55  ;;  %v35946_v55 = vld [vmem:[#allocation2 + $0x1d08] sm:$0xff] }
 0xdf9   : > { %v36938_v41 = vadd.f32 %v36937_v40, %v35915_v51  ;;  %v35947_v51 = vld [vmem:[#allocation2 + $0x1d10] sm:$0xff] }
 0xdfb   : > { %v36939_v12 = vadd.f32 %v36938_v41, %v35916_v37  ;;  %v35948_v37 = vld [vmem:[#allocation2 + $0x1d18] sm:$0xff] }
 0xdfd   : > { %v36940_v25 = vadd.f32 %v36939_v12, %v35917_v16  ;;  %v35949_v16 = vld [vmem:[#allocation2 + $0x1d20] sm:$0xff] }
 0xdff   : > { %v36941_v57 = vadd.f32 %v36940_v25, %v35918_v7  ;;  %v35950_v7 = vld [vmem:[#allocation2 + $0x1d28] sm:$0xff] }
 0xe01   : > { %v36942_v24 = vadd.f32 %v36941_v57, %v35919_v18  ;;  %v35951_v18 = vld [vmem:[#allocation2 + $0x1d30] sm:$0xff] }
 0xe03   : > { %v36943_v34 = vadd.f32 %v36942_v24, %v35920_v17  ;;  %v35952_v17 = vld [vmem:[#allocation2 + $0x1d38] sm:$0xff] }
 0xe05   : > { %v36944_v13 = vadd.f32 %v36943_v34, %v35921_v21  ;;  %v35953_v21 = vld [vmem:[#allocation2 + $0x1d40] sm:$0xff] }
 0xe07   : > { %v36945_v54 = vadd.f32 %v36944_v13, %v35922_v39  ;;  %v35954_v39 = vld [vmem:[#allocation2 + $0x1d48] sm:$0xff] }
 0xe09   : > { %v36946_v58 = vadd.f32 %v36945_v54, %v35923_v31  ;;  %v35955_v31 = vld [vmem:[#allocation2 + $0x1d50] sm:$0xff] }
 0xe0b   : > { %v36947_v6 = vadd.f32 %v36946_v58, %v35924_v3  ;;  %v35956_v3 = vld [vmem:[#allocation2 + $0x1d58] sm:$0xff] }
 0xe0d   : > { %v36948_v52 = vadd.f32 %v36947_v6, %v35925_v22  ;;  %v35957_v22 = vld [vmem:[#allocation2 + $0x1d60] sm:$0xff] }
 0xe0f   : > { %v36949_v14 = vadd.f32 %v36948_v52, %v35926_v26  ;;  %v35958_v26 = vld [vmem:[#allocation2 + $0x1d68] sm:$0xff] }
 0xe11   : > { %v36950_v49 = vadd.f32 %v36949_v14, %v35927_v15  ;;  %v35959_v15 = vld [vmem:[#allocation2 + $0x1d70] sm:$0xff] }
 0xe13   : > { %v36951_v61 = vadd.f32 %v36950_v49, %v35928_v62  ;;  %v35960_v62 = vld [vmem:[#allocation2 + $0x1d78] sm:$0xff] }
 0xe15   : > { %v36952_v35 = vadd.f32 %v36951_v61, %v35929_v5  ;;  %v35961_v5 = vld [vmem:[#allocation2 + $0x1d80] sm:$0xff] }
 0xe17   : > { %v36953_v53 = vadd.f32 %v36952_v35, %v35930_v8  ;;  %v35962_v8 = vld [vmem:[#allocation2 + $0x1d88] sm:$0xff] }
 0xe19   : > { %v36954_v0 = vadd.f32 %v36953_v53, %v35931_v9  ;;  %v35963_v9 = vld [vmem:[#allocation2 + $0x1d90] sm:$0xff] }
 0xe1b   : > { %v36955_v28 = vadd.f32 %v36954_v0, %v35932_v44  ;;  %v35964_v44 = vld [vmem:[#allocation2 + $0x1d98] sm:$0xff] }
 0xe1d   : > { %v36956_v42 = vadd.f32 %v36955_v28, %v35933_v27  ;;  %v35965_v27 = vld [vmem:[#allocation2 + $0x1da0] sm:$0xff] }
 0xe1f   : > { %v36957_v47 = vadd.f32 %v36956_v42, %v35934_v2  ;;  %v35966_v2 = vld [vmem:[#allocation2 + $0x1da8] sm:$0xff] }
 0xe21   : > { %v36958_v46 = vadd.f32 %v36957_v47, %v35935_v38  ;;  %v35967_v38 = vld [vmem:[#allocation2 + $0x1db0] sm:$0xff] }
 0xe23   : > { %v36959_v20 = vadd.f32 %v36958_v46, %v35936_v1  ;;  %v35968_v1 = vld [vmem:[#allocation2 + $0x1db8] sm:$0xff] }
 0xe25   : > { %v36960_v45 = vadd.f32 %v36959_v20, %v35937_v32  ;;  %v35969_v32 = vld [vmem:[#allocation2 + $0x1dc0] sm:$0xff] }
 0xe27   : > { %v36961_v43 = vadd.f32 %v36960_v45, %v35938_v23  ;;  %v35970_v23 = vld [vmem:[#allocation2 + $0x1dc8] sm:$0xff] }
 0xe29   : > { %v36962_v29 = vadd.f32 %v36961_v43, %v35939_v11  ;;  %v35971_v11 = vld [vmem:[#allocation2 + $0x1dd0] sm:$0xff] }
 0xe2b   : > { %v36963_v63 = vadd.f32 %v36962_v29, %v35940_v59  ;;  %v35972_v59 = vld [vmem:[#allocation2 + $0x1dd8] sm:$0xff] }
 0xe2d   : > { %v36964_v60 = vadd.f32 %v36963_v63, %v35941_v48  ;;  %v35973_v48 = vld [vmem:[#allocation2 + $0x1de0] sm:$0xff] }
 0xe2f   : > { %v36965_v56 = vadd.f32 %v36964_v60, %v35942_v10  ;;  %v35974_v10 = vld [vmem:[#allocation2 + $0x1de8] sm:$0xff] }
 0xe31   : > { %v36966_v4 = vadd.f32 %v36965_v56, %v35943_v19  ;;  %v35975_v19 = vld [vmem:[#allocation2 + $0x1df0] sm:$0xff] }
 0xe33   : > { %v36967_v36 = vadd.f32 %v36966_v4, %v35944_v50  ;;  %v35976_v50 = vld [vmem:[#allocation2 + $0x1df8] sm:$0xff] }
 0xe35   : > { %v36968_v30 = vadd.f32 %v36967_v36, %v35945_v33  ;;  %v35977_v33 = vld [vmem:[#allocation2 + $0x1e00] sm:$0xff] }
 0xe37   : > { %v36969_v40 = vadd.f32 %v36968_v30, %v35946_v55  ;;  %v35978_v55 = vld [vmem:[#allocation2 + $0x1e08] sm:$0xff] }
 0xe39   : > { %v36970_v41 = vadd.f32 %v36969_v40, %v35947_v51  ;;  %v35979_v51 = vld [vmem:[#allocation2 + $0x1e10] sm:$0xff] }
 0xe3b   : > { %v36971_v12 = vadd.f32 %v36970_v41, %v35948_v37  ;;  %v35980_v37 = vld [vmem:[#allocation2 + $0x1e18] sm:$0xff] }
 0xe3d   : > { %v36972_v25 = vadd.f32 %v36971_v12, %v35949_v16  ;;  %v35981_v16 = vld [vmem:[#allocation2 + $0x1e20] sm:$0xff] }
 0xe3f   : > { %v36973_v57 = vadd.f32 %v36972_v25, %v35950_v7  ;;  %v35982_v7 = vld [vmem:[#allocation2 + $0x1e28] sm:$0xff] }
 0xe41   : > { %v36974_v24 = vadd.f32 %v36973_v57, %v35951_v18  ;;  %v35983_v18 = vld [vmem:[#allocation2 + $0x1e30] sm:$0xff] }
 0xe43   : > { %v36975_v34 = vadd.f32 %v36974_v24, %v35952_v17  ;;  %v35984_v17 = vld [vmem:[#allocation2 + $0x1e38] sm:$0xff] }
 0xe45   : > { %v36976_v13 = vadd.f32 %v36975_v34, %v35953_v21  ;;  %v35985_v21 = vld [vmem:[#allocation2 + $0x1e40] sm:$0xff] }
 0xe47   : > { %v36977_v54 = vadd.f32 %v36976_v13, %v35954_v39  ;;  %v35986_v39 = vld [vmem:[#allocation2 + $0x1e48] sm:$0xff] }
 0xe49   : > { %v36978_v58 = vadd.f32 %v36977_v54, %v35955_v31  ;;  %v35987_v31 = vld [vmem:[#allocation2 + $0x1e50] sm:$0xff] }
 0xe4b   : > { %v36979_v6 = vadd.f32 %v36978_v58, %v35956_v3  ;;  %v35988_v3 = vld [vmem:[#allocation2 + $0x1e58] sm:$0xff] }
 0xe4d   : > { %v36980_v52 = vadd.f32 %v36979_v6, %v35957_v22  ;;  %v35989_v22 = vld [vmem:[#allocation2 + $0x1e60] sm:$0xff] }
 0xe4f   : > { %v36981_v14 = vadd.f32 %v36980_v52, %v35958_v26  ;;  %v35990_v26 = vld [vmem:[#allocation2 + $0x1e68] sm:$0xff] }
 0xe51   : > { %v36982_v49 = vadd.f32 %v36981_v14, %v35959_v15  ;;  %v35991_v15 = vld [vmem:[#allocation2 + $0x1e70] sm:$0xff] }
 0xe53   : > { %v36983_v61 = vadd.f32 %v36982_v49, %v35960_v62  ;;  %v35992_v62 = vld [vmem:[#allocation2 + $0x1e78] sm:$0xff] }
 0xe55   : > { %v36984_v35 = vadd.f32 %v36983_v61, %v35961_v5  ;;  %v35993_v5 = vld [vmem:[#allocation2 + $0x1e80] sm:$0xff] }
 0xe57   : > { %v36985_v53 = vadd.f32 %v36984_v35, %v35962_v8  ;;  %v35994_v8 = vld [vmem:[#allocation2 + $0x1e88] sm:$0xff] }
 0xe59   : > { %v36986_v0 = vadd.f32 %v36985_v53, %v35963_v9  ;;  %v35995_v9 = vld [vmem:[#allocation2 + $0x1e90] sm:$0xff] }
 0xe5b   : > { %v36987_v28 = vadd.f32 %v36986_v0, %v35964_v44  ;;  %v35996_v44 = vld [vmem:[#allocation2 + $0x1e98] sm:$0xff] }
 0xe5d   : > { %v36988_v42 = vadd.f32 %v36987_v28, %v35965_v27  ;;  %v35997_v27 = vld [vmem:[#allocation2 + $0x1ea0] sm:$0xff] }
 0xe5f   : > { %v36989_v47 = vadd.f32 %v36988_v42, %v35966_v2  ;;  %v35998_v2 = vld [vmem:[#allocation2 + $0x1ea8] sm:$0xff] }
 0xe61   : > { %v36990_v46 = vadd.f32 %v36989_v47, %v35967_v38  ;;  %v35999_v38 = vld [vmem:[#allocation2 + $0x1eb0] sm:$0xff] }
 0xe63   : > { %v36991_v20 = vadd.f32 %v36990_v46, %v35968_v1  ;;  %v36000_v1 = vld [vmem:[#allocation2 + $0x1eb8] sm:$0xff] }
 0xe65   : > { %v36992_v45 = vadd.f32 %v36991_v20, %v35969_v32  ;;  %v36001_v32 = vld [vmem:[#allocation2 + $0x1ec0] sm:$0xff] }
 0xe67   : > { %v36993_v43 = vadd.f32 %v36992_v45, %v35970_v23  ;;  %v36002_v23 = vld [vmem:[#allocation2 + $0x1ec8] sm:$0xff] }
 0xe69   : > { %v36994_v29 = vadd.f32 %v36993_v43, %v35971_v11  ;;  %v36003_v11 = vld [vmem:[#allocation2 + $0x1ed0] sm:$0xff] }
 0xe6b   : > { %v36995_v63 = vadd.f32 %v36994_v29, %v35972_v59  ;;  %v36004_v59 = vld [vmem:[#allocation2 + $0x1ed8] sm:$0xff] }
 0xe6d   : > { %v36996_v60 = vadd.f32 %v36995_v63, %v35973_v48  ;;  %v36005_v48 = vld [vmem:[#allocation2 + $0x1ee0] sm:$0xff] }
 0xe6f   : > { %v36997_v56 = vadd.f32 %v36996_v60, %v35974_v10  ;;  %v36006_v10 = vld [vmem:[#allocation2 + $0x1ee8] sm:$0xff] }
 0xe71   : > { %v36998_v4 = vadd.f32 %v36997_v56, %v35975_v19  ;;  %v36007_v19 = vld [vmem:[#allocation2 + $0x1ef0] sm:$0xff] }
 0xe73   : > { %v36999_v36 = vadd.f32 %v36998_v4, %v35976_v50  ;;  %v36008_v50 = vld [vmem:[#allocation2 + $0x1ef8] sm:$0xff] }
 0xe75   : > { %v37000_v30 = vadd.f32 %v36999_v36, %v35977_v33  ;;  %v36009_v33 = vld [vmem:[#allocation2 + $0x1f00] sm:$0xff] }
 0xe77   : > { %v37001_v40 = vadd.f32 %v37000_v30, %v35978_v55  ;;  %v36010_v55 = vld [vmem:[#allocation2 + $0x1f08] sm:$0xff] }
 0xe79   : > { %v37002_v41 = vadd.f32 %v37001_v40, %v35979_v51  ;;  %v36011_v51 = vld [vmem:[#allocation2 + $0x1f10] sm:$0xff] }
 0xe7b   : > { %v37003_v12 = vadd.f32 %v37002_v41, %v35980_v37  ;;  %v36012_v37 = vld [vmem:[#allocation2 + $0x1f18] sm:$0xff] }
 0xe7d   : > { %v37004_v25 = vadd.f32 %v37003_v12, %v35981_v16  ;;  %v36013_v16 = vld [vmem:[#allocation2 + $0x1f20] sm:$0xff] }
 0xe7f   : > { %v37005_v57 = vadd.f32 %v37004_v25, %v35982_v7  ;;  %v36014_v7 = vld [vmem:[#allocation2 + $0x1f28] sm:$0xff] }
 0xe81   : > { %v37006_v24 = vadd.f32 %v37005_v57, %v35983_v18  ;;  %v36015_v18 = vld [vmem:[#allocation2 + $0x1f30] sm:$0xff] }
 0xe83   : > { %v37007_v34 = vadd.f32 %v37006_v24, %v35984_v17  ;;  %v36016_v17 = vld [vmem:[#allocation2 + $0x1f38] sm:$0xff] }
 0xe85   : > { %v37008_v13 = vadd.f32 %v37007_v34, %v35985_v21  ;;  %v36017_v21 = vld [vmem:[#allocation2 + $0x1f40] sm:$0xff] }
 0xe87   : > { %v37009_v54 = vadd.f32 %v37008_v13, %v35986_v39  ;;  %v36018_v39 = vld [vmem:[#allocation2 + $0x1f48] sm:$0xff] }
 0xe89   : > { %v37010_v58 = vadd.f32 %v37009_v54, %v35987_v31  ;;  %v36019_v31 = vld [vmem:[#allocation2 + $0x1f50] sm:$0xff] }
 0xe8b   : > { %v37011_v6 = vadd.f32 %v37010_v58, %v35988_v3  ;;  %v36020_v3 = vld [vmem:[#allocation2 + $0x1f58] sm:$0xff] }
 0xe8d   : > { %v37012_v52 = vadd.f32 %v37011_v6, %v35989_v22  ;;  %v36021_v22 = vld [vmem:[#allocation2 + $0x1f60] sm:$0xff] }
 0xe8f   : > { %v37013_v14 = vadd.f32 %v37012_v52, %v35990_v26  ;;  %v36022_v26 = vld [vmem:[#allocation2 + $0x1f68] sm:$0xff] }
 0xe91   : > { %v37014_v49 = vadd.f32 %v37013_v14, %v35991_v15  ;;  %v36023_v15 = vld [vmem:[#allocation2 + $0x1f70] sm:$0xff] }
 0xe93   : > { %v37015_v61 = vadd.f32 %v37014_v49, %v35992_v62  ;;  %v36024_v62 = vld [vmem:[#allocation2 + $0x1f78] sm:$0xff] }
 0xe95   : > { %v37016_v35 = vadd.f32 %v37015_v61, %v35993_v5  ;;  %v36025_v5 = vld [vmem:[#allocation2 + $0x1f80] sm:$0xff] }
 0xe97   : > { %v37017_v53 = vadd.f32 %v37016_v35, %v35994_v8  ;;  %v36026_v8 = vld [vmem:[#allocation2 + $0x1f88] sm:$0xff] }
 0xe99   : > { %v37018_v0 = vadd.f32 %v37017_v53, %v35995_v9  ;;  %v36027_v9 = vld [vmem:[#allocation2 + $0x1f90] sm:$0xff] }
 0xe9b   : > { %v37019_v28 = vadd.f32 %v37018_v0, %v35996_v44  ;;  %v36028_v44 = vld [vmem:[#allocation2 + $0x1f98] sm:$0xff] }
 0xe9d   : > { %v37020_v42 = vadd.f32 %v37019_v28, %v35997_v27  ;;  %v36029_v27 = vld [vmem:[#allocation2 + $0x1fa0] sm:$0xff] }
 0xe9f   : > { %v37021_v47 = vadd.f32 %v37020_v42, %v35998_v2  ;;  %v36030_v2 = vld [vmem:[#allocation2 + $0x1fa8] sm:$0xff] }
 0xea1   : > { %v37022_v46 = vadd.f32 %v37021_v47, %v35999_v38  ;;  %v36031_v38 = vld [vmem:[#allocation2 + $0x1fb0] sm:$0xff] }
 0xea3   : > { %v37023_v20 = vadd.f32 %v37022_v46, %v36000_v1  ;;  %v36032_v1 = vld [vmem:[#allocation2 + $0x1fb8] sm:$0xff] }
 0xea5   : > { %v37024_v45 = vadd.f32 %v37023_v20, %v36001_v32  ;;  %v36033_v32 = vld [vmem:[#allocation2 + $0x1fc0] sm:$0xff] }
 0xea7   : > { %v37025_v43 = vadd.f32 %v37024_v45, %v36002_v23  ;;  %v36034_v23 = vld [vmem:[#allocation2 + $0x1fc8] sm:$0xff] }
 0xea9   : > { %v37026_v29 = vadd.f32 %v37025_v43, %v36003_v11  ;;  %v36035_v11 = vld [vmem:[#allocation2 + $0x1fd0] sm:$0xff] }
 0xeab   : > { %v37027_v63 = vadd.f32 %v37026_v29, %v36004_v59  ;;  %v36036_v59 = vld [vmem:[#allocation2 + $0x1fd8] sm:$0xff] }
 0xead   : > { %v37028_v60 = vadd.f32 %v37027_v63, %v36005_v48  ;;  %v36037_v48 = vld [vmem:[#allocation2 + $0x1fe0] sm:$0xff] }
 0xeaf   : > { %v37029_v56 = vadd.f32 %v37028_v60, %v36006_v10  ;;  %v36038_v10 = vld [vmem:[#allocation2 + $0x1fe8] sm:$0xff] }
 0xeb1   : > { %v37030_v4 = vadd.f32 %v37029_v56, %v36007_v19  ;;  %v36039_v19 = vld [vmem:[#allocation2 + $0x1ff0] sm:$0xff] }
 0xeb3   : > { %v37031_v36 = vadd.f32 %v37030_v4, %v36008_v50  ;;  %v36040_v50 = vld [vmem:[#allocation2 + $0x1ff8] sm:$0xff] }
 0xeb5   : > { %v37032_v30 = vadd.f32 %v37031_v36, %v36009_v33 }
 0xeb7   : > { %v37033_v40 = vadd.f32 %v37032_v30, %v36010_v55 }
 0xeb9   : > { %v37034_v41 = vadd.f32 %v37033_v40, %v36011_v51 }
 0xebb   : > { %v37035_v12 = vadd.f32 %v37034_v41, %v36012_v37 }
 0xebd   : > { %v37036_v25 = vadd.f32 %v37035_v12, %v36013_v16 }
 0xebf   : > { %v37037_v57 = vadd.f32 %v37036_v25, %v36014_v7 }
 0xec1   : > { %v37038_v24 = vadd.f32 %v37037_v57, %v36015_v18 }
 0xec3   : > { %v37039_v34 = vadd.f32 %v37038_v24, %v36016_v17 }
 0xec5   : > { %v37040_v13 = vadd.f32 %v37039_v34, %v36017_v21 }
 0xec7   : > { %v37041_v54 = vadd.f32 %v37040_v13, %v36018_v39 }
 0xec9   : > { %v37042_v58 = vadd.f32 %v37041_v54, %v36019_v31 }
 0xecb   : > { %v37043_v6 = vadd.f32 %v37042_v58, %v36020_v3 }
 0xecd   : > { %v37044_v52 = vadd.f32 %v37043_v6, %v36021_v22 }
 0xecf   : > { %v37045_v14 = vadd.f32 %v37044_v52, %v36022_v26 }
 0xed1   : > { %v37046_v49 = vadd.f32 %v37045_v14, %v36023_v15 }
 0xed3   : > { %v37047_v61 = vadd.f32 %v37046_v49, %v36024_v62 }
 0xed5   : > { %v37048_v35 = vadd.f32 %v37047_v61, %v36025_v5 }
 0xed7   : > { %v37049_v53 = vadd.f32 %v37048_v35, %v36026_v8 }
 0xed9   : > { %v37050_v0 = vadd.f32 %v37049_v53, %v36027_v9 }
 0xedb   : > { %v37051_v28 = vadd.f32 %v37050_v0, %v36028_v44 }
 0xedd   : > { %v37052_v42 = vadd.f32 %v37051_v28, %v36029_v27 }
 0xedf   : > { %v37053_v47 = vadd.f32 %v37052_v42, %v36030_v2 }
 0xee1   : > { %v37054_v46 = vadd.f32 %v37053_v47, %v36031_v38 }
 0xee3   : > { %v37055_v20 = vadd.f32 %v37054_v46, %v36032_v1 }
 0xee5   : > { %v37056_v45 = vadd.f32 %v37055_v20, %v36033_v32 }
 0xee7   : > { %v37057_v43 = vadd.f32 %v37056_v45, %v36034_v23 }
 0xee9   : > { %v37058_v29 = vadd.f32 %v37057_v43, %v36035_v11 }
 0xeeb   : > { %v37059_v63 = vadd.f32 %v37058_v29, %v36036_v59 }
 0xeed   : > { %v37060_v60 = vadd.f32 %v37059_v63, %v36037_v48 }
 0xeef   : > { %v37061_v56 = vadd.f32 %v37060_v60, %v36038_v10 }
 0xef1   : > { %v37062_v4 = vadd.f32 %v37061_v56, %v36039_v19 }
 0xef3   : > { %v37063_v33 = vadd.f32 %v37062_v4, %v36040_v50 }
 0xef5   : > { %37064 = vadd.xlane.f32.xlu0 %v37063_v33 }
 0xef6   : > { %37770 = shalt.err (!%p37767_p7)
}
 0xef7   : > { %s37771_s3 = scalar_lea.hbm %s44083_s0, 16  ;;  %s37775_s24 = scalar_lea.hbm %s44167_s5, 64 }
 0xef8   : > { %p37772_p0 = scmp.ne.s32.totalorder %s44083_s0, %s37771_s3  ;;  %p37776_p3 = scmp.lt.u32.totalorder %s44083_s0, %s44167_s5 }
 0xef9   : > { %p37777_p9 = scmp.lt.u32.totalorder %s37775_s24, %s37771_s3  ;;  %p37779_p4 = scmp.lt.u32.totalorder %s37771_s3, %s44083_s0 }
 0xefa   : > { %p37773_p5 = pnand %p37772_p0, %p45758_p12 }
 0xefb   : > { %p37778_p1 = por %p37777_p9, %p37776_p3 }
 0xefc   : > { %p37774_p2 = pneg %p37773_p5 }
 0xefd   : > { %p37780_p6 = por %p37779_p4, %p37778_p1 }
 0xeff   : > { %p37781_p11 = pnand %p37780_p6, %p37774_p2 }
 0xf01   : > { %37784 = shalt.err (!%p37781_p11)
}
 0xf02   : > { %37298 = dma.vmem_to_hbm [thread:$0]  (%p45758_p12), %s37106_s16, 16, %s44083_s0, %s37080_s26  }
 0xf03   : > { %s37092_s25 = sshll.u32 %s338_s15, 4  ;;  %s44112_s17 = scalar_lea.hbm %s44166_s4, %s37274_s12  ;;  %s44114_s25 = int_to_ptr.vmem [resolvable:$true] %s37092_s25 }
 0xf04   : > { %s37076_s0 = scalar_lea.sflag [#allocation5], %s38153_s14  ;;  %s37785_s16 = scalar_lea.vmem %s44114_s25, 16 }
 0xf05   : > { %p37786_p13 = scmp.ne.s32.totalorder %s44114_s25, %s37785_s16  ;;  %s37894_s21 = smov [#allocation11]  }
 0xf06   : > { %s37789_s26 = sshll.u32 %s37894_s21, 4  ;;  %s37790_s26 = int_to_ptr.vmem [resolvable:$false] %s37789_s26 }
 0xf07   : > { %p37787_p8 = pnand %p37786_p13, %p45758_p12  ;;  %s37791_s12 = scalar_lea.vmem %s37790_s26, 32 }
 0xf08   : > { %p37792_p7 = scmp.lt.s32.totalorder %s44114_s25, %s37790_s26  ;;  %p37793_p0 = scmp.lt.s32.totalorder %s37791_s12, %s37785_s16 }
 0xf09   : > { %p37788_p10 = pneg %p37787_p8 }
 0xf0a   : > { %p37794_p5 = por %p37793_p0, %p37792_p7 }
 0xf0c   : > { %p37795_p2 = pnand %p37794_p5, %p37788_p10 }
 0xf82   : > { %v37065_v36 = vpop.xlane.xlu0 %37064 }
 0xf83   : > { %v37066_v55 = vrot.slane %v37065_v36, 4 }
 0xf85   : > { %v37067_v30 = vadd.f32 %v37066_v55, %v37065_v36 }
 0xf87   : > { %v37068_v51 = vrot.slane %v37067_v30, 2 }
 0xf89   : > { %v37069_v40 = vadd.f32 %v37068_v51, %v37067_v30 }
 0xf8b   : > { %v37070_v37 = vrot.slane %v37069_v40, 1 }
 0xf8d   : > { %v37071_v41 = vadd.f32 %v37070_v37, %v37069_v40 }
 0xf8f   : > { %37283 = vpush %v37071_v41 }
 0xfc0   : > { %s37284_s27 = spop %37283 }
 0xfc1   : > { %v37073_v16 = vstv %s37284_s27 }
 0xfc2   : > { %37074 = vst [vmem:[%s338_s15] sm:$0x1] %v37073_v16 }
 0xfc3   : > { %37798 = shalt.err (!%p37795_p2)
}
 0xfc4   : > { %s37799_s14 = scalar_lea.hbm %s44112_s17, 16  ;;  %s37803_s13 = scalar_lea.hbm %s44166_s4, 64 }
 0xfc5   : > { %p37800_p3 = scmp.ne.s32.totalorder %s44112_s17, %s37799_s14  ;;  %p37804_p4 = scmp.lt.u32.totalorder %s44112_s17, %s44166_s4 }
 0xfc6   : > { %p37805_p6 = scmp.lt.u32.totalorder %s37803_s13, %s37799_s14  ;;  %p37807_p13 = scmp.lt.u32.totalorder %s37799_s14, %s44112_s17 }
 0xfc7   : > { %p37801_p9 = pnand %p37800_p3, %p45758_p12 }
 0xfc8   : > { %p37806_p11 = por %p37805_p6, %p37804_p4 }
 0xfc9   : > { %p37802_p1 = pneg %p37801_p9 }
 0xfca   : > { %p37808_p8 = por %p37807_p13, %p37806_p11 }
 0xfcc   : > { %p37809_p10 = pnand %p37808_p8, %p37802_p1 }
 0xfce   : > { %37812 = shalt.err (!%p37809_p10)
}
 0xfcf   : > { %37297 = dma.vmem_to_hbm [thread:$0]  (%p45758_p12), %s44114_s25, 16, %s44112_s17, %s37076_s0  }
 0xfd0 PF: > { %p37327_p7 = scmp.ge.s32.totalorder %s37883_s23, 2  ;;  %s37117_s9 = sand.u32 1, %s37863_s18  }
 0xfd1   : > { %p45759_p0 = scmp.ne.s32.totalorder %s44584_s30, 0  ;;  %s37118_s24 = scalar_lea.sflag [#allocation5], %s37117_s9 }
 0xfd3   : > { %p37316_p5 = pnand %p37327_p7, %p45759_p0 }
 0xfd5   : > { %37854 = dma.done.wait (!%p37316_p5), %s37118_s24, 16  }
 0xfd6   : > { %37856 = vsyncadd (!%p37316_p5), %s37118_s24, 4294967280  ;;  %s37126_s28 = scalar_lea.sflag [#allocation13], %s37117_s9 }
 0xfd7   : > { %37858 = dma.done.wait (!%p37316_p5), %s37126_s28, 16  }
 0xfd8   : > { %37860 = vsyncadd (!%p37316_p5), %s37126_s28, 4294967280  ;;  %s29_s23 = sadd.s32 1, %s37883_s23   ;;  %s45760_s29 = sld [smem:[#allocation20_spill]] }
 0xfd9   : > { %p26_p2 = scmp.ge.s32.totalorder %s29_s23, 6   ;;  %s45761_s18 = smov %s37867_s19 }
 0xfda   : > { %s45762_s19 = smov %s37871_s20  ;;  %s45763_s20 = smov %s38077_s10 }
 0xfdb   : > { %s45764_s21 = smov %s37879_s22  ;;  %28 = sbr.rel (!%p26_p2) target bundleno = 15 (0xf), region = 141 }
 0xfde   : > { %s45765_s22 = smov %s45760_s29 }
 0xfe2   :  { %37130 = vsyncpa [#allocation4], 1 }
 0xfe3   :  { %37132 = vsyncpa [#allocation4 + $0x1], 1 }
 0xfe4   :  { %37133 = vsyncpa [#allocation7], 1 }
 0xfe5   :  { %37135 = vsyncpa [#allocation7 + $0x1], 1 }
 0xfe6   :  { %37136 = vsyncpa [#allocation10], 1 }
 0xfe7   :  { %37137 = vsyncpa [#allocation5], 1 }
 0xfe8   :  { %37139 = vsyncpa [#allocation5 + $0x1], 1 }
 0xfe9   :  { %37140 = vsyncpa [#allocation13], 1 }
 0xfea   :  { %37142 = vsyncpa [#allocation13 + $0x1], 1 }

</bundles_post_ra>
